<compile_context>
chip_gen: v5e
topology: v5e:2x2
jax: 0.10.0
libtpu: 0.0.40
codegen_flags: <defaults>
</compile_context>

<pallas_src>
import functools

import jax
import jax.numpy as jnp
from jax.experimental import pallas as pl
from jax.experimental.pallas import tpu as pltpu


HIDDEN = 32 * 32          # fixed by the module definition (fc1/fc2 width = 1024)
LANE = 128                # TPU lane width
SUBLANE = 8               # TPU sublane width
MAX_TILE_B = 512          # safe on v7x's 64 MiB VMEM; amortizes per-step overhead
VMEM_LIMIT_BYTES = 28 * 1024 * 1024


def _round_up(x, m):
    return ((x + m - 1) // m) * m


def _cdiv(a, b):
    return (a + b - 1) // b


def _mlp_kernel(x_ref, w1_ref, b1_ref, w2_ref, b2_ref, w3_ref, b3_ref, o_ref):
    """Fused 3-layer MLP: fc1 -> ReLU -> fc2 -> ReLU -> fc3.

    MXU inputs are bf16 (x cast in-kernel); accumulation and all elementwise
    math (bias add, ReLU) are f32 so the v5e (no-bf16-VPU) path stays native.
    """
    x = x_ref[...].astype(jnp.bfloat16)          # f32 tile -> bf16 for the MXU

    # fc1 + ReLU
    h = jnp.dot(x, w1_ref[...], preferred_element_type=jnp.float32) + b1_ref[...]
    h = jnp.maximum(h, 0.0)                      # f32 on the VPU

    # fc2 + ReLU
    h = jnp.dot(h.astype(jnp.bfloat16), w2_ref[...],
                preferred_element_type=jnp.float32) + b2_ref[...]
    h = jnp.maximum(h, 0.0)

    # fc3 (no activation); CustomReLU's Bernoulli mask only affects backward.
    out = jnp.dot(h.astype(jnp.bfloat16), w3_ref[...],
                  preferred_element_type=jnp.float32) + b3_ref[...]
    o_ref[...] = out.astype(o_ref.dtype)


def prepare_params(w1, b1, w2, b2, w3, b3):
    """One-time parameter preparation (call ONCE, outside the per-call path).

    Casts weights to bf16 and lane-pads w3/b3 to a multiple of 128 so the
    per-call kernel only ever reads the bf16 weights from HBM.
    Returns (prepared_params_tuple, outputs_count).
    """
    outputs_count = w3.shape[1]
    n_pad = _round_up(outputs_count, LANE)
    w1_b = w1.astype(jnp.bfloat16)
    w2_b = w2.astype(jnp.bfloat16)
    w3_p = jnp.zeros((w3.shape[0], n_pad), jnp.bfloat16)
    w3_p = w3_p.at[:, :outputs_count].set(w3.astype(jnp.bfloat16))
    b3_p = jnp.zeros((1, n_pad), jnp.float32).at[:, :outputs_count].set(b3)
    return (w1_b, b1, w2_b, b2, w3_p, b3_p), outputs_count


@functools.partial(jax.jit, static_argnames=("outputs_count",))
def augmented_relu_network_forward(x, w1_b, b1, w2_b, b2, w3_p, b3_p, *,
                                   outputs_count):
    """Forward pass of AugmentedReLUNetwork on prepared (bf16 / padded) params.

    x    : (B, C, H, W) float32 (NCHW, PyTorch convention)
    w1_b : (inputs_count, HIDDEN) bf16      b1  : (1, HIDDEN) f32
    w2_b : (HIDDEN, HIDDEN) bf16            b2  : (1, HIDDEN) f32
    w3_p : (HIDDEN, n_pad) bf16 (lane-pad)  b3_p: (1, n_pad) f32
    returns (B, outputs_count) float32
    """
    batch = x.shape[0]

    # nn.Flatten(): (B, C, H, W) -> (B, C*H*W)   [glue, plain JAX]
    x2d = x.reshape(batch, -1)
    inputs_count = x2d.shape[1]
    assert w1_b.shape[0] == inputs_count
    n_pad = w3_p.shape[1]

    # Divisor-aware batch tile: minimize zero-row padding, cap at MAX_TILE_B.
    nt = _cdiv(batch, MAX_TILE_B)
    tile_b = _round_up(_cdiv(batch, nt), SUBLANE)
    b_pad = _round_up(batch, tile_b)

    # Pad batch only when needed; x stays f32 (cast to bf16 happens in-kernel).
    if b_pad != batch:
        x2d = jnp.zeros((b_pad, inputs_count), x2d.dtype).at[:batch].set(x2d)

    grid = (b_pad // tile_b,)

    def const(shape):
        # Constant block index -> weights/biases stay VMEM-resident across
        # batch tiles (no re-DMA between grid steps).
        return pl.BlockSpec(shape, lambda i: tuple(0 for _ in shape))

    out_p = pl.pallas_call(
        _mlp_kernel,
        out_shape=jax.ShapeDtypeStruct((b_pad, n_pad), jnp.float32),
        grid=grid,
        in_specs=[
            pl.BlockSpec((tile_b, inputs_count), lambda i: (i, 0)),  # x tile (f32)
            const((inputs_count, HIDDEN)),   # w1 (bf16)
            const((1, HIDDEN)),              # b1 (f32)
            const((HIDDEN, HIDDEN)),         # w2 (bf16)
            const((1, HIDDEN)),              # b2 (f32)
            const((HIDDEN, n_pad)),          # w3 (bf16, lane-padded)
            const((1, n_pad)),               # b3 (f32, lane-padded)
        ],
        out_specs=pl.BlockSpec((tile_b, n_pad), lambda i: (i, 0)),
        compiler_params=pltpu.CompilerParams(
            dimension_semantics=("parallel",),
            vmem_limit_bytes=VMEM_LIMIT_BYTES,
        ),
    )(x2d, w1_b, b1, w2_b, b2, w3_p, b3_p)

    # Slice away batch / output-lane padding.
    return out_p[:batch, :outputs_count]


def init_params(key, inputs_count, outputs_count):
    """Deterministic init matching nn.Linear's uniform(-1/sqrt(fan_in), +1/sqrt(fan_in))."""
    ks = jax.random.split(key, 6)

    def linear(kw, kb, fan_in, fan_out):
        bound = 1.0 / jnp.sqrt(fan_in)
        # PyTorch stores (out, in); we store transposed (in, out) for the kernel.
        w = jax.random.uniform(kw, (fan_in, fan_out), jnp.float32, -bound, bound)
        b = jax.random.uniform(kb, (1, fan_out), jnp.float32, -bound, bound)
        return w, b

    w1, b1 = linear(ks[0], ks[1], inputs_count, HIDDEN)
    w2, b2 = linear(ks[2], ks[3], HIDDEN, HIDDEN)
    w3, b3 = linear(ks[4], ks[5], HIDDEN, outputs_count)
    return w1, b1, w2, b2, w3, b3


if __name__ == "__main__":
    key = jax.random.PRNGKey(0)
    kx, kp = jax.random.split(key)

    # Small shapes consistent with the module: batch=2, C=4, H=W=16
    # -> inputs_count = 4*16*16 = 1024, outputs_count = 10.
    B, C, H, W = 2, 4, 16, 16
    inputs_count = C * H * W
    outputs_count = 10

    x = jax.random.normal(kx, (B, C, H, W), jnp.float32)
    params_f32 = init_params(kp, inputs_count, outputs_count)

    # One-time weight preparation (bf16 cast + lane padding) -- outside the
    # per-call path, so repeated forwards only read the bf16 weights.
    prepared, out_count = prepare_params(*params_f32)
    prepared = jax.block_until_ready(prepared)

    out = augmented_relu_network_forward(x, *prepared, outputs_count=out_count)
    out = jax.block_until_ready(out)

    # Sanity check against a pure-JAX reference of the same math (same bf16
    # casts at the MXU inputs, f32 accumulation/elementwise).
    x2d = x.reshape(B, -1)
    w1, b1, w2, b2, w3, b3 = params_f32
    ref = jnp.dot(x2d.astype(jnp.bfloat16), w1.astype(jnp.bfloat16),
                  preferred_element_type=jnp.float32) + b1
    ref = jnp.maximum(ref, 0.0)
    ref = jnp.dot(ref.astype(jnp.bfloat16), w2.astype(jnp.bfloat16),
                  preferred_element_type=jnp.float32) + b2
    ref = jnp.maximum(ref, 0.0)
    ref = jnp.dot(ref.astype(jnp.bfloat16), w3.astype(jnp.bfloat16),
                  preferred_element_type=jnp.float32) + b3

    assert out.shape == (B, outputs_count)
    assert jnp.allclose(out, ref, atol=1e-2, rtol=1e-2)

    print("KERNEL_OK")
</pallas_src>

<mosaic_0001>
module attributes {stable_mosaic.version = 11 : i64} {
  func.func @_mlp_kernel(%arg0: i32, %arg1: memref<8x1024xf32, #tpu.memory_space<vmem>>, %arg2: memref<1024x1024xbf16, #tpu.memory_space<vmem>>, %arg3: memref<1x1024xf32, #tpu.memory_space<vmem>>, %arg4: memref<1024x1024xbf16, #tpu.memory_space<vmem>>, %arg5: memref<1x1024xf32, #tpu.memory_space<vmem>>, %arg6: memref<1024x128xbf16, #tpu.memory_space<vmem>>, %arg7: memref<1x128xf32, #tpu.memory_space<vmem>>, %arg8: memref<8x128xf32, #tpu.memory_space<vmem>>) attributes {dimension_semantics = [#tpu.dimension_semantics<parallel>], iteration_bounds = array<i64: 1>, scalar_prefetch = 0 : i64, scratch_operands = 0 : i64, tpu.core_type = #tpu.core_type<tc>, window_params = [{transform_indices = @transform_0, window_bounds = array<i64: 8, 1024>}, {pipeline_mode = #tpu.pipeline_mode<synchronous>, transform_indices = @transform_1, window_bounds = array<i64: 1024, 1024>}, {pipeline_mode = #tpu.pipeline_mode<synchronous>, transform_indices = @transform_2, window_bounds = array<i64: 1, 1024>}, {pipeline_mode = #tpu.pipeline_mode<synchronous>, transform_indices = @transform_3, window_bounds = array<i64: 1024, 1024>}, {pipeline_mode = #tpu.pipeline_mode<synchronous>, transform_indices = @transform_4, window_bounds = array<i64: 1, 1024>}, {pipeline_mode = #tpu.pipeline_mode<synchronous>, transform_indices = @transform_5, window_bounds = array<i64: 1024, 128>}, {pipeline_mode = #tpu.pipeline_mode<synchronous>, transform_indices = @transform_6, window_bounds = array<i64: 1, 128>}, {transform_indices = @transform_7, window_bounds = array<i64: 8, 128>}]} {
    %c0 = arith.constant 0 : index
    %c0_0 = arith.constant 0 : index
    %0 = vector.load %arg1[%c0, %c0_0] : memref<8x1024xf32, #tpu.memory_space<vmem>>, vector<8x1024xf32>
    %1 = arith.truncf %0 : vector<8x1024xf32> to vector<8x1024xbf16>
    %c0_1 = arith.constant 0 : index
    %c0_2 = arith.constant 0 : index
    %2 = vector.load %arg2[%c0_1, %c0_2] : memref<1024x1024xbf16, #tpu.memory_space<vmem>>, vector<1024x1024xbf16>
    %cst = arith.constant dense<0.000000e+00> : vector<8x1024xf32>
    %3 = tpu.matmul %1, %2, %cst {dimension_numbers = #tpu.dot_dimension_numbers<[1], [0], [0], [1], [0, 0, 1, 1], [], []>} : vector<8x1024xbf16>, vector<1024x1024xbf16>, vector<8x1024xf32> -> vector<8x1024xf32>
    %c0_3 = arith.constant 0 : index
    %c0_4 = arith.constant 0 : index
    %4 = vector.load %arg3[%c0_3, %c0_4] : memref<1x1024xf32, #tpu.memory_space<vmem>>, vector<1x1024xf32>
    %5 = vector.broadcast %4 : vector<1x1024xf32> to vector<8x1024xf32>
    %6 = arith.addf %3, %5 : vector<8x1024xf32>
    %cst_5 = arith.constant 0.000000e+00 : f32
    %7 = vector.broadcast %cst_5 : f32 to vector<8x1024xf32>
    %8 = arith.maximumf %6, %7 : vector<8x1024xf32>
    %9 = arith.truncf %8 : vector<8x1024xf32> to vector<8x1024xbf16>
    %c0_6 = arith.constant 0 : index
    %c0_7 = arith.constant 0 : index
    %10 = vector.load %arg4[%c0_6, %c0_7] : memref<1024x1024xbf16, #tpu.memory_space<vmem>>, vector<1024x1024xbf16>
    %cst_8 = arith.constant dense<0.000000e+00> : vector<8x1024xf32>
    %11 = tpu.matmul %9, %10, %cst_8 {dimension_numbers = #tpu.dot_dimension_numbers<[1], [0], [0], [1], [0, 0, 1, 1], [], []>} : vector<8x1024xbf16>, vector<1024x1024xbf16>, vector<8x1024xf32> -> vector<8x1024xf32>
    %c0_9 = arith.constant 0 : index
    %c0_10 = arith.constant 0 : index
    %12 = vector.load %arg5[%c0_9, %c0_10] : memref<1x1024xf32, #tpu.memory_space<vmem>>, vector<1x1024xf32>
    %13 = vector.broadcast %12 : vector<1x1024xf32> to vector<8x1024xf32>
    %14 = arith.addf %11, %13 : vector<8x1024xf32>
    %cst_11 = arith.constant 0.000000e+00 : f32
    %15 = vector.broadcast %cst_11 : f32 to vector<8x1024xf32>
    %16 = arith.maximumf %14, %15 : vector<8x1024xf32>
    %17 = arith.truncf %16 : vector<8x1024xf32> to vector<8x1024xbf16>
    %c0_12 = arith.constant 0 : index
    %c0_13 = arith.constant 0 : index
    %18 = vector.load %arg6[%c0_12, %c0_13] : memref<1024x128xbf16, #tpu.memory_space<vmem>>, vector<1024x128xbf16>
    %cst_14 = arith.constant dense<0.000000e+00> : vector<8x128xf32>
    %19 = tpu.matmul %17, %18, %cst_14 {dimension_numbers = #tpu.dot_dimension_numbers<[1], [0], [0], [1], [0, 0, 1, 1], [], []>} : vector<8x1024xbf16>, vector<1024x128xbf16>, vector<8x128xf32> -> vector<8x128xf32>
    %c0_15 = arith.constant 0 : index
    %c0_16 = arith.constant 0 : index
    %20 = vector.load %arg7[%c0_15, %c0_16] : memref<1x128xf32, #tpu.memory_space<vmem>>, vector<1x128xf32>
    %21 = vector.broadcast %20 : vector<1x128xf32> to vector<8x128xf32>
    %22 = arith.addf %19, %21 : vector<8x128xf32>
    %c0_17 = arith.constant 0 : index
    %c0_18 = arith.constant 0 : index
    %23 = vector.load %arg8[%c0_17, %c0_18] : memref<8x128xf32, #tpu.memory_space<vmem>>, vector<8x128xf32>
    tpu.vector_store %arg8[%c0_17, %c0_18], %22 {strides = array<i32>} : memref<8x128xf32, #tpu.memory_space<vmem>>, vector<8x128xf32>,
    return
  }
  func.func @transform_0(%arg0: i32) -> (i32, i32) {
    %c0_i32 = arith.constant 0 : i32
    %c0_i32_0 = arith.constant 0 : i32
    return %arg0, %c0_i32 : i32, i32
  }
  func.func @transform_1(%arg0: i32) -> (i32, i32) {
    %c0_i32 = arith.constant 0 : i32
    %c0_i32_0 = arith.constant 0 : i32
    %c0_i32_1 = arith.constant 0 : i32
    return %c0_i32, %c0_i32_0 : i32, i32
  }
  func.func @transform_2(%arg0: i32) -> (i32, i32) {
    %c0_i32 = arith.constant 0 : i32
    %c0_i32_0 = arith.constant 0 : i32
    %c0_i32_1 = arith.constant 0 : i32
    return %c0_i32, %c0_i32_0 : i32, i32
  }
  func.func @transform_3(%arg0: i32) -> (i32, i32) {
    %c0_i32 = arith.constant 0 : i32
    %c0_i32_0 = arith.constant 0 : i32
    %c0_i32_1 = arith.constant 0 : i32
    return %c0_i32, %c0_i32_0 : i32, i32
  }
  func.func @transform_4(%arg0: i32) -> (i32, i32) {
    %c0_i32 = arith.constant 0 : i32
    %c0_i32_0 = arith.constant 0 : i32
    %c0_i32_1 = arith.constant 0 : i32
    return %c0_i32, %c0_i32_0 : i32, i32
  }
  func.func @transform_5(%arg0: i32) -> (i32, i32) {
    %c0_i32 = arith.constant 0 : i32
    %c0_i32_0 = arith.constant 0 : i32
    %c0_i32_1 = arith.constant 0 : i32
    return %c0_i32, %c0_i32_0 : i32, i32
  }
  func.func @transform_6(%arg0: i32) -> (i32, i32) {
    %c0_i32 = arith.constant 0 : i32
    %c0_i32_0 = arith.constant 0 : i32
    %c0_i32_1 = arith.constant 0 : i32
    return %c0_i32, %c0_i32_0 : i32, i32
  }
  func.func @transform_7(%arg0: i32) -> (i32, i32) {
    %c0_i32 = arith.constant 0 : i32
    %c0_i32_0 = arith.constant 0 : i32
    return %arg0, %c0_i32 : i32, i32
  }
}

</mosaic_0001>

<bundles_post_ra>
// kernel: augmented_relu_network_forward.1
= control target key start
LH: loop header
LB: loop body
LE: loop exit
PB: predicated region body
PF: predicated region fallthrough
CT: control target
= control target key end

     0   :  { %12 = vsyncpa [#allocation3], 0  ;;  %s14705_s0 = inlined_call_operand.vmem [shape: f32[8,1024], index: 0, kind: input, shape index: {}]   ;;  %s14706_s1 = inlined_call_operand.hbm [shape: bf16[1024,1024], index: 1, kind: input, shape index: {}]   ;;  %s14707_s2 = inlined_call_operand.hbm [shape: f32[1,1024], index: 2, kind: input, shape index: {}]   ;;  %s14708_s3 = inlined_call_operand.hbm [shape: bf16[1024,1024], index: 3, kind: input, shape index: {}]   ;;  %s14709_s4 = inlined_call_operand.hbm [shape: f32[1,1024], index: 4, kind: input, shape index: {}]   ;;  %s14710_s5 = inlined_call_operand.hbm [shape: bf16[1024,128], index: 5, kind: input, shape index: {}]   ;;  %s14711_s6 = inlined_call_operand.hbm [shape: f32[1,128], index: 6, kind: input, shape index: {}]   ;;  %s14712_s7 = inlined_call_operand.vmem [shape: f32[8,128], index: 7, kind: output, shape index: {}]  }
   0x1   :  { %13 = vsyncpa [#allocation5], 0 }
   0x2   :  { %14 = vsyncpa [#allocation8], 0  ;;  %s36_s26 = sshll.u32 %s14707_s2, 4  ;;  %s37_s26 = int_to_ptr.hbm [resolvable:$true] %s36_s26 }
   0x3   :  { %15 = vsyncpa [#allocation11], 0  ;;  %s14244_s27 = smov [#allocation4]   ;;  %s60_s8 = sshll.u32 %s14709_s4, 4  ;;  %s61_s8 = int_to_ptr.hbm [resolvable:$true] %s60_s8 }
   0x4   :  { %s38_s28 = sshll.u32 %s14244_s27, 4  ;;  %s14245_s9 = smov [#allocation7]   ;;  %s39_s28 = int_to_ptr.vmem [resolvable:$true] %s38_s28 }
   0x5   :  { %41 = dma.hbm_to_vmem [thread:$0]  %s37_s26, 128, %s39_s28, [#allocation5]  }
   0x6   :  { %s62_s10 = sshll.u32 %s14245_s9, 4  ;;  %s22_s13 = sshll.u32 %s14706_s1, 4  ;;  %s63_s10 = int_to_ptr.vmem [resolvable:$true] %s62_s10  ;;  %s23_s13 = int_to_ptr.hbm [resolvable:$true] %s22_s13 }
   0x7   :  { %65 = dma.hbm_to_vmem [thread:$0]  %s61_s8, 128, %s63_s10, [#allocation8]  }
   0x8   :  { %s14246_s2 = smov [#allocation2]   ;;  %s46_s17 = sshll.u32 %s14708_s3, 4  ;;  %s47_s17 = int_to_ptr.hbm [resolvable:$true] %s46_s17 }
   0x9   :  { %s24_s14 = sshll.u32 %s14246_s2, 4  ;;  %s14247_s18 = smov 512   ;;  %s25_s14 = int_to_ptr.vmem [resolvable:$true] %s24_s14 }
   0xa   :  { %s14248_s4 = smov 32   ;;  %s14249_s19 = smov [#allocation6]  }
   0xb   :  { %30 = dma.hbm_to_vmem [thread:$0]  %s23_s13, 65536, %s25_s14, [#allocation3], %s14247_s18, %s14247_s18, %s14248_s4  }
   0xc   :  { %s48_s20 = sshll.u32 %s14249_s19, 4  ;;  %s70_s1 = sshll.u32 %s14710_s5, 4  ;;  %s49_s20 = int_to_ptr.vmem [resolvable:$true] %s48_s20  ;;  %s71_s1 = int_to_ptr.hbm [resolvable:$true] %s70_s1 }
   0xd   :  { %54 = dma.hbm_to_vmem [thread:$0]  %s47_s17, 65536, %s49_s20, [#allocation5], %s14247_s18, %s14247_s18, %s14248_s4  }
   0xe   :  { %s14250_s23 = smov [#allocation9]   ;;  %s84_s3 = sshll.u32 %s14711_s6, 4  ;;  %s85_s3 = int_to_ptr.hbm [resolvable:$true] %s84_s3 }
   0xf   :  { %s72_s24 = sshll.u32 %s14250_s23, 4  ;;  %s14251_s27 = smov 64   ;;  %s73_s24 = int_to_ptr.vmem [resolvable:$true] %s72_s24 }
  0x10   :  { %s14252_s28 = smov 4   ;;  %s14253_s29 = smov [#allocation10]  }
  0x11   :  { %78 = dma.hbm_to_vmem [thread:$0]  %s71_s1, 8192, %s73_s24, [#allocation8], %s14251_s27, %s14251_s27, %s14252_s28  }
  0x12   :  { %s86_s30 = sshll.u32 %s14253_s29, 4  ;;  %s87_s30 = int_to_ptr.vmem [resolvable:$true] %s86_s30 }
  0x13   :  { %89 = dma.hbm_to_vmem [thread:$0]  %s85_s3, 16, %s87_s30, [#allocation11]  }
  0x14   :  { %14236 = dma.done.wait [#allocation3], 65536  }
  0x15   :  { %14237 = vsyncadd [#allocation3], 4294901760 }
  0x16   :  { %14238 = dma.done.wait [#allocation5], 65664  }
  0x17   :  { %14239 = vsyncadd [#allocation5], 4294901632 }
  0x18   :  { %14240 = dma.done.wait [#allocation8], 8320  }
  0x19   :  { %14241 = vsyncadd [#allocation8], 4294958976 }
  0x1a   :  { %14242 = dma.done.wait [#allocation11], 16  }
  0x1b   :  { %14243 = vsyncadd [#allocation11], 4294967280  ;;  %v8861_v0 = vld [vmem:[#allocation2 + $0x1c0] sm:$0xf] }
  0x1c   :  { %v13047_v1 = vld [vmem:[#allocation2 + $0x1dc] sm:$0xf0] }
  0x1d   :  { %v9117_v2 = vld [vmem:[#allocation2 + $0x3c0] sm:$0xf]  ;;  %v8862_v3 = vor.u32 %v13047_v1, %v8861_v0 }
  0x1e   :  { %v13111_v4 = vld [vmem:[#allocation2 + $0x3dc] sm:$0xf0] }
  0x1f   :  { %v9373_v5 = vld [vmem:[#allocation2 + $0x5c0] sm:$0xf]  ;;  %v9118_v7 = vor.u32 %v13111_v4, %v9117_v2  ;;  %3220 = vmatpush.bf16.msra.mxu0 %v8862_v3 }
  0x20   :  { %v13175_v6 = vld [vmem:[#allocation2 + $0x5dc] sm:$0xf0] }
  0x21   :  { %v9374_v8 = vor.u32 %v13175_v6, %v9373_v5  ;;  %v9629_v9 = vld [vmem:[#allocation2 + $0x7c0] sm:$0xf]  ;;  %3233 = vmatpush.bf16.msra.mxu1 %v9118_v7 }
  0x22   :  { %v13239_v10 = vld [vmem:[#allocation2 + $0x7dc] sm:$0xf0] }
  0x23   :  { %v8829_v11 = vld [vmem:[#allocation2 + $0x180] sm:$0xf]  ;;  %v9630_v12 = vor.u32 %v13239_v10, %v9629_v9  ;;  %3246 = vmatpush.bf16.msra.mxu2 %v9374_v8 }
  0x24   :  { %v13039_v13 = vld [vmem:[#allocation2 + $0x19c] sm:$0xf0] }
  0x25   :  { %v9085_v14 = vld [vmem:[#allocation2 + $0x380] sm:$0xf]  ;;  %v8830_v16 = vor.u32 %v13039_v13, %v8829_v11  ;;  %3259 = vmatpush.bf16.msra.mxu3 %v9630_v12 }
  0x26   :  { %v13103_v15 = vld [vmem:[#allocation2 + $0x39c] sm:$0xf0] }
  0x27   :  { %v9086_v17 = vor.u32 %v13103_v15, %v9085_v14  ;;  %v9341_v18 = vld [vmem:[#allocation2 + $0x580] sm:$0xf]  ;;  %3221 = vmatpush.bf16.msra.mxu0 %v8830_v16 }
  0x28   :  { %v13167_v19 = vld [vmem:[#allocation2 + $0x59c] sm:$0xf0] }
  0x29   :  { %v9597_v20 = vld [vmem:[#allocation2 + $0x780] sm:$0xf]  ;;  %v9342_v21 = vor.u32 %v13167_v19, %v9341_v18  ;;  %3234 = vmatpush.bf16.msra.mxu1 %v9086_v17 }
  0x2a   :  { %v13231_v22 = vld [vmem:[#allocation2 + $0x79c] sm:$0xf0] }
  0x2b   :  { %v8797_v23 = vld [vmem:[#allocation2 + $0x140] sm:$0xf]  ;;  %v9598_v25 = vor.u32 %v13231_v22, %v9597_v20  ;;  %3247 = vmatpush.bf16.msra.mxu2 %v9342_v21 }
  0x2c   :  { %v13031_v24 = vld [vmem:[#allocation2 + $0x15c] sm:$0xf0] }
  0x2d   :  { %v9053_v26 = vld [vmem:[#allocation2 + $0x340] sm:$0xf]  ;;  %v8798_v29 = vor.u32 %v13031_v24, %v8797_v23  ;;  %3260 = vmatpush.bf16.msra.mxu3 %v9598_v25 }
  0x2e   :  { %v13095_v27 = vld [vmem:[#allocation2 + $0x35c] sm:$0xf0] }
  0x2f   :  { %v9309_v28 = vld [vmem:[#allocation2 + $0x540] sm:$0xf]  ;;  %v9054_v33 = vor.u32 %v13095_v27, %v9053_v26  ;;  %3222 = vmatpush.bf16.msra.mxu0 %v8798_v29 }
  0x30   :  { %v13159_v30 = vld [vmem:[#allocation2 + $0x55c] sm:$0xf0] }
  0x31   :  { %v9565_v31 = vld [vmem:[#allocation2 + $0x740] sm:$0xf]  ;;  %v9310_v34 = vor.u32 %v13159_v30, %v9309_v28  ;;  %3235 = vmatpush.bf16.msra.mxu1 %v9054_v33 }
  0x32   :  { %v13223_v32 = vld [vmem:[#allocation2 + $0x75c] sm:$0xf0] }
  0x33   :  { %v8765_v35 = vld [vmem:[#allocation2 + $0x100] sm:$0xf]  ;;  %v9566_v38 = vor.u32 %v13223_v32, %v9565_v31  ;;  %3248 = vmatpush.bf16.msra.mxu2 %v9310_v34 }
  0x34   :  { %v13023_v36 = vld [vmem:[#allocation2 + $0x11c] sm:$0xf0] }
  0x35   :  { %v9021_v37 = vld [vmem:[#allocation2 + $0x300] sm:$0xf]  ;;  %v8766_v44 = vor.u32 %v13023_v36, %v8765_v35  ;;  %3261 = vmatpush.bf16.msra.mxu3 %v9566_v38 }
  0x36   :  { %v13087_v39 = vld [vmem:[#allocation2 + $0x31c] sm:$0xf0] }
  0x37   :  { %v9277_v40 = vld [vmem:[#allocation2 + $0x500] sm:$0xf]  ;;  %v9022_v45 = vor.u32 %v13087_v39, %v9021_v37  ;;  %3223 = vmatpush.bf16.msra.mxu0 %v8766_v44 }
  0x38   :  { %v13151_v41 = vld [vmem:[#allocation2 + $0x51c] sm:$0xf0] }
  0x39   :  { %v9533_v42 = vld [vmem:[#allocation2 + $0x700] sm:$0xf]  ;;  %v9278_v46 = vor.u32 %v13151_v41, %v9277_v40  ;;  %3236 = vmatpush.bf16.msra.mxu1 %v9022_v45 }
  0x3a   :  { %v13215_v43 = vld [vmem:[#allocation2 + $0x71c] sm:$0xf0] }
  0x3b   :  { %v8733_v47 = vld [vmem:[#allocation2 + $0xc0] sm:$0xf]  ;;  %v9534_v50 = vor.u32 %v13215_v43, %v9533_v42  ;;  %3249 = vmatpush.bf16.msra.mxu2 %v9278_v46 }
  0x3c   :  { %v13015_v48 = vld [vmem:[#allocation2 + $0xdc] sm:$0xf0] }
  0x3d   :  { %v8989_v49 = vld [vmem:[#allocation2 + $0x2c0] sm:$0xf]  ;;  %v8734_v56 = vor.u32 %v13015_v48, %v8733_v47  ;;  %3262 = vmatpush.bf16.msra.mxu3 %v9534_v50 }
  0x3e   :  { %v13079_v51 = vld [vmem:[#allocation2 + $0x2dc] sm:$0xf0] }
  0x3f   :  { %v9245_v52 = vld [vmem:[#allocation2 + $0x4c0] sm:$0xf]  ;;  %v8990_v57 = vor.u32 %v13079_v51, %v8989_v49  ;;  %3224 = vmatpush.bf16.msra.mxu0 %v8734_v56 }
  0x40   :  { %v13143_v53 = vld [vmem:[#allocation2 + $0x4dc] sm:$0xf0] }
  0x41   :  { %v9501_v54 = vld [vmem:[#allocation2 + $0x6c0] sm:$0xf]  ;;  %v9246_v58 = vor.u32 %v13143_v53, %v9245_v52  ;;  %3237 = vmatpush.bf16.msra.mxu1 %v8990_v57 }
  0x42   :  { %v13207_v55 = vld [vmem:[#allocation2 + $0x6dc] sm:$0xf0] }
  0x43   :  { %v8701_v59 = vld [vmem:[#allocation2 + $0x80] sm:$0xf]  ;;  %v9502_v62 = vor.u32 %v13207_v55, %v9501_v54  ;;  %3250 = vmatpush.bf16.msra.mxu2 %v9246_v58 }
  0x44   :  { %v13007_v60 = vld [vmem:[#allocation2 + $0x9c] sm:$0xf0] }
  0x45   :  { %v8957_v61 = vld [vmem:[#allocation2 + $0x280] sm:$0xf]  ;;  %v8702_v4 = vor.u32 %v13007_v60, %v8701_v59  ;;  %3263 = vmatpush.bf16.msra.mxu3 %v9502_v62 }
  0x46   :  { %v13071_v63 = vld [vmem:[#allocation2 + $0x29c] sm:$0xf0] }
  0x47   :  { %v9213_v0 = vld [vmem:[#allocation2 + $0x480] sm:$0xf]  ;;  %v8958_v5 = vor.u32 %v13071_v63, %v8957_v61  ;;  %3225 = vmatpush.bf16.msra.mxu0 %v8702_v4 }
  0x48   :  { %v13135_v1 = vld [vmem:[#allocation2 + $0x49c] sm:$0xf0] }
  0x49   :  { %v9469_v2 = vld [vmem:[#allocation2 + $0x680] sm:$0xf]  ;;  %v9214_v6 = vor.u32 %v13135_v1, %v9213_v0  ;;  %3238 = vmatpush.bf16.msra.mxu1 %v8958_v5 }
  0x4a   :  { %v13199_v3 = vld [vmem:[#allocation2 + $0x69c] sm:$0xf0] }
  0x4b   :  { %v8669_v7 = vld [vmem:[#allocation2 + $0x40] sm:$0xf]  ;;  %v9470_v10 = vor.u32 %v13199_v3, %v9469_v2  ;;  %3251 = vmatpush.bf16.msra.mxu2 %v9214_v6  ;;  %v116_v3 = vld [vmem:[%s14705_s0 + $0x10] sm:$0xff] }
  0x4c   :  { %v12999_v8 = vld [vmem:[#allocation2 + $0x5c] sm:$0xf0] }
  0x4d   :  { %v8925_v9 = vld [vmem:[#allocation2 + $0x240] sm:$0xf]  ;;  %v8670_v16 = vor.u32 %v12999_v8, %v8669_v7  ;;  %3264 = vmatpush.bf16.msra.mxu3 %v9470_v10  ;;  %v14318_v8 = vpack.c.bf16 %v116_v3, %v116_v3  ;;  %v117_v10 = vld [vmem:[%s14705_s0 + $0x18] sm:$0xff] }
  0x4e   :  { %v13063_v11 = vld [vmem:[#allocation2 + $0x25c] sm:$0xf0] }
  0x4f   :  { %v9181_v12 = vld [vmem:[#allocation2 + $0x440] sm:$0xf]  ;;  %v8926_v19 = vor.u32 %v13063_v11, %v8925_v9  ;;  %3226 = vmatpush.bf16.msra.mxu0 %v8670_v16 }
  0x50   :  { %v13127_v13 = vld [vmem:[#allocation2 + $0x45c] sm:$0xf0] }
  0x51   :  { %v9437_v14 = vld [vmem:[#allocation2 + $0x640] sm:$0xf]  ;;  %v9182_v20 = vor.u32 %v13127_v13, %v9181_v12  ;;  %3239 = vmatpush.bf16.msra.mxu1 %v8926_v19  ;;  %v115_v19 = vld [vmem:[%s14705_s0 + $0x8] sm:$0xff] }
  0x52   :  { %v13191_v15 = vld [vmem:[#allocation2 + $0x65c] sm:$0xf0] }
  0x53   :  { %v8637_v17 = vld [vmem:[#allocation2] sm:$0xf]  ;;  %v9438_v24 = vor.u32 %v13191_v15, %v9437_v14  ;;  %3252 = vmatpush.bf16.msra.mxu2 %v9182_v20  ;;  %v14325_v15 = vpack.c.bf16 %v117_v10, %v117_v10  ;;  %v9119_v10 = vld [vmem:[#allocation2 + $0x3e0] sm:$0xf0] }
  0x54   :  { %v12991_v18 = vld [vmem:[#allocation2 + $0x1c] sm:$0xf0] }
  0x55   :  { %v8893_v21 = vld [vmem:[#allocation2 + $0x200] sm:$0xf]  ;;  %v8638_v31 = vor.u32 %v12991_v18, %v8637_v17  ;;  %3265 = vmatpush.bf16.msra.mxu3 %v9438_v24 }
  0x56   :  { %v13055_v22 = vld [vmem:[#allocation2 + $0x21c] sm:$0xf0] }
  0x57   :  { %v9149_v23 = vld [vmem:[#allocation2 + $0x400] sm:$0xf]  ;;  %v8894_v35 = vor.u32 %v13055_v22, %v8893_v21  ;;  %3227 = vmatpush.bf16.msra.mxu0 %v8638_v31 }
  0x58   :  { %v13119_v25 = vld [vmem:[#allocation2 + $0x41c] sm:$0xf0] }
  0x59   :  { %v9405_v26 = vld [vmem:[#allocation2 + $0x600] sm:$0xf]  ;;  %v9150_v36 = vor.u32 %v13119_v25, %v9149_v23  ;;  %3240 = vmatpush.bf16.msra.mxu1 %v8894_v35  ;;  %v14333_v25 = vpack.c.bf16 %v115_v19, %v115_v19 }
  0x5a   :  { %v13183_v27 = vld [vmem:[#allocation2 + $0x61c] sm:$0xf0] }
  0x5b   :  { %v9885_v28 = vld [vmem:[#allocation2 + $0x9c0] sm:$0xf]  ;;  %v9406_v39 = vor.u32 %v13183_v27, %v9405_v26  ;;  %3253 = vmatpush.bf16.msra.mxu2 %v9150_v36 }
  0x5c   :  { %v13303_v29 = vld [vmem:[#allocation2 + $0x9dc] sm:$0xf0]  ;;  %3241 = vmatmul.bf16.vlgmr.msra.gmra.mxu1 %v14333_v25 }
  0x5d   :  { %v10141_v30 = vld [vmem:[#allocation2 + $0xbc0] sm:$0xf]  ;;  %v9886_v40 = vor.u32 %v13303_v29, %v9885_v28  ;;  %3266 = vmatpush.bf16.msra.mxu3 %v9406_v39 }
  0x5e   :  { %v13367_v32 = vld [vmem:[#allocation2 + $0xbdc] sm:$0xf0]  ;;  %3254 = vmatmul.bf16.vlgmr.msra.gmra.mxu2 %v14318_v8 }
  0x5f   :  { %v10397_v33 = vld [vmem:[#allocation2 + $0xdc0] sm:$0xf]  ;;  %v10142_v41 = vor.u32 %v13367_v32, %v10141_v30  ;;  %3272 = vmatpush.bf16.msrb.mxu0 %v9886_v40 }
  0x60   :  { %v13431_v34 = vld [vmem:[#allocation2 + $0xddc] sm:$0xf0]  ;;  %3267 = vmatmul.bf16.vlgmr.msra.gmra.mxu3 %v14325_v15 }
  0x61   :  { %v10653_v37 = vld [vmem:[#allocation2 + $0xfc0] sm:$0xf]  ;;  %v10398_v42 = vor.u32 %v13431_v34, %v10397_v33  ;;  %3285 = vmatpush.bf16.msrb.mxu1 %v10142_v41 }
  0x62   :  { %v13495_v38 = vld [vmem:[#allocation2 + $0xfdc] sm:$0xf0] }
  0x63   :  { %v9853_v43 = vld [vmem:[#allocation2 + $0x980] sm:$0xf]  ;;  %v10654_v46 = vor.u32 %v13495_v38, %v10653_v37  ;;  %3298 = vmatpush.bf16.msrb.mxu2 %v10398_v42 }
  0x64   :  { %v13295_v44 = vld [vmem:[#allocation2 + $0x99c] sm:$0xf0] }
  0x65   :  { %v10109_v45 = vld [vmem:[#allocation2 + $0xb80] sm:$0xf]  ;;  %v9854_v52 = vor.u32 %v13295_v44, %v9853_v43  ;;  %3311 = vmatpush.bf16.msrb.mxu3 %v10654_v46 }
  0x66   :  { %v13359_v47 = vld [vmem:[#allocation2 + $0xb9c] sm:$0xf0] }
  0x67   :  { %v10365_v48 = vld [vmem:[#allocation2 + $0xd80] sm:$0xf]  ;;  %v10110_v54 = vor.u32 %v13359_v47, %v10109_v45  ;;  %3273 = vmatpush.bf16.msrb.mxu0 %v9854_v52 }
  0x68   :  { %v13423_v49 = vld [vmem:[#allocation2 + $0xd9c] sm:$0xf0] }
  0x69   :  { %v10621_v50 = vld [vmem:[#allocation2 + $0xf80] sm:$0xf]  ;;  %v10366_v55 = vor.u32 %v13423_v49, %v10365_v48  ;;  %3286 = vmatpush.bf16.msrb.mxu1 %v10110_v54 }
  0x6a   :  { %v13487_v51 = vld [vmem:[#allocation2 + $0xf9c] sm:$0xf0] }
  0x6b   :  { %v9821_v53 = vld [vmem:[#allocation2 + $0x940] sm:$0xf]  ;;  %v10622_v59 = vor.u32 %v13487_v51, %v10621_v50  ;;  %3299 = vmatpush.bf16.msrb.mxu2 %v10366_v55 }
  0x6c   :  { %v13287_v56 = vld [vmem:[#allocation2 + $0x95c] sm:$0xf0] }
  0x6d   :  { %v10077_v57 = vld [vmem:[#allocation2 + $0xb40] sm:$0xf]  ;;  %v9822_v0 = vor.u32 %v13287_v56, %v9821_v53  ;;  %3312 = vmatpush.bf16.msrb.mxu3 %v10622_v59 }
  0x6e   :  { %v13351_v58 = vld [vmem:[#allocation2 + $0xb5c] sm:$0xf0] }
  0x6f   :  { %v10333_v60 = vld [vmem:[#allocation2 + $0xd40] sm:$0xf]  ;;  %v10078_v1 = vor.u32 %v13351_v58, %v10077_v57  ;;  %3274 = vmatpush.bf16.msrb.mxu0 %v9822_v0 }
  0x70   :  { %v13415_v61 = vld [vmem:[#allocation2 + $0xd5c] sm:$0xf0] }
  0x71   :  { %v10589_v62 = vld [vmem:[#allocation2 + $0xf40] sm:$0xf]  ;;  %v10334_v5 = vor.u32 %v13415_v61, %v10333_v60  ;;  %3287 = vmatpush.bf16.msrb.mxu1 %v10078_v1 }
  0x72   :  { %v13479_v63 = vld [vmem:[#allocation2 + $0xf5c] sm:$0xf0] }
  0x73   :  { %v9789_v2 = vld [vmem:[#allocation2 + $0x900] sm:$0xf]  ;;  %v10590_v11 = vor.u32 %v13479_v63, %v10589_v62  ;;  %3300 = vmatpush.bf16.msrb.mxu2 %v10334_v5  ;;  %v8863_v5 = vld [vmem:[#allocation2 + $0x1e0] sm:$0xf0] }
  0x74   :  { %v114_v4 = vld [vmem:[%s14705_s0] sm:$0xff] }
  0x75   :  { %v13279_v6 = vld [vmem:[#allocation2 + $0x91c] sm:$0xf0]  ;;  %v14320_v9 = vpack.c.bf16 %v114_v4, %v114_v4  ;;  %3313 = vmatpush.bf16.msrb.mxu3 %v10590_v11  ;;  %v13043_v4 = vld [vmem:[#allocation2 + $0x1c4] sm:$0xf] }
  0x76   :  { %v10045_v7 = vld [vmem:[#allocation2 + $0xb00] sm:$0xf]  ;;  %v9790_v18 = vor.u32 %v13279_v6, %v9789_v2  ;;  %v13107_v6 = vld [vmem:[#allocation2 + $0x3c4] sm:$0xf] }
  0x77   :  { %v13343_v12 = vld [vmem:[#allocation2 + $0xb1c] sm:$0xf0]  ;;  %3228 = vmatmul.bf16.vlgmr.msra.gmra.mxu0 %v14320_v9  ;;  %v13171_v11 = vld [vmem:[#allocation2 + $0x5c4] sm:$0xf] }
  0x78   :  { %v10301_v13 = vld [vmem:[#allocation2 + $0xd00] sm:$0xf]  ;;  %v10046_v20 = vor.u32 %v13343_v12, %v10045_v7  ;;  %3275 = vmatpush.bf16.msrb.mxu0 %v9790_v18  ;;  %v9375_v12 = vld [vmem:[#allocation2 + $0x5e0] sm:$0xf0]  ;;  %v120_v18 = vld [vmem:[%s14705_s0 + $0x30] sm:$0xff] }
  0x79   :  { %v13407_v14 = vld [vmem:[#allocation2 + $0xd1c] sm:$0xf0] }
  0x7a   :  { %v10557_v16 = vld [vmem:[#allocation2 + $0xf00] sm:$0xf]  ;;  %v10302_v21 = vor.u32 %v13407_v14, %v10301_v13  ;;  %3288 = vmatpush.bf16.msrb.mxu1 %v10046_v20  ;;  %v8866_v20 = vor.u32 %v13043_v4, %v8863_v5  ;;  %v8735_v4 = vld [vmem:[#allocation2 + $0xe0] sm:$0xf0] }
  0x7b   :  { %v13471_v17 = vld [vmem:[#allocation2 + $0xf1c] sm:$0xf0]  ;;  %v13075_v5 = vld [vmem:[#allocation2 + $0x2c4] sm:$0xf] }
  0x7c   :  { %v9757_v22 = vld [vmem:[#allocation2 + $0x8c0] sm:$0xf]  ;;  %v10558_v26 = vor.u32 %v13471_v17, %v10557_v16  ;;  %3301 = vmatpush.bf16.msrb.mxu2 %v10302_v21  ;;  %v13235_v16 = vld [vmem:[#allocation2 + $0x7c4] sm:$0xf] }
  0x7d   :  { %v13271_v23 = vld [vmem:[#allocation2 + $0x8dc] sm:$0xf0]  ;;  %v9631_v17 = vld [vmem:[#allocation2 + $0x7e0] sm:$0xf0] }
  0x7e   :  { %v10013_v24 = vld [vmem:[#allocation2 + $0xac0] sm:$0xf]  ;;  %v9758_v32 = vor.u32 %v13271_v23, %v9757_v22  ;;  %3314 = vmatpush.bf16.msrb.mxu3 %v10558_v26  ;;  %v13035_v21 = vld [vmem:[#allocation2 + $0x184] sm:$0xf]  ;;  %v121_v23 = vld [vmem:[%s14705_s0 + $0x38] sm:$0xff]  ;;  %v9378_v26 = vor.u32 %v13171_v11, %v9375_v12 }
  0x7f   :  { %v13335_v27 = vld [vmem:[#allocation2 + $0xadc] sm:$0xf0]  ;;  %v9247_v11 = vld [vmem:[#allocation2 + $0x4e0] sm:$0xf0] }
  0x80   :  { %v10269_v28 = vld [vmem:[#allocation2 + $0xcc0] sm:$0xf]  ;;  %v10014_v33 = vor.u32 %v13335_v27, %v10013_v24  ;;  %3276 = vmatpush.bf16.msrb.mxu0 %v9758_v32  ;;  %v9122_v24 = vor.u32 %v13107_v6, %v9119_v10  ;;  %v8831_v27 = vld [vmem:[#allocation2 + $0x1a0] sm:$0xf0] }
  0x81   :  { %v13399_v29 = vld [vmem:[#allocation2 + $0xcdc] sm:$0xf0]  ;;  %v13163_v32 = vld [vmem:[#allocation2 + $0x584] sm:$0xf] }
  0x82   :  { %v10525_v30 = vld [vmem:[#allocation2 + $0xec0] sm:$0xf]  ;;  %v10270_v34 = vor.u32 %v13399_v29, %v10269_v28  ;;  %3289 = vmatpush.bf16.msrb.mxu1 %v10014_v33  ;;  %v13099_v28 = vld [vmem:[#allocation2 + $0x384] sm:$0xf]  ;;  %v119_v29 = vld [vmem:[%s14705_s0 + $0x28] sm:$0xff] }
  0x83   :  { %v13463_v31 = vld [vmem:[#allocation2 + $0xedc] sm:$0xf0]  ;;  %v9343_v33 = vld [vmem:[#allocation2 + $0x5a0] sm:$0xf0] }
  0x84   :  { %v9725_v35 = vld [vmem:[#allocation2 + $0x880] sm:$0xf]  ;;  %v10526_v38 = vor.u32 %v13463_v31, %v10525_v30  ;;  %3302 = vmatpush.bf16.msrb.mxu2 %v10270_v34  ;;  %v9634_v30 = vor.u32 %v13235_v16, %v9631_v17  ;;  %v9087_v31 = vld [vmem:[#allocation2 + $0x3a0] sm:$0xf0]  ;;  %v14348_v34 = vpack.c.bf16 %v120_v18, %v120_v18 }
  0x85   :  { %v13263_v36 = vld [vmem:[#allocation2 + $0x89c] sm:$0xf0]  ;;  %v13139_v10 = vld [vmem:[#allocation2 + $0x4c4] sm:$0xf] }
  0x86   :  { %v9981_v37 = vld [vmem:[#allocation2 + $0xa80] sm:$0xf]  ;;  %v9726_v44 = vor.u32 %v13263_v36, %v9725_v35  ;;  %3315 = vmatpush.bf16.msrb.mxu3 %v10526_v38  ;;  %v13227_v35 = vld [vmem:[#allocation2 + $0x784] sm:$0xf]  ;;  %v14352_v38 = vpack.c.bf16 %v121_v23, %v121_v23  ;;  %v9250_v17 = vor.u32 %v13139_v10, %v9247_v11 }
  0x87   :  { %v13327_v39 = vld [vmem:[#allocation2 + $0xa9c] sm:$0xf0]  ;;  %v9599_v36 = vld [vmem:[#allocation2 + $0x7a0] sm:$0xf0] }
  0x88   :  { %v10237_v40 = vld [vmem:[#allocation2 + $0xc80] sm:$0xf]  ;;  %v9982_v45 = vor.u32 %v13327_v39, %v9981_v37  ;;  %3277 = vmatpush.bf16.msrb.mxu0 %v9726_v44  ;;  %v8834_v39 = vor.u32 %v13035_v21, %v8831_v27  ;;  %v8799_v44 = vld [vmem:[#allocation2 + $0x160] sm:$0xf0] }
  0x89   :  { %v13391_v41 = vld [vmem:[#allocation2 + $0xc9c] sm:$0xf0]  ;;  %v13203_v12 = vld [vmem:[#allocation2 + $0x6c4] sm:$0xf] }
  0x8a   :  { %v10493_v42 = vld [vmem:[#allocation2 + $0xe80] sm:$0xf]  ;;  %v10238_v46 = vor.u32 %v13391_v41, %v10237_v40  ;;  %3290 = vmatpush.bf16.msrb.mxu1 %v9982_v45  ;;  %v14354_v40 = vpack.c.bf16 %v119_v29, %v119_v29  ;;  %v9090_v41 = vor.u32 %v13099_v28, %v9087_v31  ;;  %v13091_v45 = vld [vmem:[#allocation2 + $0x344] sm:$0xf] }
  0x8b   :  { %v13455_v43 = vld [vmem:[#allocation2 + $0xe9c] sm:$0xf0]  ;;  %v13003_v18 = vld [vmem:[#allocation2 + $0x84] sm:$0xf] }
  0x8c   :  { %v9693_v47 = vld [vmem:[#allocation2 + $0x840] sm:$0xf]  ;;  %v10494_v50 = vor.u32 %v13455_v43, %v10493_v42  ;;  %3303 = vmatpush.bf16.msrb.mxu2 %v10238_v46  ;;  %v9346_v42 = vor.u32 %v13163_v32, %v9343_v33  ;;  %v13027_v43 = vld [vmem:[#allocation2 + $0x144] sm:$0xf]  ;;  %v9602_v46 = vor.u32 %v13227_v35, %v9599_v36 }
  0x8d   :  { %v13255_v48 = vld [vmem:[#allocation2 + $0x85c] sm:$0xf0]  ;;  %v13131_v23 = vld [vmem:[#allocation2 + $0x484] sm:$0xf] }
  0x8e   :  { %v9949_v49 = vld [vmem:[#allocation2 + $0xa40] sm:$0xf]  ;;  %v9694_v56 = vor.u32 %v13255_v48, %v9693_v47  ;;  %3316 = vmatpush.bf16.msrb.mxu3 %v10494_v50  ;;  %v9055_v47 = vld [vmem:[#allocation2 + $0x360] sm:$0xf0] }
  0x8f   :  { %v13319_v51 = vld [vmem:[#allocation2 + $0xa5c] sm:$0xf0]  ;;  %v13155_v48 = vld [vmem:[#allocation2 + $0x544] sm:$0xf] }
  0x90   :  { %v10205_v52 = vld [vmem:[#allocation2 + $0xc40] sm:$0xf]  ;;  %v9950_v59 = vor.u32 %v13319_v51, %v9949_v49  ;;  %3278 = vmatpush.bf16.msrb.mxu0 %v9694_v56  ;;  %v9311_v49 = vld [vmem:[#allocation2 + $0x560] sm:$0xf0] }
  0x91   :  { %v13383_v53 = vld [vmem:[#allocation2 + $0xc5c] sm:$0xf0]  ;;  %v13219_v50 = vld [vmem:[#allocation2 + $0x744] sm:$0xf] }
  0x92   :  { %v10461_v54 = vld [vmem:[#allocation2 + $0xe40] sm:$0xf]  ;;  %v10206_v60 = vor.u32 %v13383_v53, %v10205_v52  ;;  %3291 = vmatpush.bf16.msrb.mxu1 %v9950_v59  ;;  %v9567_v51 = vld [vmem:[#allocation2 + $0x760] sm:$0xf0]  ;;  %v8802_v52 = vor.u32 %v13027_v43, %v8799_v44  ;;  %v9058_v53 = vor.u32 %v13091_v45, %v9055_v47 }
  0x93   :  { %v13447_v55 = vld [vmem:[#allocation2 + $0xe5c] sm:$0xf0]  ;;  %v8767_v56 = vld [vmem:[#allocation2 + $0x120] sm:$0xf0] }
  0x94   :  { %v9661_v57 = vld [vmem:[#allocation2 + $0x800] sm:$0xf]  ;;  %v10462_v0 = vor.u32 %v13447_v55, %v10461_v54  ;;  %3304 = vmatpush.bf16.msrb.mxu2 %v10206_v60  ;;  %v9314_v54 = vor.u32 %v13155_v48, %v9311_v49  ;;  %v13019_v55 = vld [vmem:[#allocation2 + $0x104] sm:$0xf] }
  0x95   :  { %v13247_v58 = vld [vmem:[#allocation2 + $0x81c] sm:$0xf0]  ;;  %v9023_v59 = vld [vmem:[#allocation2 + $0x320] sm:$0xf0] }
  0x96   :  { %v9917_v61 = vld [vmem:[#allocation2 + $0xa00] sm:$0xf]  ;;  %v9662_v7 = vor.u32 %v13247_v58, %v9661_v57  ;;  %3317 = vmatpush.bf16.msrb.mxu3 %v10462_v0  ;;  %v13083_v57 = vld [vmem:[#allocation2 + $0x304] sm:$0xf]  ;;  %v9570_v58 = vor.u32 %v13219_v50, %v9567_v51  ;;  %v8770_v0 = vor.u32 %v13019_v55, %v8767_v56 }
  0x97   :  { %v13311_v62 = vld [vmem:[#allocation2 + $0xa1c] sm:$0xf0]  ;;  %v13147_v60 = vld [vmem:[#allocation2 + $0x504] sm:$0xf] }
  0x98   :  { %v10173_v63 = vld [vmem:[#allocation2 + $0xc00] sm:$0xf]  ;;  %v9918_v13 = vor.u32 %v13311_v62, %v9917_v61  ;;  %3279 = vmatpush.bf16.msrb.mxu0 %v9662_v7  ;;  %v9279_v61 = vld [vmem:[#allocation2 + $0x520] sm:$0xf0] }
  0x99   :  { %v13375_v1 = vld [vmem:[#allocation2 + $0xc1c] sm:$0xf0]  ;;  %v13211_v62 = vld [vmem:[#allocation2 + $0x704] sm:$0xf] }
  0x9a   :  { %v10429_v2 = vld [vmem:[#allocation2 + $0xe00] sm:$0xf]  ;;  %v10174_v14 = vor.u32 %v13375_v1, %v10173_v63  ;;  %3292 = vmatpush.bf16.msrb.mxu1 %v9918_v13  ;;  %v9535_v63 = vld [vmem:[#allocation2 + $0x720] sm:$0xf0]  ;;  %v9026_v1 = vor.u32 %v13083_v57, %v9023_v59 }
  0x9b   :  { %v13439_v3 = vld [vmem:[#allocation2 + $0xe1c] sm:$0xf0]  ;;  %v9538_v6 = vor.u32 %v13211_v62, %v9535_v63  ;;  %v8991_v7 = vld [vmem:[#allocation2 + $0x2e0] sm:$0xf0] }
  0x9c   :  { %v10430_v19 = vor.u32 %v13439_v3, %v10429_v2  ;;  %v118_v22 = vld [vmem:[%s14705_s0 + $0x20] sm:$0xff]  ;;  %3305 = vmatpush.bf16.msrb.mxu2 %v10174_v14  ;;  %3324 = vmatpush.bf16.msra.mxu0 %v8866_v20  ;;  %v9282_v2 = vor.u32 %v13147_v60, %v9279_v61  ;;  %v8994_v16 = vor.u32 %v13075_v5, %v8991_v7 }
  0x9d   :  { %v14350_v37 = vpack.c.bf16 %v118_v22, %v118_v22  ;;  %3293 = vmatmul.bf16.vlgmr.msrb.gmra.mxu1 %v14354_v40  ;;  %v13011_v3 = vld [vmem:[#allocation2 + $0xc4] sm:$0xf] }
  0x9e   :  { %3318 = vmatpush.bf16.msrb.mxu3 %v10430_v19  ;;  %3337 = vmatpush.bf16.msra.mxu1 %v9122_v24  ;;  %v9503_v13 = vld [vmem:[#allocation2 + $0x6e0] sm:$0xf0]  ;;  %v8738_v14 = vor.u32 %v13011_v3, %v8735_v4 }
  0x9f   :  { %3306 = vmatmul.bf16.vlgmr.msrb.gmra.mxu2 %v14348_v34  ;;  %3280 = vmatmul.bf16.vlgmr.msrb.gmra.mxu0 %v14350_v37  ;;  %v8703_v19 = vld [vmem:[#allocation2 + $0xa0] sm:$0xf0]  ;;  %v9506_v21 = vor.u32 %v13203_v12, %v9503_v13 }
  0xa0   :  { %3350 = vmatpush.bf16.msra.mxu2 %v9378_v26  ;;  %3325 = vmatpush.bf16.msra.mxu0 %v8834_v39  ;;  %v13067_v20 = vld [vmem:[#allocation2 + $0x284] sm:$0xf]  ;;  %v8706_v28 = vor.u32 %v13003_v18, %v8703_v19 }
  0xa1   :  { %3319 = vmatmul.bf16.vlgmr.msrb.gmra.mxu3 %v14352_v38  ;;  %v8959_v22 = vld [vmem:[#allocation2 + $0x2a0] sm:$0xf0] }
  0xa2   :  { %3363 = vmatpush.bf16.msra.mxu3 %v9634_v30  ;;  %3338 = vmatpush.bf16.msra.mxu1 %v9090_v41  ;;  %v9215_v24 = vld [vmem:[#allocation2 + $0x4a0] sm:$0xf0]  ;;  %v8962_v29 = vor.u32 %v13067_v20, %v8959_v22 }
  0xa3   :  { %v13195_v26 = vld [vmem:[#allocation2 + $0x684] sm:$0xf]  ;;  %v9218_v30 = vor.u32 %v13131_v23, %v9215_v24 }
  0xa4   :  { %3351 = vmatpush.bf16.msra.mxu2 %v9346_v42  ;;  %3326 = vmatpush.bf16.msra.mxu0 %v8802_v52  ;;  %v9471_v27 = vld [vmem:[#allocation2 + $0x6a0] sm:$0xf0] }
  0xa5   :  { %v12995_v31 = vld [vmem:[#allocation2 + $0x44] sm:$0xf]  ;;  %v9474_v35 = vor.u32 %v13195_v26, %v9471_v27 }
  0xa6   :  { %3364 = vmatpush.bf16.msra.mxu3 %v9602_v46  ;;  %3339 = vmatpush.bf16.msra.mxu1 %v9058_v53  ;;  %v8671_v32 = vld [vmem:[#allocation2 + $0x60] sm:$0xf0] }
  0xa7   :  { %v13059_v33 = vld [vmem:[#allocation2 + $0x244] sm:$0xf]  ;;  %v8674_v44 = vor.u32 %v12995_v31, %v8671_v32 }
  0xa8   :  { %3352 = vmatpush.bf16.msra.mxu2 %v9314_v54  ;;  %3327 = vmatpush.bf16.msra.mxu0 %v8770_v0  ;;  %v8927_v36 = vld [vmem:[#allocation2 + $0x260] sm:$0xf0] }
  0xa9   :  { %v13123_v39 = vld [vmem:[#allocation2 + $0x444] sm:$0xf]  ;;  %v8930_v47 = vor.u32 %v13059_v33, %v8927_v36 }
  0xaa   :  { %3365 = vmatpush.bf16.msra.mxu3 %v9570_v58  ;;  %3340 = vmatpush.bf16.msra.mxu1 %v9026_v1  ;;  %v9183_v41 = vld [vmem:[#allocation2 + $0x460] sm:$0xf0] }
  0xab   :  { %v13187_v42 = vld [vmem:[#allocation2 + $0x644] sm:$0xf]  ;;  %v9186_v48 = vor.u32 %v13123_v39, %v9183_v41 }
  0xac   :  { %3353 = vmatpush.bf16.msra.mxu2 %v9282_v2  ;;  %3328 = vmatpush.bf16.msra.mxu0 %v8738_v14  ;;  %v9439_v43 = vld [vmem:[#allocation2 + $0x660] sm:$0xf0] }
  0xad   :  { %v12987_v45 = vld [vmem:[#allocation2 + $0x4] sm:$0xf]  ;;  %v9442_v52 = vor.u32 %v13187_v42, %v9439_v43 }
  0xae   :  { %3366 = vmatpush.bf16.msra.mxu3 %v9538_v6  ;;  %3341 = vmatpush.bf16.msra.mxu1 %v8994_v16  ;;  %v8639_v46 = vld [vmem:[#allocation2 + $0x20] sm:$0xf0] }
  0xaf   :  { %v13051_v49 = vld [vmem:[#allocation2 + $0x204] sm:$0xf]  ;;  %v8642_v59 = vor.u32 %v12987_v45, %v8639_v46 }
  0xb0   :  { %3354 = vmatpush.bf16.msra.mxu2 %v9250_v17  ;;  %3329 = vmatpush.bf16.msra.mxu0 %v8706_v28  ;;  %v8895_v50 = vld [vmem:[#allocation2 + $0x220] sm:$0xf0] }
  0xb1   :  { %v13115_v51 = vld [vmem:[#allocation2 + $0x404] sm:$0xf]  ;;  %v8898_v63 = vor.u32 %v13051_v49, %v8895_v50 }
  0xb2   :  { %3367 = vmatpush.bf16.msra.mxu3 %v9506_v21  ;;  %3342 = vmatpush.bf16.msra.mxu1 %v8962_v29  ;;  %v9151_v53 = vld [vmem:[#allocation2 + $0x420] sm:$0xf0] }
  0xb3   :  { %v13179_v54 = vld [vmem:[#allocation2 + $0x604] sm:$0xf]  ;;  %v9154_v0 = vor.u32 %v13115_v51, %v9151_v53 }
  0xb4   :  { %3355 = vmatpush.bf16.msra.mxu2 %v9218_v30  ;;  %v9407_v55 = vld [vmem:[#allocation2 + $0x620] sm:$0xf0]  ;;  %3330 = vmatpush.bf16.msra.mxu0 %v8674_v44 }
  0xb5   :  { %v13299_v56 = vld [vmem:[#allocation2 + $0x9c4] sm:$0xf]  ;;  %v9410_v3 = vor.u32 %v13179_v54, %v9407_v55 }
  0xb6   :  { %3368 = vmatpush.bf16.msra.mxu3 %v9474_v35  ;;  %v9887_v57 = vld [vmem:[#allocation2 + $0x9e0] sm:$0xf0]  ;;  %3343 = vmatpush.bf16.msra.mxu1 %v8930_v47 }
  0xb7   :  { %v13363_v58 = vld [vmem:[#allocation2 + $0xbc4] sm:$0xf]  ;;  %v9890_v4 = vor.u32 %v13299_v56, %v9887_v57 }
  0xb8   :  { %v10143_v60 = vld [vmem:[#allocation2 + $0xbe0] sm:$0xf0]  ;;  %3356 = vmatpush.bf16.msra.mxu2 %v9186_v48  ;;  %3331 = vmatpush.bf16.msra.mxu0 %v8642_v59 }
  0xb9   :  { %v13427_v61 = vld [vmem:[#allocation2 + $0xdc4] sm:$0xf]  ;;  %v10146_v5 = vor.u32 %v13363_v58, %v10143_v60 }
  0xba   :  { %v10399_v62 = vld [vmem:[#allocation2 + $0xde0] sm:$0xf0]  ;;  %3369 = vmatpush.bf16.msra.mxu3 %v9442_v52  ;;  %3344 = vmatpush.bf16.msra.mxu1 %v8898_v63 }
  0xbb   :  { %v13491_v1 = vld [vmem:[#allocation2 + $0xfc4] sm:$0xf]  ;;  %v10402_v6 = vor.u32 %v13427_v61, %v10399_v62  ;;  %3332 = vmatmul.bf16.vlgmr.msra.gmra.mxu0 %v14320_v9 }
  0xbc   :  { %v10655_v2 = vld [vmem:[#allocation2 + $0xfe0] sm:$0xf0]  ;;  %3357 = vmatpush.bf16.msra.mxu2 %v9154_v0  ;;  %3376 = vmatpush.bf16.msrb.mxu0 %v9890_v4 }
  0xbd   :  { %v13291_v7 = vld [vmem:[#allocation2 + $0x984] sm:$0xf]  ;;  %v10658_v12 = vor.u32 %v13491_v1, %v10655_v2  ;;  %3345 = vmatmul.bf16.vlgmr.msra.gmra.mxu1 %v14333_v25 }
  0xbe   :  { %v9855_v10 = vld [vmem:[#allocation2 + $0x9a0] sm:$0xf0]  ;;  %3370 = vmatpush.bf16.msra.mxu3 %v9410_v3  ;;  %3389 = vmatpush.bf16.msrb.mxu1 %v10146_v5 }
  0xbf   :  { %v13355_v11 = vld [vmem:[#allocation2 + $0xb84] sm:$0xf]  ;;  %v9858_v19 = vor.u32 %v13291_v7, %v9855_v10  ;;  %3358 = vmatmul.bf16.vlgmr.msra.gmra.mxu2 %v14318_v8 }
  0xc0   :  { %v10111_v13 = vld [vmem:[#allocation2 + $0xba0] sm:$0xf0]  ;;  %3402 = vmatpush.bf16.msrb.mxu2 %v10402_v6 }
  0xc1   :  { %v13419_v14 = vld [vmem:[#allocation2 + $0xd84] sm:$0xf]  ;;  %v10114_v20 = vor.u32 %v13355_v11, %v10111_v13  ;;  %3371 = vmatmul.bf16.vlgmr.msra.gmra.mxu3 %v14325_v15  ;;  %3377 = vmatpush.bf16.msrb.mxu0 %v9858_v19 }
  0xc2   :  { %v10367_v16 = vld [vmem:[#allocation2 + $0xda0] sm:$0xf0]  ;;  %3415 = vmatpush.bf16.msrb.mxu3 %v10658_v12 }
  0xc3   :  { %v13483_v17 = vld [vmem:[#allocation2 + $0xf84] sm:$0xf]  ;;  %v10370_v21 = vor.u32 %v13419_v14, %v10367_v16  ;;  %3390 = vmatpush.bf16.msrb.mxu1 %v10114_v20 }
  0xc4   :  { %v10623_v18 = vld [vmem:[#allocation2 + $0xfa0] sm:$0xf0] }
  0xc5   :  { %v13283_v22 = vld [vmem:[#allocation2 + $0x944] sm:$0xf]  ;;  %v10626_v26 = vor.u32 %v13483_v17, %v10623_v18  ;;  %3403 = vmatpush.bf16.msrb.mxu2 %v10370_v21 }
  0xc6   :  { %v9823_v23 = vld [vmem:[#allocation2 + $0x960] sm:$0xf0] }
  0xc7   :  { %v13347_v24 = vld [vmem:[#allocation2 + $0xb44] sm:$0xf]  ;;  %v9826_v32 = vor.u32 %v13283_v22, %v9823_v23  ;;  %3416 = vmatpush.bf16.msrb.mxu3 %v10626_v26 }
  0xc8   :  { %v10079_v27 = vld [vmem:[#allocation2 + $0xb60] sm:$0xf0] }
  0xc9   :  { %v13411_v28 = vld [vmem:[#allocation2 + $0xd44] sm:$0xf]  ;;  %v10082_v33 = vor.u32 %v13347_v24, %v10079_v27  ;;  %3378 = vmatpush.bf16.msrb.mxu0 %v9826_v32 }
  0xca   :  { %v10335_v29 = vld [vmem:[#allocation2 + $0xd60] sm:$0xf0] }
  0xcb   :  { %v13475_v30 = vld [vmem:[#allocation2 + $0xf44] sm:$0xf]  ;;  %v10338_v35 = vor.u32 %v13411_v28, %v10335_v29  ;;  %3391 = vmatpush.bf16.msrb.mxu1 %v10082_v33 }
  0xcc   :  { %v10591_v31 = vld [vmem:[#allocation2 + $0xf60] sm:$0xf0] }
  0xcd   :  { %v13275_v36 = vld [vmem:[#allocation2 + $0x904] sm:$0xf]  ;;  %v10594_v42 = vor.u32 %v13475_v30, %v10591_v31  ;;  %3404 = vmatpush.bf16.msrb.mxu2 %v10338_v35 }
  0xce   :  { %v9791_v39 = vld [vmem:[#allocation2 + $0x920] sm:$0xf0] }
  0xcf   :  { %v13339_v41 = vld [vmem:[#allocation2 + $0xb04] sm:$0xf]  ;;  %v9794_v48 = vor.u32 %v13275_v36, %v9791_v39  ;;  %3417 = vmatpush.bf16.msrb.mxu3 %v10594_v42  ;;  %v8869_v39 = vld [vmem:[#allocation2 + $0x1c8] sm:$0xf] }
  0xd0   :  { %v10047_v43 = vld [vmem:[#allocation2 + $0xb20] sm:$0xf0]  ;;  %v9125_v42 = vld [vmem:[#allocation2 + $0x3c8] sm:$0xf] }
  0xd1   :  { %v13403_v44 = vld [vmem:[#allocation2 + $0xd04] sm:$0xf]  ;;  %v10050_v49 = vor.u32 %v13339_v41, %v10047_v43  ;;  %3379 = vmatpush.bf16.msrb.mxu0 %v9794_v48  ;;  %v13048_v41 = vld [vmem:[#allocation2 + $0x1e4] sm:$0xf0] }
  0xd2   :  { %v10303_v45 = vld [vmem:[#allocation2 + $0xd20] sm:$0xf0] }
  0xd3   :  { %v13467_v46 = vld [vmem:[#allocation2 + $0xf04] sm:$0xf]  ;;  %v10306_v50 = vor.u32 %v13403_v44, %v10303_v45  ;;  %3392 = vmatpush.bf16.msrb.mxu1 %v10050_v49  ;;  %v13112_v44 = vld [vmem:[#allocation2 + $0x3e4] sm:$0xf0] }
  0xd4   :  { %v10559_v47 = vld [vmem:[#allocation2 + $0xf20] sm:$0xf0]  ;;  %v9381_v45 = vld [vmem:[#allocation2 + $0x5c8] sm:$0xf] }
  0xd5   :  { %v13267_v51 = vld [vmem:[#allocation2 + $0x8c4] sm:$0xf]  ;;  %v10562_v54 = vor.u32 %v13467_v46, %v10559_v47  ;;  %3405 = vmatpush.bf16.msrb.mxu2 %v10306_v50  ;;  %v13176_v46 = vld [vmem:[#allocation2 + $0x5e4] sm:$0xf0] }
  0xd6   :  { %v9759_v52 = vld [vmem:[#allocation2 + $0x8e0] sm:$0xf0]  ;;  %v9637_v49 = vld [vmem:[#allocation2 + $0x7c8] sm:$0xf] }
  0xd7   :  { %v13331_v53 = vld [vmem:[#allocation2 + $0xac4] sm:$0xf]  ;;  %v9762_v60 = vor.u32 %v13267_v51, %v9759_v52  ;;  %3418 = vmatpush.bf16.msrb.mxu3 %v10562_v54  ;;  %v13240_v50 = vld [vmem:[#allocation2 + $0x7e4] sm:$0xf0]  ;;  %v8870_v52 = vor.u32 %v13048_v41, %v8869_v39  ;;  %v9382_v54 = vor.u32 %v13176_v46, %v9381_v45 }
  0xd8   :  { %v10015_v55 = vld [vmem:[#allocation2 + $0xae0] sm:$0xf0]  ;;  %v9253_v39 = vld [vmem:[#allocation2 + $0x4c8] sm:$0xf] }
  0xd9   :  { %v13395_v56 = vld [vmem:[#allocation2 + $0xcc4] sm:$0xf]  ;;  %v10018_v61 = vor.u32 %v13331_v53, %v10015_v55  ;;  %3380 = vmatpush.bf16.msrb.mxu0 %v9762_v60  ;;  %v9126_v53 = vor.u32 %v13112_v44, %v9125_v42  ;;  %v8837_v55 = vld [vmem:[#allocation2 + $0x188] sm:$0xf] }
  0xda   :  { %v10271_v57 = vld [vmem:[#allocation2 + $0xce0] sm:$0xf0]  ;;  %v9349_v60 = vld [vmem:[#allocation2 + $0x588] sm:$0xf] }
  0xdb   :  { %v13459_v58 = vld [vmem:[#allocation2 + $0xec4] sm:$0xf]  ;;  %v10274_v62 = vor.u32 %v13395_v56, %v10271_v57  ;;  %3393 = vmatpush.bf16.msrb.mxu1 %v10018_v61  ;;  %v13040_v56 = vld [vmem:[#allocation2 + $0x1a4] sm:$0xf0] }
  0xdc   :  { %v10527_v59 = vld [vmem:[#allocation2 + $0xee0] sm:$0xf0]  ;;  %v9093_v57 = vld [vmem:[#allocation2 + $0x388] sm:$0xf] }
  0xdd   :  { %v13259_v63 = vld [vmem:[#allocation2 + $0x884] sm:$0xf]  ;;  %v10530_v2 = vor.u32 %v13459_v58, %v10527_v59  ;;  %3406 = vmatpush.bf16.msrb.mxu2 %v10274_v62  ;;  %v9638_v58 = vor.u32 %v13240_v50, %v9637_v49  ;;  %v13104_v59 = vld [vmem:[#allocation2 + $0x3a4] sm:$0xf0] }
  0xde   :  { %v9727_v0 = vld [vmem:[#allocation2 + $0x8a0] sm:$0xf0]  ;;  %v13168_v61 = vld [vmem:[#allocation2 + $0x5a4] sm:$0xf0] }
  0xdf   :  { %v13323_v1 = vld [vmem:[#allocation2 + $0xa84] sm:$0xf]  ;;  %v9730_v10 = vor.u32 %v13259_v63, %v9727_v0  ;;  %3419 = vmatpush.bf16.msrb.mxu3 %v10530_v2  ;;  %v9605_v62 = vld [vmem:[#allocation2 + $0x788] sm:$0xf]  ;;  %v8838_v0 = vor.u32 %v13040_v56, %v8837_v55  ;;  %v9350_v2 = vor.u32 %v13168_v61, %v9349_v60 }
  0xe0   :  { %v9983_v3 = vld [vmem:[#allocation2 + $0xaa0] sm:$0xf0]  ;;  %v13232_v63 = vld [vmem:[#allocation2 + $0x7a4] sm:$0xf0] }
  0xe1   :  { %v13387_v4 = vld [vmem:[#allocation2 + $0xc84] sm:$0xf]  ;;  %v9986_v11 = vor.u32 %v13323_v1, %v9983_v3  ;;  %3381 = vmatpush.bf16.msrb.mxu0 %v9730_v10  ;;  %v9094_v1 = vor.u32 %v13104_v59, %v9093_v57  ;;  %v8805_v3 = vld [vmem:[#allocation2 + $0x148] sm:$0xf] }
  0xe2   :  { %v10239_v5 = vld [vmem:[#allocation2 + $0xca0] sm:$0xf0]  ;;  %v9317_v10 = vld [vmem:[#allocation2 + $0x548] sm:$0xf] }
  0xe3   :  { %v13451_v6 = vld [vmem:[#allocation2 + $0xe84] sm:$0xf]  ;;  %v10242_v12 = vor.u32 %v13387_v4, %v10239_v5  ;;  %3394 = vmatpush.bf16.msrb.mxu1 %v9986_v11  ;;  %v13032_v4 = vld [vmem:[#allocation2 + $0x164] sm:$0xf0] }
  0xe4   :  { %v10495_v7 = vld [vmem:[#allocation2 + $0xea0] sm:$0xf0]  ;;  %v9061_v5 = vld [vmem:[#allocation2 + $0x348] sm:$0xf] }
  0xe5   :  { %v13251_v13 = vld [vmem:[#allocation2 + $0x844] sm:$0xf]  ;;  %v10498_v17 = vor.u32 %v13451_v6, %v10495_v7  ;;  %3407 = vmatpush.bf16.msrb.mxu2 %v10242_v12  ;;  %v9606_v6 = vor.u32 %v13232_v63, %v9605_v62  ;;  %v13096_v7 = vld [vmem:[#allocation2 + $0x364] sm:$0xf0] }
  0xe6   :  { %v9695_v14 = vld [vmem:[#allocation2 + $0x860] sm:$0xf0]  ;;  %v13160_v11 = vld [vmem:[#allocation2 + $0x564] sm:$0xf0] }
  0xe7   :  { %v13315_v16 = vld [vmem:[#allocation2 + $0xa44] sm:$0xf]  ;;  %v9698_v23 = vor.u32 %v13251_v13, %v9695_v14  ;;  %3420 = vmatpush.bf16.msrb.mxu3 %v10498_v17  ;;  %v9573_v12 = vld [vmem:[#allocation2 + $0x748] sm:$0xf]  ;;  %v8806_v14 = vor.u32 %v13032_v4, %v8805_v3  ;;  %v9318_v17 = vor.u32 %v13160_v11, %v9317_v10 }
  0xe8   :  { %v9951_v18 = vld [vmem:[#allocation2 + $0xa60] sm:$0xf0]  ;;  %v13224_v13 = vld [vmem:[#allocation2 + $0x764] sm:$0xf0] }
  0xe9   :  { %v13379_v19 = vld [vmem:[#allocation2 + $0xc44] sm:$0xf]  ;;  %v9954_v27 = vor.u32 %v13315_v16, %v9951_v18  ;;  %3382 = vmatpush.bf16.msrb.mxu0 %v9698_v23  ;;  %v9062_v16 = vor.u32 %v13096_v7, %v9061_v5  ;;  %v8773_v18 = vld [vmem:[#allocation2 + $0x108] sm:$0xf] }
  0xea   :  { %v10207_v20 = vld [vmem:[#allocation2 + $0xc60] sm:$0xf0]  ;;  %v9285_v23 = vld [vmem:[#allocation2 + $0x508] sm:$0xf] }
  0xeb   :  { %v13443_v21 = vld [vmem:[#allocation2 + $0xe44] sm:$0xf]  ;;  %v10210_v28 = vor.u32 %v13379_v19, %v10207_v20  ;;  %3395 = vmatpush.bf16.msrb.mxu1 %v9954_v27  ;;  %v13024_v19 = vld [vmem:[#allocation2 + $0x124] sm:$0xf0] }
  0xec   :  { %v10463_v22 = vld [vmem:[#allocation2 + $0xe60] sm:$0xf0]  ;;  %v9029_v20 = vld [vmem:[#allocation2 + $0x308] sm:$0xf] }
  0xed   :  { %v13243_v24 = vld [vmem:[#allocation2 + $0x804] sm:$0xf]  ;;  %v10466_v32 = vor.u32 %v13443_v21, %v10463_v22  ;;  %3408 = vmatpush.bf16.msrb.mxu2 %v10210_v28  ;;  %v9574_v21 = vor.u32 %v13224_v13, %v9573_v12  ;;  %v13088_v22 = vld [vmem:[#allocation2 + $0x324] sm:$0xf0]  ;;  %v8774_v28 = vor.u32 %v13024_v19, %v8773_v18 }
  0xee   :  { %v9663_v26 = vld [vmem:[#allocation2 + $0x820] sm:$0xf0]  ;;  %v13216_v27 = vld [vmem:[#allocation2 + $0x724] sm:$0xf0] }
  0xef   :  { %v13307_v29 = vld [vmem:[#allocation2 + $0xa04] sm:$0xf]  ;;  %v9666_v43 = vor.u32 %v13243_v24, %v9663_v26  ;;  %3421 = vmatpush.bf16.msrb.mxu3 %v10466_v32  ;;  %v13152_v24 = vld [vmem:[#allocation2 + $0x524] sm:$0xf0] }
  0xf0   :  { %v9919_v30 = vld [vmem:[#allocation2 + $0xa20] sm:$0xf0]  ;;  %v9541_v26 = vld [vmem:[#allocation2 + $0x708] sm:$0xf] }
  0xf1   :  { %v13371_v31 = vld [vmem:[#allocation2 + $0xc04] sm:$0xf]  ;;  %v9922_v47 = vor.u32 %v13307_v29, %v9919_v30  ;;  %3383 = vmatpush.bf16.msrb.mxu0 %v9666_v43  ;;  %v9030_v29 = vor.u32 %v13088_v22, %v9029_v20  ;;  %v9286_v30 = vor.u32 %v13152_v24, %v9285_v23  ;;  %v13016_v32 = vld [vmem:[#allocation2 + $0xe4] sm:$0xf0] }
  0xf2   :  { %v10175_v33 = vld [vmem:[#allocation2 + $0xc20] sm:$0xf0]  ;;  %v13144_v41 = vld [vmem:[#allocation2 + $0x4e4] sm:$0xf0] }
  0xf3   :  { %v13435_v35 = vld [vmem:[#allocation2 + $0xe04] sm:$0xf]  ;;  %v10178_v48 = vor.u32 %v13371_v31, %v10175_v33  ;;  %3396 = vmatpush.bf16.msrb.mxu1 %v9922_v47  ;;  %v8741_v31 = vld [vmem:[#allocation2 + $0xc8] sm:$0xf]  ;;  %v9254_v46 = vor.u32 %v13144_v41, %v9253_v39 }
  0xf4   :  { %v10431_v36 = vld [vmem:[#allocation2 + $0xe20] sm:$0xf0]  ;;  %3384 = vmatmul.bf16.vlgmr.msrb.gmra.mxu0 %v14350_v37  ;;  %v8997_v33 = vld [vmem:[#allocation2 + $0x2c8] sm:$0xf]  ;;  %v8742_v44 = vor.u32 %v13016_v32, %v8741_v31 }
  0xf5   :  { %v10434_v51 = vor.u32 %v13435_v35, %v10431_v36  ;;  %3409 = vmatpush.bf16.msrb.mxu2 %v10178_v48  ;;  %3428 = vmatpush.bf16.msra.mxu0 %v8870_v52  ;;  %v9542_v35 = vor.u32 %v13216_v27, %v9541_v26  ;;  %v13080_v36 = vld [vmem:[#allocation2 + $0x2e4] sm:$0xf0] }
  0xf6   :  { %3397 = vmatmul.bf16.vlgmr.msrb.gmra.mxu1 %v14354_v40  ;;  %v9509_v42 = vld [vmem:[#allocation2 + $0x6c8] sm:$0xf]  ;;  %v8998_v45 = vor.u32 %v13080_v36, %v8997_v33 }
  0xf7   :  { %3422 = vmatpush.bf16.msrb.mxu3 %v10434_v51  ;;  %3441 = vmatpush.bf16.msra.mxu1 %v9126_v53  ;;  %v13208_v43 = vld [vmem:[#allocation2 + $0x6e4] sm:$0xf0] }
  0xf8   :  { %3410 = vmatmul.bf16.vlgmr.msrb.gmra.mxu2 %v14348_v34  ;;  %v8709_v47 = vld [vmem:[#allocation2 + $0x88] sm:$0xf]  ;;  %v9510_v50 = vor.u32 %v13208_v43, %v9509_v42 }
  0xf9   :  { %3454 = vmatpush.bf16.msra.mxu2 %v9382_v54  ;;  %3429 = vmatpush.bf16.msra.mxu0 %v8838_v0  ;;  %v13008_v48 = vld [vmem:[#allocation2 + $0xa4] sm:$0xf0] }
  0xfa   :  { %3423 = vmatmul.bf16.vlgmr.msrb.gmra.mxu3 %v14352_v38  ;;  %v8965_v49 = vld [vmem:[#allocation2 + $0x288] sm:$0xf]  ;;  %v8710_v56 = vor.u32 %v13008_v48, %v8709_v47 }
  0xfb   :  { %3467 = vmatpush.bf16.msra.mxu3 %v9638_v58  ;;  %3442 = vmatpush.bf16.msra.mxu1 %v9094_v1  ;;  %v13072_v51 = vld [vmem:[#allocation2 + $0x2a4] sm:$0xf0] }
  0xfc   :  { %v9221_v52 = vld [vmem:[#allocation2 + $0x488] sm:$0xf]  ;;  %v8966_v57 = vor.u32 %v13072_v51, %v8965_v49 }
  0xfd   :  { %3455 = vmatpush.bf16.msra.mxu2 %v9350_v2  ;;  %3430 = vmatpush.bf16.msra.mxu0 %v8806_v14  ;;  %v13136_v53 = vld [vmem:[#allocation2 + $0x4a4] sm:$0xf0] }
  0xfe   :  { %v9477_v54 = vld [vmem:[#allocation2 + $0x688] sm:$0xf]  ;;  %v9222_v58 = vor.u32 %v13136_v53, %v9221_v52 }
  0xff   :  { %3468 = vmatpush.bf16.msra.mxu3 %v9606_v6  ;;  %3443 = vmatpush.bf16.msra.mxu1 %v9062_v16  ;;  %v13200_v55 = vld [vmem:[#allocation2 + $0x6a4] sm:$0xf0] }
 0x100   :  { %v8677_v59 = vld [vmem:[#allocation2 + $0x48] sm:$0xf]  ;;  %v9478_v62 = vor.u32 %v13200_v55, %v9477_v54 }
 0x101   :  { %3456 = vmatpush.bf16.msra.mxu2 %v9318_v17  ;;  %3431 = vmatpush.bf16.msra.mxu0 %v8774_v28  ;;  %v13000_v60 = vld [vmem:[#allocation2 + $0x64] sm:$0xf0] }
 0x102   :  { %v8933_v61 = vld [vmem:[#allocation2 + $0x248] sm:$0xf]  ;;  %v8678_v4 = vor.u32 %v13000_v60, %v8677_v59 }
 0x103   :  { %3469 = vmatpush.bf16.msra.mxu3 %v9574_v21  ;;  %3444 = vmatpush.bf16.msra.mxu1 %v9030_v29  ;;  %v13064_v63 = vld [vmem:[#allocation2 + $0x264] sm:$0xf0] }
 0x104   :  { %v9189_v0 = vld [vmem:[#allocation2 + $0x448] sm:$0xf]  ;;  %v8934_v7 = vor.u32 %v13064_v63, %v8933_v61 }
 0x105   :  { %3457 = vmatpush.bf16.msra.mxu2 %v9286_v30  ;;  %3432 = vmatpush.bf16.msra.mxu0 %v8742_v44  ;;  %v13128_v1 = vld [vmem:[#allocation2 + $0x464] sm:$0xf0] }
 0x106   :  { %v9445_v2 = vld [vmem:[#allocation2 + $0x648] sm:$0xf]  ;;  %v9190_v10 = vor.u32 %v13128_v1, %v9189_v0 }
 0x107   :  { %3470 = vmatpush.bf16.msra.mxu3 %v9542_v35  ;;  %3445 = vmatpush.bf16.msra.mxu1 %v8998_v45  ;;  %v13192_v3 = vld [vmem:[#allocation2 + $0x664] sm:$0xf0] }
 0x108   :  { %v8645_v5 = vld [vmem:[#allocation2 + $0x8] sm:$0xf]  ;;  %v9446_v14 = vor.u32 %v13192_v3, %v9445_v2 }
 0x109   :  { %3458 = vmatpush.bf16.msra.mxu2 %v9254_v46  ;;  %3433 = vmatpush.bf16.msra.mxu0 %v8710_v56  ;;  %v12992_v6 = vld [vmem:[#allocation2 + $0x24] sm:$0xf0] }
 0x10a   :  { %v8901_v11 = vld [vmem:[#allocation2 + $0x208] sm:$0xf]  ;;  %v8646_v22 = vor.u32 %v12992_v6, %v8645_v5  ;;  %v14372_v6 = vld [vmem:[#allocation4] sm:$0xff] }
 0x10b   :  { %3471 = vmatpush.bf16.msra.mxu3 %v9510_v50  ;;  %3446 = vmatpush.bf16.msra.mxu1 %v8966_v57  ;;  %v13056_v12 = vld [vmem:[#allocation2 + $0x224] sm:$0xf0] }
 0x10c   :  { %v9157_v13 = vld [vmem:[#allocation2 + $0x408] sm:$0xf]  ;;  %v8902_v27 = vor.u32 %v13056_v12, %v8901_v11 }
 0x10d   :  { %3459 = vmatpush.bf16.msra.mxu2 %v9222_v58  ;;  %v13120_v16 = vld [vmem:[#allocation2 + $0x424] sm:$0xf0]  ;;  %3434 = vmatpush.bf16.msra.mxu0 %v8678_v4 }
 0x10e   :  { %v9413_v17 = vld [vmem:[#allocation2 + $0x608] sm:$0xf]  ;;  %v9158_v28 = vor.u32 %v13120_v16, %v9157_v13 }
 0x10f   :  { %3472 = vmatpush.bf16.msra.mxu3 %v9478_v62  ;;  %v13184_v18 = vld [vmem:[#allocation2 + $0x624] sm:$0xf0]  ;;  %3447 = vmatpush.bf16.msra.mxu1 %v8934_v7 }
 0x110   :  { %v9893_v19 = vld [vmem:[#allocation2 + $0x9c8] sm:$0xf]  ;;  %v9414_v31 = vor.u32 %v13184_v18, %v9413_v17  ;;  %v644_v18 = vperm.slane %v14372_v6, 0 }
 0x111   :  { %v13304_v20 = vld [vmem:[#allocation2 + $0x9e4] sm:$0xf0]  ;;  %3460 = vmatpush.bf16.msra.mxu2 %v9190_v10  ;;  %3435 = vmatpush.bf16.msra.mxu0 %v8646_v22 }
 0x112   :  { %v10149_v21 = vld [vmem:[#allocation2 + $0xbc8] sm:$0xf]  ;;  %v9894_v32 = vor.u32 %v13304_v20, %v9893_v19 }
 0x113   :  { %v13368_v23 = vld [vmem:[#allocation2 + $0xbe4] sm:$0xf0]  ;;  %3473 = vmatpush.bf16.msra.mxu3 %v9446_v14  ;;  %3448 = vmatpush.bf16.msra.mxu1 %v8902_v27  ;;  %v3229_v27 = vpop.f32.mrf.mxu0 }
 0x114   :  { %v10405_v24 = vld [vmem:[#allocation2 + $0xdc8] sm:$0xf]  ;;  %v10150_v33 = vor.u32 %v13368_v23, %v10149_v21  ;;  %3436 = vmatmul.bf16.vlgmr.msra.gmra.mxu0 %v14320_v9 }
 0x115   :  { %v13432_v26 = vld [vmem:[#allocation2 + $0xde4] sm:$0xf0]  ;;  %3461 = vmatpush.bf16.msra.mxu2 %v9158_v28  ;;  %3480 = vmatpush.bf16.msrb.mxu0 %v9894_v32 }
 0x116   :  { %v10661_v29 = vld [vmem:[#allocation2 + $0xfc8] sm:$0xf]  ;;  %v10406_v35 = vor.u32 %v13432_v26, %v10405_v24  ;;  %3449 = vmatmul.bf16.vlgmr.msra.gmra.mxu1 %v14333_v25 }
 0x117   :  { %v13496_v30 = vld [vmem:[#allocation2 + $0xfe4] sm:$0xf0]  ;;  %3474 = vmatpush.bf16.msra.mxu3 %v9414_v31  ;;  %3493 = vmatpush.bf16.msrb.mxu1 %v10150_v33  ;;  %v3230_v33 = vadd.f32 %v3229_v27, %v644_v18  ;;  %v9639_v27 = vld [vmem:[#allocation2 + $0x7e8] sm:$0xf0] }
 0x118   :  { %v9861_v36 = vld [vmem:[#allocation2 + $0x988] sm:$0xf]  ;;  %v10662_v42 = vor.u32 %v13496_v30, %v10661_v29  ;;  %3462 = vmatmul.bf16.vlgmr.msra.gmra.mxu2 %v14318_v8 }
 0x119   :  { %v13296_v39 = vld [vmem:[#allocation2 + $0x9a4] sm:$0xf0]  ;;  %3506 = vmatpush.bf16.msrb.mxu2 %v10406_v35 }
 0x11a   :  { %v10117_v41 = vld [vmem:[#allocation2 + $0xb88] sm:$0xf]  ;;  %v9862_v48 = vor.u32 %v13296_v39, %v9861_v36  ;;  %3475 = vmatmul.bf16.vlgmr.msra.gmra.mxu3 %v14325_v15 }
 0x11b   :  { %v13360_v43 = vld [vmem:[#allocation2 + $0xba4] sm:$0xf0]  ;;  %3519 = vmatpush.bf16.msrb.mxu3 %v10662_v42 }
 0x11c   :  { %v10373_v44 = vld [vmem:[#allocation2 + $0xd88] sm:$0xf]  ;;  %v10118_v49 = vor.u32 %v13360_v43, %v10117_v41  ;;  %3481 = vmatpush.bf16.msrb.mxu0 %v9862_v48 }
 0x11d   :  { %v13424_v45 = vld [vmem:[#allocation2 + $0xda4] sm:$0xf0] }
 0x11e   :  { %v10629_v46 = vld [vmem:[#allocation2 + $0xf88] sm:$0xf]  ;;  %v10374_v50 = vor.u32 %v13424_v45, %v10373_v44  ;;  %3494 = vmatpush.bf16.msrb.mxu1 %v10118_v49  ;;  %v3242_v45 = vpop.f32.mrf.mxu1 }
 0x11f   :  { %v13488_v47 = vld [vmem:[#allocation2 + $0xfa4] sm:$0xf0] }
 0x120   :  { %v9829_v51 = vld [vmem:[#allocation2 + $0x948] sm:$0xf]  ;;  %v10630_v54 = vor.u32 %v13488_v47, %v10629_v46  ;;  %3507 = vmatpush.bf16.msrb.mxu2 %v10374_v50 }
 0x121   :  { %v13288_v52 = vld [vmem:[#allocation2 + $0x964] sm:$0xf0] }
 0x122   :  { %v10085_v53 = vld [vmem:[#allocation2 + $0xb48] sm:$0xf]  ;;  %v9830_v60 = vor.u32 %v13288_v52, %v9829_v51  ;;  %3520 = vmatpush.bf16.msrb.mxu3 %v10630_v54  ;;  %v3243_v51 = vadd.f32 %v3242_v45, %v3230_v33  ;;  %v13036_v33 = vld [vmem:[#allocation2 + $0x18c] sm:$0xf] }
 0x123   :  { %v13352_v55 = vld [vmem:[#allocation2 + $0xb64] sm:$0xf0]  ;;  %v13228_v45 = vld [vmem:[#allocation2 + $0x78c] sm:$0xf] }
 0x124   :  { %v10341_v56 = vld [vmem:[#allocation2 + $0xd48] sm:$0xf]  ;;  %v10086_v62 = vor.u32 %v13352_v55, %v10085_v53  ;;  %3482 = vmatpush.bf16.msrb.mxu0 %v9830_v60  ;;  %v3268_v60 = vpop.f32.mrf.mxu3 }
 0x125   :  { %v13416_v57 = vld [vmem:[#allocation2 + $0xd64] sm:$0xf0] }
 0x126   :  { %v10597_v58 = vld [vmem:[#allocation2 + $0xf48] sm:$0xf]  ;;  %v10342_v63 = vor.u32 %v13416_v57, %v10341_v56  ;;  %3495 = vmatpush.bf16.msrb.mxu1 %v10086_v62  ;;  %v3255_v56 = vpop.f32.mrf.mxu2 }
 0x127   :  { %v13480_v59 = vld [vmem:[#allocation2 + $0xf64] sm:$0xf0] }
 0x128   :  { %v9797_v61 = vld [vmem:[#allocation2 + $0x908] sm:$0xf]  ;;  %v10598_v3 = vor.u32 %v13480_v59, %v10597_v58  ;;  %3508 = vmatpush.bf16.msrb.mxu2 %v10342_v63  ;;  %v3256_v59 = vadd.f32 %v3255_v56, %v3243_v51  ;;  %v8807_v51 = vld [vmem:[#allocation2 + $0x168] sm:$0xf0] }
 0x129   :  { %v13280_v0 = vld [vmem:[#allocation2 + $0x924] sm:$0xf0]  ;;  %v9319_v56 = vld [vmem:[#allocation2 + $0x568] sm:$0xf0] }
 0x12a   :  { %v10053_v1 = vld [vmem:[#allocation2 + $0xb08] sm:$0xf]  ;;  %v9798_v11 = vor.u32 %v13280_v0, %v9797_v61  ;;  %3521 = vmatpush.bf16.msrb.mxu3 %v10598_v3  ;;  %v3231_v0 = vpop.f32.mrf.mxu0 }
 0x12b   :  { %v13344_v2 = vld [vmem:[#allocation2 + $0xb24] sm:$0xf0]  ;;  %v13084_v0 = vld [vmem:[#allocation2 + $0x30c] sm:$0xf] }
 0x12c   :  { %v10309_v4 = vld [vmem:[#allocation2 + $0xd08] sm:$0xf]  ;;  %v10054_v13 = vor.u32 %v13344_v2, %v10053_v1  ;;  %3483 = vmatpush.bf16.msrb.mxu0 %v9798_v11 }
 0x12d   :  { %v13408_v5 = vld [vmem:[#allocation2 + $0xd24] sm:$0xf0] }
 0x12e   :  { %v10565_v7 = vld [vmem:[#allocation2 + $0xf08] sm:$0xf]  ;;  %v10310_v14 = vor.u32 %v13408_v5, %v10309_v4  ;;  %3496 = vmatpush.bf16.msrb.mxu1 %v10054_v13 }
 0x12f   :  { %v13472_v10 = vld [vmem:[#allocation2 + $0xf24] sm:$0xf0] }
 0x130   :  { %v9765_v12 = vld [vmem:[#allocation2 + $0x8c8] sm:$0xf]  ;;  %v10566_v19 = vor.u32 %v13472_v10, %v10565_v7  ;;  %3509 = vmatpush.bf16.msrb.mxu2 %v10310_v14  ;;  %v14375_v7 = vadd.f32 %v3268_v60, %v3256_v59  ;;  %v13044_v14 = vld [vmem:[#allocation2 + $0x1cc] sm:$0xf] }
 0x131   :  { %v13272_v16 = vld [vmem:[#allocation2 + $0x8e4] sm:$0xf0] }
 0x132   :  { %v10021_v17 = vld [vmem:[#allocation2 + $0xac8] sm:$0xf]  ;;  %v9766_v26 = vor.u32 %v13272_v16, %v9765_v12  ;;  %3522 = vmatpush.bf16.msrb.mxu3 %v10566_v19  ;;  %v8871_v16 = vld [vmem:[#allocation2 + $0x1e8] sm:$0xf0] }
 0x133   :  { %v13336_v20 = vld [vmem:[#allocation2 + $0xae4] sm:$0xf0]  ;;  %v9127_v19 = vld [vmem:[#allocation2 + $0x3e8] sm:$0xf0] }
 0x134   :  { %v10277_v21 = vld [vmem:[#allocation2 + $0xcc8] sm:$0xf]  ;;  %v10022_v28 = vor.u32 %v13336_v20, %v10021_v17  ;;  %3484 = vmatpush.bf16.msrb.mxu0 %v9766_v26  ;;  %v13108_v17 = vld [vmem:[#allocation2 + $0x3cc] sm:$0xf] }
 0x135   :  { %v13400_v22 = vld [vmem:[#allocation2 + $0xce4] sm:$0xf0]  ;;  %v13172_v20 = vld [vmem:[#allocation2 + $0x5cc] sm:$0xf] }
 0x136   :  { %v10533_v23 = vld [vmem:[#allocation2 + $0xec8] sm:$0xf]  ;;  %v10278_v29 = vor.u32 %v13400_v22, %v10277_v21  ;;  %3497 = vmatpush.bf16.msrb.mxu1 %v10022_v28  ;;  %v9383_v21 = vld [vmem:[#allocation2 + $0x5e8] sm:$0xf0]  ;;  %v3244_v22 = vpop.f32.mrf.mxu1 }
 0x137   :  { %v13464_v24 = vld [vmem:[#allocation2 + $0xee4] sm:$0xf0]  ;;  %v13236_v26 = vld [vmem:[#allocation2 + $0x7cc] sm:$0xf] }
 0x138   :  { %v9733_v30 = vld [vmem:[#allocation2 + $0x888] sm:$0xf]  ;;  %v10534_v35 = vor.u32 %v13464_v24, %v10533_v23  ;;  %3510 = vmatpush.bf16.msrb.mxu2 %v10278_v29  ;;  %v8874_v29 = vor.u32 %v13044_v14, %v8871_v16  ;;  %v13012_v16 = vld [vmem:[#allocation2 + $0xcc] sm:$0xf] }
 0x139   :  { %v13264_v31 = vld [vmem:[#allocation2 + $0x8a4] sm:$0xf0]  ;;  %v8999_v22 = vld [vmem:[#allocation2 + $0x2e8] sm:$0xf0] }
 0x13a   :  { %v9989_v32 = vld [vmem:[#allocation2 + $0xa88] sm:$0xf]  ;;  %v9734_v44 = vor.u32 %v13264_v31, %v9733_v30  ;;  %3523 = vmatpush.bf16.msrb.mxu3 %v10534_v35  ;;  %v3257_v30 = vpop.f32.mrf.mxu2  ;;  %v9130_v31 = vor.u32 %v13108_v17, %v9127_v19  ;;  %v8839_v35 = vld [vmem:[#allocation2 + $0x1a8] sm:$0xf0] }
 0x13b   :  { %v13328_v36 = vld [vmem:[#allocation2 + $0xaa4] sm:$0xf0]  ;;  %v8743_v17 = vld [vmem:[#allocation2 + $0xe8] sm:$0xf0] }
 0x13c   :  { %v10245_v39 = vld [vmem:[#allocation2 + $0xc88] sm:$0xf]  ;;  %v9990_v46 = vor.u32 %v13328_v36, %v9989_v32  ;;  %3485 = vmatpush.bf16.msrb.mxu0 %v9734_v44  ;;  %v9386_v32 = vor.u32 %v13172_v20, %v9383_v21  ;;  %v13100_v36 = vld [vmem:[#allocation2 + $0x38c] sm:$0xf] }
 0x13d   :  { %v13392_v41 = vld [vmem:[#allocation2 + $0xca4] sm:$0xf0]  ;;  %v9351_v44 = vld [vmem:[#allocation2 + $0x5a8] sm:$0xf0] }
 0x13e   :  { %v10501_v42 = vld [vmem:[#allocation2 + $0xe88] sm:$0xf]  ;;  %v10246_v47 = vor.u32 %v13392_v41, %v10245_v39  ;;  %3498 = vmatpush.bf16.msrb.mxu1 %v9990_v46  ;;  %v3270_v39 = vpop.f32.mrf.mxu3  ;;  %v9642_v41 = vor.u32 %v13236_v26, %v9639_v27  ;;  %v9607_v46 = vld [vmem:[#allocation2 + $0x7a8] sm:$0xf0]  ;;  %v3294_v20 = vpop.f32.mrf.mxu1 }
 0x13f   :  { %v13456_v43 = vld [vmem:[#allocation2 + $0xea4] sm:$0xf0]  ;;  %v13204_v26 = vld [vmem:[#allocation2 + $0x6cc] sm:$0xf] }
 0x140   :  { %v9701_v48 = vld [vmem:[#allocation2 + $0x848] sm:$0xf]  ;;  %v10502_v52 = vor.u32 %v13456_v43, %v10501_v42  ;;  %3511 = vmatpush.bf16.msrb.mxu2 %v10246_v47  ;;  %v9095_v42 = vld [vmem:[#allocation2 + $0x3a8] sm:$0xf0]  ;;  %v8842_v47 = vor.u32 %v13036_v33, %v8839_v35 }
 0x141   :  { %v13256_v49 = vld [vmem:[#allocation2 + $0x864] sm:$0xf0]  ;;  %v13164_v43 = vld [vmem:[#allocation2 + $0x58c] sm:$0xf] }
 0x142   :  { %v9957_v50 = vld [vmem:[#allocation2 + $0xa48] sm:$0xf]  ;;  %v9702_v61 = vor.u32 %v13256_v49, %v9701_v48  ;;  %3524 = vmatpush.bf16.msrb.mxu3 %v10502_v52  ;;  %v9098_v48 = vor.u32 %v13100_v36, %v9095_v42  ;;  %v9354_v49 = vor.u32 %v13164_v43, %v9351_v44  ;;  %v13092_v52 = vld [vmem:[#allocation2 + $0x34c] sm:$0xf]  ;;  %v3307_v36 = vpop.f32.mrf.mxu2 }
 0x143   :  { %v13320_v53 = vld [vmem:[#allocation2 + $0xa64] sm:$0xf0]  ;;  %v9511_v27 = vld [vmem:[#allocation2 + $0x6e8] sm:$0xf0] }
 0x144   :  { %v10213_v54 = vld [vmem:[#allocation2 + $0xc48] sm:$0xf]  ;;  %v9958_v1 = vor.u32 %v13320_v53, %v9957_v50  ;;  %3486 = vmatpush.bf16.msrb.mxu0 %v9702_v61  ;;  %v13028_v50 = vld [vmem:[#allocation2 + $0x14c] sm:$0xf]  ;;  %v9610_v53 = vor.u32 %v13228_v45, %v9607_v46 }
 0x145   :  { %v13384_v55 = vld [vmem:[#allocation2 + $0xc64] sm:$0xf0]  ;;  %v8810_v59 = vor.u32 %v13028_v50, %v8807_v51  ;;  %v8711_v33 = vld [vmem:[#allocation2 + $0xa8] sm:$0xf0] }
 0x146   :  { %v10469_v57 = vld [vmem:[#allocation2 + $0xe48] sm:$0xf]  ;;  %v10214_v2 = vor.u32 %v13384_v55, %v10213_v54  ;;  %3499 = vmatpush.bf16.msrb.mxu1 %v9958_v1  ;;  %v9063_v54 = vld [vmem:[#allocation2 + $0x368] sm:$0xf0]  ;;  %v3320_v44 = vpop.f32.mrf.mxu3 }
 0x147   :  { %v13448_v58 = vld [vmem:[#allocation2 + $0xe64] sm:$0xf0]  ;;  %v13156_v55 = vld [vmem:[#allocation2 + $0x54c] sm:$0xf]  ;;  %v9066_v60 = vor.u32 %v13092_v52, %v9063_v54 }
 0x148   :  { %v9669_v62 = vld [vmem:[#allocation2 + $0x808] sm:$0xf]  ;;  %v10470_v10 = vor.u32 %v13448_v58, %v10469_v57  ;;  %3512 = vmatpush.bf16.msrb.mxu2 %v10214_v2  ;;  %v13220_v57 = vld [vmem:[#allocation2 + $0x74c] sm:$0xf]  ;;  %v9322_v61 = vor.u32 %v13156_v55, %v9319_v56  ;;  %v3296_v55 = vpop.f32.mrf.mxu1 }
 0x149   :  { %v13248_v63 = vld [vmem:[#allocation2 + $0x824] sm:$0xf0]  ;;  %v9575_v58 = vld [vmem:[#allocation2 + $0x768] sm:$0xf0] }
 0x14a   :  { %v9925_v3 = vld [vmem:[#allocation2 + $0xa08] sm:$0xf]  ;;  %v9670_v18 = vor.u32 %v13248_v63, %v9669_v62  ;;  %3525 = vmatpush.bf16.msrb.mxu3 %v10470_v10  ;;  %v13020_v62 = vld [vmem:[#allocation2 + $0x10c] sm:$0xf]  ;;  %v9578_v1 = vor.u32 %v13220_v57, %v9575_v58 }
 0x14b   :  { %v13312_v4 = vld [vmem:[#allocation2 + $0xa24] sm:$0xf0]  ;;  %v8775_v63 = vld [vmem:[#allocation2 + $0x128] sm:$0xf0] }
 0x14c   :  { %v10181_v5 = vld [vmem:[#allocation2 + $0xc08] sm:$0xf]  ;;  %v9926_v23 = vor.u32 %v13312_v4, %v9925_v3  ;;  %3487 = vmatpush.bf16.msrb.mxu0 %v9670_v18  ;;  %v9031_v2 = vld [vmem:[#allocation2 + $0x328] sm:$0xf0] }
 0x14d   :  { %v13376_v11 = vld [vmem:[#allocation2 + $0xc24] sm:$0xf0]  ;;  %v13148_v3 = vld [vmem:[#allocation2 + $0x50c] sm:$0xf] }
 0x14e   :  { %v10437_v12 = vld [vmem:[#allocation2 + $0xe08] sm:$0xf]  ;;  %v10182_v24 = vor.u32 %v13376_v11, %v10181_v5  ;;  %3500 = vmatpush.bf16.msrb.mxu1 %v9926_v23  ;;  %v9287_v4 = vld [vmem:[#allocation2 + $0x528] sm:$0xf0]  ;;  %v8778_v11 = vor.u32 %v13020_v62, %v8775_v63 }
 0x14f   :  { %v13440_v13 = vld [vmem:[#allocation2 + $0xe24] sm:$0xf0]  ;;  %3488 = vmatmul.bf16.vlgmr.msrb.gmra.mxu0 %v14350_v37  ;;  %v13212_v5 = vld [vmem:[#allocation2 + $0x70c] sm:$0xf]  ;;  %v9290_v14 = vor.u32 %v13148_v3, %v9287_v4 }
 0x150   :  { %v10438_v28 = vor.u32 %v13440_v13, %v10437_v12  ;;  %3513 = vmatpush.bf16.msrb.mxu2 %v10182_v24  ;;  %3532 = vmatpush.bf16.msra.mxu0 %v8874_v29  ;;  %v9543_v10 = vld [vmem:[#allocation2 + $0x728] sm:$0xf0]  ;;  %v3281_v12 = vpop.f32.mrf.mxu0  ;;  %v9034_v13 = vor.u32 %v13084_v0, %v9031_v2  ;;  %v8746_v29 = vor.u32 %v13012_v16, %v8743_v17  ;;  %v3322_v16 = vpop.f32.mrf.mxu3 }
 0x151   :  { %3501 = vmatmul.bf16.vlgmr.msrb.gmra.mxu1 %v14354_v40  ;;  %v13076_v18 = vld [vmem:[#allocation2 + $0x2cc] sm:$0xf]  ;;  %v3282_v19 = vadd.f32 %v3281_v12, %v14375_v7  ;;  %v9546_v21 = vor.u32 %v13212_v5, %v9543_v10  ;;  %v9514_v7 = vor.u32 %v13204_v26, %v9511_v27  ;;  %v3309_v10 = vpop.f32.mrf.mxu2 }
 0x152   :  { %3526 = vmatpush.bf16.msrb.mxu3 %v10438_v28  ;;  %3545 = vmatpush.bf16.msra.mxu1 %v9130_v31  ;;  %v13140_v23 = vld [vmem:[#allocation2 + $0x4cc] sm:$0xf]  ;;  %v9002_v30 = vor.u32 %v13076_v18, %v8999_v22 }
 0x153   :  { %3514 = vmatmul.bf16.vlgmr.msrb.gmra.mxu2 %v14348_v34  ;;  %v9255_v24 = vld [vmem:[#allocation2 + $0x4e8] sm:$0xf0]  ;;  %v3295_v28 = vadd.f32 %v3294_v20, %v3282_v19 }
 0x154   :  { %3558 = vmatpush.bf16.msra.mxu2 %v9386_v32  ;;  %3533 = vmatpush.bf16.msra.mxu0 %v8842_v47  ;;  %v9258_v31 = vor.u32 %v13140_v23, %v9255_v24  ;;  %v13004_v32 = vld [vmem:[#allocation2 + $0x8c] sm:$0xf] }
 0x155   :  { %3527 = vmatmul.bf16.vlgmr.msrb.gmra.mxu3 %v14352_v38  ;;  %v13068_v35 = vld [vmem:[#allocation2 + $0x28c] sm:$0xf]  ;;  %v3308_v43 = vadd.f32 %v3307_v36, %v3295_v28  ;;  %v8714_v47 = vor.u32 %v13004_v32, %v8711_v33 }
 0x156   :  { %3571 = vmatpush.bf16.msra.mxu3 %v9642_v41  ;;  %3546 = vmatpush.bf16.msra.mxu1 %v9098_v48  ;;  %v8967_v39 = vld [vmem:[#allocation2 + $0x2a8] sm:$0xf0] }
 0x157   :  { %v13132_v41 = vld [vmem:[#allocation2 + $0x48c] sm:$0xf]  ;;  %v14382_v48 = vadd.f32 %v3320_v44, %v3308_v43  ;;  %v8970_v50 = vor.u32 %v13068_v35, %v8967_v39 }
 0x158   :  { %3559 = vmatpush.bf16.msra.mxu2 %v9354_v49  ;;  %3534 = vmatpush.bf16.msra.mxu0 %v8810_v59  ;;  %v9223_v42 = vld [vmem:[#allocation2 + $0x4a8] sm:$0xf0]  ;;  %v3283_v49 = vpop.f32.mrf.mxu0 }
 0x159   :  { %v13196_v45 = vld [vmem:[#allocation2 + $0x68c] sm:$0xf]  ;;  %v9226_v51 = vor.u32 %v13132_v41, %v9223_v42 }
 0x15a   :  { %3572 = vmatpush.bf16.msra.mxu3 %v9610_v53  ;;  %3547 = vmatpush.bf16.msra.mxu1 %v9066_v60  ;;  %v9479_v46 = vld [vmem:[#allocation2 + $0x6a8] sm:$0xf0] }
 0x15b   :  { %v12996_v52 = vld [vmem:[#allocation2 + $0x4c] sm:$0xf]  ;;  %v9482_v56 = vor.u32 %v13196_v45, %v9479_v46 }
 0x15c   :  { %3560 = vmatpush.bf16.msra.mxu2 %v9322_v61  ;;  %3535 = vmatpush.bf16.msra.mxu0 %v8778_v11  ;;  %v8679_v53 = vld [vmem:[#allocation2 + $0x68] sm:$0xf0] }
 0x15d   :  { %v13060_v54 = vld [vmem:[#allocation2 + $0x24c] sm:$0xf]  ;;  %v8682_v62 = vor.u32 %v12996_v52, %v8679_v53 }
 0x15e   :  { %3573 = vmatpush.bf16.msra.mxu3 %v9578_v1  ;;  %3548 = vmatpush.bf16.msra.mxu1 %v9034_v13  ;;  %v8935_v57 = vld [vmem:[#allocation2 + $0x268] sm:$0xf0] }
 0x15f   :  { %v13124_v58 = vld [vmem:[#allocation2 + $0x44c] sm:$0xf]  ;;  %v8938_v1 = vor.u32 %v13060_v54, %v8935_v57 }
 0x160   :  { %3561 = vmatpush.bf16.msra.mxu2 %v9290_v14  ;;  %3536 = vmatpush.bf16.msra.mxu0 %v8746_v29  ;;  %v9191_v59 = vld [vmem:[#allocation2 + $0x468] sm:$0xf0] }
 0x161   :  { %v13188_v60 = vld [vmem:[#allocation2 + $0x64c] sm:$0xf]  ;;  %v9194_v2 = vor.u32 %v13124_v58, %v9191_v59 }
 0x162   :  { %3574 = vmatpush.bf16.msra.mxu3 %v9546_v21  ;;  %3549 = vmatpush.bf16.msra.mxu1 %v9002_v30  ;;  %v9447_v61 = vld [vmem:[#allocation2 + $0x668] sm:$0xf0] }
 0x163   :  { %v12988_v63 = vld [vmem:[#allocation2 + $0xc] sm:$0xf]  ;;  %v9450_v11 = vor.u32 %v13188_v60, %v9447_v61 }
 0x164   :  { %3562 = vmatpush.bf16.msra.mxu2 %v9258_v31  ;;  %3537 = vmatpush.bf16.msra.mxu0 %v8714_v47  ;;  %v8647_v0 = vld [vmem:[#allocation2 + $0x28] sm:$0xf0] }
 0x165   :  { %v13052_v3 = vld [vmem:[#allocation2 + $0x20c] sm:$0xf]  ;;  %v8650_v20 = vor.u32 %v12988_v63, %v8647_v0  ;;  %v645_v0 = vperm.slane %v14372_v6, 1 }
 0x166   :  { %3575 = vmatpush.bf16.msra.mxu3 %v9514_v7  ;;  %3550 = vmatpush.bf16.msra.mxu1 %v8970_v50  ;;  %v8903_v4 = vld [vmem:[#allocation2 + $0x228] sm:$0xf0] }
 0x167   :  { %v13116_v5 = vld [vmem:[#allocation2 + $0x40c] sm:$0xf]  ;;  %v8906_v24 = vor.u32 %v13052_v3, %v8903_v4 }
 0x168   :  { %3563 = vmatpush.bf16.msra.mxu2 %v9226_v51  ;;  %v9159_v12 = vld [vmem:[#allocation2 + $0x428] sm:$0xf0]  ;;  %3538 = vmatpush.bf16.msra.mxu0 %v8682_v62 }
 0x169   :  { %v13180_v13 = vld [vmem:[#allocation2 + $0x60c] sm:$0xf]  ;;  %v9162_v26 = vor.u32 %v13116_v5, %v9159_v12  ;;  %v3333_v12 = vpop.f32.mrf.mxu0 }
 0x16a   :  { %3576 = vmatpush.bf16.msra.mxu3 %v9482_v56  ;;  %v9415_v14 = vld [vmem:[#allocation2 + $0x628] sm:$0xf0]  ;;  %3551 = vmatpush.bf16.msra.mxu1 %v8938_v1 }
 0x16b   :  { %v13300_v17 = vld [vmem:[#allocation2 + $0x9cc] sm:$0xf]  ;;  %v9418_v29 = vor.u32 %v13180_v13, %v9415_v14 }
 0x16c   :  { %v9895_v18 = vld [vmem:[#allocation2 + $0x9e8] sm:$0xf0]  ;;  %3564 = vmatpush.bf16.msra.mxu2 %v9194_v2  ;;  %3539 = vmatpush.bf16.msra.mxu0 %v8650_v20  ;;  %v3346_v20 = vpop.f32.mrf.mxu1 }
 0x16d   :  { %v13364_v19 = vld [vmem:[#allocation2 + $0xbcc] sm:$0xf]  ;;  %v9898_v30 = vor.u32 %v13300_v17, %v9895_v18 }
 0x16e   :  { %v10151_v21 = vld [vmem:[#allocation2 + $0xbe8] sm:$0xf0]  ;;  %3577 = vmatpush.bf16.msra.mxu3 %v9450_v11  ;;  %3552 = vmatpush.bf16.msra.mxu1 %v8906_v24 }
 0x16f   :  { %v13428_v22 = vld [vmem:[#allocation2 + $0xdcc] sm:$0xf]  ;;  %v10154_v31 = vor.u32 %v13364_v19, %v10151_v21  ;;  %3540 = vmatmul.bf16.vlgmr.msra.gmra.mxu0 %v14320_v9  ;;  %v3334_v19 = vadd.f32 %v3333_v12, %v645_v0 }
 0x170   :  { %v10407_v23 = vld [vmem:[#allocation2 + $0xde8] sm:$0xf0]  ;;  %3565 = vmatpush.bf16.msra.mxu2 %v9162_v26  ;;  %3584 = vmatpush.bf16.msrb.mxu0 %v9898_v30 }
 0x171   :  { %v13492_v27 = vld [vmem:[#allocation2 + $0xfcc] sm:$0xf]  ;;  %v10410_v32 = vor.u32 %v13428_v22, %v10407_v23  ;;  %3553 = vmatmul.bf16.vlgmr.msra.gmra.mxu1 %v14333_v25 }
 0x172   :  { %v10663_v28 = vld [vmem:[#allocation2 + $0xfe8] sm:$0xf0]  ;;  %3578 = vmatpush.bf16.msra.mxu3 %v9418_v29  ;;  %3597 = vmatpush.bf16.msrb.mxu1 %v10154_v31 }
 0x173   :  { %v13292_v33 = vld [vmem:[#allocation2 + $0x98c] sm:$0xf]  ;;  %v10666_v7 = vor.u32 %v13492_v27, %v10663_v28  ;;  %3566 = vmatmul.bf16.vlgmr.msra.gmra.mxu2 %v14318_v8  ;;  %v3347_v27 = vadd.f32 %v3346_v20, %v3334_v19  ;;  %v9133_v19 = vld [vmem:[#allocation2 + $0x3d0] sm:$0xf] }
 0x174   :  { %v9863_v35 = vld [vmem:[#allocation2 + $0x9a8] sm:$0xf0]  ;;  %3610 = vmatpush.bf16.msrb.mxu2 %v10410_v32 }
 0x175   :  { %v13356_v36 = vld [vmem:[#allocation2 + $0xb8c] sm:$0xf]  ;;  %v9866_v45 = vor.u32 %v13292_v33, %v9863_v35  ;;  %3579 = vmatmul.bf16.vlgmr.msra.gmra.mxu3 %v14325_v15  ;;  %v3359_v35 = vpop.f32.mrf.mxu2 }
 0x176   :  { %v10119_v39 = vld [vmem:[#allocation2 + $0xba8] sm:$0xf0]  ;;  %3623 = vmatpush.bf16.msrb.mxu3 %v10666_v7 }
 0x177   :  { %v13420_v41 = vld [vmem:[#allocation2 + $0xd8c] sm:$0xf]  ;;  %v10122_v46 = vor.u32 %v13356_v36, %v10119_v39  ;;  %3585 = vmatpush.bf16.msrb.mxu0 %v9866_v45 }
 0x178   :  { %v10375_v42 = vld [vmem:[#allocation2 + $0xda8] sm:$0xf0] }
 0x179   :  { %v13484_v43 = vld [vmem:[#allocation2 + $0xf8c] sm:$0xf]  ;;  %v10378_v47 = vor.u32 %v13420_v41, %v10375_v42  ;;  %3598 = vmatpush.bf16.msrb.mxu1 %v10122_v46  ;;  %v3360_v42 = vadd.f32 %v3359_v35, %v3347_v27  ;;  %v13241_v27 = vld [vmem:[#allocation2 + $0x7ec] sm:$0xf0] }
 0x17a   :  { %v10631_v44 = vld [vmem:[#allocation2 + $0xfa8] sm:$0xf0]  ;;  %v9101_v35 = vld [vmem:[#allocation2 + $0x390] sm:$0xf] }
 0x17b   :  { %v13284_v49 = vld [vmem:[#allocation2 + $0x94c] sm:$0xf]  ;;  %v10634_v52 = vor.u32 %v13484_v43, %v10631_v44  ;;  %3611 = vmatpush.bf16.msrb.mxu2 %v10378_v47  ;;  %v3372_v43 = vpop.f32.mrf.mxu3 }
 0x17c   :  { %v9831_v50 = vld [vmem:[#allocation2 + $0x968] sm:$0xf0]  ;;  %v14389_v47 = vadd.f32 %v3372_v43, %v3360_v42  ;;  %v9613_v42 = vld [vmem:[#allocation2 + $0x790] sm:$0xf] }
 0x17d   :  { %v13348_v51 = vld [vmem:[#allocation2 + $0xb4c] sm:$0xf]  ;;  %v9834_v58 = vor.u32 %v13284_v49, %v9831_v50  ;;  %3624 = vmatpush.bf16.msrb.mxu3 %v10634_v52  ;;  %v3335_v49 = vpop.f32.mrf.mxu0  ;;  %v13233_v43 = vld [vmem:[#allocation2 + $0x7ac] sm:$0xf0] }
 0x17e   :  { %v10087_v53 = vld [vmem:[#allocation2 + $0xb68] sm:$0xf0]  ;;  %v8813_v49 = vld [vmem:[#allocation2 + $0x150] sm:$0xf] }
 0x17f   :  { %v13412_v54 = vld [vmem:[#allocation2 + $0xd4c] sm:$0xf]  ;;  %v10090_v60 = vor.u32 %v13348_v51, %v10087_v53  ;;  %3586 = vmatpush.bf16.msrb.mxu0 %v9834_v58 }
 0x180   :  { %v10343_v55 = vld [vmem:[#allocation2 + $0xd68] sm:$0xf0] }
 0x181   :  { %v13476_v56 = vld [vmem:[#allocation2 + $0xf4c] sm:$0xf]  ;;  %v10346_v61 = vor.u32 %v13412_v54, %v10343_v55  ;;  %3599 = vmatpush.bf16.msrb.mxu1 %v10090_v60  ;;  %v3348_v55 = vpop.f32.mrf.mxu1 }
 0x182   :  { %v10599_v57 = vld [vmem:[#allocation2 + $0xf68] sm:$0xf0]  ;;  %v13161_v55 = vld [vmem:[#allocation2 + $0x56c] sm:$0xf0] }
 0x183   :  { %v13276_v59 = vld [vmem:[#allocation2 + $0x90c] sm:$0xf]  ;;  %v10602_v1 = vor.u32 %v13476_v56, %v10599_v57  ;;  %3612 = vmatpush.bf16.msrb.mxu2 %v10346_v61 }
 0x184   :  { %v9799_v62 = vld [vmem:[#allocation2 + $0x928] sm:$0xf0] }
 0x185   :  { %v13340_v63 = vld [vmem:[#allocation2 + $0xb0c] sm:$0xf]  ;;  %v9802_v11 = vor.u32 %v13276_v59, %v9799_v62  ;;  %3625 = vmatpush.bf16.msrb.mxu3 %v10602_v1 }
 0x186   :  { %v10055_v2 = vld [vmem:[#allocation2 + $0xb28] sm:$0xf0] }
 0x187   :  { %v13404_v3 = vld [vmem:[#allocation2 + $0xd0c] sm:$0xf]  ;;  %v10058_v13 = vor.u32 %v13340_v63, %v10055_v2  ;;  %3587 = vmatpush.bf16.msrb.mxu0 %v9802_v11 }
 0x188   :  { %v10311_v4 = vld [vmem:[#allocation2 + $0xd28] sm:$0xf0] }
 0x189   :  { %v13468_v5 = vld [vmem:[#allocation2 + $0xf0c] sm:$0xf]  ;;  %v10314_v14 = vor.u32 %v13404_v3, %v10311_v4  ;;  %3600 = vmatpush.bf16.msrb.mxu1 %v10058_v13 }
 0x18a   :  { %v10567_v10 = vld [vmem:[#allocation2 + $0xf28] sm:$0xf0] }
 0x18b   :  { %v13268_v16 = vld [vmem:[#allocation2 + $0x8cc] sm:$0xf]  ;;  %v10570_v6 = vor.u32 %v13468_v5, %v10567_v10  ;;  %3613 = vmatpush.bf16.msrb.mxu2 %v10314_v14  ;;  %v3361_v10 = vpop.f32.mrf.mxu2 }
 0x18c   :  { %v9767_v17 = vld [vmem:[#allocation2 + $0x8e8] sm:$0xf0] }
 0x18d   :  { %v13332_v18 = vld [vmem:[#allocation2 + $0xacc] sm:$0xf]  ;;  %v9770_v28 = vor.u32 %v13268_v16, %v9767_v17  ;;  %3626 = vmatpush.bf16.msrb.mxu3 %v10570_v6  ;;  %v3374_v16 = vpop.f32.mrf.mxu3  ;;  %v8877_v17 = vld [vmem:[#allocation2 + $0x1d0] sm:$0xf] }
 0x18e   :  { %v10023_v21 = vld [vmem:[#allocation2 + $0xae8] sm:$0xf0]  ;;  %v13113_v6 = vld [vmem:[#allocation2 + $0x3ec] sm:$0xf0] }
 0x18f   :  { %v13396_v22 = vld [vmem:[#allocation2 + $0xccc] sm:$0xf]  ;;  %v10026_v29 = vor.u32 %v13332_v18, %v10023_v21  ;;  %3588 = vmatpush.bf16.msrb.mxu0 %v9770_v28  ;;  %v13049_v18 = vld [vmem:[#allocation2 + $0x1ec] sm:$0xf0] }
 0x190   :  { %v10279_v23 = vld [vmem:[#allocation2 + $0xce8] sm:$0xf0]  ;;  %v9389_v21 = vld [vmem:[#allocation2 + $0x5d0] sm:$0xf] }
 0x191   :  { %v13460_v24 = vld [vmem:[#allocation2 + $0xecc] sm:$0xf]  ;;  %v10282_v30 = vor.u32 %v13396_v22, %v10279_v23  ;;  %3601 = vmatpush.bf16.msrb.mxu1 %v10026_v29  ;;  %v13177_v22 = vld [vmem:[#allocation2 + $0x5ec] sm:$0xf0]  ;;  %v8878_v29 = vor.u32 %v13049_v18, %v8877_v17 }
 0x192   :  { %v10535_v26 = vld [vmem:[#allocation2 + $0xee8] sm:$0xf0]  ;;  %v13017_v16 = vld [vmem:[#allocation2 + $0xec] sm:$0xf0] }
 0x193   :  { %v13260_v31 = vld [vmem:[#allocation2 + $0x88c] sm:$0xf]  ;;  %v10538_v36 = vor.u32 %v13460_v24, %v10535_v26  ;;  %3614 = vmatpush.bf16.msrb.mxu2 %v10282_v30  ;;  %v9645_v26 = vld [vmem:[#allocation2 + $0x7d0] sm:$0xf]  ;;  %v9134_v30 = vor.u32 %v13113_v6, %v9133_v19  ;;  %v3398_v19 = vpop.f32.mrf.mxu1 }
 0x194   :  { %v9735_v32 = vld [vmem:[#allocation2 + $0x8a8] sm:$0xf0]  ;;  %v9005_v17 = vld [vmem:[#allocation2 + $0x2d0] sm:$0xf] }
 0x195   :  { %v13324_v33 = vld [vmem:[#allocation2 + $0xa8c] sm:$0xf]  ;;  %v9738_v46 = vor.u32 %v13260_v31, %v9735_v32  ;;  %3627 = vmatpush.bf16.msrb.mxu3 %v10538_v36  ;;  %v9390_v31 = vor.u32 %v13177_v22, %v9389_v21  ;;  %v8845_v32 = vld [vmem:[#allocation2 + $0x190] sm:$0xf]  ;;  %v9646_v36 = vor.u32 %v13241_v27, %v9645_v26 }
 0x196   :  { %v9991_v7 = vld [vmem:[#allocation2 + $0xaa8] sm:$0xf0]  ;;  %v13081_v6 = vld [vmem:[#allocation2 + $0x2ec] sm:$0xf0] }
 0x197   :  { %v13388_v39 = vld [vmem:[#allocation2 + $0xc8c] sm:$0xf]  ;;  %v9994_v50 = vor.u32 %v13324_v33, %v9991_v7  ;;  %3589 = vmatpush.bf16.msrb.mxu0 %v9738_v46  ;;  %v13041_v33 = vld [vmem:[#allocation2 + $0x1ac] sm:$0xf0] }
 0x198   :  { %v10247_v41 = vld [vmem:[#allocation2 + $0xca8] sm:$0xf0]  ;;  %v13105_v7 = vld [vmem:[#allocation2 + $0x3ac] sm:$0xf0] }
 0x199   :  { %v13452_v44 = vld [vmem:[#allocation2 + $0xe8c] sm:$0xf]  ;;  %v10250_v51 = vor.u32 %v13388_v39, %v10247_v41  ;;  %3602 = vmatpush.bf16.msrb.mxu1 %v9994_v50  ;;  %v9357_v39 = vld [vmem:[#allocation2 + $0x590] sm:$0xf] }
 0x19a   :  { %v10503_v45 = vld [vmem:[#allocation2 + $0xea8] sm:$0xf0]  ;;  %v13169_v41 = vld [vmem:[#allocation2 + $0x5ac] sm:$0xf0] }
 0x19b   :  { %v13252_v52 = vld [vmem:[#allocation2 + $0x84c] sm:$0xf]  ;;  %v10506_v56 = vor.u32 %v13452_v44, %v10503_v45  ;;  %3615 = vmatpush.bf16.msrb.mxu2 %v10250_v51  ;;  %v8846_v44 = vor.u32 %v13041_v33, %v8845_v32  ;;  %v9102_v45 = vor.u32 %v13105_v7, %v9101_v35  ;;  %v9358_v46 = vor.u32 %v13169_v41, %v9357_v39  ;;  %v13033_v50 = vld [vmem:[#allocation2 + $0x16c] sm:$0xf0]  ;;  %v3411_v33 = vpop.f32.mrf.mxu2  ;;  %v3424_v41 = vpop.f32.mrf.mxu3 }
 0x19c   :  { %v9703_v53 = vld [vmem:[#allocation2 + $0x868] sm:$0xf0]  ;;  %v9069_v51 = vld [vmem:[#allocation2 + $0x350] sm:$0xf] }
 0x19d   :  { %v13316_v54 = vld [vmem:[#allocation2 + $0xa4c] sm:$0xf]  ;;  %v9706_v62 = vor.u32 %v13252_v52, %v9703_v53  ;;  %3628 = vmatpush.bf16.msrb.mxu3 %v10506_v56  ;;  %v9614_v52 = vor.u32 %v13233_v43, %v9613_v42  ;;  %v13097_v53 = vld [vmem:[#allocation2 + $0x36c] sm:$0xf0] }
 0x19e   :  { %v9959_v57 = vld [vmem:[#allocation2 + $0xa68] sm:$0xf0]  ;;  %v9581_v56 = vld [vmem:[#allocation2 + $0x750] sm:$0xf] }
 0x19f   :  { %v13380_v58 = vld [vmem:[#allocation2 + $0xc4c] sm:$0xf]  ;;  %v9962_v1 = vor.u32 %v13316_v54, %v9959_v57  ;;  %3590 = vmatpush.bf16.msrb.mxu0 %v9706_v62  ;;  %v9325_v54 = vld [vmem:[#allocation2 + $0x550] sm:$0xf] }
 0x1a0   :  { %v10215_v59 = vld [vmem:[#allocation2 + $0xc68] sm:$0xf0]  ;;  %v13225_v57 = vld [vmem:[#allocation2 + $0x76c] sm:$0xf0] }
 0x1a1   :  { %v13444_v60 = vld [vmem:[#allocation2 + $0xe4c] sm:$0xf]  ;;  %v10218_v2 = vor.u32 %v13380_v58, %v10215_v59  ;;  %3603 = vmatpush.bf16.msrb.mxu1 %v9962_v1  ;;  %v8814_v58 = vor.u32 %v13033_v50, %v8813_v49  ;;  %v9070_v59 = vor.u32 %v13097_v53, %v9069_v51  ;;  %v13025_v62 = vld [vmem:[#allocation2 + $0x12c] sm:$0xf0] }
 0x1a2   :  { %v10471_v61 = vld [vmem:[#allocation2 + $0xe68] sm:$0xf0]  ;;  %v13089_v1 = vld [vmem:[#allocation2 + $0x32c] sm:$0xf0] }
 0x1a3   :  { %v13244_v63 = vld [vmem:[#allocation2 + $0x80c] sm:$0xf]  ;;  %v10474_v11 = vor.u32 %v13444_v60, %v10471_v61  ;;  %3616 = vmatpush.bf16.msrb.mxu2 %v10218_v2  ;;  %v9326_v60 = vor.u32 %v13161_v55, %v9325_v54  ;;  %v8781_v61 = vld [vmem:[#allocation2 + $0x110] sm:$0xf]  ;;  %v3400_v54 = vpop.f32.mrf.mxu1 }
 0x1a4   :  { %v9671_v0 = vld [vmem:[#allocation2 + $0x828] sm:$0xf0]  ;;  %v9293_v2 = vld [vmem:[#allocation2 + $0x510] sm:$0xf]  ;;  %v8782_v10 = vor.u32 %v13025_v62, %v8781_v61 }
 0x1a5   :  { %v13308_v3 = vld [vmem:[#allocation2 + $0xa0c] sm:$0xf]  ;;  %v9674_v20 = vor.u32 %v13244_v63, %v9671_v0  ;;  %3629 = vmatpush.bf16.msrb.mxu3 %v10474_v11  ;;  %v9037_v63 = vld [vmem:[#allocation2 + $0x310] sm:$0xf]  ;;  %v9582_v0 = vor.u32 %v13225_v57, %v9581_v56  ;;  %v3385_v11 = vpop.f32.mrf.mxu0 }
 0x1a6   :  { %v9927_v4 = vld [vmem:[#allocation2 + $0xa28] sm:$0xf0]  ;;  %v3386_v18 = vadd.f32 %v3385_v11, %v14389_v47  ;;  %v9261_v21 = vld [vmem:[#allocation2 + $0x4d0] sm:$0xf] }
 0x1a7   :  { %v13372_v5 = vld [vmem:[#allocation2 + $0xc0c] sm:$0xf]  ;;  %v9930_v23 = vor.u32 %v13308_v3, %v9927_v4  ;;  %3591 = vmatpush.bf16.msrb.mxu0 %v9674_v20  ;;  %v13153_v3 = vld [vmem:[#allocation2 + $0x52c] sm:$0xf0] }
 0x1a8   :  { %v10183_v12 = vld [vmem:[#allocation2 + $0xc28] sm:$0xf0]  ;;  %v9549_v4 = vld [vmem:[#allocation2 + $0x710] sm:$0xf]  ;;  %v3399_v26 = vadd.f32 %v3398_v19, %v3386_v18 }
 0x1a9   :  { %v13436_v13 = vld [vmem:[#allocation2 + $0xe0c] sm:$0xf]  ;;  %v10186_v24 = vor.u32 %v13372_v5, %v10183_v12  ;;  %3604 = vmatpush.bf16.msrb.mxu1 %v9930_v23  ;;  %v13217_v5 = vld [vmem:[#allocation2 + $0x72c] sm:$0xf0]  ;;  %v9038_v12 = vor.u32 %v13089_v1, %v9037_v63 }
 0x1aa   :  { %v10439_v14 = vld [vmem:[#allocation2 + $0xe28] sm:$0xf0]  ;;  %3592 = vmatmul.bf16.vlgmr.msrb.gmra.mxu0 %v14350_v37  ;;  %v9550_v20 = vor.u32 %v13217_v5, %v9549_v4  ;;  %v13145_v22 = vld [vmem:[#allocation2 + $0x4ec] sm:$0xf0]  ;;  %v3412_v39 = vadd.f32 %v3411_v33, %v3399_v26  ;;  %v3413_v5 = vpop.f32.mrf.mxu2 }
 0x1ab   :  { %v10442_v28 = vor.u32 %v13436_v13, %v10439_v14  ;;  %3617 = vmatpush.bf16.msrb.mxu2 %v10186_v24  ;;  %3636 = vmatpush.bf16.msra.mxu0 %v8878_v29  ;;  %v9294_v13 = vor.u32 %v13153_v3, %v9293_v2  ;;  %v8749_v14 = vld [vmem:[#allocation2 + $0xd0] sm:$0xf]  ;;  %v9262_v29 = vor.u32 %v13145_v22, %v9261_v21 }
 0x1ac   :  { %3605 = vmatmul.bf16.vlgmr.msrb.gmra.mxu1 %v14354_v40  ;;  %v9517_v23 = vld [vmem:[#allocation2 + $0x6d0] sm:$0xf]  ;;  %v8750_v27 = vor.u32 %v13017_v16, %v8749_v14  ;;  %v3426_v14 = vpop.f32.mrf.mxu3 }
 0x1ad   :  { %3630 = vmatpush.bf16.msrb.mxu3 %v10442_v28  ;;  %3649 = vmatpush.bf16.msra.mxu1 %v9134_v30  ;;  %v13209_v24 = vld [vmem:[#allocation2 + $0x6ec] sm:$0xf0]  ;;  %v9006_v28 = vor.u32 %v13081_v6, %v9005_v17 }
 0x1ae   :  { %3618 = vmatmul.bf16.vlgmr.msrb.gmra.mxu2 %v14348_v34  ;;  %v8717_v30 = vld [vmem:[#allocation2 + $0x90] sm:$0xf]  ;;  %v9518_v47 = vor.u32 %v13209_v24, %v9517_v23 }
 0x1af   :  { %3662 = vmatpush.bf16.msra.mxu2 %v9390_v31  ;;  %3637 = vmatpush.bf16.msra.mxu0 %v8846_v44  ;;  %v13009_v31 = vld [vmem:[#allocation2 + $0xac] sm:$0xf0] }
 0x1b0   :  { %3631 = vmatmul.bf16.vlgmr.msrb.gmra.mxu3 %v14352_v38  ;;  %v8973_v32 = vld [vmem:[#allocation2 + $0x290] sm:$0xf]  ;;  %v8718_v44 = vor.u32 %v13009_v31, %v8717_v30 }
 0x1b1   :  { %3675 = vmatpush.bf16.msra.mxu3 %v9646_v36  ;;  %3650 = vmatpush.bf16.msra.mxu1 %v9102_v45  ;;  %v13073_v35 = vld [vmem:[#allocation2 + $0x2ac] sm:$0xf0]  ;;  %v14396_v45 = vadd.f32 %v3424_v41, %v3412_v39 }
 0x1b2   :  { %v9229_v36 = vld [vmem:[#allocation2 + $0x490] sm:$0xf]  ;;  %v8974_v49 = vor.u32 %v13073_v35, %v8973_v32 }
 0x1b3   :  { %3663 = vmatpush.bf16.msra.mxu2 %v9358_v46  ;;  %3638 = vmatpush.bf16.msra.mxu0 %v8814_v58  ;;  %v13137_v7 = vld [vmem:[#allocation2 + $0x4ac] sm:$0xf0]  ;;  %v3387_v46 = vpop.f32.mrf.mxu0 }
 0x1b4   :  { %v9485_v42 = vld [vmem:[#allocation2 + $0x690] sm:$0xf]  ;;  %v9230_v50 = vor.u32 %v13137_v7, %v9229_v36 }
 0x1b5   :  { %3676 = vmatpush.bf16.msra.mxu3 %v9614_v52  ;;  %3651 = vmatpush.bf16.msra.mxu1 %v9070_v59  ;;  %v13201_v43 = vld [vmem:[#allocation2 + $0x6ac] sm:$0xf0] }
 0x1b6   :  { %v8685_v51 = vld [vmem:[#allocation2 + $0x50] sm:$0xf]  ;;  %v9486_v55 = vor.u32 %v13201_v43, %v9485_v42 }
 0x1b7   :  { %3664 = vmatpush.bf16.msra.mxu2 %v9326_v60  ;;  %3639 = vmatpush.bf16.msra.mxu0 %v8782_v10  ;;  %v13001_v52 = vld [vmem:[#allocation2 + $0x6c] sm:$0xf0] }
 0x1b8   :  { %v8941_v53 = vld [vmem:[#allocation2 + $0x250] sm:$0xf]  ;;  %v8686_v61 = vor.u32 %v13001_v52, %v8685_v51 }
 0x1b9   :  { %3677 = vmatpush.bf16.msra.mxu3 %v9582_v0  ;;  %3652 = vmatpush.bf16.msra.mxu1 %v9038_v12  ;;  %v13065_v56 = vld [vmem:[#allocation2 + $0x26c] sm:$0xf0] }
 0x1ba   :  { %v9197_v57 = vld [vmem:[#allocation2 + $0x450] sm:$0xf]  ;;  %v8942_v0 = vor.u32 %v13065_v56, %v8941_v53 }
 0x1bb   :  { %3665 = vmatpush.bf16.msra.mxu2 %v9294_v13  ;;  %3640 = vmatpush.bf16.msra.mxu0 %v8750_v27  ;;  %v13129_v58 = vld [vmem:[#allocation2 + $0x46c] sm:$0xf0] }
 0x1bc   :  { %v9453_v59 = vld [vmem:[#allocation2 + $0x650] sm:$0xf]  ;;  %v9198_v1 = vor.u32 %v13129_v58, %v9197_v57 }
 0x1bd   :  { %3678 = vmatpush.bf16.msra.mxu3 %v9550_v20  ;;  %3653 = vmatpush.bf16.msra.mxu1 %v9006_v28  ;;  %v13193_v60 = vld [vmem:[#allocation2 + $0x66c] sm:$0xf0] }
 0x1be   :  { %v8653_v62 = vld [vmem:[#allocation2 + $0x10] sm:$0xf]  ;;  %v9454_v10 = vor.u32 %v13193_v60, %v9453_v59 }
 0x1bf   :  { %3666 = vmatpush.bf16.msra.mxu2 %v9262_v29  ;;  %3641 = vmatpush.bf16.msra.mxu0 %v8718_v44  ;;  %v12993_v63 = vld [vmem:[#allocation2 + $0x2c] sm:$0xf0] }
 0x1c0   :  { %v8909_v2 = vld [vmem:[#allocation2 + $0x210] sm:$0xf]  ;;  %v8654_v19 = vor.u32 %v12993_v63, %v8653_v62  ;;  %v14402_v63 = vld [vmem:[#allocation4] sm:$0xff] }
 0x1c1   :  { %3679 = vmatpush.bf16.msra.mxu3 %v9518_v47  ;;  %3654 = vmatpush.bf16.msra.mxu1 %v8974_v49  ;;  %v13057_v3 = vld [vmem:[#allocation2 + $0x22c] sm:$0xf0] }
 0x1c2   :  { %v9165_v4 = vld [vmem:[#allocation2 + $0x410] sm:$0xf]  ;;  %v8910_v22 = vor.u32 %v13057_v3, %v8909_v2 }
 0x1c3   :  { %3667 = vmatpush.bf16.msra.mxu2 %v9230_v50  ;;  %v13121_v11 = vld [vmem:[#allocation2 + $0x42c] sm:$0xf0]  ;;  %3642 = vmatpush.bf16.msra.mxu0 %v8686_v61 }
 0x1c4   :  { %v9421_v12 = vld [vmem:[#allocation2 + $0x610] sm:$0xf]  ;;  %v9166_v23 = vor.u32 %v13121_v11, %v9165_v4 }
 0x1c5   :  { %3680 = vmatpush.bf16.msra.mxu3 %v9486_v55  ;;  %v13185_v13 = vld [vmem:[#allocation2 + $0x62c] sm:$0xf0]  ;;  %3655 = vmatpush.bf16.msra.mxu1 %v8942_v0  ;;  %v646_v0 = vperm.slane %v14402_v63, 2 }
 0x1c6   :  { %v9901_v16 = vld [vmem:[#allocation2 + $0x9d0] sm:$0xf]  ;;  %v9422_v27 = vor.u32 %v13185_v13, %v9421_v12  ;;  %v3437_v12 = vpop.f32.mrf.mxu0 }
 0x1c7   :  { %v13305_v17 = vld [vmem:[#allocation2 + $0x9ec] sm:$0xf0]  ;;  %3668 = vmatpush.bf16.msra.mxu2 %v9198_v1  ;;  %3643 = vmatpush.bf16.msra.mxu0 %v8654_v19  ;;  %v3438_v19 = vadd.f32 %v3437_v12, %v646_v0 }
 0x1c8   :  { %v10157_v18 = vld [vmem:[#allocation2 + $0xbd0] sm:$0xf]  ;;  %v9902_v28 = vor.u32 %v13305_v17, %v9901_v16 }
 0x1c9   :  { %v13369_v20 = vld [vmem:[#allocation2 + $0xbec] sm:$0xf0]  ;;  %3681 = vmatpush.bf16.msra.mxu3 %v9454_v10  ;;  %3656 = vmatpush.bf16.msra.mxu1 %v8910_v22 }
 0x1ca   :  { %v10413_v6 = vld [vmem:[#allocation2 + $0xdd0] sm:$0xf]  ;;  %v10158_v29 = vor.u32 %v13369_v20, %v10157_v18  ;;  %3644 = vmatmul.bf16.vlgmr.msra.gmra.mxu0 %v14320_v9  ;;  %v3450_v20 = vpop.f32.mrf.mxu1 }
 0x1cb   :  { %v13433_v21 = vld [vmem:[#allocation2 + $0xdec] sm:$0xf0]  ;;  %3669 = vmatpush.bf16.msra.mxu2 %v9166_v23  ;;  %3688 = vmatpush.bf16.msrb.mxu0 %v9902_v28 }
 0x1cc   :  { %v10669_v24 = vld [vmem:[#allocation2 + $0xfd0] sm:$0xf]  ;;  %v10414_v30 = vor.u32 %v13433_v21, %v10413_v6  ;;  %3657 = vmatmul.bf16.vlgmr.msra.gmra.mxu1 %v14333_v25 }
 0x1cd   :  { %v13497_v26 = vld [vmem:[#allocation2 + $0xfec] sm:$0xf0]  ;;  %3682 = vmatpush.bf16.msra.mxu3 %v9422_v27  ;;  %3701 = vmatpush.bf16.msrb.mxu1 %v10158_v29  ;;  %v3451_v27 = vadd.f32 %v3450_v20, %v3438_v19  ;;  %v13045_v19 = vld [vmem:[#allocation2 + $0x1d4] sm:$0xf] }
 0x1ce   :  { %v9869_v31 = vld [vmem:[#allocation2 + $0x990] sm:$0xf]  ;;  %v10670_v47 = vor.u32 %v13497_v26, %v10669_v24  ;;  %3670 = vmatmul.bf16.vlgmr.msra.gmra.mxu2 %v14318_v8  ;;  %v8879_v20 = vld [vmem:[#allocation2 + $0x1f0] sm:$0xf0] }
 0x1cf   :  { %v13297_v32 = vld [vmem:[#allocation2 + $0x9ac] sm:$0xf0]  ;;  %3714 = vmatpush.bf16.msrb.mxu2 %v10414_v30 }
 0x1d0   :  { %v10125_v33 = vld [vmem:[#allocation2 + $0xb90] sm:$0xf]  ;;  %v9870_v42 = vor.u32 %v13297_v32, %v9869_v31  ;;  %3683 = vmatmul.bf16.vlgmr.msra.gmra.mxu3 %v14325_v15 }
 0x1d1   :  { %v13361_v35 = vld [vmem:[#allocation2 + $0xbac] sm:$0xf0]  ;;  %3727 = vmatpush.bf16.msrb.mxu3 %v10670_v47  ;;  %v3463_v47 = vpop.f32.mrf.mxu2 }
 0x1d2   :  { %v10381_v36 = vld [vmem:[#allocation2 + $0xd90] sm:$0xf]  ;;  %v10126_v43 = vor.u32 %v13361_v35, %v10125_v33  ;;  %3689 = vmatpush.bf16.msrb.mxu0 %v9870_v42  ;;  %v3476_v42 = vpop.f32.mrf.mxu3 }
 0x1d3   :  { %v13425_v7 = vld [vmem:[#allocation2 + $0xdac] sm:$0xf0] }
 0x1d4   :  { %v10637_v39 = vld [vmem:[#allocation2 + $0xf90] sm:$0xf]  ;;  %v10382_v44 = vor.u32 %v13425_v7, %v10381_v36  ;;  %3702 = vmatpush.bf16.msrb.mxu1 %v10126_v43 }
 0x1d5   :  { %v13489_v41 = vld [vmem:[#allocation2 + $0xfac] sm:$0xf0] }
 0x1d6   :  { %v9837_v46 = vld [vmem:[#allocation2 + $0x950] sm:$0xf]  ;;  %v10638_v51 = vor.u32 %v13489_v41, %v10637_v39  ;;  %3715 = vmatpush.bf16.msrb.mxu2 %v10382_v44  ;;  %v3464_v41 = vadd.f32 %v3463_v47, %v3451_v27  ;;  %v13037_v47 = vld [vmem:[#allocation2 + $0x194] sm:$0xf] }
 0x1d7   :  { %v13289_v49 = vld [vmem:[#allocation2 + $0x96c] sm:$0xf0] }
 0x1d8   :  { %v10093_v50 = vld [vmem:[#allocation2 + $0xb50] sm:$0xf]  ;;  %v9838_v57 = vor.u32 %v13289_v49, %v9837_v46  ;;  %3728 = vmatpush.bf16.msrb.mxu3 %v10638_v51  ;;  %v14405_v49 = vadd.f32 %v3476_v42, %v3464_v41  ;;  %v13165_v41 = vld [vmem:[#allocation2 + $0x594] sm:$0xf] }
 0x1d9   :  { %v13353_v52 = vld [vmem:[#allocation2 + $0xb6c] sm:$0xf0]  ;;  %v3465_v12 = vpop.f32.mrf.mxu2  ;;  %v9359_v42 = vld [vmem:[#allocation2 + $0x5b0] sm:$0xf0] }
 0x1da   :  { %v10349_v53 = vld [vmem:[#allocation2 + $0xd50] sm:$0xf]  ;;  %v10094_v59 = vor.u32 %v13353_v52, %v10093_v50  ;;  %3690 = vmatpush.bf16.msrb.mxu0 %v9838_v57  ;;  %v3439_v50 = vpop.f32.mrf.mxu0  ;;  %v13213_v12 = vld [vmem:[#allocation2 + $0x714] sm:$0xf] }
 0x1db   :  { %v13417_v54 = vld [vmem:[#allocation2 + $0xd6c] sm:$0xf0] }
 0x1dc   :  { %v10605_v55 = vld [vmem:[#allocation2 + $0xf50] sm:$0xf]  ;;  %v10350_v60 = vor.u32 %v13417_v54, %v10349_v53  ;;  %3703 = vmatpush.bf16.msrb.mxu1 %v10094_v59 }
 0x1dd   :  { %v13481_v56 = vld [vmem:[#allocation2 + $0xf6c] sm:$0xf0] }
 0x1de   :  { %v9805_v58 = vld [vmem:[#allocation2 + $0x910] sm:$0xf]  ;;  %v10606_v1 = vor.u32 %v13481_v56, %v10605_v55  ;;  %3716 = vmatpush.bf16.msrb.mxu2 %v10350_v60  ;;  %v3452_v56 = vpop.f32.mrf.mxu1 }
 0x1df   :  { %v13281_v61 = vld [vmem:[#allocation2 + $0x92c] sm:$0xf0]  ;;  %v9071_v56 = vld [vmem:[#allocation2 + $0x370] sm:$0xf0] }
 0x1e0   :  { %v10061_v62 = vld [vmem:[#allocation2 + $0xb10] sm:$0xf]  ;;  %v9806_v11 = vor.u32 %v13281_v61, %v9805_v58  ;;  %3729 = vmatpush.bf16.msrb.mxu3 %v10606_v1 }
 0x1e1   :  { %v13345_v2 = vld [vmem:[#allocation2 + $0xb2c] sm:$0xf0] }
 0x1e2   :  { %v10317_v3 = vld [vmem:[#allocation2 + $0xd10] sm:$0xf]  ;;  %v10062_v13 = vor.u32 %v13345_v2, %v10061_v62  ;;  %3691 = vmatpush.bf16.msrb.mxu0 %v9806_v11 }
 0x1e3   :  { %v13409_v4 = vld [vmem:[#allocation2 + $0xd2c] sm:$0xf0] }
 0x1e4   :  { %v10573_v5 = vld [vmem:[#allocation2 + $0xf10] sm:$0xf]  ;;  %v10318_v14 = vor.u32 %v13409_v4, %v10317_v3  ;;  %3704 = vmatpush.bf16.msrb.mxu1 %v10062_v13 }
 0x1e5   :  { %v13473_v10 = vld [vmem:[#allocation2 + $0xf2c] sm:$0xf0] }
 0x1e6   :  { %v9773_v16 = vld [vmem:[#allocation2 + $0x8d0] sm:$0xf]  ;;  %v10574_v6 = vor.u32 %v13473_v10, %v10573_v5  ;;  %3717 = vmatpush.bf16.msrb.mxu2 %v10318_v14 }
 0x1e7   :  { %v13273_v17 = vld [vmem:[#allocation2 + $0x8ec] sm:$0xf0] }
 0x1e8   :  { %v10029_v18 = vld [vmem:[#allocation2 + $0xad0] sm:$0xf]  ;;  %v9774_v28 = vor.u32 %v13273_v17, %v9773_v16  ;;  %3730 = vmatpush.bf16.msrb.mxu3 %v10574_v6  ;;  %v13109_v6 = vld [vmem:[#allocation2 + $0x3d4] sm:$0xf] }
 0x1e9   :  { %v13337_v21 = vld [vmem:[#allocation2 + $0xaec] sm:$0xf0] }
 0x1ea   :  { %v10285_v22 = vld [vmem:[#allocation2 + $0xcd0] sm:$0xf]  ;;  %v10030_v29 = vor.u32 %v13337_v21, %v10029_v18  ;;  %3692 = vmatpush.bf16.msrb.mxu0 %v9774_v28  ;;  %v3478_v18 = vpop.f32.mrf.mxu3  ;;  %v13237_v28 = vld [vmem:[#allocation2 + $0x7d4] sm:$0xf] }
 0x1eb   :  { %v13401_v23 = vld [vmem:[#allocation2 + $0xcec] sm:$0xf0] }
 0x1ec   :  { %v10541_v24 = vld [vmem:[#allocation2 + $0xed0] sm:$0xf]  ;;  %v10286_v30 = vor.u32 %v13401_v23, %v10285_v22  ;;  %3705 = vmatpush.bf16.msrb.mxu1 %v10030_v29  ;;  %v9135_v22 = vld [vmem:[#allocation2 + $0x3f0] sm:$0xf0] }
 0x1ed   :  { %v13465_v26 = vld [vmem:[#allocation2 + $0xeec] sm:$0xf0]  ;;  %v13173_v23 = vld [vmem:[#allocation2 + $0x5d4] sm:$0xf] }
 0x1ee   :  { %v9741_v31 = vld [vmem:[#allocation2 + $0x890] sm:$0xf]  ;;  %v10542_v35 = vor.u32 %v13465_v26, %v10541_v24  ;;  %3718 = vmatpush.bf16.msrb.mxu2 %v10286_v30  ;;  %v9391_v24 = vld [vmem:[#allocation2 + $0x5f0] sm:$0xf0] }
 0x1ef   :  { %v13265_v32 = vld [vmem:[#allocation2 + $0x8ac] sm:$0xf0]  ;;  %v9647_v29 = vld [vmem:[#allocation2 + $0x7f0] sm:$0xf0] }
 0x1f0   :  { %v9997_v33 = vld [vmem:[#allocation2 + $0xa90] sm:$0xf]  ;;  %v9742_v46 = vor.u32 %v13265_v32, %v9741_v31  ;;  %3731 = vmatpush.bf16.msrb.mxu3 %v10542_v35  ;;  %v8882_v31 = vor.u32 %v13045_v19, %v8879_v20  ;;  %v9138_v32 = vor.u32 %v13109_v6, %v9135_v22  ;;  %v8847_v35 = vld [vmem:[#allocation2 + $0x1b0] sm:$0xf0]  ;;  %v3502_v22 = vpop.f32.mrf.mxu1 }
 0x1f1   :  { %v13329_v36 = vld [vmem:[#allocation2 + $0xaac] sm:$0xf0]  ;;  %v13013_v19 = vld [vmem:[#allocation2 + $0xd4] sm:$0xf] }
 0x1f2   :  { %v10253_v7 = vld [vmem:[#allocation2 + $0xc90] sm:$0xf]  ;;  %v9998_v51 = vor.u32 %v13329_v36, %v9997_v33  ;;  %3693 = vmatpush.bf16.msrb.mxu0 %v9742_v46  ;;  %v9394_v33 = vor.u32 %v13173_v23, %v9391_v24  ;;  %v13101_v36 = vld [vmem:[#allocation2 + $0x394] sm:$0xf]  ;;  %v8850_v46 = vor.u32 %v13037_v47, %v8847_v35 }
 0x1f3   :  { %v13393_v39 = vld [vmem:[#allocation2 + $0xcac] sm:$0xf0]  ;;  %v8751_v20 = vld [vmem:[#allocation2 + $0xf0] sm:$0xf0] }
 0x1f4   :  { %v10509_v43 = vld [vmem:[#allocation2 + $0xe90] sm:$0xf]  ;;  %v10254_v52 = vor.u32 %v13393_v39, %v10253_v7  ;;  %3706 = vmatpush.bf16.msrb.mxu1 %v9998_v51  ;;  %v9650_v7 = vor.u32 %v13237_v28, %v9647_v29  ;;  %v9103_v39 = vld [vmem:[#allocation2 + $0x3b0] sm:$0xf0]  ;;  %v9362_v51 = vor.u32 %v13165_v41, %v9359_v42 }
 0x1f5   :  { %v13457_v44 = vld [vmem:[#allocation2 + $0xeac] sm:$0xf0]  ;;  %v9106_v50 = vor.u32 %v13101_v36, %v9103_v39  ;;  %v13077_v6 = vld [vmem:[#allocation2 + $0x2d4] sm:$0xf] }
 0x1f6   :  { %v9709_v53 = vld [vmem:[#allocation2 + $0x850] sm:$0xf]  ;;  %v10510_v57 = vor.u32 %v13457_v44, %v10509_v43  ;;  %3719 = vmatpush.bf16.msrb.mxu2 %v10254_v52  ;;  %v13229_v43 = vld [vmem:[#allocation2 + $0x794] sm:$0xf] }
 0x1f7   :  { %v13257_v54 = vld [vmem:[#allocation2 + $0x86c] sm:$0xf0]  ;;  %v9615_v44 = vld [vmem:[#allocation2 + $0x7b0] sm:$0xf0] }
 0x1f8   :  { %v9965_v55 = vld [vmem:[#allocation2 + $0xa50] sm:$0xf]  ;;  %v9710_v0 = vor.u32 %v13257_v54, %v9709_v53  ;;  %3732 = vmatpush.bf16.msrb.mxu3 %v10510_v57  ;;  %v13029_v52 = vld [vmem:[#allocation2 + $0x154] sm:$0xf] }
 0x1f9   :  { %v13321_v58 = vld [vmem:[#allocation2 + $0xa6c] sm:$0xf0]  ;;  %v8815_v53 = vld [vmem:[#allocation2 + $0x170] sm:$0xf0] }
 0x1fa   :  { %v10221_v59 = vld [vmem:[#allocation2 + $0xc50] sm:$0xf]  ;;  %v9966_v3 = vor.u32 %v13321_v58, %v9965_v55  ;;  %3694 = vmatpush.bf16.msrb.mxu0 %v9710_v0  ;;  %v13093_v54 = vld [vmem:[#allocation2 + $0x354] sm:$0xf]  ;;  %v9618_v55 = vor.u32 %v13229_v43, %v9615_v44  ;;  %v3528_v44 = vpop.f32.mrf.mxu3 }
 0x1fb   :  { %v13385_v60 = vld [vmem:[#allocation2 + $0xc6c] sm:$0xf0]  ;;  %v13157_v57 = vld [vmem:[#allocation2 + $0x554] sm:$0xf] }
 0x1fc   :  { %v10477_v61 = vld [vmem:[#allocation2 + $0xe50] sm:$0xf]  ;;  %v10222_v4 = vor.u32 %v13385_v60, %v10221_v59  ;;  %3707 = vmatpush.bf16.msrb.mxu1 %v9966_v3  ;;  %v9327_v58 = vld [vmem:[#allocation2 + $0x570] sm:$0xf0] }
 0x1fd   :  { %v13449_v62 = vld [vmem:[#allocation2 + $0xe6c] sm:$0xf0]  ;;  %v13221_v59 = vld [vmem:[#allocation2 + $0x754] sm:$0xf]  ;;  %v9330_v0 = vor.u32 %v13157_v57, %v9327_v58 }
 0x1fe   :  { %v9677_v1 = vld [vmem:[#allocation2 + $0x810] sm:$0xf]  ;;  %v10478_v13 = vor.u32 %v13449_v62, %v10477_v61  ;;  %3720 = vmatpush.bf16.msrb.mxu2 %v10222_v4  ;;  %v9583_v60 = vld [vmem:[#allocation2 + $0x770] sm:$0xf0]  ;;  %v8818_v61 = vor.u32 %v13029_v52, %v8815_v53  ;;  %v9074_v62 = vor.u32 %v13093_v54, %v9071_v56 }
 0x1ff   :  { %v13249_v2 = vld [vmem:[#allocation2 + $0x82c] sm:$0xf0]  ;;  %v13085_v3 = vld [vmem:[#allocation2 + $0x314] sm:$0xf]  ;;  %v9586_v4 = vor.u32 %v13221_v59, %v9583_v60  ;;  %v3504_v59 = vpop.f32.mrf.mxu1 }
 0x200   :  { %v9933_v5 = vld [vmem:[#allocation2 + $0xa10] sm:$0xf]  ;;  %v9678_v21 = vor.u32 %v13249_v2, %v9677_v1  ;;  %3733 = vmatpush.bf16.msrb.mxu3 %v10478_v13  ;;  %v13021_v1 = vld [vmem:[#allocation2 + $0x114] sm:$0xf] }
 0x201   :  { %v13313_v10 = vld [vmem:[#allocation2 + $0xa2c] sm:$0xf0]  ;;  %v8783_v2 = vld [vmem:[#allocation2 + $0x130] sm:$0xf0] }
 0x202   :  { %v10189_v11 = vld [vmem:[#allocation2 + $0xc10] sm:$0xf]  ;;  %v9934_v26 = vor.u32 %v13313_v10, %v9933_v5  ;;  %3695 = vmatpush.bf16.msrb.mxu0 %v9678_v21  ;;  %v9039_v5 = vld [vmem:[#allocation2 + $0x330] sm:$0xf0] }
 0x203   :  { %v13377_v14 = vld [vmem:[#allocation2 + $0xc2c] sm:$0xf0]  ;;  %v13149_v10 = vld [vmem:[#allocation2 + $0x514] sm:$0xf] }
 0x204   :  { %v10445_v16 = vld [vmem:[#allocation2 + $0xe10] sm:$0xf]  ;;  %v10190_v27 = vor.u32 %v13377_v14, %v10189_v11  ;;  %3708 = vmatpush.bf16.msrb.mxu1 %v9934_v26  ;;  %v9295_v11 = vld [vmem:[#allocation2 + $0x530] sm:$0xf0]  ;;  %v8786_v14 = vor.u32 %v13021_v1, %v8783_v2 }
 0x205   :  { %v13441_v17 = vld [vmem:[#allocation2 + $0xe2c] sm:$0xf0]  ;;  %3696 = vmatmul.bf16.vlgmr.msrb.gmra.mxu0 %v14350_v37  ;;  %v9551_v13 = vld [vmem:[#allocation2 + $0x730] sm:$0xf0]  ;;  %v9298_v18 = vor.u32 %v13149_v10, %v9295_v11 }
 0x206   :  { %v10446_v30 = vor.u32 %v13441_v17, %v10445_v16  ;;  %3721 = vmatpush.bf16.msrb.mxu2 %v10190_v27  ;;  %3740 = vmatpush.bf16.msra.mxu0 %v8882_v31  ;;  %v3489_v16 = vpop.f32.mrf.mxu0  ;;  %v9042_v17 = vor.u32 %v13085_v3, %v9039_v5  ;;  %v9554_v23 = vor.u32 %v13213_v12, %v9551_v13  ;;  %v9007_v24 = vld [vmem:[#allocation2 + $0x2f0] sm:$0xf0] }
 0x207   :  { %3709 = vmatmul.bf16.vlgmr.msrb.gmra.mxu1 %v14354_v40  ;;  %v3490_v21 = vadd.f32 %v3489_v16, %v14405_v49  ;;  %v13141_v26 = vld [vmem:[#allocation2 + $0x4d4] sm:$0xf]  ;;  %v8754_v31 = vor.u32 %v13013_v19, %v8751_v20 }
 0x208   :  { %3734 = vmatpush.bf16.msrb.mxu3 %v10446_v30  ;;  %3753 = vmatpush.bf16.msra.mxu1 %v9138_v32  ;;  %v9263_v27 = vld [vmem:[#allocation2 + $0x4f0] sm:$0xf0]  ;;  %v9010_v32 = vor.u32 %v13077_v6, %v9007_v24  ;;  %v3530_v6 = vpop.f32.mrf.mxu3 }
 0x209   :  { %3722 = vmatmul.bf16.vlgmr.msrb.gmra.mxu2 %v14348_v34  ;;  %v13205_v28 = vld [vmem:[#allocation2 + $0x6d4] sm:$0xf]  ;;  %v3503_v30 = vadd.f32 %v3502_v22, %v3490_v21 }
 0x20a   :  { %3766 = vmatpush.bf16.msra.mxu2 %v9394_v33  ;;  %3741 = vmatpush.bf16.msra.mxu0 %v8850_v46  ;;  %v9519_v29 = vld [vmem:[#allocation2 + $0x6f0] sm:$0xf0]  ;;  %v9266_v33 = vor.u32 %v13141_v26, %v9263_v27 }
 0x20b   :  { %3735 = vmatmul.bf16.vlgmr.msrb.gmra.mxu3 %v14352_v38  ;;  %v13005_v47 = vld [vmem:[#allocation2 + $0x94] sm:$0xf]  ;;  %v9522_v49 = vor.u32 %v13205_v28, %v9519_v29 }
 0x20c   :  { %3779 = vmatpush.bf16.msra.mxu3 %v9650_v7  ;;  %3754 = vmatpush.bf16.msra.mxu1 %v9106_v50  ;;  %v8719_v35 = vld [vmem:[#allocation2 + $0xb0] sm:$0xf0]  ;;  %v3515_v7 = vpop.f32.mrf.mxu2 }
 0x20d   :  { %v13069_v36 = vld [vmem:[#allocation2 + $0x294] sm:$0xf]  ;;  %v3516_v43 = vadd.f32 %v3515_v7, %v3503_v30 }
 0x20e   :  { %3767 = vmatpush.bf16.msra.mxu2 %v9362_v51  ;;  %3742 = vmatpush.bf16.msra.mxu0 %v8818_v61  ;;  %v8975_v39 = vld [vmem:[#allocation2 + $0x2b0] sm:$0xf0]  ;;  %v8722_v51 = vor.u32 %v13005_v47, %v8719_v35  ;;  %v3491_v53 = vpop.f32.mrf.mxu0 }
 0x20f   :  { %v13133_v41 = vld [vmem:[#allocation2 + $0x494] sm:$0xf]  ;;  %v14412_v52 = vadd.f32 %v3528_v44, %v3516_v43  ;;  %v8978_v54 = vor.u32 %v13069_v36, %v8975_v39 }
 0x210   :  { %3780 = vmatpush.bf16.msra.mxu3 %v9618_v55  ;;  %3755 = vmatpush.bf16.msra.mxu1 %v9074_v62  ;;  %v9231_v42 = vld [vmem:[#allocation2 + $0x4b0] sm:$0xf0] }
 0x211   :  { %v13197_v46 = vld [vmem:[#allocation2 + $0x694] sm:$0xf]  ;;  %v9234_v55 = vor.u32 %v13133_v41, %v9231_v42 }
 0x212   :  { %3768 = vmatpush.bf16.msra.mxu2 %v9330_v0  ;;  %3743 = vmatpush.bf16.msra.mxu0 %v8786_v14  ;;  %v9487_v50 = vld [vmem:[#allocation2 + $0x6b0] sm:$0xf0] }
 0x213   :  { %v12997_v56 = vld [vmem:[#allocation2 + $0x54] sm:$0xf]  ;;  %v9490_v60 = vor.u32 %v13197_v46, %v9487_v50 }
 0x214   :  { %3781 = vmatpush.bf16.msra.mxu3 %v9586_v4  ;;  %3756 = vmatpush.bf16.msra.mxu1 %v9042_v17  ;;  %v8687_v57 = vld [vmem:[#allocation2 + $0x70] sm:$0xf0]  ;;  %v3517_v16 = vpop.f32.mrf.mxu2 }
 0x215   :  { %v13061_v58 = vld [vmem:[#allocation2 + $0x254] sm:$0xf]  ;;  %v8690_v3 = vor.u32 %v12997_v56, %v8687_v57 }
 0x216   :  { %3769 = vmatpush.bf16.msra.mxu2 %v9298_v18  ;;  %3744 = vmatpush.bf16.msra.mxu0 %v8754_v31  ;;  %v8943_v61 = vld [vmem:[#allocation2 + $0x270] sm:$0xf0] }
 0x217   :  { %v13125_v62 = vld [vmem:[#allocation2 + $0x454] sm:$0xf]  ;;  %v8946_v10 = vor.u32 %v13061_v58, %v8943_v61 }
 0x218   :  { %3782 = vmatpush.bf16.msra.mxu3 %v9554_v23  ;;  %3757 = vmatpush.bf16.msra.mxu1 %v9010_v32  ;;  %v9199_v0 = vld [vmem:[#allocation2 + $0x470] sm:$0xf0] }
 0x219   :  { %v13189_v1 = vld [vmem:[#allocation2 + $0x654] sm:$0xf]  ;;  %v9202_v11 = vor.u32 %v13125_v62, %v9199_v0 }
 0x21a   :  { %3770 = vmatpush.bf16.msra.mxu2 %v9266_v33  ;;  %v9455_v2 = vld [vmem:[#allocation2 + $0x670] sm:$0xf0]  ;;  %3745 = vmatpush.bf16.msra.mxu0 %v8722_v51 }
 0x21b   :  { %v12989_v4 = vld [vmem:[#allocation2 + $0x14] sm:$0xf]  ;;  %v9458_v17 = vor.u32 %v13189_v1, %v9455_v2 }
 0x21c   :  { %3783 = vmatpush.bf16.msra.mxu3 %v9522_v49  ;;  %v8655_v5 = vld [vmem:[#allocation2 + $0x30] sm:$0xf0]  ;;  %3758 = vmatpush.bf16.msra.mxu1 %v8978_v54 }
 0x21d   :  { %v13053_v12 = vld [vmem:[#allocation2 + $0x214] sm:$0xf]  ;;  %v8658_v24 = vor.u32 %v12989_v4, %v8655_v5 }
 0x21e   :  { %3771 = vmatpush.bf16.msra.mxu2 %v9234_v55  ;;  %v8911_v13 = vld [vmem:[#allocation2 + $0x230] sm:$0xf0]  ;;  %3746 = vmatpush.bf16.msra.mxu0 %v8690_v3 }
 0x21f   :  { %v13117_v14 = vld [vmem:[#allocation2 + $0x414] sm:$0xf]  ;;  %v8914_v29 = vor.u32 %v13053_v12, %v8911_v13 }
 0x220   :  { %3784 = vmatpush.bf16.msra.mxu3 %v9490_v60  ;;  %v9167_v18 = vld [vmem:[#allocation2 + $0x430] sm:$0xf0]  ;;  %3759 = vmatpush.bf16.msra.mxu1 %v8946_v10 }
 0x221   :  { %v13181_v19 = vld [vmem:[#allocation2 + $0x614] sm:$0xf]  ;;  %v9170_v30 = vor.u32 %v13117_v14, %v9167_v18 }
 0x222   :  { %v9423_v20 = vld [vmem:[#allocation2 + $0x630] sm:$0xf0]  ;;  %3772 = vmatpush.bf16.msra.mxu2 %v9202_v11  ;;  %3747 = vmatpush.bf16.msra.mxu0 %v8658_v24  ;;  %v647_v11 = vperm.slane %v14402_v63, 3 }
 0x223   :  { %v13301_v21 = vld [vmem:[#allocation2 + $0x9d4] sm:$0xf]  ;;  %v9426_v33 = vor.u32 %v13181_v19, %v9423_v20  ;;  %v3541_v20 = vpop.f32.mrf.mxu0 }
 0x224   :  { %v9903_v22 = vld [vmem:[#allocation2 + $0x9f0] sm:$0xf0]  ;;  %3785 = vmatpush.bf16.msra.mxu3 %v9458_v17  ;;  %3760 = vmatpush.bf16.msra.mxu1 %v8914_v29 }
 0x225   :  { %v13365_v23 = vld [vmem:[#allocation2 + $0xbd4] sm:$0xf]  ;;  %v9906_v47 = vor.u32 %v13301_v21, %v9903_v22  ;;  %3748 = vmatmul.bf16.vlgmr.msra.gmra.mxu0 %v14320_v9 }
 0x226   :  { %v10159_v26 = vld [vmem:[#allocation2 + $0xbf0] sm:$0xf0]  ;;  %3773 = vmatpush.bf16.msra.mxu2 %v9170_v30 }
 0x227   :  { %v13429_v27 = vld [vmem:[#allocation2 + $0xdd4] sm:$0xf]  ;;  %v10162_v35 = vor.u32 %v13365_v23, %v10159_v26  ;;  %3792 = vmatpush.bf16.msrb.mxu0 %v9906_v47  ;;  %3761 = vmatmul.bf16.vlgmr.msra.gmra.mxu1 %v14333_v25  ;;  %v3542_v26 = vadd.f32 %v3541_v20, %v647_v11 }
 0x228   :  { %v10415_v28 = vld [vmem:[#allocation2 + $0xdf0] sm:$0xf0]  ;;  %3786 = vmatpush.bf16.msra.mxu3 %v9426_v33 }
 0x229   :  { %v13493_v31 = vld [vmem:[#allocation2 + $0xfd4] sm:$0xf]  ;;  %v10418_v36 = vor.u32 %v13429_v27, %v10415_v28  ;;  %3805 = vmatpush.bf16.msrb.mxu1 %v10162_v35  ;;  %3774 = vmatmul.bf16.vlgmr.msra.gmra.mxu2 %v14318_v8  ;;  %v3554_v27 = vpop.f32.mrf.mxu1 }
 0x22a   :  { %v10671_v32 = vld [vmem:[#allocation2 + $0xff0] sm:$0xf0]  ;;  %v3555_v33 = vadd.f32 %v3554_v27, %v3542_v26  ;;  %v8885_v26 = vld [vmem:[#allocation2 + $0x1d8] sm:$0xf] }
 0x22b   :  { %v13293_v7 = vld [vmem:[#allocation2 + $0x994] sm:$0xf]  ;;  %v10674_v41 = vor.u32 %v13493_v31, %v10671_v32  ;;  %3818 = vmatpush.bf16.msrb.mxu2 %v10418_v36  ;;  %3787 = vmatmul.bf16.vlgmr.msra.gmra.mxu3 %v14325_v15  ;;  %v13050_v27 = vld [vmem:[#allocation2 + $0x1f4] sm:$0xf0] }
 0x22c   :  { %v9871_v49 = vld [vmem:[#allocation2 + $0x9b0] sm:$0xf0] }
 0x22d   :  { %v13357_v39 = vld [vmem:[#allocation2 + $0xb94] sm:$0xf]  ;;  %v9874_v51 = vor.u32 %v13293_v7, %v9871_v49  ;;  %3831 = vmatpush.bf16.msrb.mxu3 %v10674_v41  ;;  %v3567_v41 = vpop.f32.mrf.mxu2 }
 0x22e   :  { %v10127_v42 = vld [vmem:[#allocation2 + $0xbb0] sm:$0xf0] }
 0x22f   :  { %v13421_v43 = vld [vmem:[#allocation2 + $0xd94] sm:$0xf]  ;;  %v10130_v53 = vor.u32 %v13357_v39, %v10127_v42  ;;  %3793 = vmatpush.bf16.msrb.mxu0 %v9874_v51  ;;  %v3580_v51 = vpop.f32.mrf.mxu3 }
 0x230   :  { %v10383_v44 = vld [vmem:[#allocation2 + $0xdb0] sm:$0xf0] }
 0x231   :  { %v13485_v46 = vld [vmem:[#allocation2 + $0xf94] sm:$0xf]  ;;  %v10386_v54 = vor.u32 %v13421_v43, %v10383_v44  ;;  %3806 = vmatpush.bf16.msrb.mxu1 %v10130_v53 }
 0x232   :  { %v10639_v50 = vld [vmem:[#allocation2 + $0xfb0] sm:$0xf0] }
 0x233   :  { %v13285_v55 = vld [vmem:[#allocation2 + $0x954] sm:$0xf]  ;;  %v10642_v58 = vor.u32 %v13485_v46, %v10639_v50  ;;  %3819 = vmatpush.bf16.msrb.mxu2 %v10386_v54  ;;  %v3568_v50 = vadd.f32 %v3567_v41, %v3555_v33  ;;  %v8853_v41 = vld [vmem:[#allocation2 + $0x198] sm:$0xf] }
 0x234   :  { %v9839_v56 = vld [vmem:[#allocation2 + $0x970] sm:$0xf0] }
 0x235   :  { %v13349_v57 = vld [vmem:[#allocation2 + $0xb54] sm:$0xf]  ;;  %v9842_v1 = vor.u32 %v13285_v55, %v9839_v56  ;;  %3832 = vmatpush.bf16.msrb.mxu3 %v10642_v58  ;;  %v14419_v56 = vadd.f32 %v3580_v51, %v3568_v50  ;;  %v3569_v20 = vpop.f32.mrf.mxu2  ;;  %v9365_v50 = vld [vmem:[#allocation2 + $0x598] sm:$0xf] }
 0x236   :  { %v10095_v59 = vld [vmem:[#allocation2 + $0xb70] sm:$0xf0]  ;;  %v13170_v51 = vld [vmem:[#allocation2 + $0x5b4] sm:$0xf0] }
 0x237   :  { %v13413_v60 = vld [vmem:[#allocation2 + $0xd54] sm:$0xf]  ;;  %v10098_v3 = vor.u32 %v13349_v57, %v10095_v59  ;;  %3794 = vmatpush.bf16.msrb.mxu0 %v9842_v1  ;;  %v3543_v57 = vpop.f32.mrf.mxu0  ;;  %v9557_v20 = vld [vmem:[#allocation2 + $0x718] sm:$0xf] }
 0x238   :  { %v10351_v61 = vld [vmem:[#allocation2 + $0xd70] sm:$0xf0] }
 0x239   :  { %v13477_v62 = vld [vmem:[#allocation2 + $0xf54] sm:$0xf]  ;;  %v10354_v4 = vor.u32 %v13413_v60, %v10351_v61  ;;  %3807 = vmatpush.bf16.msrb.mxu1 %v10098_v3 }
 0x23a   :  { %v10607_v0 = vld [vmem:[#allocation2 + $0xf70] sm:$0xf0] }
 0x23b   :  { %v13277_v2 = vld [vmem:[#allocation2 + $0x914] sm:$0xf]  ;;  %v10610_v12 = vor.u32 %v13477_v62, %v10607_v0  ;;  %3820 = vmatpush.bf16.msrb.mxu2 %v10354_v4  ;;  %v3556_v0 = vpop.f32.mrf.mxu1 }
 0x23c   :  { %v9807_v5 = vld [vmem:[#allocation2 + $0x930] sm:$0xf0]  ;;  %v13098_v0 = vld [vmem:[#allocation2 + $0x374] sm:$0xf0] }
 0x23d   :  { %v13341_v10 = vld [vmem:[#allocation2 + $0xb14] sm:$0xf]  ;;  %v9810_v19 = vor.u32 %v13277_v2, %v9807_v5  ;;  %3833 = vmatpush.bf16.msrb.mxu3 %v10610_v12 }
 0x23e   :  { %v10063_v13 = vld [vmem:[#allocation2 + $0xb30] sm:$0xf0] }
 0x23f   :  { %v13405_v14 = vld [vmem:[#allocation2 + $0xd14] sm:$0xf]  ;;  %v10066_v6 = vor.u32 %v13341_v10, %v10063_v13  ;;  %3795 = vmatpush.bf16.msrb.mxu0 %v9810_v19 }
 0x240   :  { %v10319_v16 = vld [vmem:[#allocation2 + $0xd30] sm:$0xf0] }
 0x241   :  { %v13469_v17 = vld [vmem:[#allocation2 + $0xf14] sm:$0xf]  ;;  %v10322_v21 = vor.u32 %v13405_v14, %v10319_v16  ;;  %3808 = vmatpush.bf16.msrb.mxu1 %v10066_v6 }
 0x242   :  { %v10575_v18 = vld [vmem:[#allocation2 + $0xf30] sm:$0xf0] }
 0x243   :  { %v13269_v22 = vld [vmem:[#allocation2 + $0x8d4] sm:$0xf]  ;;  %v10578_v63 = vor.u32 %v13469_v17, %v10575_v18  ;;  %3821 = vmatpush.bf16.msrb.mxu2 %v10322_v21 }
 0x244   :  { %v9775_v23 = vld [vmem:[#allocation2 + $0x8f0] sm:$0xf0] }
 0x245   :  { %v13333_v24 = vld [vmem:[#allocation2 + $0xad4] sm:$0xf]  ;;  %v9778_v47 = vor.u32 %v13269_v22, %v9775_v23  ;;  %3834 = vmatpush.bf16.msrb.mxu3 %v10578_v63  ;;  %v9141_v63 = vld [vmem:[#allocation2 + $0x3d8] sm:$0xf] }
 0x246   :  { %v10031_v28 = vld [vmem:[#allocation2 + $0xaf0] sm:$0xf0] }
 0x247   :  { %v13397_v29 = vld [vmem:[#allocation2 + $0xcd4] sm:$0xf]  ;;  %v10034_v35 = vor.u32 %v13333_v24, %v10031_v28  ;;  %3796 = vmatpush.bf16.msrb.mxu0 %v9778_v47  ;;  %v3582_v24 = vpop.f32.mrf.mxu3  ;;  %v9653_v47 = vld [vmem:[#allocation2 + $0x7d8] sm:$0xf] }
 0x248   :  { %v10287_v30 = vld [vmem:[#allocation2 + $0xcf0] sm:$0xf0] }
 0x249   :  { %v13461_v31 = vld [vmem:[#allocation2 + $0xed4] sm:$0xf]  ;;  %v10290_v36 = vor.u32 %v13397_v29, %v10287_v30  ;;  %3809 = vmatpush.bf16.msrb.mxu1 %v10034_v35  ;;  %v13114_v29 = vld [vmem:[#allocation2 + $0x3f4] sm:$0xf0] }
 0x24a   :  { %v10543_v32 = vld [vmem:[#allocation2 + $0xef0] sm:$0xf0]  ;;  %v9397_v30 = vld [vmem:[#allocation2 + $0x5d8] sm:$0xf] }
 0x24b   :  { %v13261_v7 = vld [vmem:[#allocation2 + $0x894] sm:$0xf]  ;;  %v10546_v42 = vor.u32 %v13461_v31, %v10543_v32  ;;  %3822 = vmatpush.bf16.msrb.mxu2 %v10290_v36  ;;  %v13178_v31 = vld [vmem:[#allocation2 + $0x5f4] sm:$0xf0] }
 0x24c   :  { %v9743_v49 = vld [vmem:[#allocation2 + $0x8b0] sm:$0xf0]  ;;  %v13242_v35 = vld [vmem:[#allocation2 + $0x7f4] sm:$0xf0] }
 0x24d   :  { %v13325_v39 = vld [vmem:[#allocation2 + $0xa94] sm:$0xf]  ;;  %v9746_v55 = vor.u32 %v13261_v7, %v9743_v49  ;;  %3835 = vmatpush.bf16.msrb.mxu3 %v10546_v42  ;;  %v8886_v7 = vor.u32 %v13050_v27, %v8885_v26  ;;  %v9142_v49 = vor.u32 %v13114_v29, %v9141_v63  ;;  %v13042_v42 = vld [vmem:[#allocation2 + $0x1b4] sm:$0xf0]  ;;  %v3606_v29 = vpop.f32.mrf.mxu1 }
 0x24e   :  { %v9999_v43 = vld [vmem:[#allocation2 + $0xab0] sm:$0xf0]  ;;  %v8757_v26 = vld [vmem:[#allocation2 + $0xd8] sm:$0xf] }
 0x24f   :  { %v13389_v44 = vld [vmem:[#allocation2 + $0xc94] sm:$0xf]  ;;  %v10002_v58 = vor.u32 %v13325_v39, %v9999_v43  ;;  %3797 = vmatpush.bf16.msrb.mxu0 %v9746_v55  ;;  %v9398_v39 = vor.u32 %v13178_v31, %v9397_v30  ;;  %v9109_v43 = vld [vmem:[#allocation2 + $0x398] sm:$0xf]  ;;  %v8854_v55 = vor.u32 %v13042_v42, %v8853_v41 }
 0x250   :  { %v10255_v46 = vld [vmem:[#allocation2 + $0xcb0] sm:$0xf0]  ;;  %v13018_v27 = vld [vmem:[#allocation2 + $0xf4] sm:$0xf0] }
 0x251   :  { %v13453_v53 = vld [vmem:[#allocation2 + $0xe94] sm:$0xf]  ;;  %v10258_v59 = vor.u32 %v13389_v44, %v10255_v46  ;;  %3810 = vmatpush.bf16.msrb.mxu1 %v10002_v58  ;;  %v9654_v44 = vor.u32 %v13242_v35, %v9653_v47  ;;  %v13106_v46 = vld [vmem:[#allocation2 + $0x3b4] sm:$0xf0]  ;;  %v9366_v58 = vor.u32 %v13170_v51, %v9365_v50 }
 0x252   :  { %v10511_v54 = vld [vmem:[#allocation2 + $0xeb0] sm:$0xf0]  ;;  %v9110_v57 = vor.u32 %v13106_v46, %v9109_v43  ;;  %v9013_v63 = vld [vmem:[#allocation2 + $0x2d8] sm:$0xf] }
 0x253   :  { %v13253_v60 = vld [vmem:[#allocation2 + $0x854] sm:$0xf]  ;;  %v10514_v1 = vor.u32 %v13453_v53, %v10511_v54  ;;  %3823 = vmatpush.bf16.msrb.mxu2 %v10258_v59  ;;  %v9621_v53 = vld [vmem:[#allocation2 + $0x798] sm:$0xf] }
 0x254   :  { %v9711_v61 = vld [vmem:[#allocation2 + $0x870] sm:$0xf0]  ;;  %v13234_v54 = vld [vmem:[#allocation2 + $0x7b4] sm:$0xf0] }
 0x255   :  { %v13317_v62 = vld [vmem:[#allocation2 + $0xa54] sm:$0xf]  ;;  %v9714_v11 = vor.u32 %v13253_v60, %v9711_v61  ;;  %3836 = vmatpush.bf16.msrb.mxu3 %v10514_v1  ;;  %v8821_v59 = vld [vmem:[#allocation2 + $0x158] sm:$0xf] }
 0x256   :  { %v9967_v2 = vld [vmem:[#allocation2 + $0xa70] sm:$0xf0]  ;;  %v13034_v60 = vld [vmem:[#allocation2 + $0x174] sm:$0xf0] }
 0x257   :  { %v13381_v3 = vld [vmem:[#allocation2 + $0xc54] sm:$0xf]  ;;  %v9970_v14 = vor.u32 %v13317_v62, %v9967_v2  ;;  %3798 = vmatpush.bf16.msrb.mxu0 %v9714_v11  ;;  %v9077_v61 = vld [vmem:[#allocation2 + $0x358] sm:$0xf]  ;;  %v9622_v62 = vor.u32 %v13234_v54, %v9621_v53  ;;  %v3632_v54 = vpop.f32.mrf.mxu3 }
 0x258   :  { %v10223_v4 = vld [vmem:[#allocation2 + $0xc70] sm:$0xf0]  ;;  %v9333_v1 = vld [vmem:[#allocation2 + $0x558] sm:$0xf] }
 0x259   :  { %v13445_v5 = vld [vmem:[#allocation2 + $0xe54] sm:$0xf]  ;;  %v10226_v16 = vor.u32 %v13381_v3, %v10223_v4  ;;  %3811 = vmatpush.bf16.msrb.mxu1 %v9970_v14  ;;  %v13162_v2 = vld [vmem:[#allocation2 + $0x574] sm:$0xf0] }
 0x25a   :  { %v10479_v10 = vld [vmem:[#allocation2 + $0xe70] sm:$0xf0]  ;;  %v9589_v3 = vld [vmem:[#allocation2 + $0x758] sm:$0xf]  ;;  %v9334_v11 = vor.u32 %v13162_v2, %v9333_v1 }
 0x25b   :  { %v13245_v12 = vld [vmem:[#allocation2 + $0x814] sm:$0xf]  ;;  %v10482_v6 = vor.u32 %v13445_v5, %v10479_v10  ;;  %3824 = vmatpush.bf16.msrb.mxu2 %v10226_v16  ;;  %v13226_v4 = vld [vmem:[#allocation2 + $0x774] sm:$0xf0]  ;;  %v8822_v5 = vor.u32 %v13034_v60, %v8821_v59  ;;  %v9078_v10 = vor.u32 %v13098_v0, %v9077_v61 }
 0x25c   :  { %v9679_v13 = vld [vmem:[#allocation2 + $0x830] sm:$0xf0]  ;;  %v9045_v14 = vld [vmem:[#allocation2 + $0x318] sm:$0xf]  ;;  %v9590_v16 = vor.u32 %v13226_v4, %v9589_v3  ;;  %v3608_v3 = vpop.f32.mrf.mxu1 }
 0x25d   :  { %v13309_v17 = vld [vmem:[#allocation2 + $0xa14] sm:$0xf]  ;;  %v9682_v28 = vor.u32 %v13245_v12, %v9679_v13  ;;  %3837 = vmatpush.bf16.msrb.mxu3 %v10482_v6  ;;  %v8789_v12 = vld [vmem:[#allocation2 + $0x118] sm:$0xf] }
 0x25e   :  { %v9935_v18 = vld [vmem:[#allocation2 + $0xa30] sm:$0xf0]  ;;  %v13026_v13 = vld [vmem:[#allocation2 + $0x134] sm:$0xf0] }
 0x25f   :  { %v13373_v19 = vld [vmem:[#allocation2 + $0xc14] sm:$0xf]  ;;  %v9938_v32 = vor.u32 %v13309_v17, %v9935_v18  ;;  %3799 = vmatpush.bf16.msrb.mxu0 %v9682_v28  ;;  %v13090_v17 = vld [vmem:[#allocation2 + $0x334] sm:$0xf0] }
 0x260   :  { %v10191_v21 = vld [vmem:[#allocation2 + $0xc30] sm:$0xf0]  ;;  %v9301_v18 = vld [vmem:[#allocation2 + $0x518] sm:$0xf] }
 0x261   :  { %v13437_v22 = vld [vmem:[#allocation2 + $0xe14] sm:$0xf]  ;;  %v10194_v33 = vor.u32 %v13373_v19, %v10191_v21  ;;  %3812 = vmatpush.bf16.msrb.mxu1 %v9938_v32  ;;  %v13154_v19 = vld [vmem:[#allocation2 + $0x534] sm:$0xf0]  ;;  %v8790_v21 = vor.u32 %v13026_v13, %v8789_v12 }
 0x262   :  { %v10447_v23 = vld [vmem:[#allocation2 + $0xe30] sm:$0xf0]  ;;  %3800 = vmatmul.bf16.vlgmr.msrb.gmra.mxu0 %v14350_v37  ;;  %v13218_v6 = vld [vmem:[#allocation2 + $0x734] sm:$0xf0]  ;;  %v9302_v24 = vor.u32 %v13154_v19, %v9301_v18 }
 0x263   :  { %v10450_v36 = vor.u32 %v13437_v22, %v10447_v23  ;;  %3825 = vmatpush.bf16.msrb.mxu2 %v10194_v33  ;;  %3844 = vmatpush.bf16.msra.mxu0 %v8886_v7  ;;  %v3593_v22 = vpop.f32.mrf.mxu0  ;;  %v9046_v23 = vor.u32 %v13090_v17, %v9045_v14  ;;  %v9558_v30 = vor.u32 %v13218_v6, %v9557_v20  ;;  %v13082_v31 = vld [vmem:[#allocation2 + $0x2f4] sm:$0xf0] }
 0x264   :  { %3813 = vmatmul.bf16.vlgmr.msrb.gmra.mxu1 %v14354_v40  ;;  %v3594_v28 = vadd.f32 %v3593_v22, %v14419_v56  ;;  %v9269_v32 = vld [vmem:[#allocation2 + $0x4d8] sm:$0xf]  ;;  %v8758_v7 = vor.u32 %v13018_v27, %v8757_v26 }
 0x265   :  { %3838 = vmatpush.bf16.msrb.mxu3 %v10450_v36  ;;  %3857 = vmatpush.bf16.msra.mxu1 %v9142_v49  ;;  %v13146_v33 = vld [vmem:[#allocation2 + $0x4f4] sm:$0xf0]  ;;  %v9014_v49 = vor.u32 %v13082_v31, %v9013_v63  ;;  %v3634_v63 = vpop.f32.mrf.mxu3 }
 0x266   :  { %3826 = vmatmul.bf16.vlgmr.msrb.gmra.mxu2 %v14348_v34  ;;  %v9525_v47 = vld [vmem:[#allocation2 + $0x6d8] sm:$0xf]  ;;  %v3607_v36 = vadd.f32 %v3606_v29, %v3594_v28 }
 0x267   :  { %3870 = vmatpush.bf16.msra.mxu2 %v9398_v39  ;;  %3845 = vmatpush.bf16.msra.mxu0 %v8854_v55  ;;  %v13210_v35 = vld [vmem:[#allocation2 + $0x6f4] sm:$0xf0]  ;;  %v9270_v39 = vor.u32 %v13146_v33, %v9269_v32 }
 0x268   :  { %3839 = vmatmul.bf16.vlgmr.msrb.gmra.mxu3 %v14352_v38  ;;  %v8725_v41 = vld [vmem:[#allocation2 + $0x98] sm:$0xf]  ;;  %v9526_v56 = vor.u32 %v13210_v35, %v9525_v47 }
 0x269   :  { %3883 = vmatpush.bf16.msra.mxu3 %v9654_v44  ;;  %3858 = vmatpush.bf16.msra.mxu1 %v9110_v57  ;;  %v13010_v42 = vld [vmem:[#allocation2 + $0xb4] sm:$0xf0]  ;;  %v3619_v44 = vpop.f32.mrf.mxu2 }
 0x26a   :  { %v8981_v43 = vld [vmem:[#allocation2 + $0x298] sm:$0xf]  ;;  %v3620_v53 = vadd.f32 %v3619_v44, %v3607_v36 }
 0x26b   :  { %3871 = vmatpush.bf16.msra.mxu2 %v9366_v58  ;;  %3846 = vmatpush.bf16.msra.mxu0 %v8822_v5  ;;  %v13074_v46 = vld [vmem:[#allocation2 + $0x2b4] sm:$0xf0]  ;;  %v8726_v58 = vor.u32 %v13010_v42, %v8725_v41  ;;  %v3595_v60 = vpop.f32.mrf.mxu0 }
 0x26c   :  { %v9237_v50 = vld [vmem:[#allocation2 + $0x498] sm:$0xf]  ;;  %v14426_v59 = vadd.f32 %v3632_v54, %v3620_v53  ;;  %v8982_v61 = vor.u32 %v13074_v46, %v8981_v43 }
 0x26d   :  { %3884 = vmatpush.bf16.msra.mxu3 %v9622_v62  ;;  %3859 = vmatpush.bf16.msra.mxu1 %v9078_v10  ;;  %v13138_v51 = vld [vmem:[#allocation2 + $0x4b4] sm:$0xf0] }
 0x26e   :  { %v9493_v55 = vld [vmem:[#allocation2 + $0x698] sm:$0xf]  ;;  %v9238_v62 = vor.u32 %v13138_v51, %v9237_v50 }
 0x26f   :  { %3872 = vmatpush.bf16.msra.mxu2 %v9334_v11  ;;  %3847 = vmatpush.bf16.msra.mxu0 %v8790_v21  ;;  %v13202_v57 = vld [vmem:[#allocation2 + $0x6b4] sm:$0xf0] }
 0x270   :  { %v8693_v0 = vld [vmem:[#allocation2 + $0x58] sm:$0xf]  ;;  %v9494_v4 = vor.u32 %v13202_v57, %v9493_v55 }
 0x271   :  { %3885 = vmatpush.bf16.msra.mxu3 %v9590_v16  ;;  %3860 = vmatpush.bf16.msra.mxu1 %v9046_v23  ;;  %v13002_v1 = vld [vmem:[#allocation2 + $0x74] sm:$0xf0]  ;;  %v3621_v22 = vpop.f32.mrf.mxu2 }
 0x272   :  { %v8949_v2 = vld [vmem:[#allocation2 + $0x258] sm:$0xf]  ;;  %v8694_v14 = vor.u32 %v13002_v1, %v8693_v0 }
 0x273   :  { %3873 = vmatpush.bf16.msra.mxu2 %v9302_v24  ;;  %3848 = vmatpush.bf16.msra.mxu0 %v8758_v7  ;;  %v13066_v5 = vld [vmem:[#allocation2 + $0x274] sm:$0xf0]  ;;  %v3645_v63 = vpop.f32.mrf.mxu0 }
 0x274   :  { %v9205_v10 = vld [vmem:[#allocation2 + $0x458] sm:$0xf]  ;;  %v8950_v18 = vor.u32 %v13066_v5, %v8949_v2 }
 0x275   :  { %3886 = vmatpush.bf16.msra.mxu3 %v9558_v30  ;;  %3861 = vmatpush.bf16.msra.mxu1 %v9014_v49  ;;  %v13130_v11 = vld [vmem:[#allocation2 + $0x474] sm:$0xf0] }
 0x276   :  { %v9461_v12 = vld [vmem:[#allocation2 + $0x658] sm:$0xf]  ;;  %v9206_v19 = vor.u32 %v13130_v11, %v9205_v10 }
 0x277   :  { %3874 = vmatpush.bf16.msra.mxu2 %v9270_v39  ;;  %v13194_v13 = vld [vmem:[#allocation2 + $0x674] sm:$0xf0]  ;;  %3849 = vmatpush.bf16.msra.mxu0 %v8726_v58 }
 0x278   :  { %v8661_v16 = vld [vmem:[#allocation2 + $0x18] sm:$0xf]  ;;  %v9462_v23 = vor.u32 %v13194_v13, %v9461_v12 }
 0x279   :  { %3887 = vmatpush.bf16.msra.mxu3 %v9526_v56  ;;  %v12994_v17 = vld [vmem:[#allocation2 + $0x34] sm:$0xf0]  ;;  %3862 = vmatpush.bf16.msra.mxu1 %v8982_v61 }
 0x27a   :  { %v8917_v20 = vld [vmem:[#allocation2 + $0x218] sm:$0xf]  ;;  %v8662_v31 = vor.u32 %v12994_v17, %v8661_v16 }
 0x27b   :  { %3875 = vmatpush.bf16.msra.mxu2 %v9238_v62  ;;  %v13058_v6 = vld [vmem:[#allocation2 + $0x234] sm:$0xf0]  ;;  %3850 = vmatpush.bf16.msra.mxu0 %v8694_v14 }
 0x27c   :  { %v9173_v21 = vld [vmem:[#allocation2 + $0x418] sm:$0xf]  ;;  %v8918_v35 = vor.u32 %v13058_v6, %v8917_v20 }
 0x27d   :  { %3888 = vmatpush.bf16.msra.mxu3 %v9494_v4  ;;  %v13122_v24 = vld [vmem:[#allocation2 + $0x434] sm:$0xf0]  ;;  %3863 = vmatpush.bf16.msra.mxu1 %v8950_v18 }
 0x27e   :  { %v9429_v26 = vld [vmem:[#allocation2 + $0x618] sm:$0xf]  ;;  %v9174_v36 = vor.u32 %v13122_v24, %v9173_v21 }
 0x27f   :  { %v13186_v27 = vld [vmem:[#allocation2 + $0x634] sm:$0xf0]  ;;  %3876 = vmatpush.bf16.msra.mxu2 %v9206_v19  ;;  %3851 = vmatpush.bf16.msra.mxu0 %v8662_v31  ;;  %v14432_v19 = vld [vmem:[#allocation4] sm:$0xff] }
 0x280   :  { %v9909_v28 = vld [vmem:[#allocation2 + $0x9d8] sm:$0xf]  ;;  %v9430_v39 = vor.u32 %v13186_v27, %v9429_v26  ;;  %v648_v20 = vperm.slane %v14432_v19, 4 }
 0x281   :  { %v13306_v29 = vld [vmem:[#allocation2 + $0x9f4] sm:$0xf0]  ;;  %3889 = vmatpush.bf16.msra.mxu3 %v9462_v23  ;;  %3864 = vmatpush.bf16.msra.mxu1 %v8918_v35 }
 0x282   :  { %v10165_v30 = vld [vmem:[#allocation2 + $0xbd8] sm:$0xf]  ;;  %v9910_v41 = vor.u32 %v13306_v29, %v9909_v28  ;;  %3852 = vmatmul.bf16.vlgmr.msra.gmra.mxu0 %v14320_v9 }
 0x283   :  { %v13370_v32 = vld [vmem:[#allocation2 + $0xbf4] sm:$0xf0]  ;;  %3877 = vmatpush.bf16.msra.mxu2 %v9174_v36 }
 0x284   :  { %v10421_v33 = vld [vmem:[#allocation2 + $0xdd8] sm:$0xf]  ;;  %v10166_v42 = vor.u32 %v13370_v32, %v10165_v30  ;;  %3896 = vmatpush.bf16.msrb.mxu0 %v9910_v41  ;;  %3865 = vmatmul.bf16.vlgmr.msra.gmra.mxu1 %v14333_v25 }
 0x285   :  { %v13434_v47 = vld [vmem:[#allocation2 + $0xdf4] sm:$0xf0]  ;;  %3890 = vmatpush.bf16.msra.mxu3 %v9430_v39 }
 0x286   :  { %v10677_v7 = vld [vmem:[#allocation2 + $0xfd8] sm:$0xf]  ;;  %v10422_v43 = vor.u32 %v13434_v47, %v10421_v33  ;;  %3909 = vmatpush.bf16.msrb.mxu1 %v10166_v42  ;;  %3878 = vmatmul.bf16.vlgmr.msra.gmra.mxu2 %v14318_v8  ;;  %v3646_v33 = vadd.f32 %v3645_v63, %v648_v20  ;;  %v3658_v47 = vpop.f32.mrf.mxu1 }
 0x287   :  { %v13498_v49 = vld [vmem:[#allocation2 + $0xff4] sm:$0xf0] }
 0x288   :  { %v9877_v44 = vld [vmem:[#allocation2 + $0x998] sm:$0xf]  ;;  %v10678_v50 = vor.u32 %v13498_v49, %v10677_v7  ;;  %3922 = vmatpush.bf16.msrb.mxu2 %v10422_v43  ;;  %3891 = vmatmul.bf16.vlgmr.msra.gmra.mxu3 %v14325_v15  ;;  %v3659_v42 = vadd.f32 %v3658_v47, %v3646_v33 }
 0x289   :  { %v13298_v56 = vld [vmem:[#allocation2 + $0x9b4] sm:$0xf0] }
 0x28a   :  { %v10133_v46 = vld [vmem:[#allocation2 + $0xb98] sm:$0xf]  ;;  %v9878_v58 = vor.u32 %v13298_v56, %v9877_v44  ;;  %3935 = vmatpush.bf16.msrb.mxu3 %v10678_v50 }
 0x28b   :  { %v13362_v51 = vld [vmem:[#allocation2 + $0xbb4] sm:$0xf0] }
 0x28c   :  { %v10389_v53 = vld [vmem:[#allocation2 + $0xd98] sm:$0xf]  ;;  %v10134_v60 = vor.u32 %v13362_v51, %v10133_v46  ;;  %3897 = vmatpush.bf16.msrb.mxu0 %v9878_v58 }
 0x28d   :  { %v13426_v54 = vld [vmem:[#allocation2 + $0xdb4] sm:$0xf0] }
 0x28e   :  { %v10645_v55 = vld [vmem:[#allocation2 + $0xf98] sm:$0xf]  ;;  %v10390_v61 = vor.u32 %v13426_v54, %v10389_v53  ;;  %3910 = vmatpush.bf16.msrb.mxu1 %v10134_v60  ;;  %v3671_v53 = vpop.f32.mrf.mxu2 }
 0x28f   :  { %v13490_v57 = vld [vmem:[#allocation2 + $0xfb4] sm:$0xf0]  ;;  %v3672_v60 = vadd.f32 %v3671_v53, %v3659_v42  ;;  %v9399_v42 = vld [vmem:[#allocation2 + $0x5f8] sm:$0xf0] }
 0x290   :  { %v9845_v62 = vld [vmem:[#allocation2 + $0x958] sm:$0xf]  ;;  %v10646_v2 = vor.u32 %v13490_v57, %v10645_v55  ;;  %3923 = vmatpush.bf16.msrb.mxu2 %v10390_v61  ;;  %v3684_v61 = vpop.f32.mrf.mxu3 }
 0x291   :  { %v13290_v0 = vld [vmem:[#allocation2 + $0x974] sm:$0xf0] }
 0x292   :  { %v10101_v1 = vld [vmem:[#allocation2 + $0xb58] sm:$0xf]  ;;  %v9846_v12 = vor.u32 %v13290_v0, %v9845_v62  ;;  %3936 = vmatpush.bf16.msrb.mxu3 %v10646_v2  ;;  %v14435_v2 = vadd.f32 %v3684_v61, %v3672_v60  ;;  %v9111_v61 = vld [vmem:[#allocation2 + $0x3b8] sm:$0xf0] }
 0x293   :  { %v13354_v3 = vld [vmem:[#allocation2 + $0xb74] sm:$0xf0] }
 0x294   :  { %v10357_v4 = vld [vmem:[#allocation2 + $0xd58] sm:$0xf]  ;;  %v10102_v14 = vor.u32 %v13354_v3, %v10101_v1  ;;  %3898 = vmatpush.bf16.msrb.mxu0 %v9846_v12  ;;  %v3647_v3 = vpop.f32.mrf.mxu0 }
 0x295   :  { %v13418_v5 = vld [vmem:[#allocation2 + $0xd74] sm:$0xf0]  ;;  %v9623_v3 = vld [vmem:[#allocation2 + $0x7b8] sm:$0xf0] }
 0x296   :  { %v10613_v10 = vld [vmem:[#allocation2 + $0xf58] sm:$0xf]  ;;  %v10358_v16 = vor.u32 %v13418_v5, %v10357_v4  ;;  %3911 = vmatpush.bf16.msrb.mxu1 %v10102_v14 }
 0x297   :  { %v13482_v11 = vld [vmem:[#allocation2 + $0xf74] sm:$0xf0] }
 0x298   :  { %v9813_v13 = vld [vmem:[#allocation2 + $0x918] sm:$0xf]  ;;  %v10614_v6 = vor.u32 %v13482_v11, %v10613_v10  ;;  %3924 = vmatpush.bf16.msrb.mxu2 %v10358_v16  ;;  %v3686_v47 = vpop.f32.mrf.mxu3 }
 0x299   :  { %v13282_v17 = vld [vmem:[#allocation2 + $0x934] sm:$0xf0] }
 0x29a   :  { %v10069_v18 = vld [vmem:[#allocation2 + $0xb18] sm:$0xf]  ;;  %v9814_v27 = vor.u32 %v13282_v17, %v9813_v13  ;;  %3937 = vmatpush.bf16.msrb.mxu3 %v10614_v6  ;;  %v3660_v13 = vpop.f32.mrf.mxu1 }
 0x29b   :  { %v13346_v21 = vld [vmem:[#allocation2 + $0xb34] sm:$0xf0]  ;;  %v13094_v13 = vld [vmem:[#allocation2 + $0x35c] sm:$0xf] }
 0x29c   :  { %v10325_v22 = vld [vmem:[#allocation2 + $0xd18] sm:$0xf]  ;;  %v10070_v28 = vor.u32 %v13346_v21, %v10069_v18  ;;  %3899 = vmatpush.bf16.msrb.mxu0 %v9814_v27  ;;  %v3697_v47 = vpop.f32.mrf.mxu0 }
 0x29d   :  { %v13410_v23 = vld [vmem:[#allocation2 + $0xd34] sm:$0xf0] }
 0x29e   :  { %v10581_v24 = vld [vmem:[#allocation2 + $0xf18] sm:$0xf]  ;;  %v10326_v29 = vor.u32 %v13410_v23, %v10325_v22  ;;  %3912 = vmatpush.bf16.msrb.mxu1 %v10070_v28 }
 0x29f   :  { %v13474_v26 = vld [vmem:[#allocation2 + $0xf34] sm:$0xf0] }
 0x2a0   :  { %v9781_v30 = vld [vmem:[#allocation2 + $0x8d8] sm:$0xf]  ;;  %v10582_v35 = vor.u32 %v13474_v26, %v10581_v24  ;;  %3925 = vmatpush.bf16.msrb.mxu2 %v10326_v29  ;;  %v3673_v29 = vpop.f32.mrf.mxu2 }
 0x2a1   :  { %v13274_v31 = vld [vmem:[#allocation2 + $0x8f4] sm:$0xf0]  ;;  %v13150_v29 = vld [vmem:[#allocation2 + $0x51c] sm:$0xf] }
 0x2a2   :  { %v10037_v32 = vld [vmem:[#allocation2 + $0xad8] sm:$0xf]  ;;  %v9782_v43 = vor.u32 %v13274_v31, %v9781_v30  ;;  %3938 = vmatpush.bf16.msrb.mxu3 %v10582_v35  ;;  %v13046_v35 = vld [vmem:[#allocation2 + $0x1dc] sm:$0xf] }
 0x2a3   :  { %v13338_v36 = vld [vmem:[#allocation2 + $0xaf4] sm:$0xf0] }
 0x2a4   :  { %v10293_v7 = vld [vmem:[#allocation2 + $0xcd8] sm:$0xf]  ;;  %v10038_v44 = vor.u32 %v13338_v36, %v10037_v32  ;;  %3900 = vmatpush.bf16.msrb.mxu0 %v9782_v43  ;;  %v8887_v36 = vld [vmem:[#allocation2 + $0x1f8] sm:$0xf0] }
 0x2a5   :  { %v13402_v49 = vld [vmem:[#allocation2 + $0xcf4] sm:$0xf0] }
 0x2a6   :  { %v10549_v39 = vld [vmem:[#allocation2 + $0xed8] sm:$0xf]  ;;  %v10294_v56 = vor.u32 %v13402_v49, %v10293_v7  ;;  %3913 = vmatpush.bf16.msrb.mxu1 %v10038_v44  ;;  %v13110_v7 = vld [vmem:[#allocation2 + $0x3dc] sm:$0xf] }
 0x2a7   :  { %v13466_v41 = vld [vmem:[#allocation2 + $0xef4] sm:$0xf0] }
 0x2a8   :  { %v9749_v46 = vld [vmem:[#allocation2 + $0x898] sm:$0xf]  ;;  %v10550_v54 = vor.u32 %v13466_v41, %v10549_v39  ;;  %3926 = vmatpush.bf16.msrb.mxu2 %v10294_v56  ;;  %v9143_v39 = vld [vmem:[#allocation2 + $0x3f8] sm:$0xf0] }
 0x2a9   :  { %v13266_v50 = vld [vmem:[#allocation2 + $0x8b4] sm:$0xf0]  ;;  %v13174_v41 = vld [vmem:[#allocation2 + $0x5dc] sm:$0xf]  ;;  %v9146_v53 = vor.u32 %v13110_v7, %v9143_v39 }
 0x2aa   :  { %v10005_v51 = vld [vmem:[#allocation2 + $0xa98] sm:$0xf]  ;;  %v9750_v1 = vor.u32 %v13266_v50, %v9749_v46  ;;  %3939 = vmatpush.bf16.msrb.mxu3 %v10550_v54  ;;  %v13238_v56 = vld [vmem:[#allocation2 + $0x7dc] sm:$0xf]  ;;  %v9402_v54 = vor.u32 %v13174_v41, %v9399_v42  ;;  %v3698_v41 = vadd.f32 %v3697_v47, %v14435_v2  ;;  %v3710_v42 = vpop.f32.mrf.mxu1 }
 0x2ab   :  { %v13330_v55 = vld [vmem:[#allocation2 + $0xab4] sm:$0xf0]  ;;  %v9655_v46 = vld [vmem:[#allocation2 + $0x7f8] sm:$0xf0] }
 0x2ac   :  { %v10261_v57 = vld [vmem:[#allocation2 + $0xc98] sm:$0xf]  ;;  %v10006_v4 = vor.u32 %v13330_v55, %v10005_v51  ;;  %3901 = vmatpush.bf16.msrb.mxu0 %v9750_v1  ;;  %v8890_v51 = vor.u32 %v13046_v35, %v8887_v36  ;;  %v13038_v55 = vld [vmem:[#allocation2 + $0x19c] sm:$0xf]  ;;  %v9658_v60 = vor.u32 %v13238_v56, %v9655_v46 }
 0x2ad   :  { %v13394_v58 = vld [vmem:[#allocation2 + $0xcb4] sm:$0xf0]  ;;  %v13230_v1 = vld [vmem:[#allocation2 + $0x79c] sm:$0xf] }
 0x2ae   :  { %v10517_v62 = vld [vmem:[#allocation2 + $0xe98] sm:$0xf]  ;;  %v10262_v5 = vor.u32 %v13394_v58, %v10261_v57  ;;  %3914 = vmatpush.bf16.msrb.mxu1 %v10006_v4  ;;  %v8855_v57 = vld [vmem:[#allocation2 + $0x1b8] sm:$0xf0] }
 0x2af   :  { %v13458_v0 = vld [vmem:[#allocation2 + $0xeb4] sm:$0xf0]  ;;  %v13102_v58 = vld [vmem:[#allocation2 + $0x39c] sm:$0xf]  ;;  %v8858_v4 = vor.u32 %v13038_v55, %v8855_v57 }
 0x2b0   :  { %v9717_v10 = vld [vmem:[#allocation2 + $0x858] sm:$0xf]  ;;  %v10518_v14 = vor.u32 %v13458_v0, %v10517_v62  ;;  %3927 = vmatpush.bf16.msrb.mxu2 %v10262_v5  ;;  %v13166_v62 = vld [vmem:[#allocation2 + $0x59c] sm:$0xf]  ;;  %v9114_v5 = vor.u32 %v13102_v58, %v9111_v61 }
 0x2b1   :  { %v13258_v11 = vld [vmem:[#allocation2 + $0x874] sm:$0xf0]  ;;  %v9367_v0 = vld [vmem:[#allocation2 + $0x5b8] sm:$0xf0] }
 0x2b2   :  { %v9973_v12 = vld [vmem:[#allocation2 + $0xa58] sm:$0xf]  ;;  %v9718_v21 = vor.u32 %v13258_v11, %v9717_v10  ;;  %3940 = vmatpush.bf16.msrb.mxu3 %v10518_v14  ;;  %v9370_v10 = vor.u32 %v13166_v62, %v9367_v0  ;;  %v13030_v11 = vld [vmem:[#allocation2 + $0x15c] sm:$0xf]  ;;  %v9626_v14 = vor.u32 %v13230_v1, %v9623_v3  ;;  %v3723_v62 = vpop.f32.mrf.mxu2 }
 0x2b3   :  { %v13322_v16 = vld [vmem:[#allocation2 + $0xa74] sm:$0xf0]  ;;  %v13014_v7 = vld [vmem:[#allocation2 + $0xdc] sm:$0xf] }
 0x2b4   :  { %v10229_v17 = vld [vmem:[#allocation2 + $0xc58] sm:$0xf]  ;;  %v9974_v24 = vor.u32 %v13322_v16, %v9973_v12  ;;  %3902 = vmatpush.bf16.msrb.mxu0 %v9718_v21  ;;  %v8823_v12 = vld [vmem:[#allocation2 + $0x178] sm:$0xf0] }
 0x2b5   :  { %v13386_v18 = vld [vmem:[#allocation2 + $0xc74] sm:$0xf0]  ;;  %v9079_v16 = vld [vmem:[#allocation2 + $0x378] sm:$0xf0]  ;;  %v8826_v21 = vor.u32 %v13030_v11, %v8823_v12 }
 0x2b6   :  { %v10485_v20 = vld [vmem:[#allocation2 + $0xe58] sm:$0xf]  ;;  %v10230_v26 = vor.u32 %v13386_v18, %v10229_v17  ;;  %3915 = vmatpush.bf16.msrb.mxu1 %v9974_v24  ;;  %v13158_v17 = vld [vmem:[#allocation2 + $0x55c] sm:$0xf] }
 0x2b7   :  { %v13450_v6 = vld [vmem:[#allocation2 + $0xe74] sm:$0xf0]  ;;  %v9335_v18 = vld [vmem:[#allocation2 + $0x578] sm:$0xf0] }
 0x2b8   :  { %v9685_v22 = vld [vmem:[#allocation2 + $0x818] sm:$0xf]  ;;  %v10486_v30 = vor.u32 %v13450_v6, %v10485_v20  ;;  %3928 = vmatpush.bf16.msrb.mxu2 %v10230_v26  ;;  %v13222_v20 = vld [vmem:[#allocation2 + $0x75c] sm:$0xf] }
 0x2b9   :  { %v13250_v23 = vld [vmem:[#allocation2 + $0x834] sm:$0xf0]  ;;  %v9591_v6 = vld [vmem:[#allocation2 + $0x778] sm:$0xf0] }
 0x2ba   :  { %v9941_v27 = vld [vmem:[#allocation2 + $0xa18] sm:$0xf]  ;;  %v9686_v49 = vor.u32 %v13250_v23, %v9685_v22  ;;  %3941 = vmatpush.bf16.msrb.mxu3 %v10486_v30  ;;  %v9082_v22 = vor.u32 %v13094_v13, %v9079_v16  ;;  %v9338_v23 = vor.u32 %v13158_v17, %v9335_v18  ;;  %v13022_v24 = vld [vmem:[#allocation2 + $0x11c] sm:$0xf] }
 0x2bb   :  { %v13314_v63 = vld [vmem:[#allocation2 + $0xa34] sm:$0xf0]  ;;  %v8791_v26 = vld [vmem:[#allocation2 + $0x138] sm:$0xf0] }
 0x2bc   :  { %v10197_v28 = vld [vmem:[#allocation2 + $0xc18] sm:$0xf]  ;;  %v9942_v43 = vor.u32 %v13314_v63, %v9941_v27  ;;  %3903 = vmatpush.bf16.msrb.mxu0 %v9686_v49  ;;  %v13086_v27 = vld [vmem:[#allocation2 + $0x31c] sm:$0xf]  ;;  %v9594_v63 = vor.u32 %v13222_v20, %v9591_v6 }
 0x2bd   :  { %v13378_v31 = vld [vmem:[#allocation2 + $0xc34] sm:$0xf0]  ;;  %v9303_v30 = vld [vmem:[#allocation2 + $0x538] sm:$0xf0] }
 0x2be   :  { %v10453_v32 = vld [vmem:[#allocation2 + $0xe18] sm:$0xf]  ;;  %v10198_v44 = vor.u32 %v13378_v31, %v10197_v28  ;;  %3916 = vmatpush.bf16.msrb.mxu1 %v9942_v43  ;;  %v9047_v28 = vld [vmem:[#allocation2 + $0x338] sm:$0xf0]  ;;  %v9306_v36 = vor.u32 %v13150_v29, %v9303_v30 }
 0x2bf   :  { %v13442_v33 = vld [vmem:[#allocation2 + $0xe34] sm:$0xf0]  ;;  %3904 = vmatmul.bf16.vlgmr.msrb.gmra.mxu0 %v14350_v37  ;;  %v13214_v31 = vld [vmem:[#allocation2 + $0x71c] sm:$0xf]  ;;  %v9050_v35 = vor.u32 %v13086_v27, %v9047_v28 }
 0x2c0   :  { %v10454_v50 = vor.u32 %v13442_v33, %v10453_v32  ;;  %3929 = vmatpush.bf16.msrb.mxu2 %v10198_v44  ;;  %3948 = vmatpush.bf16.msra.mxu0 %v8890_v51  ;;  %v9559_v32 = vld [vmem:[#allocation2 + $0x738] sm:$0xf0]  ;;  %v8794_v33 = vor.u32 %v13022_v24, %v8791_v26 }
 0x2c1   :  { %3917 = vmatmul.bf16.vlgmr.msrb.gmra.mxu1 %v14354_v40  ;;  %v8759_v49 = vld [vmem:[#allocation2 + $0xf8] sm:$0xf0]  ;;  %v9562_v43 = vor.u32 %v13214_v31, %v9559_v32 }
 0x2c2   :  { %3942 = vmatpush.bf16.msrb.mxu3 %v10454_v50  ;;  %3961 = vmatpush.bf16.msra.mxu1 %v9146_v53  ;;  %v13078_v39 = vld [vmem:[#allocation2 + $0x2dc] sm:$0xf]  ;;  %v3711_v53 = vadd.f32 %v3710_v42, %v3698_v41 }
 0x2c3   :  { %3930 = vmatmul.bf16.vlgmr.msrb.gmra.mxu2 %v14348_v34  ;;  %v9015_v44 = vld [vmem:[#allocation2 + $0x2f8] sm:$0xf0] }
 0x2c4   :  { %3974 = vmatpush.bf16.msra.mxu2 %v9402_v54  ;;  %3949 = vmatpush.bf16.msra.mxu0 %v8858_v4  ;;  %v13142_v56 = vld [vmem:[#allocation2 + $0x4dc] sm:$0xf]  ;;  %v8762_v54 = vor.u32 %v13014_v7, %v8759_v49  ;;  %v9018_v55 = vor.u32 %v13078_v39, %v9015_v44  ;;  %v3724_v4 = vadd.f32 %v3723_v62, %v3711_v53 }
 0x2c5   :  { %3943 = vmatmul.bf16.vlgmr.msrb.gmra.mxu3 %v14352_v38  ;;  %v9271_v46 = vld [vmem:[#allocation2 + $0x4f8] sm:$0xf0] }
 0x2c6   :  { %3987 = vmatpush.bf16.msra.mxu3 %v9658_v60  ;;  %3962 = vmatpush.bf16.msra.mxu1 %v9114_v5  ;;  %v13206_v50 = vld [vmem:[#allocation2 + $0x6dc] sm:$0xf]  ;;  %v9274_v57 = vor.u32 %v13142_v56, %v9271_v46  ;;  %v3736_v5 = vpop.f32.mrf.mxu3 }
 0x2c7   :  { %v9527_v51 = vld [vmem:[#allocation2 + $0x6f8] sm:$0xf0]  ;;  %v14442_v13 = vadd.f32 %v3736_v5, %v3724_v4 }
 0x2c8   :  { %3975 = vmatpush.bf16.msra.mxu2 %v9370_v10  ;;  %3950 = vmatpush.bf16.msra.mxu0 %v8826_v21  ;;  %v13006_v58 = vld [vmem:[#allocation2 + $0x9c] sm:$0xf]  ;;  %v9530_v2 = vor.u32 %v13206_v50, %v9527_v51  ;;  %v3712_v21 = vpop.f32.mrf.mxu1 }
 0x2c9   :  { %v8727_v60 = vld [vmem:[#allocation2 + $0xb8] sm:$0xf0] }
 0x2ca   :  { %3988 = vmatpush.bf16.msra.mxu3 %v9626_v14  ;;  %3963 = vmatpush.bf16.msra.mxu1 %v9082_v22  ;;  %v13070_v61 = vld [vmem:[#allocation2 + $0x29c] sm:$0xf]  ;;  %v8730_v12 = vor.u32 %v13006_v58, %v8727_v60  ;;  %v3699_v14 = vpop.f32.mrf.mxu0 }
 0x2cb   :  { %v8983_v0 = vld [vmem:[#allocation2 + $0x2b8] sm:$0xf0] }
 0x2cc   :  { %3976 = vmatpush.bf16.msra.mxu2 %v9338_v23  ;;  %3951 = vmatpush.bf16.msra.mxu0 %v8794_v33  ;;  %v13134_v1 = vld [vmem:[#allocation2 + $0x49c] sm:$0xf]  ;;  %v8986_v16 = vor.u32 %v13070_v61, %v8983_v0 }
 0x2cd   :  { %v9239_v3 = vld [vmem:[#allocation2 + $0x4b8] sm:$0xf0] }
 0x2ce   :  { %3989 = vmatpush.bf16.msra.mxu3 %v9594_v63  ;;  %3964 = vmatpush.bf16.msra.mxu1 %v9050_v35  ;;  %v13198_v10 = vld [vmem:[#allocation2 + $0x69c] sm:$0xf]  ;;  %v9242_v17 = vor.u32 %v13134_v1, %v9239_v3  ;;  %v3738_v42 = vpop.f32.mrf.mxu3 }
 0x2cf   :  { %v9495_v11 = vld [vmem:[#allocation2 + $0x6b8] sm:$0xf0] }
 0x2d0   :  { %3977 = vmatpush.bf16.msra.mxu2 %v9306_v36  ;;  %3952 = vmatpush.bf16.msra.mxu0 %v8762_v54  ;;  %v12998_v18 = vld [vmem:[#allocation2 + $0x5c] sm:$0xf]  ;;  %v9498_v22 = vor.u32 %v13198_v10, %v9495_v11  ;;  %v3725_v36 = vpop.f32.mrf.mxu2 }
 0x2d1   :  { %v8695_v20 = vld [vmem:[#allocation2 + $0x78] sm:$0xf0] }
 0x2d2   :  { %3990 = vmatpush.bf16.msra.mxu3 %v9562_v43  ;;  %3965 = vmatpush.bf16.msra.mxu1 %v9018_v55  ;;  %v13062_v6 = vld [vmem:[#allocation2 + $0x25c] sm:$0xf]  ;;  %v8698_v28 = vor.u32 %v12998_v18, %v8695_v20 }
 0x2d3   :  { %v8951_v23 = vld [vmem:[#allocation2 + $0x278] sm:$0xf0] }
 0x2d4   :  { %3978 = vmatpush.bf16.msra.mxu2 %v9274_v57  ;;  %v13126_v24 = vld [vmem:[#allocation2 + $0x45c] sm:$0xf]  ;;  %3953 = vmatpush.bf16.msra.mxu0 %v8730_v12  ;;  %v8954_v31 = vor.u32 %v13062_v6, %v8951_v23 }
 0x2d5   :  { %v9207_v26 = vld [vmem:[#allocation2 + $0x478] sm:$0xf0] }
 0x2d6   :  { %3991 = vmatpush.bf16.msra.mxu3 %v9530_v2  ;;  %v13190_v27 = vld [vmem:[#allocation2 + $0x65c] sm:$0xf]  ;;  %3966 = vmatpush.bf16.msra.mxu1 %v8986_v16  ;;  %v9210_v32 = vor.u32 %v13126_v24, %v9207_v26 }
 0x2d7   :  { %v9463_v63 = vld [vmem:[#allocation2 + $0x678] sm:$0xf0] }
 0x2d8   :  { %v12990_v29 = vld [vmem:[#allocation2 + $0x1c] sm:$0xf]  ;;  %3979 = vmatpush.bf16.msra.mxu2 %v9242_v17  ;;  %v9466_v7 = vor.u32 %v13190_v27, %v9463_v63  ;;  %3954 = vmatpush.bf16.msra.mxu0 %v8698_v28 }
 0x2d9   :  { %v8663_v30 = vld [vmem:[#allocation2 + $0x38] sm:$0xf0] }
 0x2da   :  { %v13054_v33 = vld [vmem:[#allocation2 + $0x21c] sm:$0xf]  ;;  %3992 = vmatpush.bf16.msra.mxu3 %v9498_v22  ;;  %v8666_v46 = vor.u32 %v12990_v29, %v8663_v30  ;;  %3967 = vmatpush.bf16.msra.mxu1 %v8954_v31 }
 0x2db   :  { %v8919_v47 = vld [vmem:[#allocation2 + $0x238] sm:$0xf0] }
 0x2dc   :  { %v13118_v35 = vld [vmem:[#allocation2 + $0x41c] sm:$0xf]  ;;  %3980 = vmatpush.bf16.msra.mxu2 %v9210_v32  ;;  %v8922_v54 = vor.u32 %v13054_v33, %v8919_v47  ;;  %3955 = vmatpush.bf16.msra.mxu0 %v8666_v46 }
 0x2dd   :  { %v9175_v49 = vld [vmem:[#allocation2 + $0x438] sm:$0xf0] }
 0x2de   :  { %v13182_v39 = vld [vmem:[#allocation2 + $0x61c] sm:$0xf]  ;;  %v9178_v55 = vor.u32 %v13118_v35, %v9175_v49  ;;  %3993 = vmatpush.bf16.msra.mxu3 %v9466_v7  ;;  %3968 = vmatpush.bf16.msra.mxu1 %v8922_v54  ;;  %v14448_v49 = vpop.f32.mrf.mxu0 }
 0x2df   :  { %v9431_v41 = vld [vmem:[#allocation2 + $0x638] sm:$0xf0]  ;;  %3956 = vmatmul.bf16.vlgmr.msra.gmra.mxu0 %v14320_v9 }
 0x2e0   :  { %v13302_v43 = vld [vmem:[#allocation2 + $0x9dc] sm:$0xf]  ;;  %v9434_v60 = vor.u32 %v13182_v39, %v9431_v41  ;;  %3981 = vmatpush.bf16.msra.mxu2 %v9178_v55 }
 0x2e1   :  { %v9911_v44 = vld [vmem:[#allocation2 + $0x9f8] sm:$0xf0]  ;;  %3969 = vmatmul.bf16.vlgmr.msra.gmra.mxu1 %v14333_v25 }
 0x2e2   :  { %v13366_v56 = vld [vmem:[#allocation2 + $0xbdc] sm:$0xf]  ;;  %v9914_v61 = vor.u32 %v13302_v43, %v9911_v44  ;;  %3994 = vmatpush.bf16.msra.mxu3 %v9434_v60  ;;  %v14450_v44 = vpop.f32.mrf.mxu1 }
 0x2e3   :  { %v10167_v50 = vld [vmem:[#allocation2 + $0xbf8] sm:$0xf0]  ;;  %3982 = vmatmul.bf16.vlgmr.msra.gmra.mxu2 %v14318_v8 }
 0x2e4   :  { %v13430_v51 = vld [vmem:[#allocation2 + $0xddc] sm:$0xf]  ;;  %v10170_v62 = vor.u32 %v13366_v56, %v10167_v50  ;;  %4000 = vmatpush.bf16.msrb.mxu0 %v9914_v61 }
 0x2e5   :  { %v10423_v53 = vld [vmem:[#allocation2 + $0xdf8] sm:$0xf0]  ;;  %3995 = vmatmul.bf16.vlgmr.msra.gmra.mxu3 %v14325_v15 }
 0x2e6   :  { %v13494_v57 = vld [vmem:[#allocation2 + $0xfdc] sm:$0xf]  ;;  %v10426_v2 = vor.u32 %v13430_v51, %v10423_v53  ;;  %4013 = vmatpush.bf16.msrb.mxu1 %v10170_v62 }
 0x2e7   :  { %v10679_v58 = vld [vmem:[#allocation2 + $0xff8] sm:$0xf0] }
 0x2e8   :  { %v13294_v0 = vld [vmem:[#allocation2 + $0x99c] sm:$0xf]  ;;  %v10682_v4 = vor.u32 %v13494_v57, %v10679_v58  ;;  %4026 = vmatpush.bf16.msrb.mxu2 %v10426_v2  ;;  %v14452_v2 = vpop.f32.mrf.mxu2 }
 0x2e9   :  { %v9879_v1 = vld [vmem:[#allocation2 + $0x9b8] sm:$0xf0] }
 0x2ea   :  { %v13358_v3 = vld [vmem:[#allocation2 + $0xb9c] sm:$0xf]  ;;  %v9882_v16 = vor.u32 %v13294_v0, %v9879_v1  ;;  %4039 = vmatpush.bf16.msrb.mxu3 %v10682_v4 }
 0x2eb   :  { %v10135_v5 = vld [vmem:[#allocation2 + $0xbb8] sm:$0xf0] }
 0x2ec   :  { %v13422_v10 = vld [vmem:[#allocation2 + $0xd9c] sm:$0xf]  ;;  %v10138_v17 = vor.u32 %v13358_v3, %v10135_v5  ;;  %4001 = vmatpush.bf16.msrb.mxu0 %v9882_v16  ;;  %v14454_v5 = vpop.f32.mrf.mxu3 }
 0x2ed   :  { %v10391_v11 = vld [vmem:[#allocation2 + $0xdb8] sm:$0xf0] }
 0x2ee   :  { %v13486_v12 = vld [vmem:[#allocation2 + $0xf9c] sm:$0xf]  ;;  %v10394_v18 = vor.u32 %v13422_v10, %v10391_v11  ;;  %4014 = vmatpush.bf16.msrb.mxu1 %v10138_v17 }
 0x2ef   :  { %v10647_v14 = vld [vmem:[#allocation2 + $0xfb8] sm:$0xf0] }
 0x2f0   :  { %v13286_v20 = vld [vmem:[#allocation2 + $0x95c] sm:$0xf]  ;;  %v10650_v22 = vor.u32 %v13486_v12, %v10647_v14  ;;  %4027 = vmatpush.bf16.msrb.mxu2 %v10394_v18  ;;  %v3751_v14 = vpop.f32.mrf.mxu0 }
 0x2f1   :  { %v9847_v6 = vld [vmem:[#allocation2 + $0x978] sm:$0xf0]  ;;  %v13743_v14 = vld [vmem:[#allocation6 + $0x79c] sm:$0xf0] }
 0x2f2   :  { %v13350_v21 = vld [vmem:[#allocation2 + $0xb5c] sm:$0xf]  ;;  %v9850_v28 = vor.u32 %v13286_v20, %v9847_v6  ;;  %4040 = vmatpush.bf16.msrb.mxu3 %v10650_v22 }
 0x2f3   :  { %v10103_v23 = vld [vmem:[#allocation2 + $0xb78] sm:$0xf0] }
 0x2f4   :  { %v13414_v24 = vld [vmem:[#allocation2 + $0xd5c] sm:$0xf]  ;;  %v10106_v29 = vor.u32 %v13350_v21, %v10103_v23  ;;  %4002 = vmatpush.bf16.msrb.mxu0 %v9850_v28  ;;  %v3764_v21 = vpop.f32.mrf.mxu1 }
 0x2f5   :  { %v10359_v26 = vld [vmem:[#allocation2 + $0xd78] sm:$0xf0]  ;;  %v11101_v21 = vld [vmem:[#allocation6 + $0x340] sm:$0xf] }
 0x2f6   :  { %v13478_v27 = vld [vmem:[#allocation2 + $0xf5c] sm:$0xf]  ;;  %v10362_v30 = vor.u32 %v13414_v24, %v10359_v26  ;;  %4015 = vmatpush.bf16.msrb.mxu1 %v10106_v29 }
 0x2f7   :  { %v10615_v63 = vld [vmem:[#allocation2 + $0xf78] sm:$0xf0] }
 0x2f8   :  { %v13278_v31 = vld [vmem:[#allocation2 + $0x91c] sm:$0xf]  ;;  %v10618_v33 = vor.u32 %v13478_v27, %v10615_v63  ;;  %4028 = vmatpush.bf16.msrb.mxu2 %v10362_v30 }
 0x2f9   :  { %v9815_v32 = vld [vmem:[#allocation2 + $0x938] sm:$0xf0] }
 0x2fa   :  { %v13342_v8 = vld [vmem:[#allocation2 + $0xb1c] sm:$0xf]  ;;  %v9818_v15 = vor.u32 %v13278_v31, %v9815_v32  ;;  %4041 = vmatpush.bf16.msrb.mxu3 %v10618_v33 }
 0x2fb   :  { %v10071_v47 = vld [vmem:[#allocation2 + $0xb38] sm:$0xf0] }
 0x2fc   :  { %v13406_v35 = vld [vmem:[#allocation2 + $0xd1c] sm:$0xf]  ;;  %v10074_v25 = vor.u32 %v13342_v8, %v10071_v47  ;;  %4003 = vmatpush.bf16.msrb.mxu0 %v9818_v15 }
 0x2fd   :  { %v10327_v36 = vld [vmem:[#allocation2 + $0xd38] sm:$0xf0] }
 0x2fe   :  { %v13470_v7 = vld [vmem:[#allocation2 + $0xf1c] sm:$0xf]  ;;  %v10330_v39 = vor.u32 %v13406_v35, %v10327_v36  ;;  %4016 = vmatpush.bf16.msrb.mxu1 %v10074_v25  ;;  %v3777_v35 = vpop.f32.mrf.mxu2  ;;  %v3790_v25 = vpop.f32.mrf.mxu3 }
 0x2ff   :  { %v10583_v9 = vld [vmem:[#allocation2 + $0xf38] sm:$0xf0]  ;;  %v11581_v35 = vld [vmem:[#allocation6 + $0x700] sm:$0xf] }
 0x300   :  { %v13270_v41 = vld [vmem:[#allocation2 + $0x8dc] sm:$0xf]  ;;  %v10586_v56 = vor.u32 %v13470_v7, %v10583_v9  ;;  %4029 = vmatpush.bf16.msrb.mxu2 %v10330_v39  ;;  %v10909_v39 = vld [vmem:[#allocation6 + $0x1c0] sm:$0xf] }
 0x301   :  { %v9783_v42 = vld [vmem:[#allocation2 + $0x8f8] sm:$0xf0]  ;;  %v13527_v25 = vld [vmem:[#allocation6 + $0xdc] sm:$0xf0] }
 0x302   :  { %v13334_v43 = vld [vmem:[#allocation2 + $0xadc] sm:$0xf]  ;;  %v9786_v55 = vor.u32 %v13270_v41, %v9783_v42  ;;  %4042 = vmatpush.bf16.msrb.mxu3 %v10586_v56  ;;  %v13559_v41 = vld [vmem:[#allocation6 + $0x1dc] sm:$0xf0] }
 0x303   :  { %v10039_v46 = vld [vmem:[#allocation2 + $0xaf8] sm:$0xf0]  ;;  %v11165_v42 = vld [vmem:[#allocation6 + $0x3c0] sm:$0xf] }
 0x304   :  { %v13398_v50 = vld [vmem:[#allocation2 + $0xcdc] sm:$0xf]  ;;  %v10042_v57 = vor.u32 %v13334_v43, %v10039_v46  ;;  %4004 = vmatpush.bf16.msrb.mxu0 %v9786_v55  ;;  %v13623_v56 = vld [vmem:[#allocation6 + $0x3dc] sm:$0xf0] }
 0x305   :  { %v10295_v51 = vld [vmem:[#allocation2 + $0xcf8] sm:$0xf0]  ;;  %v11421_v46 = vld [vmem:[#allocation6 + $0x5c0] sm:$0xf] }
 0x306   :  { %v13462_v53 = vld [vmem:[#allocation2 + $0xedc] sm:$0xf]  ;;  %v10298_v58 = vor.u32 %v13398_v50, %v10295_v51  ;;  %4017 = vmatpush.bf16.msrb.mxu1 %v10042_v57  ;;  %v13687_v50 = vld [vmem:[#allocation6 + $0x5dc] sm:$0xf0] }
 0x307   :  { %v10551_v54 = vld [vmem:[#allocation2 + $0xef8] sm:$0xf0]  ;;  %v13751_v55 = vld [vmem:[#allocation6 + $0x7dc] sm:$0xf0] }
 0x308   :  { %v13262_v60 = vld [vmem:[#allocation2 + $0x89c] sm:$0xf]  ;;  %v10554_v0 = vor.u32 %v13462_v53, %v10551_v54  ;;  %4030 = vmatpush.bf16.msrb.mxu2 %v10298_v58  ;;  %v11677_v54 = vld [vmem:[#allocation6 + $0x7c0] sm:$0xf]  ;;  %v10910_v58 = vor.u32 %v13559_v41, %v10909_v39  ;;  %v14462_v41 = vpop.f32.mrf.mxu1 }
 0x309   :  { %v9751_v61 = vld [vmem:[#allocation2 + $0x8b8] sm:$0xf0]  ;;  %v11037_v39 = vld [vmem:[#allocation6 + $0x2c0] sm:$0xf] }
 0x30a   :  { %v13326_v62 = vld [vmem:[#allocation2 + $0xa9c] sm:$0xf]  ;;  %v9754_v12 = vor.u32 %v13262_v60, %v9751_v61  ;;  %4043 = vmatpush.bf16.msrb.mxu3 %v10554_v0  ;;  %v11166_v60 = vor.u32 %v13623_v56, %v11165_v42  ;;  %v11422_v61 = vor.u32 %v13687_v50, %v11421_v46  ;;  %v13551_v0 = vld [vmem:[#allocation6 + $0x19c] sm:$0xf0] }
 0x30b   :  { %v10007_v1 = vld [vmem:[#allocation2 + $0xab8] sm:$0xf0]  ;;  %v11293_v56 = vld [vmem:[#allocation6 + $0x4c0] sm:$0xf] }
 0x30c   :  { %v13390_v3 = vld [vmem:[#allocation2 + $0xc9c] sm:$0xf]  ;;  %v10010_v16 = vor.u32 %v13326_v62, %v10007_v1  ;;  %4005 = vmatpush.bf16.msrb.mxu0 %v9754_v12  ;;  %v10877_v62 = vld [vmem:[#allocation6 + $0x180] sm:$0xf] }
 0x30d   :  { %v10263_v4 = vld [vmem:[#allocation2 + $0xcb8] sm:$0xf0]  ;;  %v11133_v1 = vld [vmem:[#allocation6 + $0x380] sm:$0xf] }
 0x30e   :  { %v13454_v10 = vld [vmem:[#allocation2 + $0xe9c] sm:$0xf]  ;;  %v10266_v17 = vor.u32 %v13390_v3, %v10263_v4  ;;  %4018 = vmatpush.bf16.msrb.mxu1 %v10010_v16  ;;  %v11678_v3 = vor.u32 %v13751_v55, %v11677_v54  ;;  %v13615_v4 = vld [vmem:[#allocation6 + $0x39c] sm:$0xf0]  ;;  %v10878_v16 = vor.u32 %v13551_v0, %v10877_v62 }
 0x30f   :  { %v10519_v11 = vld [vmem:[#allocation2 + $0xeb8] sm:$0xf0]  ;;  %v11645_v12 = vld [vmem:[#allocation6 + $0x780] sm:$0xf] }
 0x310   :  { %v13254_v18 = vld [vmem:[#allocation2 + $0x85c] sm:$0xf]  ;;  %v10522_v22 = vor.u32 %v13454_v10, %v10519_v11  ;;  %4031 = vmatpush.bf16.msrb.mxu2 %v10266_v17  ;;  %v11389_v10 = vld [vmem:[#allocation6 + $0x580] sm:$0xf]  ;;  %v11134_v17 = vor.u32 %v13615_v4, %v11133_v1  ;;  %v14466_v4 = vpop.f32.mrf.mxu3 }
 0x311   :  { %v9719_v20 = vld [vmem:[#allocation2 + $0x878] sm:$0xf0]  ;;  %v13679_v11 = vld [vmem:[#allocation6 + $0x59c] sm:$0xf0] }
 0x312   :  { %v13318_v6 = vld [vmem:[#allocation2 + $0xa5c] sm:$0xf]  ;;  %v9722_v28 = vor.u32 %v13254_v18, %v9719_v20  ;;  %4044 = vmatpush.bf16.msrb.mxu3 %v10522_v22  ;;  %v11390_v18 = vor.u32 %v13679_v11, %v11389_v10  ;;  %v10845_v20 = vld [vmem:[#allocation6 + $0x140] sm:$0xf]  ;;  %v11646_v22 = vor.u32 %v13743_v14, %v11645_v12 }
 0x313   :  { %v9975_v23 = vld [vmem:[#allocation2 + $0xa78] sm:$0xf0]  ;;  %v13655_v46 = vld [vmem:[#allocation6 + $0x4dc] sm:$0xf0] }
 0x314   :  { %v13382_v24 = vld [vmem:[#allocation2 + $0xc5c] sm:$0xf]  ;;  %v9978_v31 = vor.u32 %v13318_v6, %v9975_v23  ;;  %4006 = vmatpush.bf16.msrb.mxu0 %v9722_v28  ;;  %v13543_v6 = vld [vmem:[#allocation6 + $0x15c] sm:$0xf0]  ;;  %v11294_v55 = vor.u32 %v13655_v46, %v11293_v56 }
 0x315   :  { %v10231_v26 = vld [vmem:[#allocation2 + $0xc78] sm:$0xf0]  ;;  %v13607_v23 = vld [vmem:[#allocation6 + $0x35c] sm:$0xf0]  ;;  %v10846_v28 = vor.u32 %v13543_v6, %v10845_v20 }
 0x316   :  { %v13446_v27 = vld [vmem:[#allocation2 + $0xe5c] sm:$0xf]  ;;  %v10234_v32 = vor.u32 %v13382_v24, %v10231_v26  ;;  %4019 = vmatpush.bf16.msrb.mxu1 %v9978_v31  ;;  %v11357_v24 = vld [vmem:[#allocation6 + $0x540] sm:$0xf] }
 0x317   :  { %v10487_v63 = vld [vmem:[#allocation2 + $0xe78] sm:$0xf0]  ;;  %v13671_v26 = vld [vmem:[#allocation6 + $0x55c] sm:$0xf0] }
 0x318   :  { %v13246_v29 = vld [vmem:[#allocation2 + $0x81c] sm:$0xf]  ;;  %v10490_v36 = vor.u32 %v13446_v27, %v10487_v63  ;;  %4032 = vmatpush.bf16.msrb.mxu2 %v10234_v32  ;;  %v11613_v27 = vld [vmem:[#allocation6 + $0x740] sm:$0xf] }
 0x319   :  { %v9687_v30 = vld [vmem:[#allocation2 + $0x838] sm:$0xf0]  ;;  %v13735_v63 = vld [vmem:[#allocation6 + $0x75c] sm:$0xf0] }
 0x31a   :  { %v13310_v8 = vld [vmem:[#allocation2 + $0xa1c] sm:$0xf]  ;;  %v9690_v43 = vor.u32 %v13246_v29, %v9687_v30  ;;  %4045 = vmatpush.bf16.msrb.mxu3 %v10490_v36  ;;  %v11102_v29 = vor.u32 %v13607_v23, %v11101_v21  ;;  %v11358_v30 = vor.u32 %v13671_v26, %v11357_v24  ;;  %v10813_v31 = vld [vmem:[#allocation6 + $0x100] sm:$0xf]  ;;  %v3816_v21 = vpop.f32.mrf.mxu1 }
 0x31b   :  { %v9943_v33 = vld [vmem:[#allocation2 + $0xa38] sm:$0xf0]  ;;  %v11069_v32 = vld [vmem:[#allocation6 + $0x300] sm:$0xf] }
 0x31c   :  { %v13374_v47 = vld [vmem:[#allocation2 + $0xc1c] sm:$0xf]  ;;  %v9946_v51 = vor.u32 %v13310_v8, %v9943_v33  ;;  %4007 = vmatpush.bf16.msrb.mxu0 %v9690_v43  ;;  %v11614_v8 = vor.u32 %v13735_v63, %v11613_v27  ;;  %v13599_v33 = vld [vmem:[#allocation6 + $0x31c] sm:$0xf0]  ;;  %v649_v27 = vperm.slane %v14432_v19, 5  ;;  %v3842_v19 = vpop.f32.mrf.mxu3 }
 0x31d   :  { %v10199_v7 = vld [vmem:[#allocation2 + $0xc38] sm:$0xf0]  ;;  %v13591_v43 = vld [vmem:[#allocation6 + $0x2dc] sm:$0xf0] }
 0x31e   :  { %v13438_v9 = vld [vmem:[#allocation2 + $0xe1c] sm:$0xf]  ;;  %v10202_v53 = vor.u32 %v13374_v47, %v10199_v7  ;;  %4020 = vmatpush.bf16.msrb.mxu1 %v9946_v51  ;;  %v11325_v47 = vld [vmem:[#allocation6 + $0x500] sm:$0xf]  ;;  %v14460_v7 = vpop.f32.mrf.mxu0  ;;  %v11038_v54 = vor.u32 %v13591_v43, %v11037_v39 }
 0x31f   :  { %v10455_v15 = vld [vmem:[#allocation2 + $0xe38] sm:$0xf0]  ;;  %4008 = vmatmul.bf16.vlgmr.msrb.gmra.mxu0 %v14350_v37  ;;  %v13535_v37 = vld [vmem:[#allocation6 + $0x11c] sm:$0xf0] }
 0x320   :  { %v10458_v57 = vor.u32 %v13438_v9, %v10455_v15  ;;  %4033 = vmatpush.bf16.msrb.mxu2 %v10202_v53  ;;  %7158 = vmatpush.bf16.msra.mxu0 %v10910_v58  ;;  %v10814_v36 = vor.u32 %v13535_v37, %v10813_v31  ;;  %v10781_v15 = vld [vmem:[#allocation6 + $0xc0] sm:$0xf] }
 0x321   :  { %4021 = vmatmul.bf16.vlgmr.msrb.gmra.mxu1 %v14354_v40  ;;  %v13663_v40 = vld [vmem:[#allocation6 + $0x51c] sm:$0xf0]  ;;  %v10782_v53 = vor.u32 %v13527_v25, %v10781_v15 }
 0x322   :  { %4046 = vmatpush.bf16.msrb.mxu3 %v10458_v57  ;;  %7171 = vmatpush.bf16.msra.mxu1 %v11166_v60  ;;  %v11326_v9 = vor.u32 %v13663_v40, %v11325_v47  ;;  %v11549_v50 = vld [vmem:[#allocation6 + $0x6c0] sm:$0xf] }
 0x323   :  { %4034 = vmatmul.bf16.vlgmr.msrb.gmra.mxu2 %v14348_v34  ;;  %v13727_v34 = vld [vmem:[#allocation6 + $0x71c] sm:$0xf0] }
 0x324   :  { %7184 = vmatpush.bf16.msra.mxu2 %v11422_v61  ;;  %7159 = vmatpush.bf16.msra.mxu0 %v10878_v16  ;;  %v11582_v42 = vor.u32 %v13727_v34, %v11581_v35  ;;  %v13719_v51 = vld [vmem:[#allocation6 + $0x6dc] sm:$0xf0]  ;;  %v14464_v61 = vpop.f32.mrf.mxu2 }
 0x325   :  { %4047 = vmatmul.bf16.vlgmr.msrb.gmra.mxu3 %v14352_v38  ;;  %v11070_v38 = vor.u32 %v13599_v33, %v11069_v32  ;;  %v10749_v57 = vld [vmem:[#allocation6 + $0x80] sm:$0xf]  ;;  %v11550_v62 = vor.u32 %v13719_v51, %v11549_v50  ;;  %v4052_v50 = vmax.f32 %v14382_v48, 0.0  ;;  %v4053_v51 = vmax.f32 %v14396_v45, 0.0 }
 0x326   :  { %7197 = vmatpush.bf16.msra.mxu3 %v11678_v3  ;;  %7172 = vmatpush.bf16.msra.mxu1 %v11134_v17  ;;  %v13519_v58 = vld [vmem:[#allocation6 + $0x9c] sm:$0xf0]  ;;  %v3803_v14 = vpop.f32.mrf.mxu0 }
 0x327   :  { %v11005_v60 = vld [vmem:[#allocation6 + $0x280] sm:$0xf]  ;;  %v10750_v12 = vor.u32 %v13519_v58, %v10749_v57  ;;  %v14477_v14 = vpack.c.bf16 %v4053_v51, %v4053_v51 }
 0x328   :  { %7185 = vmatpush.bf16.msra.mxu2 %v11390_v18  ;;  %7160 = vmatpush.bf16.msra.mxu0 %v10846_v28  ;;  %v13583_v0 = vld [vmem:[#allocation6 + $0x29c] sm:$0xf0] }
 0x329   :  { %v11261_v1 = vld [vmem:[#allocation6 + $0x480] sm:$0xf]  ;;  %v11006_v16 = vor.u32 %v13583_v0, %v11005_v60 }
 0x32a   :  { %7198 = vmatpush.bf16.msra.mxu3 %v11646_v22  ;;  %7173 = vmatpush.bf16.msra.mxu1 %v11102_v29  ;;  %v13647_v3 = vld [vmem:[#allocation6 + $0x49c] sm:$0xf0] }
 0x32b   :  { %v11517_v10 = vld [vmem:[#allocation6 + $0x680] sm:$0xf]  ;;  %v11262_v17 = vor.u32 %v13647_v3, %v11261_v1 }
 0x32c   :  { %7186 = vmatpush.bf16.msra.mxu2 %v11358_v30  ;;  %7161 = vmatpush.bf16.msra.mxu0 %v10814_v36  ;;  %v13711_v11 = vld [vmem:[#allocation6 + $0x69c] sm:$0xf0]  ;;  %v3829_v40 = vpop.f32.mrf.mxu2 }
 0x32d   :  { %v10717_v18 = vld [vmem:[#allocation6 + $0x40] sm:$0xf]  ;;  %v11518_v22 = vor.u32 %v13711_v11, %v11517_v10 }
 0x32e   :  { %7199 = vmatpush.bf16.msra.mxu3 %v11614_v8  ;;  %7174 = vmatpush.bf16.msra.mxu1 %v11070_v38  ;;  %v13511_v20 = vld [vmem:[#allocation6 + $0x5c] sm:$0xf0] }
 0x32f   :  { %v10973_v6 = vld [vmem:[#allocation6 + $0x240] sm:$0xf]  ;;  %v10718_v29 = vor.u32 %v13511_v20, %v10717_v18 }
 0x330   :  { %7187 = vmatpush.bf16.msra.mxu2 %v11326_v9  ;;  %7162 = vmatpush.bf16.msra.mxu0 %v10782_v53  ;;  %v13575_v23 = vld [vmem:[#allocation6 + $0x25c] sm:$0xf0]  ;;  %v3750_v9 = vadd.f32 %v14448_v49, %v649_v27  ;;  %v4055_v49 = vmax.f32 %v14426_v59, 0.0 }
 0x331   :  { %v11229_v24 = vld [vmem:[#allocation6 + $0x440] sm:$0xf]  ;;  %v10974_v37 = vor.u32 %v13575_v23, %v10973_v6 }
 0x332   :  { %7200 = vmatpush.bf16.msra.mxu3 %v11582_v42  ;;  %7175 = vmatpush.bf16.msra.mxu1 %v11038_v54  ;;  %v13639_v26 = vld [vmem:[#allocation6 + $0x45c] sm:$0xf0]  ;;  %v3763_v60 = vadd.f32 %v14450_v44, %v3750_v9  ;;  %v14481_v59 = vpack.c.bf16 %v4055_v49, %v4055_v49 }
 0x333   :  { %v11485_v63 = vld [vmem:[#allocation6 + $0x640] sm:$0xf]  ;;  %v11230_v32 = vor.u32 %v13639_v26, %v11229_v24 }
 0x334   :  { %7188 = vmatpush.bf16.msra.mxu2 %v11294_v55  ;;  %v13703_v28 = vld [vmem:[#allocation6 + $0x65c] sm:$0xf0]  ;;  %7163 = vmatpush.bf16.msra.mxu0 %v10750_v12  ;;  %v4054_v55 = vmax.f32 %v14412_v52, 0.0  ;;  %v14475_v12 = vpack.c.bf16 %v4052_v50, %v4052_v50  ;;  %v14495_v50 = vpop.f32.mrf.mxu2 }
 0x335   :  { %v10685_v30 = vld [vmem:[#allocation6] sm:$0xf]  ;;  %v11486_v35 = vor.u32 %v13703_v28, %v11485_v63 }
 0x336   :  { %7201 = vmatpush.bf16.msra.mxu3 %v11550_v62  ;;  %v13503_v31 = vld [vmem:[#allocation6 + $0x1c] sm:$0xf0]  ;;  %7176 = vmatpush.bf16.msra.mxu1 %v11006_v16  ;;  %v14479_v52 = vpack.c.bf16 %v4054_v55, %v4054_v55  ;;  %v3776_v16 = vadd.f32 %v14452_v2, %v3763_v60  ;;  %v14497_v55 = vpop.f32.mrf.mxu3 }
 0x337   :  { %v10941_v8 = vld [vmem:[#allocation6 + $0x200] sm:$0xf]  ;;  %v10686_v42 = vor.u32 %v13503_v31, %v10685_v30 }
 0x338   :  { %7189 = vmatpush.bf16.msra.mxu2 %v11262_v17  ;;  %v13567_v33 = vld [vmem:[#allocation6 + $0x21c] sm:$0xf0]  ;;  %7164 = vmatpush.bf16.msra.mxu0 %v10718_v29  ;;  %v3789_v26 = vadd.f32 %v14454_v5, %v3776_v16 }
 0x339   :  { %v11197_v47 = vld [vmem:[#allocation6 + $0x400] sm:$0xf]  ;;  %v10942_v53 = vor.u32 %v13567_v33, %v10941_v8  ;;  %v14489_v33 = vpop.f32.mrf.mxu0 }
 0x33a   :  { %7202 = vmatpush.bf16.msra.mxu3 %v11518_v22  ;;  %v13631_v34 = vld [vmem:[#allocation6 + $0x41c] sm:$0xf0]  ;;  %7177 = vmatpush.bf16.msra.mxu1 %v10974_v37 }
 0x33b   :  { %v11453_v36 = vld [vmem:[#allocation6 + $0x600] sm:$0xf]  ;;  %v11198_v54 = vor.u32 %v13631_v34, %v11197_v47  ;;  %v3802_v47 = vadd.f32 %v14460_v7, %v3789_v26  ;;  %v13555_v26 = vld [vmem:[#allocation6 + $0x1c4] sm:$0xf] }
 0x33c   :  { %v13695_v38 = vld [vmem:[#allocation6 + $0x61c] sm:$0xf0]  ;;  %7190 = vmatpush.bf16.msra.mxu2 %v11230_v32  ;;  %7165 = vmatpush.bf16.msra.mxu0 %v10686_v42 }
 0x33d   :  { %v11933_v15 = vld [vmem:[#allocation6 + $0x9c0] sm:$0xf]  ;;  %v11454_v57 = vor.u32 %v13695_v38, %v11453_v36  ;;  %v14492_v38 = vpop.f32.mrf.mxu1 }
 0x33e   :  { %v13815_v25 = vld [vmem:[#allocation6 + $0x9dc] sm:$0xf0]  ;;  %7203 = vmatpush.bf16.msra.mxu3 %v11486_v35  ;;  %7178 = vmatpush.bf16.msra.mxu1 %v10942_v53 }
 0x33f   :  { %v12189_v39 = vld [vmem:[#allocation6 + $0xbc0] sm:$0xf]  ;;  %v11934_v58 = vor.u32 %v13815_v25, %v11933_v15  ;;  %7166 = vmatmul.bf16.vlgmr.msra.gmra.mxu0 %v14475_v12 }
 0x340   :  { %v13879_v43 = vld [vmem:[#allocation6 + $0xbdc] sm:$0xf0]  ;;  %7191 = vmatpush.bf16.msra.mxu2 %v11198_v54 }
 0x341   :  { %v12445_v56 = vld [vmem:[#allocation6 + $0xdc0] sm:$0xf]  ;;  %v12190_v62 = vor.u32 %v13879_v43, %v12189_v39  ;;  %7210 = vmatpush.bf16.msrb.mxu0 %v11934_v58  ;;  %7179 = vmatmul.bf16.vlgmr.msra.gmra.mxu1 %v14477_v14  ;;  %v3815_v39 = vadd.f32 %v14462_v41, %v3802_v47  ;;  %v11423_v47 = vld [vmem:[#allocation6 + $0x5e0] sm:$0xf0] }
 0x342   :  { %v13943_v46 = vld [vmem:[#allocation6 + $0xddc] sm:$0xf0]  ;;  %7204 = vmatpush.bf16.msra.mxu3 %v11454_v57  ;;  %v3855_v57 = vpop.f32.mrf.mxu0 }
 0x343   :  { %v12446_v0 = vor.u32 %v13943_v46, %v12445_v56  ;;  %v11901_v1 = vld [vmem:[#allocation6 + $0x980] sm:$0xf]  ;;  %7223 = vmatpush.bf16.msrb.mxu1 %v12190_v62  ;;  %7192 = vmatmul.bf16.vlgmr.msra.gmra.mxu2 %v14479_v52  ;;  %v3828_v58 = vadd.f32 %v14464_v61, %v3815_v39  ;;  %v13539_v57 = vld [vmem:[#allocation6 + $0x144] sm:$0xf] }
 0x344   :  { %v13807_v3 = vld [vmem:[#allocation6 + $0x99c] sm:$0xf0] }
 0x345   :  { %v12157_v48 = vld [vmem:[#allocation6 + $0xb80] sm:$0xf]  ;;  %v11902_v44 = vor.u32 %v13807_v3, %v11901_v1  ;;  %7236 = vmatpush.bf16.msrb.mxu2 %v12446_v0  ;;  %7205 = vmatmul.bf16.vlgmr.msra.gmra.mxu3 %v14481_v59  ;;  %v3868_v3 = vpop.f32.mrf.mxu1 }
 0x346   :  { %v13871_v45 = vld [vmem:[#allocation6 + $0xb9c] sm:$0xf0]  ;;  %v13667_v3 = vld [vmem:[#allocation6 + $0x544] sm:$0xf] }
 0x347   :  { %v12413_v10 = vld [vmem:[#allocation6 + $0xd80] sm:$0xf]  ;;  %v12158_v17 = vor.u32 %v13871_v45, %v12157_v48  ;;  %7211 = vmatpush.bf16.msrb.mxu0 %v11902_v44 }
 0x348   :  { %v13935_v11 = vld [vmem:[#allocation6 + $0xd9c] sm:$0xf0] }
 0x349   :  { %v12414_v18 = vor.u32 %v13935_v11, %v12413_v10  ;;  %v11869_v20 = vld [vmem:[#allocation6 + $0x940] sm:$0xf]  ;;  %7224 = vmatpush.bf16.msrb.mxu1 %v12158_v17  ;;  %v14500_v11 = vld [vmem:[#allocation4] sm:$0xff] }
 0x34a   :  { %v13799_v6 = vld [vmem:[#allocation6 + $0x95c] sm:$0xf0]  ;;  %v650_v44 = vperm.slane %v14500_v11, 6 }
 0x34b   :  { %v12125_v21 = vld [vmem:[#allocation6 + $0xb40] sm:$0xf]  ;;  %v11870_v2 = vor.u32 %v13799_v6, %v11869_v20  ;;  %7237 = vmatpush.bf16.msrb.mxu2 %v12414_v18  ;;  %v3841_v20 = vadd.f32 %v14466_v4, %v3828_v58  ;;  %v13603_v58 = vld [vmem:[#allocation6 + $0x344] sm:$0xf] }
 0x34c   :  { %v13863_v22 = vld [vmem:[#allocation6 + $0xb5c] sm:$0xf0] }
 0x34d   :  { %v12381_v23 = vld [vmem:[#allocation6 + $0xd40] sm:$0xf]  ;;  %v12126_v27 = vor.u32 %v13863_v22, %v12125_v21  ;;  %7212 = vmatpush.bf16.msrb.mxu0 %v11870_v2  ;;  %v3881_v2 = vpop.f32.mrf.mxu2 }
 0x34e   :  { %v13927_v24 = vld [vmem:[#allocation6 + $0xd5c] sm:$0xf0] }
 0x34f   :  { %v12382_v63 = vor.u32 %v13927_v24, %v12381_v23  ;;  %v11837_v28 = vld [vmem:[#allocation6 + $0x900] sm:$0xf]  ;;  %7225 = vmatpush.bf16.msrb.mxu1 %v12126_v27  ;;  %v3894_v27 = vpop.f32.mrf.mxu3 }
 0x350   :  { %v13791_v29 = vld [vmem:[#allocation6 + $0x91c] sm:$0xf0]  ;;  %v3905_v27 = vpop.f32.mrf.mxu0 }
 0x351   :  { %v12093_v30 = vld [vmem:[#allocation6 + $0xb00] sm:$0xf]  ;;  %v11838_v8 = vor.u32 %v13791_v29, %v11837_v28  ;;  %7238 = vmatpush.bf16.msrb.mxu2 %v12382_v63  ;;  %v3854_v29 = vadd.f32 %v14489_v33, %v650_v44  ;;  %v13611_v33 = vld [vmem:[#allocation6 + $0x384] sm:$0xf] }
 0x352   :  { %v13855_v31 = vld [vmem:[#allocation6 + $0xb1c] sm:$0xf0] }
 0x353   :  { %v12349_v37 = vld [vmem:[#allocation6 + $0xd00] sm:$0xf]  ;;  %v12094_v40 = vor.u32 %v13855_v31, %v12093_v30  ;;  %7213 = vmatpush.bf16.msrb.mxu0 %v11838_v8  ;;  %v10911_v30 = vld [vmem:[#allocation6 + $0x1e0] sm:$0xf0] }
 0x354   :  { %v13919_v32 = vld [vmem:[#allocation6 + $0xd1c] sm:$0xf0]  ;;  %v13619_v31 = vld [vmem:[#allocation6 + $0x3c4] sm:$0xf] }
 0x355   :  { %v12350_v5 = vor.u32 %v13919_v32, %v12349_v37  ;;  %v11805_v35 = vld [vmem:[#allocation6 + $0x8c0] sm:$0xf]  ;;  %7226 = vmatpush.bf16.msrb.mxu1 %v12094_v40  ;;  %v11167_v37 = vld [vmem:[#allocation6 + $0x3e0] sm:$0xf0]  ;;  %v4056_v40 = vmax.f32 %v14442_v13, 0.0 }
 0x356   :  { %v13783_v34 = vld [vmem:[#allocation6 + $0x8dc] sm:$0xf0]  ;;  %v13683_v8 = vld [vmem:[#allocation6 + $0x5c4] sm:$0xf] }
 0x357   :  { %v12061_v36 = vld [vmem:[#allocation6 + $0xac0] sm:$0xf]  ;;  %v11806_v25 = vor.u32 %v13783_v34, %v11805_v35  ;;  %7239 = vmatpush.bf16.msrb.mxu2 %v12350_v5  ;;  %v4057_v5 = vmax.f32 %v3841_v20, 0.0  ;;  %v11426_v39 = vor.u32 %v13683_v8, %v11423_v47  ;;  %v11391_v13 = vld [vmem:[#allocation6 + $0x5a0] sm:$0xf0] }
 0x358   :  { %v13847_v19 = vld [vmem:[#allocation6 + $0xadc] sm:$0xf0]  ;;  %v10815_v20 = vld [vmem:[#allocation6 + $0x120] sm:$0xf0] }
 0x359   :  { %v12317_v9 = vld [vmem:[#allocation6 + $0xcc0] sm:$0xf]  ;;  %v12062_v42 = vor.u32 %v13847_v19, %v12061_v36  ;;  %7214 = vmatpush.bf16.msrb.mxu0 %v11806_v25  ;;  %v10914_v36 = vor.u32 %v13555_v26, %v10911_v30  ;;  %v11170_v19 = vor.u32 %v13619_v31, %v11167_v37  ;;  %v3867_v25 = vadd.f32 %v14492_v38, %v3854_v29  ;;  %v10847_v38 = vld [vmem:[#allocation6 + $0x160] sm:$0xf0]  ;;  %v3918_v31 = vpop.f32.mrf.mxu1 }
 0x35a   :  { %v13911_v15 = vld [vmem:[#allocation6 + $0xcdc] sm:$0xf0]  ;;  %v10783_v37 = vld [vmem:[#allocation6 + $0xe0] sm:$0xf0] }
 0x35b   :  { %v12318_v7 = vor.u32 %v13911_v15, %v12317_v9  ;;  %v11773_v43 = vld [vmem:[#allocation6 + $0x880] sm:$0xf]  ;;  %7227 = vmatpush.bf16.msrb.mxu1 %v12062_v42  ;;  %v13547_v9 = vld [vmem:[#allocation6 + $0x184] sm:$0xf] }
 0x35c   :  { %v13775_v56 = vld [vmem:[#allocation6 + $0x89c] sm:$0xf0]  ;;  %v10879_v15 = vld [vmem:[#allocation6 + $0x1a0] sm:$0xf0] }
 0x35d   :  { %v12029_v46 = vld [vmem:[#allocation6 + $0xa80] sm:$0xf]  ;;  %v11774_v49 = vor.u32 %v13775_v56, %v11773_v43  ;;  %7240 = vmatpush.bf16.msrb.mxu2 %v12318_v7  ;;  %v11135_v42 = vld [vmem:[#allocation6 + $0x3a0] sm:$0xf0] }
 0x35e   :  { %v13839_v51 = vld [vmem:[#allocation6 + $0xa9c] sm:$0xf0]  ;;  %v13675_v56 = vld [vmem:[#allocation6 + $0x584] sm:$0xf] }
 0x35f   :  { %v12285_v53 = vld [vmem:[#allocation6 + $0xc80] sm:$0xf]  ;;  %v12030_v41 = vor.u32 %v13839_v51, %v12029_v46  ;;  %7215 = vmatpush.bf16.msrb.mxu0 %v11774_v49  ;;  %v14507_v51 = vpack.c.bf16 %v4056_v40, %v4056_v40  ;;  %v11138_v49 = vor.u32 %v13611_v33, %v11135_v42  ;;  %v13651_v8 = vld [vmem:[#allocation6 + $0x4c4] sm:$0xf]  ;;  %v3931_v33 = vpop.f32.mrf.mxu2 }
 0x360   :  { %v13903_v54 = vld [vmem:[#allocation6 + $0xc9c] sm:$0xf0]  ;;  %v11295_v47 = vld [vmem:[#allocation6 + $0x4e0] sm:$0xf0] }
 0x361   :  { %v12286_v60 = vor.u32 %v13903_v54, %v12285_v53  ;;  %v11741_v62 = vld [vmem:[#allocation6 + $0x840] sm:$0xf]  ;;  %7228 = vmatpush.bf16.msrb.mxu1 %v12030_v41  ;;  %v14509_v53 = vpack.c.bf16 %v4057_v5, %v4057_v5  ;;  %v10882_v54 = vor.u32 %v13547_v9, %v10879_v15  ;;  %v3880_v41 = vadd.f32 %v14495_v50, %v3867_v25  ;;  %v10751_v25 = vld [vmem:[#allocation6 + $0xa0] sm:$0xf0] }
 0x362   :  { %v13767_v0 = vld [vmem:[#allocation6 + $0x85c] sm:$0xf0]  ;;  %v11298_v15 = vor.u32 %v13651_v8, %v11295_v47  ;;  %v11007_v42 = vld [vmem:[#allocation6 + $0x2a0] sm:$0xf0] }
 0x363   :  { %v11997_v1 = vld [vmem:[#allocation6 + $0xa40] sm:$0xf]  ;;  %v11742_v16 = vor.u32 %v13767_v0, %v11741_v62  ;;  %7241 = vmatpush.bf16.msrb.mxu2 %v12286_v60  ;;  %v11394_v60 = vor.u32 %v13675_v56, %v11391_v13  ;;  %v11103_v62 = vld [vmem:[#allocation6 + $0x360] sm:$0xf0]  ;;  %v3893_v50 = vadd.f32 %v14497_v55, %v3880_v41 }
 0x364   :  { %v13831_v48 = vld [vmem:[#allocation6 + $0xa5c] sm:$0xf0]  ;;  %v11106_v44 = vor.u32 %v13603_v58, %v11103_v62  ;;  %v13643_v56 = vld [vmem:[#allocation6 + $0x484] sm:$0xf]  ;;  %v3907_v58 = vpop.f32.mrf.mxu0 }
 0x365   :  { %v12253_v45 = vld [vmem:[#allocation6 + $0xc40] sm:$0xf]  ;;  %v11998_v6 = vor.u32 %v13831_v48, %v11997_v1  ;;  %7216 = vmatpush.bf16.msrb.mxu0 %v11742_v16  ;;  %v11359_v48 = vld [vmem:[#allocation6 + $0x560] sm:$0xf0]  ;;  %v3906_v55 = vadd.f32 %v3905_v27, %v3893_v50 }
 0x366   :  { %v13895_v10 = vld [vmem:[#allocation6 + $0xc5c] sm:$0xf0]  ;;  %v13531_v16 = vld [vmem:[#allocation6 + $0x104] sm:$0xf] }
 0x367   :  { %v11709_v17 = vld [vmem:[#allocation6 + $0x800] sm:$0xf]  ;;  %v12254_v21 = vor.u32 %v13895_v10, %v12253_v45  ;;  %7229 = vmatpush.bf16.msrb.mxu1 %v11998_v6  ;;  %v10850_v10 = vor.u32 %v13539_v57, %v10847_v38  ;;  %v13595_v6 = vld [vmem:[#allocation6 + $0x304] sm:$0xf]  ;;  %v10818_v2 = vor.u32 %v13531_v16, %v10815_v20  ;;  %v3919_v5 = vadd.f32 %v3918_v31, %v3906_v55  ;;  %v3933_v27 = vpop.f32.mrf.mxu2 }
 0x368   :  { %v13759_v18 = vld [vmem:[#allocation6 + $0x81c] sm:$0xf0]  ;;  %v11263_v13 = vld [vmem:[#allocation6 + $0x4a0] sm:$0xf0] }
 0x369   :  { %v11965_v61 = vld [vmem:[#allocation6 + $0xa00] sm:$0xf]  ;;  %v11710_v4 = vor.u32 %v13759_v18, %v11709_v17  ;;  %7242 = vmatpush.bf16.msrb.mxu2 %v12254_v21  ;;  %v11071_v21 = vld [vmem:[#allocation6 + $0x320] sm:$0xf0]  ;;  %v11266_v62 = vor.u32 %v13643_v56, %v11263_v13 }
 0x36a   :  { %v13823_v22 = vld [vmem:[#allocation6 + $0xa1c] sm:$0xf0]  ;;  %v11074_v26 = vor.u32 %v13595_v6, %v11071_v21  ;;  %v13507_v38 = vld [vmem:[#allocation6 + $0x44] sm:$0xf] }
 0x36b   :  { %v12221_v23 = vld [vmem:[#allocation6 + $0xc00] sm:$0xf]  ;;  %v11966_v35 = vor.u32 %v13823_v22, %v11965_v61  ;;  %7217 = vmatpush.bf16.msrb.mxu0 %v11710_v4  ;;  %v11362_v61 = vor.u32 %v13667_v3, %v11359_v48  ;;  %v13659_v22 = vld [vmem:[#allocation6 + $0x504] sm:$0xf]  ;;  %v3920_v48 = vpop.f32.mrf.mxu1 }
 0x36c   :  { %v13887_v24 = vld [vmem:[#allocation6 + $0xc1c] sm:$0xf0]  ;;  %v11039_v4 = vld [vmem:[#allocation6 + $0x2e0] sm:$0xf0] }
 0x36d   :  { %v12701_v63 = vld [vmem:[#allocation6 + $0xfc0] sm:$0xf]  ;;  %v12222_v34 = vor.u32 %v13887_v24, %v12221_v23  ;;  %7230 = vmatpush.bf16.msrb.mxu1 %v11966_v35  ;;  %v11327_v23 = vld [vmem:[#allocation6 + $0x520] sm:$0xf0] }
 0x36e   :  { %v14007_v28 = vld [vmem:[#allocation6 + $0xfdc] sm:$0xf0]  ;;  %7218 = vmatmul.bf16.vlgmr.msrb.gmra.mxu0 %v14507_v51  ;;  %v11330_v30 = vor.u32 %v13659_v22, %v11327_v23  ;;  %v10975_v3 = vld [vmem:[#allocation6 + $0x260] sm:$0xf0] }
 0x36f   :  { %v12702_v32 = vor.u32 %v14007_v28, %v12701_v63  ;;  %v12669_v7 = vld [vmem:[#allocation6 + $0xf80] sm:$0xf]  ;;  %7243 = vmatpush.bf16.msrb.mxu2 %v12222_v34  ;;  %7262 = vmatpush.bf16.msra.mxu0 %v10914_v36  ;;  %v13523_v63 = vld [vmem:[#allocation6 + $0xc4] sm:$0xf] }
 0x370   :  { %v13999_v43 = vld [vmem:[#allocation6 + $0xf9c] sm:$0xf0]  ;;  %7231 = vmatmul.bf16.vlgmr.msrb.gmra.mxu1 %v14509_v53  ;;  %v10786_v35 = vor.u32 %v13523_v63, %v10783_v37  ;;  %v13515_v36 = vld [vmem:[#allocation6 + $0x84] sm:$0xf] }
 0x371   :  { %7249 = vmatpush.bf16.msrb.mxu3 %v12702_v32  ;;  %v12670_v46 = vor.u32 %v13999_v43, %v12669_v7  ;;  %7275 = vmatpush.bf16.msra.mxu1 %v11170_v19  ;;  %v12637_v0 = vld [vmem:[#allocation6 + $0xf40] sm:$0xf]  ;;  %v13587_v32 = vld [vmem:[#allocation6 + $0x2c4] sm:$0xf]  ;;  %v3932_v7 = vadd.f32 %v3931_v33, %v3919_v5  ;;  %v3944_v43 = vpop.f32.mrf.mxu3 }
 0x372   :  { %v13991_v1 = vld [vmem:[#allocation6 + $0xf5c] sm:$0xf0]  ;;  %v11042_v34 = vor.u32 %v13587_v32, %v11039_v4  ;;  %v13563_v50 = vld [vmem:[#allocation6 + $0x204] sm:$0xf] }
 0x373   :  { %7288 = vmatpush.bf16.msra.mxu2 %v11426_v39  ;;  %v12638_v45 = vor.u32 %v13991_v1, %v12637_v0  ;;  %7263 = vmatpush.bf16.msra.mxu0 %v10882_v54  ;;  %v12605_v17 = vld [vmem:[#allocation6 + $0xf00] sm:$0xf]  ;;  %v13579_v39 = vld [vmem:[#allocation6 + $0x284] sm:$0xf]  ;;  %v3945_v54 = vadd.f32 %v3944_v43, %v3932_v7 }
 0x374   :  { %v13983_v18 = vld [vmem:[#allocation6 + $0xf1c] sm:$0xf0]  ;;  %v11010_v57 = vor.u32 %v13579_v39, %v11007_v42  ;;  %v10719_v0 = vld [vmem:[#allocation6 + $0x60] sm:$0xf0] }
 0x375   :  { %7250 = vmatpush.bf16.msrb.mxu3 %v12670_v46  ;;  %7276 = vmatpush.bf16.msra.mxu1 %v11138_v49  ;;  %v12606_v24 = vor.u32 %v13983_v18, %v12605_v17  ;;  %v12573_v28 = vld [vmem:[#allocation6 + $0xec0] sm:$0xf]  ;;  %v10754_v49 = vor.u32 %v13515_v36, %v10751_v25  ;;  %v13571_v1 = vld [vmem:[#allocation6 + $0x244] sm:$0xf]  ;;  %v10722_v6 = vor.u32 %v13507_v38, %v10719_v0 }
 0x376   :  { %v13975_v29 = vld [vmem:[#allocation6 + $0xedc] sm:$0xf0]  ;;  %v13499_v17 = vld [vmem:[#allocation6 + $0x4] sm:$0xf]  ;;  %v10978_v21 = vor.u32 %v13571_v1, %v10975_v3 }
 0x377   :  { %7289 = vmatpush.bf16.msra.mxu2 %v11394_v60  ;;  %7264 = vmatpush.bf16.msra.mxu0 %v10850_v10  ;;  %v12574_v40 = vor.u32 %v13975_v29, %v12573_v28  ;;  %v12541_v19 = vld [vmem:[#allocation6 + $0xe80] sm:$0xf]  ;;  %v13635_v10 = vld [vmem:[#allocation6 + $0x444] sm:$0xf] }
 0x378   :  { %v13967_v9 = vld [vmem:[#allocation6 + $0xe9c] sm:$0xf0]  ;;  %v10687_v18 = vld [vmem:[#allocation6 + $0x20] sm:$0xf0] }
 0x379   :  { %7251 = vmatpush.bf16.msrb.mxu3 %v12638_v45  ;;  %7277 = vmatpush.bf16.msra.mxu1 %v11106_v44  ;;  %v12542_v46 = vor.u32 %v13967_v9, %v12541_v19  ;;  %v12509_v41 = vld [vmem:[#allocation6 + $0xe40] sm:$0xf]  ;;  %v4058_v45 = vmax.f32 %v3945_v54, 0.0  ;;  %v11231_v44 = vld [vmem:[#allocation6 + $0x460] sm:$0xf0]  ;;  %v3946_v31 = vpop.f32.mrf.mxu3 }
 0x37a   :  { %v13959_v60 = vld [vmem:[#allocation6 + $0xe5c] sm:$0xf0]  ;;  %v13627_v22 = vld [vmem:[#allocation6 + $0x404] sm:$0xf] }
 0x37b   :  { %7290 = vmatpush.bf16.msra.mxu2 %v11362_v61  ;;  %7265 = vmatpush.bf16.msra.mxu0 %v10818_v2  ;;  %v12510_v16 = vor.u32 %v13959_v60, %v12509_v41  ;;  %v10943_v61 = vld [vmem:[#allocation6 + $0x220] sm:$0xf0]  ;;  %v14515_v20 = vpack.c.bf16 %v4058_v45, %v4058_v45  ;;  %v12477_v23 = vld [vmem:[#allocation6 + $0xe00] sm:$0xf]  ;;  %v11234_v2 = vor.u32 %v13635_v10, %v11231_v44 }
 0x37c   :  { %v13747_v63 = vld [vmem:[#allocation6 + $0x7c4] sm:$0xf]  ;;  %v10946_v5 = vor.u32 %v13563_v50, %v10943_v61 }
 0x37d   :  { %7252 = vmatpush.bf16.msrb.mxu3 %v12606_v24  ;;  %7278 = vmatpush.bf16.msra.mxu1 %v11074_v26  ;;  %v13951_v24 = vld [vmem:[#allocation6 + $0xe1c] sm:$0xf0]  ;;  %v11199_v26 = vld [vmem:[#allocation6 + $0x420] sm:$0xf0] }
 0x37e   :  { %v11679_v28 = vld [vmem:[#allocation6 + $0x7e0] sm:$0xf0]  ;;  %7244 = vmatmul.bf16.vlgmr.msrb.gmra.mxu2 %v14515_v20  ;;  %v12478_v37 = vor.u32 %v13951_v24, %v12477_v23 }
 0x37f   :  { %7291 = vmatpush.bf16.msra.mxu2 %v11330_v30  ;;  %7266 = vmatpush.bf16.msra.mxu0 %v10786_v35  ;;  %v13811_v29 = vld [vmem:[#allocation6 + $0x9c4] sm:$0xf]  ;;  %v11682_v47 = vor.u32 %v13747_v63, %v11679_v28  ;;  %v11202_v35 = vor.u32 %v13627_v22, %v11199_v26 }
 0x380   :  { %v11935_v30 = vld [vmem:[#allocation6 + $0x9e0] sm:$0xf0] }
 0x381   :  { %7253 = vmatpush.bf16.msrb.mxu3 %v12574_v40  ;;  %7279 = vmatpush.bf16.msra.mxu1 %v11042_v34  ;;  %v13875_v55 = vld [vmem:[#allocation6 + $0xbc4] sm:$0xf]  ;;  %v10690_v40 = vor.u32 %v13499_v17, %v10687_v18  ;;  %v11938_v34 = vor.u32 %v13811_v29, %v11935_v30  ;;  %v14520_v29 = vpop.f32.mrf.mxu0 }
 0x382   :  { %v12191_v32 = vld [vmem:[#allocation6 + $0xbe0] sm:$0xf0] }
 0x383   :  { %7292 = vmatpush.bf16.msra.mxu2 %v11298_v15  ;;  %7267 = vmatpush.bf16.msra.mxu0 %v10754_v49  ;;  %v13939_v4 = vld [vmem:[#allocation6 + $0xdc4] sm:$0xf]  ;;  %v12194_v9 = vor.u32 %v13875_v55, %v12191_v32  ;;  %v14523_v55 = vpop.f32.mrf.mxu1 }
 0x384   :  { %v12447_v8 = vld [vmem:[#allocation6 + $0xde0] sm:$0xf0] }
 0x385   :  { %7254 = vmatpush.bf16.msrb.mxu3 %v12542_v46  ;;  %7280 = vmatpush.bf16.msra.mxu1 %v11010_v57  ;;  %v13803_v36 = vld [vmem:[#allocation6 + $0x984] sm:$0xf]  ;;  %v12450_v15 = vor.u32 %v13939_v4, %v12447_v8 }
 0x386   :  { %v11903_v19 = vld [vmem:[#allocation6 + $0x9a0] sm:$0xf0] }
 0x387   :  { %7293 = vmatpush.bf16.msra.mxu2 %v11266_v62  ;;  %7268 = vmatpush.bf16.msra.mxu0 %v10722_v6  ;;  %v13867_v33 = vld [vmem:[#allocation6 + $0xb84] sm:$0xf]  ;;  %v11906_v13 = vor.u32 %v13803_v36, %v11903_v19 }
 0x388   :  { %v13739_v25 = vld [vmem:[#allocation6 + $0x784] sm:$0xf] }
 0x389   :  { %7255 = vmatpush.bf16.msrb.mxu3 %v12510_v16  ;;  %7281 = vmatpush.bf16.msra.mxu1 %v10978_v21  ;;  %v11647_v39 = vld [vmem:[#allocation6 + $0x7a0] sm:$0xf0] }
 0x38a   :  { %v12159_v42 = vld [vmem:[#allocation6 + $0xba0] sm:$0xf0]  ;;  %v11650_v56 = vor.u32 %v13739_v25, %v11647_v39  ;;  %v14527_v25 = vpop.f32.mrf.mxu3 }
 0x38b   :  { %7294 = vmatpush.bf16.msra.mxu2 %v11234_v2  ;;  %v13931_v7 = vld [vmem:[#allocation6 + $0xd84] sm:$0xf]  ;;  %7269 = vmatpush.bf16.msra.mxu0 %v10690_v40  ;;  %v12162_v49 = vor.u32 %v13867_v33, %v12159_v42  ;;  %v14525_v33 = vpop.f32.mrf.mxu2 }
 0x38c   :  { %v12415_v43 = vld [vmem:[#allocation6 + $0xda0] sm:$0xf0] }
 0x38d   :  { %7256 = vmatpush.bf16.msrb.mxu3 %v12478_v37  ;;  %7282 = vmatpush.bf16.msra.mxu1 %v10946_v5  ;;  %v13795_v46 = vld [vmem:[#allocation6 + $0x944] sm:$0xf]  ;;  %v12418_v57 = vor.u32 %v13931_v7, %v12415_v43 }
 0x38e   :  { %v11871_v54 = vld [vmem:[#allocation6 + $0x960] sm:$0xf0]  ;;  %7270 = vmatmul.bf16.vlgmr.msra.gmra.mxu0 %v14475_v12 }
 0x38f   :  { %7295 = vmatpush.bf16.msra.mxu2 %v11202_v35  ;;  %7314 = vmatpush.bf16.msrb.mxu0 %v11938_v34  ;;  %v13859_v38 = vld [vmem:[#allocation6 + $0xb44] sm:$0xf]  ;;  %v11874_v3 = vor.u32 %v13795_v46, %v11871_v54 }
 0x390   :  { %v12127_v58 = vld [vmem:[#allocation6 + $0xb60] sm:$0xf0]  ;;  %7283 = vmatmul.bf16.vlgmr.msra.gmra.mxu1 %v14477_v14 }
 0x391   :  { %7301 = vmatpush.bf16.msra.mxu3 %v11682_v47  ;;  %7327 = vmatpush.bf16.msrb.mxu1 %v12194_v9  ;;  %v13923_v41 = vld [vmem:[#allocation6 + $0xd44] sm:$0xf]  ;;  %v12130_v10 = vor.u32 %v13859_v38, %v12127_v58  ;;  %v3972_v58 = vpop.f32.mrf.mxu1 }
 0x392   :  { %v12383_v60 = vld [vmem:[#allocation6 + $0xd60] sm:$0xf0]  ;;  %7296 = vmatmul.bf16.vlgmr.msra.gmra.mxu2 %v14479_v52  ;;  %v13600_v58 = vld [vmem:[#allocation6 + $0x324] sm:$0xf0] }
 0x393   :  { %7340 = vmatpush.bf16.msrb.mxu2 %v12450_v15  ;;  %v13731_v62 = vld [vmem:[#allocation6 + $0x744] sm:$0xf]  ;;  %7315 = vmatpush.bf16.msrb.mxu0 %v11906_v13  ;;  %v12386_v44 = vor.u32 %v13923_v41, %v12383_v60 }
 0x394   :  { %v11615_v0 = vld [vmem:[#allocation6 + $0x760] sm:$0xf0] }
 0x395   :  { %7302 = vmatpush.bf16.msra.mxu3 %v11650_v56  ;;  %v11618_v1 = vor.u32 %v13731_v62, %v11615_v0  ;;  %v13787_v48 = vld [vmem:[#allocation6 + $0x904] sm:$0xf]  ;;  %7328 = vmatpush.bf16.msrb.mxu1 %v12162_v49  ;;  %v651_v62 = vperm.slane %v14500_v11, 7  ;;  %v11173_v11 = vld [vmem:[#allocation6 + $0x3c8] sm:$0xf] }
 0x396   :  { %v11839_v45 = vld [vmem:[#allocation6 + $0x920] sm:$0xf0] }
 0x397   :  { %7341 = vmatpush.bf16.msrb.mxu2 %v12418_v57  ;;  %v13851_v16 = vld [vmem:[#allocation6 + $0xb04] sm:$0xf]  ;;  %7316 = vmatpush.bf16.msrb.mxu0 %v11874_v3  ;;  %v11842_v22 = vor.u32 %v13787_v48, %v11839_v45  ;;  %v3959_v57 = vpop.f32.mrf.mxu0 }
 0x398   :  { %v13723_v17 = vld [vmem:[#allocation6 + $0x704] sm:$0xf]  ;;  %v13536_v57 = vld [vmem:[#allocation6 + $0x124] sm:$0xf0] }
 0x399   :  { %v11583_v18 = vld [vmem:[#allocation6 + $0x720] sm:$0xf0]  ;;  %7303 = vmatpush.bf16.msra.mxu3 %v11618_v1  ;;  %7329 = vmatpush.bf16.msrb.mxu1 %v12130_v10 }
 0x39a   :  { %v12095_v50 = vld [vmem:[#allocation6 + $0xb20] sm:$0xf0]  ;;  %v11586_v21 = vor.u32 %v13723_v17, %v11583_v18 }
 0x39b   :  { %v13915_v61 = vld [vmem:[#allocation6 + $0xd04] sm:$0xf]  ;;  %7342 = vmatpush.bf16.msrb.mxu2 %v12386_v44  ;;  %v12098_v2 = vor.u32 %v13851_v16, %v12095_v50  ;;  %7317 = vmatpush.bf16.msrb.mxu0 %v11842_v22  ;;  %v10917_v50 = vld [vmem:[#allocation6 + $0x1c8] sm:$0xf] }
 0x39c   :  { %v12351_v6 = vld [vmem:[#allocation6 + $0xd20] sm:$0xf0]  ;;  %v13560_v22 = vld [vmem:[#allocation6 + $0x1e4] sm:$0xf0] }
 0x39d   :  { %v13779_v23 = vld [vmem:[#allocation6 + $0x8c4] sm:$0xf]  ;;  %v12354_v26 = vor.u32 %v13915_v61, %v12351_v6  ;;  %7304 = vmatpush.bf16.msra.mxu3 %v11586_v21  ;;  %7330 = vmatpush.bf16.msrb.mxu1 %v12098_v2  ;;  %v3985_v61 = vpop.f32.mrf.mxu2 }
 0x39e   :  { %v11807_v24 = vld [vmem:[#allocation6 + $0x8e0] sm:$0xf0] }
 0x39f   :  { %v13843_v27 = vld [vmem:[#allocation6 + $0xac4] sm:$0xf]  ;;  %v11810_v4 = vor.u32 %v13779_v23, %v11807_v24  ;;  %7343 = vmatpush.bf16.msrb.mxu2 %v12354_v26  ;;  %v13624_v23 = vld [vmem:[#allocation6 + $0x3e4] sm:$0xf0]  ;;  %v3998_v24 = vpop.f32.mrf.mxu3 }
 0x3a0   :  { %v12063_v63 = vld [vmem:[#allocation6 + $0xae0] sm:$0xf0] }
 0x3a1   :  { %v13907_v28 = vld [vmem:[#allocation6 + $0xcc4] sm:$0xf]  ;;  %v12066_v40 = vor.u32 %v13843_v27, %v12063_v63  ;;  %7318 = vmatpush.bf16.msrb.mxu0 %v11810_v4  ;;  %v11429_v27 = vld [vmem:[#allocation6 + $0x5c8] sm:$0xf] }
 0x3a2   :  { %v12319_v30 = vld [vmem:[#allocation6 + $0xce0] sm:$0xf0]  ;;  %v13688_v63 = vld [vmem:[#allocation6 + $0x5e4] sm:$0xf0] }
 0x3a3   :  { %v13715_v31 = vld [vmem:[#allocation6 + $0x6c4] sm:$0xf]  ;;  %v12322_v5 = vor.u32 %v13907_v28, %v12319_v30  ;;  %7331 = vmatpush.bf16.msrb.mxu1 %v12066_v40  ;;  %v10885_v4 = vld [vmem:[#allocation6 + $0x188] sm:$0xf] }
 0x3a4   :  { %v11551_v37 = vld [vmem:[#allocation6 + $0x6e0] sm:$0xf0]  ;;  %v11141_v40 = vld [vmem:[#allocation6 + $0x388] sm:$0xf] }
 0x3a5   :  { %v11554_v32 = vor.u32 %v13715_v31, %v11551_v37  ;;  %v13771_v8 = vld [vmem:[#allocation6 + $0x884] sm:$0xf]  ;;  %7344 = vmatpush.bf16.msrb.mxu2 %v12322_v5  ;;  %v3958_v31 = vadd.f32 %v14520_v29, %v651_v62  ;;  %v10918_v37 = vor.u32 %v13560_v22, %v10917_v50  ;;  %v13616_v5 = vld [vmem:[#allocation6 + $0x3a4] sm:$0xf0] }
 0x3a6   :  { %v11775_v47 = vld [vmem:[#allocation6 + $0x8a0] sm:$0xf0]  ;;  %v10853_v29 = vld [vmem:[#allocation6 + $0x148] sm:$0xf] }
 0x3a7   :  { %v13835_v35 = vld [vmem:[#allocation6 + $0xa84] sm:$0xf]  ;;  %7305 = vmatpush.bf16.msra.mxu3 %v11554_v32  ;;  %v11778_v42 = vor.u32 %v13771_v8, %v11775_v47  ;;  %v11174_v32 = vor.u32 %v13624_v23, %v11173_v11  ;;  %v11430_v8 = vor.u32 %v13688_v63, %v11429_v27  ;;  %v13552_v47 = vld [vmem:[#allocation6 + $0x1a4] sm:$0xf0]  ;;  %v4035_v27 = vpop.f32.mrf.mxu2 }
 0x3a8   :  { %v13707_v34 = vld [vmem:[#allocation6 + $0x684] sm:$0xf]  ;;  %v13656_v50 = vld [vmem:[#allocation6 + $0x4e4] sm:$0xf0] }
 0x3a9   :  { %v11519_v36 = vld [vmem:[#allocation6 + $0x6a0] sm:$0xf0]  ;;  %7319 = vmatpush.bf16.msrb.mxu0 %v11778_v42  ;;  %v11109_v42 = vld [vmem:[#allocation6 + $0x348] sm:$0xf] }
 0x3aa   :  { %v12031_v19 = vld [vmem:[#allocation6 + $0xaa0] sm:$0xf0]  ;;  %v11522_v39 = vor.u32 %v13707_v34, %v11519_v36  ;;  %v13680_v34 = vld [vmem:[#allocation6 + $0x5a4] sm:$0xf0]  ;;  %v3971_v36 = vadd.f32 %v14523_v55, %v3958_v31 }
 0x3ab   :  { %v13899_v9 = vld [vmem:[#allocation6 + $0xc84] sm:$0xf]  ;;  %v12034_v56 = vor.u32 %v13835_v35, %v12031_v19  ;;  %v11397_v35 = vld [vmem:[#allocation6 + $0x588] sm:$0xf]  ;;  %v10886_v19 = vor.u32 %v13552_v47, %v10885_v4 }
 0x3ac   :  { %v12287_v15 = vld [vmem:[#allocation6 + $0xca0] sm:$0xf0]  ;;  %7306 = vmatpush.bf16.msra.mxu3 %v11522_v39  ;;  %v13544_v39 = vld [vmem:[#allocation6 + $0x164] sm:$0xf0]  ;;  %v3984_v55 = vadd.f32 %v14525_v33, %v3971_v36 }
 0x3ad   :  { %v13763_v7 = vld [vmem:[#allocation6 + $0x844] sm:$0xf]  ;;  %v12290_v13 = vor.u32 %v13899_v9, %v12287_v15  ;;  %7332 = vmatpush.bf16.msrb.mxu1 %v12034_v56  ;;  %v11142_v9 = vor.u32 %v13616_v5, %v11141_v40  ;;  %v11398_v15 = vor.u32 %v13680_v34, %v11397_v35  ;;  %v13672_v56 = vld [vmem:[#allocation6 + $0x564] sm:$0xf0] }
 0x3ae   :  { %v11743_v43 = vld [vmem:[#allocation6 + $0x860] sm:$0xf0]  ;;  %v3997_v62 = vadd.f32 %v14527_v25, %v3984_v55  ;;  %v10789_v33 = vld [vmem:[#allocation6 + $0xc8] sm:$0xf] }
 0x3af   :  { %v13827_v46 = vld [vmem:[#allocation6 + $0xa44] sm:$0xf]  ;;  %v11746_v1 = vor.u32 %v13763_v7, %v11743_v43  ;;  %7345 = vmatpush.bf16.msrb.mxu2 %v12290_v13  ;;  %v13608_v7 = vld [vmem:[#allocation6 + $0x364] sm:$0xf0]  ;;  %v10854_v13 = vor.u32 %v13544_v39, %v10853_v29 }
 0x3b0   :  { %v11999_v54 = vld [vmem:[#allocation6 + $0xa60] sm:$0xf0]  ;;  %v11365_v43 = vld [vmem:[#allocation6 + $0x548] sm:$0xf] }
 0x3b1   :  { %v13891_v49 = vld [vmem:[#allocation6 + $0xc44] sm:$0xf]  ;;  %v12002_v10 = vor.u32 %v13827_v46, %v11999_v54  ;;  %7320 = vmatpush.bf16.msrb.mxu0 %v11746_v1  ;;  %v11110_v46 = vor.u32 %v13608_v7, %v11109_v42  ;;  %v10821_v54 = vld [vmem:[#allocation6 + $0x108] sm:$0xf] }
 0x3b2   :  { %v12255_v38 = vld [vmem:[#allocation6 + $0xc60] sm:$0xf0]  ;;  %v10822_v1 = vor.u32 %v13536_v57, %v10821_v54  ;;  %v10757_v25 = vld [vmem:[#allocation6 + $0x88] sm:$0xf] }
 0x3b3   :  { %v13699_v41 = vld [vmem:[#allocation6 + $0x644] sm:$0xf]  ;;  %v12258_v44 = vor.u32 %v13891_v49, %v12255_v38  ;;  %7333 = vmatpush.bf16.msrb.mxu1 %v12002_v10  ;;  %v11366_v49 = vor.u32 %v13672_v56, %v11365_v43  ;;  %v11077_v38 = vld [vmem:[#allocation6 + $0x308] sm:$0xf] }
 0x3b4   :  { %v11487_v60 = vld [vmem:[#allocation6 + $0x660] sm:$0xf0]  ;;  %v13528_v10 = vld [vmem:[#allocation6 + $0xe4] sm:$0xf0] }
 0x3b5   :  { %v11490_v0 = vor.u32 %v13699_v41, %v11487_v60  ;;  %v13755_v3 = vld [vmem:[#allocation6 + $0x804] sm:$0xf]  ;;  %7346 = vmatpush.bf16.msrb.mxu2 %v12258_v44  ;;  %v11333_v41 = vld [vmem:[#allocation6 + $0x508] sm:$0xf]  ;;  %v10790_v61 = vor.u32 %v13528_v10, %v10789_v33 }
 0x3b6   :  { %v11711_v48 = vld [vmem:[#allocation6 + $0x820] sm:$0xf0]  ;;  %v13664_v60 = vld [vmem:[#allocation6 + $0x524] sm:$0xf0] }
 0x3b7   :  { %v13819_v45 = vld [vmem:[#allocation6 + $0xa04] sm:$0xf]  ;;  %7307 = vmatpush.bf16.msra.mxu3 %v11490_v0  ;;  %v11714_v26 = vor.u32 %v13755_v3, %v11711_v48  ;;  %v4009_v0 = vpop.f32.mrf.mxu0  ;;  %v11078_v3 = vor.u32 %v13600_v58, %v11077_v38  ;;  %v4022_v48 = vpop.f32.mrf.mxu1  ;;  %v11045_v44 = vld [vmem:[#allocation6 + $0x2c8] sm:$0xf] }
 0x3b8   :  { %v11967_v16 = vld [vmem:[#allocation6 + $0xa20] sm:$0xf0]  ;;  %v13520_v22 = vld [vmem:[#allocation6 + $0xa4] sm:$0xf0] }
 0x3b9   :  { %v13883_v17 = vld [vmem:[#allocation6 + $0xc04] sm:$0xf]  ;;  %v11970_v28 = vor.u32 %v13819_v45, %v11967_v16  ;;  %7321 = vmatpush.bf16.msrb.mxu0 %v11714_v26  ;;  %v11334_v45 = vor.u32 %v13664_v60, %v11333_v41  ;;  %v13592_v16 = vld [vmem:[#allocation6 + $0x2e4] sm:$0xf0]  ;;  %v10758_v31 = vor.u32 %v13520_v22, %v10757_v25  ;;  %v4037_v41 = vpop.f32.mrf.mxu2 }
 0x3ba   :  { %v12223_v18 = vld [vmem:[#allocation6 + $0xc20] sm:$0xf0]  ;;  %v11013_v11 = vld [vmem:[#allocation6 + $0x288] sm:$0xf] }
 0x3bb   :  { %v13691_v6 = vld [vmem:[#allocation6 + $0x604] sm:$0xf]  ;;  %v12226_v30 = vor.u32 %v13883_v17, %v12223_v18  ;;  %7334 = vmatpush.bf16.msrb.mxu1 %v11970_v28  ;;  %v4010_v17 = vadd.f32 %v4009_v0, %v3997_v62  ;;  %v11301_v18 = vld [vmem:[#allocation6 + $0x4c8] sm:$0xf]  ;;  %v4048_v28 = vpop.f32.mrf.mxu3 }
 0x3bc   :  { %v11455_v21 = vld [vmem:[#allocation6 + $0x620] sm:$0xf0]  ;;  %7322 = vmatmul.bf16.vlgmr.msrb.gmra.mxu0 %v14507_v51  ;;  %v13584_v23 = vld [vmem:[#allocation6 + $0x2a4] sm:$0xf0] }
 0x3bd   :  { %v11458_v2 = vor.u32 %v13691_v6, %v11455_v21  ;;  %7347 = vmatpush.bf16.msrb.mxu2 %v12226_v30  ;;  %7366 = vmatpush.bf16.msra.mxu0 %v10918_v37  ;;  %v11046_v6 = vor.u32 %v13592_v16, %v11045_v44  ;;  %v11302_v21 = vor.u32 %v13656_v50, %v11301_v18  ;;  %v13648_v26 = vld [vmem:[#allocation6 + $0x4a4] sm:$0xf0] }
 0x3be   :  { %7335 = vmatmul.bf16.vlgmr.msrb.gmra.mxu1 %v14509_v53  ;;  %v4023_v24 = vadd.f32 %v4022_v48, %v4010_v17  ;;  %v11014_v37 = vor.u32 %v13584_v23, %v11013_v11  ;;  %v13512_v47 = vld [vmem:[#allocation6 + $0x64] sm:$0xf0]  ;;  %v13995_v48 = vld [vmem:[#allocation6 + $0xf84] sm:$0xf] }
 0x3bf   :  { %7308 = vmatpush.bf16.msra.mxu3 %v11458_v2  ;;  %7379 = vmatpush.bf16.msra.mxu1 %v11174_v32  ;;  %v11269_v2 = vld [vmem:[#allocation6 + $0x488] sm:$0xf]  ;;  %v4011_v30 = vpop.f32.mrf.mxu0  ;;  %v4024_v4 = vpop.f32.mrf.mxu1  ;;  %v13987_v11 = vld [vmem:[#allocation6 + $0xf44] sm:$0xf] }
 0x3c0   :  { %7348 = vmatmul.bf16.vlgmr.msrb.gmra.mxu2 %v14515_v20  ;;  %v4036_v63 = vadd.f32 %v4035_v27, %v4023_v24  ;;  %v10725_v32 = vld [vmem:[#allocation6 + $0x48] sm:$0xf]  ;;  %v12639_v23 = vld [vmem:[#allocation6 + $0xf60] sm:$0xf0] }
 0x3c1   :  { %7392 = vmatpush.bf16.msra.mxu2 %v11430_v8  ;;  %7367 = vmatpush.bf16.msra.mxu0 %v10886_v19  ;;  %v11270_v8 = vor.u32 %v13648_v26, %v11269_v2  ;;  %v10981_v40 = vld [vmem:[#allocation6 + $0x248] sm:$0xf]  ;;  %v14003_v19 = vld [vmem:[#allocation6 + $0xfc4] sm:$0xf]  ;;  %v10726_v39 = vor.u32 %v13512_v47, %v10725_v32 }
 0x3c2   :  { %v13576_v5 = vld [vmem:[#allocation6 + $0x264] sm:$0xf0]  ;;  %v4049_v35 = vadd.f32 %v4048_v28, %v4036_v63  ;;  %v14541_v4 = vld [vmem:[#allocation7] sm:$0xff] }
 0x3c3   :  { %7380 = vmatpush.bf16.msra.mxu1 %v11142_v9  ;;  %v11237_v34 = vld [vmem:[#allocation6 + $0x448] sm:$0xf]  ;;  %v12703_v9 = vld [vmem:[#allocation6 + $0xfe0] sm:$0xf0]  ;;  %v10982_v42 = vor.u32 %v13576_v5, %v10981_v40 }
 0x3c4   :  { %v13640_v36 = vld [vmem:[#allocation6 + $0x464] sm:$0xf0]  ;;  %v12607_v47 = vld [vmem:[#allocation6 + $0xf20] sm:$0xf0] }
 0x3c5   :  { %7393 = vmatpush.bf16.msra.mxu2 %v11398_v15  ;;  %7368 = vmatpush.bf16.msra.mxu0 %v10854_v13  ;;  %v10693_v29 = vld [vmem:[#allocation6 + $0x8] sm:$0xf]  ;;  %v4059_v15 = vmax.f32 %v4049_v35, 0.0  ;;  %v11238_v56 = vor.u32 %v13640_v36, %v11237_v34  ;;  %v4582_v36 = vperm.slane %v14541_v4, 0 }
 0x3c6   :  { %v13504_v7 = vld [vmem:[#allocation6 + $0x24] sm:$0xf0] }
 0x3c7   :  { %7381 = vmatpush.bf16.msra.mxu1 %v11110_v46  ;;  %v10949_v43 = vld [vmem:[#allocation6 + $0x208] sm:$0xf]  ;;  %v14537_v54 = vpack.c.bf16 %v4059_v15, %v4059_v15 }
 0x3c8   :  { %v13568_v55 = vld [vmem:[#allocation6 + $0x224] sm:$0xf0] }
 0x3c9   :  { %7394 = vmatpush.bf16.msra.mxu2 %v11366_v49  ;;  %7369 = vmatpush.bf16.msra.mxu0 %v10822_v1  ;;  %v11205_v13 = vld [vmem:[#allocation6 + $0x408] sm:$0xf]  ;;  %v12706_v49 = vor.u32 %v14003_v19, %v12703_v9  ;;  %v4050_v1 = vpop.f32.mrf.mxu3  ;;  %v10950_v33 = vor.u32 %v13568_v55, %v10949_v43  ;;  %v12575_v43 = vld [vmem:[#allocation6 + $0xee0] sm:$0xf0]  ;;  %v7167_v55 = vpop.f32.mrf.mxu0 }
 0x3ca   :  { %v13632_v46 = vld [vmem:[#allocation6 + $0x424] sm:$0xf0]  ;;  %7257 = vmatmul.bf16.vlgmr.msrb.gmra.mxu3 %v14537_v54  ;;  %v7168_v41 = vadd.f32 %v7167_v55, %v4582_v36 }
 0x3cb   :  { %7382 = vmatpush.bf16.msra.mxu1 %v11078_v3  ;;  %v11941_v57 = vld [vmem:[#allocation6 + $0x9c8] sm:$0xf]  ;;  %v10694_v3 = vor.u32 %v13504_v7, %v10693_v29  ;;  %v11206_v10 = vor.u32 %v13632_v46, %v11205_v13  ;;  %7353 = vmatpush.bf16.msrb.mxu3 %v12706_v49  ;;  %v13971_v7 = vld [vmem:[#allocation6 + $0xec4] sm:$0xf]  ;;  %v7180_v13 = vpop.f32.mrf.mxu1 }
 0x3cc   :  { %v13816_v38 = vld [vmem:[#allocation6 + $0x9e4] sm:$0xf0] }
 0x3cd   :  { %7395 = vmatpush.bf16.msra.mxu2 %v11334_v45  ;;  %7370 = vmatpush.bf16.msra.mxu0 %v10790_v61  ;;  %v12197_v58 = vld [vmem:[#allocation6 + $0xbc8] sm:$0xf]  ;;  %v12671_v45 = vld [vmem:[#allocation6 + $0xfa0] sm:$0xf0]  ;;  %v11942_v44 = vor.u32 %v13816_v38, %v11941_v57 }
 0x3ce   :  { %v13880_v60 = vld [vmem:[#allocation6 + $0xbe4] sm:$0xf0] }
 0x3cf   :  { %7383 = vmatpush.bf16.msra.mxu1 %v11046_v6  ;;  %v12453_v62 = vld [vmem:[#allocation6 + $0xdc8] sm:$0xf]  ;;  %v12198_v16 = vor.u32 %v13880_v60, %v12197_v58  ;;  %v12674_v6 = vor.u32 %v13995_v48, %v12671_v45  ;;  %v12578_v60 = vor.u32 %v13971_v7, %v12575_v43  ;;  %v7181_v48 = vadd.f32 %v7180_v13, %v7168_v41 }
 0x3d0   :  { %v13944_v0 = vld [vmem:[#allocation6 + $0xde4] sm:$0xf0] }
 0x3d1   :  { %7396 = vmatpush.bf16.msra.mxu2 %v11302_v21  ;;  %7371 = vmatpush.bf16.msra.mxu0 %v10758_v31  ;;  %v12454_v17 = vor.u32 %v13944_v0, %v12453_v62  ;;  %v11909_v18 = vld [vmem:[#allocation6 + $0x988] sm:$0xf]  ;;  %v12642_v31 = vor.u32 %v13987_v11, %v12639_v23  ;;  %v7193_v11 = vpop.f32.mrf.mxu2  ;;  %v7206_v23 = vpop.f32.mrf.mxu3 }
 0x3d2   :  { %v13808_v50 = vld [vmem:[#allocation6 + $0x9a4] sm:$0xf0]  ;;  %7354 = vmatpush.bf16.msrb.mxu3 %v12674_v6 }
 0x3d3   :  { %7384 = vmatpush.bf16.msra.mxu1 %v11014_v37  ;;  %v12165_v61 = vld [vmem:[#allocation6 + $0xb88] sm:$0xf]  ;;  %v11910_v24 = vor.u32 %v13808_v50, %v11909_v18 }
 0x3d4   :  { %v13872_v25 = vld [vmem:[#allocation6 + $0xba4] sm:$0xf0] }
 0x3d5   :  { %7397 = vmatpush.bf16.msra.mxu2 %v11270_v8  ;;  %7372 = vmatpush.bf16.msra.mxu0 %v10726_v39  ;;  %v12421_v21 = vld [vmem:[#allocation6 + $0xd88] sm:$0xf]  ;;  %v12166_v26 = vor.u32 %v13872_v25, %v12165_v61  ;;  %v13979_v8 = vld [vmem:[#allocation6 + $0xf04] sm:$0xf] }
 0x3d6   :  { %v13936_v22 = vld [vmem:[#allocation6 + $0xda4] sm:$0xf0]  ;;  %7355 = vmatpush.bf16.msrb.mxu3 %v12642_v31  ;;  %v12610_v29 = vor.u32 %v13979_v8, %v12607_v47 }
 0x3d7   :  { %7385 = vmatpush.bf16.msra.mxu1 %v10982_v42  ;;  %v11877_v2 = vld [vmem:[#allocation6 + $0x948] sm:$0xf]  ;;  %v12422_v27 = vor.u32 %v13936_v22, %v12421_v21  ;;  %v13955_v21 = vld [vmem:[#allocation6 + $0xe44] sm:$0xf] }
 0x3d8   :  { %v13800_v63 = vld [vmem:[#allocation6 + $0x964] sm:$0xf0]  ;;  %v12511_v22 = vld [vmem:[#allocation6 + $0xe60] sm:$0xf0] }
 0x3d9   :  { %7398 = vmatpush.bf16.msra.mxu2 %v11238_v56  ;;  %7373 = vmatpush.bf16.msra.mxu0 %v10694_v3  ;;  %v12133_v28 = vld [vmem:[#allocation6 + $0xb48] sm:$0xf]  ;;  %v11878_v40 = vor.u32 %v13800_v63, %v11877_v2  ;;  %v13963_v3 = vld [vmem:[#allocation6 + $0xe84] sm:$0xf]  ;;  %v7194_v2 = vadd.f32 %v7193_v11, %v7181_v48  ;;  %v7208_v41 = vpop.f32.mrf.mxu3 }
 0x3da   :  { %v13864_v30 = vld [vmem:[#allocation6 + $0xb64] sm:$0xf0]  ;;  %7356 = vmatpush.bf16.msrb.mxu3 %v12610_v29 }
 0x3db   :  { %7386 = vmatpush.bf16.msra.mxu1 %v10950_v33  ;;  %v12389_v37 = vld [vmem:[#allocation6 + $0xd48] sm:$0xf]  ;;  %v12134_v35 = vor.u32 %v13864_v30, %v12133_v28  ;;  %v12543_v33 = vld [vmem:[#allocation6 + $0xea0] sm:$0xf0]  ;;  %7309 = vmatmul.bf16.vlgmr.msra.gmra.mxu3 %v14481_v59 }
 0x3dc   :  { %7374 = vmatmul.bf16.vlgmr.msra.gmra.mxu0 %v14475_v12  ;;  %v13928_v32 = vld [vmem:[#allocation6 + $0xd64] sm:$0xf0]  ;;  %v12546_v50 = vor.u32 %v13963_v3, %v12543_v33 }
 0x3dd   :  { %7399 = vmatpush.bf16.msra.mxu2 %v11206_v10  ;;  %7418 = vmatpush.bf16.msrb.mxu0 %v11942_v44  ;;  %v11845_v5 = vld [vmem:[#allocation6 + $0x908] sm:$0xf]  ;;  %v12390_v34 = vor.u32 %v13928_v32, %v12389_v37  ;;  %v12514_v32 = vor.u32 %v13955_v21, %v12511_v22  ;;  %v11399_v21 = vld [vmem:[#allocation6 + $0x5a8] sm:$0xf0] }
 0x3de   :  { %7387 = vmatmul.bf16.vlgmr.msra.gmra.mxu1 %v14477_v14  ;;  %v13792_v19 = vld [vmem:[#allocation6 + $0x924] sm:$0xf0]  ;;  %7357 = vmatpush.bf16.msrb.mxu3 %v12578_v60 }
 0x3df   :  { %7431 = vmatpush.bf16.msrb.mxu1 %v12198_v16  ;;  %v12101_v9 = vld [vmem:[#allocation6 + $0xb08] sm:$0xf]  ;;  %v11846_v56 = vor.u32 %v13792_v19, %v11845_v5  ;;  %v14547_v5 = vadd.f32 %v7206_v23, %v7194_v2 }
 0x3e0   :  { %7400 = vmatmul.bf16.vlgmr.msra.gmra.mxu2 %v14479_v52  ;;  %v13856_v15 = vld [vmem:[#allocation6 + $0xb24] sm:$0xf0] }
 0x3e1   :  { %7444 = vmatpush.bf16.msrb.mxu2 %v12454_v17  ;;  %7419 = vmatpush.bf16.msrb.mxu0 %v11910_v24  ;;  %v12357_v39 = vld [vmem:[#allocation6 + $0xd08] sm:$0xf]  ;;  %v12102_v46 = vor.u32 %v13856_v15, %v12101_v9 }
 0x3e2   :  { %v13920_v42 = vld [vmem:[#allocation6 + $0xd24] sm:$0xf0]  ;;  %7358 = vmatpush.bf16.msrb.mxu3 %v12546_v50  ;;  %v13612_v50 = vld [vmem:[#allocation6 + $0x38c] sm:$0xf] }
 0x3e3   :  { %7432 = vmatpush.bf16.msrb.mxu1 %v12166_v26  ;;  %v12358_v49 = vor.u32 %v13920_v42, %v12357_v39  ;;  %v11813_v57 = vld [vmem:[#allocation6 + $0x8c8] sm:$0xf]  ;;  %v7169_v26 = vpop.f32.mrf.mxu0 }
 0x3e4   :  { %v13784_v38 = vld [vmem:[#allocation6 + $0x8e4] sm:$0xf0]  ;;  %v13540_v26 = vld [vmem:[#allocation6 + $0x14c] sm:$0xf] }
 0x3e5   :  { %7445 = vmatpush.bf16.msrb.mxu2 %v12422_v27  ;;  %7420 = vmatpush.bf16.msrb.mxu0 %v11878_v40  ;;  %v12069_v58 = vld [vmem:[#allocation6 + $0xac8] sm:$0xf]  ;;  %v11814_v45 = vor.u32 %v13784_v38, %v11813_v57  ;;  %v7182_v27 = vpop.f32.mrf.mxu1  ;;  %v10919_v57 = vld [vmem:[#allocation6 + $0x1e8] sm:$0xf0] }
 0x3e6   :  { %v13848_v62 = vld [vmem:[#allocation6 + $0xae4] sm:$0xf0]  ;;  %7359 = vmatpush.bf16.msrb.mxu3 %v12514_v32  ;;  %v13620_v38 = vld [vmem:[#allocation6 + $0x3cc] sm:$0xf] }
 0x3e7   :  { %7433 = vmatpush.bf16.msrb.mxu1 %v12134_v35  ;;  %v12325_v0 = vld [vmem:[#allocation6 + $0xcc8] sm:$0xf]  ;;  %v12070_v10 = vor.u32 %v13848_v62, %v12069_v58  ;;  %v13947_v35 = vld [vmem:[#allocation6 + $0xe04] sm:$0xf]  ;;  %v7195_v58 = vpop.f32.mrf.mxu2  ;;  %v11175_v62 = vld [vmem:[#allocation6 + $0x3e8] sm:$0xf0] }
 0x3e8   :  { %v13912_v1 = vld [vmem:[#allocation6 + $0xce4] sm:$0xf0]  ;;  %v10855_v27 = vld [vmem:[#allocation6 + $0x168] sm:$0xf0] }
 0x3e9   :  { %7446 = vmatpush.bf16.msrb.mxu2 %v12390_v34  ;;  %7421 = vmatpush.bf16.msrb.mxu0 %v11846_v56  ;;  %v12326_v44 = vor.u32 %v13912_v1, %v12325_v0  ;;  %v11781_v16 = vld [vmem:[#allocation6 + $0x888] sm:$0xf]  ;;  %v12479_v34 = vld [vmem:[#allocation6 + $0xe20] sm:$0xf0]  ;;  %v13684_v0 = vld [vmem:[#allocation6 + $0x5cc] sm:$0xf] }
 0x3ea   :  { %v13776_v17 = vld [vmem:[#allocation6 + $0x8a4] sm:$0xf0]  ;;  %v12482_v43 = vor.u32 %v13947_v35, %v12479_v34  ;;  %v11431_v1 = vld [vmem:[#allocation6 + $0x5e8] sm:$0xf0] }
 0x3eb   :  { %7434 = vmatpush.bf16.msrb.mxu1 %v12102_v46  ;;  %v12037_v18 = vld [vmem:[#allocation6 + $0xa88] sm:$0xf]  ;;  %v11782_v24 = vor.u32 %v13776_v17, %v11781_v16  ;;  %v11434_v16 = vor.u32 %v13684_v0, %v11431_v1  ;;  %v13548_v17 = vld [vmem:[#allocation6 + $0x18c] sm:$0xf] }
 0x3ec   :  { %v13840_v61 = vld [vmem:[#allocation6 + $0xaa4] sm:$0xf0]  ;;  %7360 = vmatpush.bf16.msrb.mxu3 %v12482_v43  ;;  %v13532_v34 = vld [vmem:[#allocation6 + $0x10c] sm:$0xf]  ;;  %v7219_v43 = vpop.f32.mrf.mxu0 }
 0x3ed   :  { %7447 = vmatpush.bf16.msrb.mxu2 %v12358_v49  ;;  %v12293_v6 = vld [vmem:[#allocation6 + $0xc88] sm:$0xf]  ;;  %7422 = vmatpush.bf16.msrb.mxu0 %v11814_v45  ;;  %v12038_v63 = vor.u32 %v13840_v61, %v12037_v18  ;;  %v13556_v49 = vld [vmem:[#allocation6 + $0x1cc] sm:$0xf] }
 0x3ee   :  { %v13904_v25 = vld [vmem:[#allocation6 + $0xca4] sm:$0xf0]  ;;  %v10887_v18 = vld [vmem:[#allocation6 + $0x1a8] sm:$0xf0] }
 0x3ef   :  { %7435 = vmatpush.bf16.msrb.mxu1 %v12070_v10  ;;  %v12294_v28 = vor.u32 %v13904_v25, %v12293_v6  ;;  %v11749_v30 = vld [vmem:[#allocation6 + $0x848] sm:$0xf]  ;;  %v10922_v10 = vor.u32 %v13556_v49, %v10919_v57  ;;  %v11143_v6 = vld [vmem:[#allocation6 + $0x3a8] sm:$0xf0]  ;;  %7361 = vmatmul.bf16.vlgmr.msrb.gmra.mxu3 %v14537_v54  ;;  %v10890_v23 = vor.u32 %v13548_v17, %v10887_v18 }
 0x3f0   :  { %v13768_v31 = vld [vmem:[#allocation6 + $0x864] sm:$0xf0]  ;;  %v13676_v25 = vld [vmem:[#allocation6 + $0x58c] sm:$0xf] }
 0x3f1   :  { %7448 = vmatpush.bf16.msrb.mxu2 %v12326_v44  ;;  %v12005_v37 = vld [vmem:[#allocation6 + $0xa48] sm:$0xf]  ;;  %7423 = vmatpush.bf16.msrb.mxu0 %v11782_v24  ;;  %v11750_v36 = vor.u32 %v13768_v31, %v11749_v30  ;;  %v11178_v44 = vor.u32 %v13620_v38, %v11175_v62  ;;  %v11146_v24 = vor.u32 %v13612_v50, %v11143_v6  ;;  %v11111_v30 = vld [vmem:[#allocation6 + $0x368] sm:$0xf0] }
 0x3f2   :  { %v13832_v8 = vld [vmem:[#allocation6 + $0xa64] sm:$0xf0]  ;;  %v11402_v2 = vor.u32 %v13676_v25, %v11399_v21  ;;  %v13668_v31 = vld [vmem:[#allocation6 + $0x54c] sm:$0xf] }
 0x3f3   :  { %v12261_v47 = vld [vmem:[#allocation6 + $0xc48] sm:$0xf]  ;;  %7436 = vmatpush.bf16.msrb.mxu1 %v12038_v63  ;;  %v12006_v29 = vor.u32 %v13832_v8, %v12005_v37  ;;  %v13604_v63 = vld [vmem:[#allocation6 + $0x34c] sm:$0xf] }
 0x3f4   :  { %v13896_v40 = vld [vmem:[#allocation6 + $0xc64] sm:$0xf0]  ;;  %v11367_v37 = vld [vmem:[#allocation6 + $0x568] sm:$0xf0]  ;;  %v7221_v21 = vpop.f32.mrf.mxu0 }
 0x3f5   :  { %v11685_v19 = vld [vmem:[#allocation6 + $0x7c8] sm:$0xf]  ;;  %7449 = vmatpush.bf16.msrb.mxu2 %v12294_v28  ;;  %v12262_v15 = vor.u32 %v13896_v40, %v12261_v47  ;;  %7424 = vmatpush.bf16.msrb.mxu0 %v11750_v36  ;;  %v10858_v47 = vor.u32 %v13540_v26, %v10855_v27  ;;  %v11114_v40 = vor.u32 %v13604_v63, %v11111_v30  ;;  %v10823_v36 = vld [vmem:[#allocation6 + $0x128] sm:$0xf0] }
 0x3f6   :  { %v13752_v9 = vld [vmem:[#allocation6 + $0x7e4] sm:$0xf0]  ;;  %v11370_v35 = vor.u32 %v13668_v31, %v11367_v37  ;;  %v13524_v57 = vld [vmem:[#allocation6 + $0xcc] sm:$0xf] }
 0x3f7   :  { %v11717_v39 = vld [vmem:[#allocation6 + $0x808] sm:$0xf]  ;;  %v11686_v46 = vor.u32 %v13752_v9, %v11685_v19  ;;  %7437 = vmatpush.bf16.msrb.mxu1 %v12006_v29  ;;  %v13596_v19 = vld [vmem:[#allocation6 + $0x30c] sm:$0xf] }
 0x3f8   :  { %v13760_v42 = vld [vmem:[#allocation6 + $0x824] sm:$0xf0]  ;;  %v11079_v29 = vld [vmem:[#allocation6 + $0x328] sm:$0xf0] }
 0x3f9   :  { %v11973_v7 = vld [vmem:[#allocation6 + $0xa08] sm:$0xf]  ;;  %v11718_v60 = vor.u32 %v13760_v42, %v11717_v39  ;;  %7450 = vmatpush.bf16.msrb.mxu2 %v12262_v15  ;;  %7405 = vmatpush.bf16.msra.mxu3 %v11686_v46  ;;  %v13660_v15 = vld [vmem:[#allocation6 + $0x50c] sm:$0xf]  ;;  %v11082_v46 = vor.u32 %v13596_v19, %v11079_v29 }
 0x3fa   :  { %v13824_v56 = vld [vmem:[#allocation6 + $0xa24] sm:$0xf0]  ;;  %v11335_v39 = vld [vmem:[#allocation6 + $0x528] sm:$0xf0] }
 0x3fb   :  { %v12229_v55 = vld [vmem:[#allocation6 + $0xc08] sm:$0xf]  ;;  %v11974_v3 = vor.u32 %v13824_v56, %v11973_v7  ;;  %7425 = vmatpush.bf16.msrb.mxu0 %v11718_v60  ;;  %v10826_v56 = vor.u32 %v13532_v34, %v10823_v36  ;;  %v11338_v49 = vor.u32 %v13660_v15, %v11335_v39  ;;  %v10791_v38 = vld [vmem:[#allocation6 + $0xe8] sm:$0xf0] }
 0x3fc   :  { %v13888_v13 = vld [vmem:[#allocation6 + $0xc24] sm:$0xf0]  ;;  %v13588_v58 = vld [vmem:[#allocation6 + $0x2cc] sm:$0xf] }
 0x3fd   :  { %v12230_v33 = vor.u32 %v13888_v13, %v12229_v55  ;;  %v11653_v48 = vld [vmem:[#allocation6 + $0x788] sm:$0xf]  ;;  %7438 = vmatpush.bf16.msrb.mxu1 %v11974_v3  ;;  %v7220_v55 = vadd.f32 %v7219_v43, %v14547_v5  ;;  %v7232_v13 = vpop.f32.mrf.mxu1  ;;  %v11047_v60 = vld [vmem:[#allocation6 + $0x2e8] sm:$0xf0] }
 0x3fe   :  { %v13744_v45 = vld [vmem:[#allocation6 + $0x7a4] sm:$0xf0]  ;;  %7426 = vmatmul.bf16.vlgmr.msrb.gmra.mxu0 %v14507_v51  ;;  %v13652_v62 = vld [vmem:[#allocation6 + $0x4cc] sm:$0xf]  ;;  %v11050_v5 = vor.u32 %v13588_v58, %v11047_v60 }
 0x3ff   :  { %v11654_v61 = vor.u32 %v13744_v45, %v11653_v48  ;;  %7451 = vmatpush.bf16.msrb.mxu2 %v12230_v33  ;;  %v11621_v22 = vld [vmem:[#allocation6 + $0x748] sm:$0xf]  ;;  %7470 = vmatpush.bf16.msra.mxu0 %v10922_v10  ;;  %v11303_v0 = vld [vmem:[#allocation6 + $0x4e8] sm:$0xf0]  ;;  %v14554_v1 = vadd.f32 %v7232_v13, %v7220_v55  ;;  %v10794_v48 = vor.u32 %v13524_v57, %v10791_v38 }
 0x400   :  { %v13736_v11 = vld [vmem:[#allocation6 + $0x764] sm:$0xf0]  ;;  %7439 = vmatmul.bf16.vlgmr.msrb.gmra.mxu1 %v14509_v53  ;;  %v11306_v45 = vor.u32 %v13652_v62, %v11303_v0  ;;  %v13516_v10 = vld [vmem:[#allocation6 + $0x8c] sm:$0xf] }
 0x401   :  { %7483 = vmatpush.bf16.msra.mxu1 %v11178_v44  ;;  %7406 = vmatpush.bf16.msra.mxu3 %v11654_v61  ;;  %v11622_v28 = vor.u32 %v13736_v11, %v11621_v22  ;;  %v11589_v32 = vld [vmem:[#allocation6 + $0x708] sm:$0xf]  ;;  %v10759_v44 = vld [vmem:[#allocation6 + $0xa8] sm:$0xf0] }
 0x402   :  { %7452 = vmatmul.bf16.vlgmr.msrb.gmra.mxu2 %v14515_v20  ;;  %v13728_v8 = vld [vmem:[#allocation6 + $0x724] sm:$0xf0]  ;;  %v11015_v18 = vld [vmem:[#allocation6 + $0x2a8] sm:$0xf0]  ;;  %v10762_v22 = vor.u32 %v13516_v10, %v10759_v44 }
 0x403   :  { %7496 = vmatpush.bf16.msra.mxu2 %v11434_v16  ;;  %7471 = vmatpush.bf16.msra.mxu0 %v10890_v23  ;;  %v11590_v9 = vor.u32 %v13728_v8, %v11589_v32  ;;  %v11557_v42 = vld [vmem:[#allocation6 + $0x6c8] sm:$0xf]  ;;  %v13580_v16 = vld [vmem:[#allocation6 + $0x28c] sm:$0xf] }
 0x404   :  { %v13720_v7 = vld [vmem:[#allocation6 + $0x6e4] sm:$0xf0]  ;;  %v13644_v50 = vld [vmem:[#allocation6 + $0x48c] sm:$0xf]  ;;  %v11018_v23 = vor.u32 %v13580_v16, %v11015_v18 }
 0x405   :  { %7484 = vmatpush.bf16.msra.mxu1 %v11146_v24  ;;  %7407 = vmatpush.bf16.msra.mxu3 %v11622_v28  ;;  %v11558_v41 = vor.u32 %v13720_v7, %v11557_v42  ;;  %v11525_v3 = vld [vmem:[#allocation6 + $0x688] sm:$0xf]  ;;  %v11271_v61 = vld [vmem:[#allocation6 + $0x4a8] sm:$0xf0]  ;;  %v7234_v11 = vpop.f32.mrf.mxu1 }
 0x406   :  { %v13712_v33 = vld [vmem:[#allocation6 + $0x6a4] sm:$0xf0]  ;;  %v11274_v24 = vor.u32 %v13644_v50, %v11271_v61  ;;  %v10727_v26 = vld [vmem:[#allocation6 + $0x68] sm:$0xf0] }
 0x407   :  { %7497 = vmatpush.bf16.msra.mxu2 %v11402_v2  ;;  %7472 = vmatpush.bf16.msra.mxu0 %v10858_v47  ;;  %v11526_v17 = vor.u32 %v13712_v33, %v11525_v3  ;;  %v11493_v6 = vld [vmem:[#allocation6 + $0x648] sm:$0xf]  ;;  %v13508_v2 = vld [vmem:[#allocation6 + $0x4c] sm:$0xf] }
 0x408   :  { %v13704_v25 = vld [vmem:[#allocation6 + $0x664] sm:$0xf0]  ;;  %v13572_v27 = vld [vmem:[#allocation6 + $0x24c] sm:$0xf]  ;;  %v10730_v8 = vor.u32 %v13508_v2, %v10727_v26 }
 0x409   :  { %7485 = vmatpush.bf16.msra.mxu1 %v11114_v40  ;;  %7408 = vmatpush.bf16.msra.mxu3 %v11590_v9  ;;  %v11494_v63 = vor.u32 %v13704_v25, %v11493_v6  ;;  %v10983_v28 = vld [vmem:[#allocation6 + $0x268] sm:$0xf0]  ;;  %v11461_v37 = vld [vmem:[#allocation6 + $0x608] sm:$0xf] }
 0x40a   :  { %v13636_v30 = vld [vmem:[#allocation6 + $0x44c] sm:$0xf]  ;;  %v13696_v32 = vld [vmem:[#allocation6 + $0x624] sm:$0xf0] }
 0x40b   :  { %7498 = vmatpush.bf16.msra.mxu2 %v11370_v35  ;;  %7473 = vmatpush.bf16.msra.mxu0 %v10826_v56  ;;  %v11239_v31 = vld [vmem:[#allocation6 + $0x468] sm:$0xf0]  ;;  %v12709_v47 = vld [vmem:[#allocation6 + $0xfc8] sm:$0xf]  ;;  %v10986_v35 = vor.u32 %v13572_v27, %v10983_v28  ;;  %v11462_v29 = vor.u32 %v13696_v32, %v11461_v37  ;;  %v4583_v28 = vperm.slane %v14541_v4, 1  ;;  %v7245_v37 = vpop.f32.mrf.mxu2  ;;  %v7271_v4 = vpop.f32.mrf.mxu0 }
 0x40c   :  { %v14008_v40 = vld [vmem:[#allocation6 + $0xfe4] sm:$0xf0]  ;;  %v11242_v34 = vor.u32 %v13636_v30, %v11239_v31  ;;  %v13500_v36 = vld [vmem:[#allocation6 + $0xc] sm:$0xf] }
 0x40d   :  { %7486 = vmatpush.bf16.msra.mxu1 %v11082_v46  ;;  %7409 = vmatpush.bf16.msra.mxu3 %v11558_v41  ;;  %v10695_v19 = vld [vmem:[#allocation6 + $0x28] sm:$0xf0]  ;;  %v12710_v7 = vor.u32 %v14008_v40, %v12709_v47  ;;  %v12677_v58 = vld [vmem:[#allocation6 + $0xf88] sm:$0xf] }
 0x40e   :  { %v13564_v9 = vld [vmem:[#allocation6 + $0x20c] sm:$0xf]  ;;  %v10698_v13 = vor.u32 %v13500_v36, %v10695_v19  ;;  %v14000_v41 = vld [vmem:[#allocation6 + $0xfa4] sm:$0xf0] }
 0x40f   :  { %7499 = vmatpush.bf16.msra.mxu2 %v11338_v49  ;;  %7474 = vmatpush.bf16.msra.mxu0 %v10794_v48  ;;  %v10951_v15 = vld [vmem:[#allocation6 + $0x228] sm:$0xf0]  ;;  %v13992_v18 = vld [vmem:[#allocation6 + $0xf64] sm:$0xf0] }
 0x410   :  { %v13628_v39 = vld [vmem:[#allocation6 + $0x40c] sm:$0xf]  ;;  %v10954_v38 = vor.u32 %v13564_v9, %v10951_v15  ;;  %v12613_v26 = vld [vmem:[#allocation6 + $0xf08] sm:$0xf]  ;;  %v7284_v15 = vpop.f32.mrf.mxu1 }
 0x411   :  { %7487 = vmatpush.bf16.msra.mxu1 %v11050_v5  ;;  %7410 = vmatpush.bf16.msra.mxu3 %v11526_v17  ;;  %v11207_v42 = vld [vmem:[#allocation6 + $0x428] sm:$0xf0]  ;;  %v12645_v17 = vld [vmem:[#allocation6 + $0xf48] sm:$0xf] }
 0x412   :  { %v13812_v43 = vld [vmem:[#allocation6 + $0x9cc] sm:$0xf]  ;;  %v11210_v60 = vor.u32 %v13628_v39, %v11207_v42  ;;  %v12646_v11 = vor.u32 %v13992_v18, %v12645_v17  ;;  %v13984_v27 = vld [vmem:[#allocation6 + $0xf24] sm:$0xf0]  ;;  %v7272_v42 = vadd.f32 %v7271_v4, %v4583_v28 }
 0x413   :  { %7500 = vmatpush.bf16.msra.mxu2 %v11306_v45  ;;  %7475 = vmatpush.bf16.msra.mxu0 %v10762_v22  ;;  %v11943_v56 = vld [vmem:[#allocation6 + $0x9e8] sm:$0xf0]  ;;  %v12678_v45 = vor.u32 %v14000_v41, %v12677_v58  ;;  %v12614_v40 = vor.u32 %v13984_v27, %v12613_v26  ;;  %v12581_v9 = vld [vmem:[#allocation6 + $0xec8] sm:$0xf] }
 0x414   :  { %v13876_v55 = vld [vmem:[#allocation6 + $0xbcc] sm:$0xf]  ;;  %v11946_v62 = vor.u32 %v13812_v43, %v11943_v56  ;;  %v12549_v58 = vld [vmem:[#allocation6 + $0xe88] sm:$0xf] }
 0x415   :  { %7488 = vmatpush.bf16.msra.mxu1 %v11018_v23  ;;  %7411 = vmatpush.bf16.msra.mxu3 %v11494_v63  ;;  %v12199_v46 = vld [vmem:[#allocation6 + $0xbe8] sm:$0xf0]  ;;  %v13968_v41 = vld [vmem:[#allocation6 + $0xea4] sm:$0xf0] }
 0x416   :  { %v13940_v49 = vld [vmem:[#allocation6 + $0xdcc] sm:$0xf]  ;;  %v12202_v0 = vor.u32 %v13876_v55, %v12199_v46  ;;  %v12517_v17 = vld [vmem:[#allocation6 + $0xe48] sm:$0xf] }
 0x417   :  { %7501 = vmatpush.bf16.msra.mxu2 %v11274_v24  ;;  %7476 = vmatpush.bf16.msra.mxu0 %v10730_v8  ;;  %v12455_v57 = vld [vmem:[#allocation6 + $0xde8] sm:$0xf0]  ;;  %v13960_v18 = vld [vmem:[#allocation6 + $0xe64] sm:$0xf0] }
 0x418   :  { %v12458_v3 = vor.u32 %v13940_v49, %v12455_v57  ;;  %v13804_v33 = vld [vmem:[#allocation6 + $0x98c] sm:$0xf]  ;;  %v13952_v28 = vld [vmem:[#allocation6 + $0xe24] sm:$0xf0] }
 0x419   :  { %7489 = vmatpush.bf16.msra.mxu1 %v10986_v35  ;;  %7412 = vmatpush.bf16.msra.mxu3 %v11462_v29  ;;  %v11911_v48 = vld [vmem:[#allocation6 + $0x9a8] sm:$0xf0]  ;;  %v14562_v35 = vadd.f32 %v7245_v37, %v14554_v1  ;;  %v13976_v29 = vld [vmem:[#allocation6 + $0xee4] sm:$0xf0] }
 0x41a   :  { %v13868_v5 = vld [vmem:[#allocation6 + $0xb8c] sm:$0xf]  ;;  %v11914_v50 = vor.u32 %v13804_v33, %v11911_v48  ;;  %v12582_v1 = vor.u32 %v13976_v29, %v12581_v9 }
 0x41b   :  { %7502 = vmatpush.bf16.msra.mxu2 %v11242_v34  ;;  %7477 = vmatpush.bf16.msra.mxu0 %v10698_v13  ;;  %v12167_v10 = vld [vmem:[#allocation6 + $0xba8] sm:$0xf0] }
 0x41c   :  { %v13932_v44 = vld [vmem:[#allocation6 + $0xd8c] sm:$0xf]  ;;  %7413 = vmatmul.bf16.vlgmr.msra.gmra.mxu3 %v14481_v59  ;;  %v12170_v61 = vor.u32 %v13868_v5, %v12167_v10 }
 0x41d   :  { %7457 = vmatpush.bf16.msrb.mxu3 %v12710_v7  ;;  %v12423_v16 = vld [vmem:[#allocation6 + $0xda8] sm:$0xf0]  ;;  %7490 = vmatpush.bf16.msra.mxu1 %v10954_v38  ;;  %v7285_v38 = vadd.f32 %v7284_v15, %v7272_v42  ;;  %v10925_v42 = vld [vmem:[#allocation6 + $0x1d0] sm:$0xf] }
 0x41e   :  { %v12426_v6 = vor.u32 %v13932_v44, %v12423_v16  ;;  %v13796_v25 = vld [vmem:[#allocation6 + $0x94c] sm:$0xf]  ;;  %7478 = vmatmul.bf16.vlgmr.msra.gmra.mxu0 %v14475_v12 }
 0x41f   :  { %7503 = vmatpush.bf16.msra.mxu2 %v11210_v60  ;;  %7522 = vmatpush.bf16.msrb.mxu0 %v11946_v62  ;;  %v11879_v21 = vld [vmem:[#allocation6 + $0x968] sm:$0xf0] }
 0x420   :  { %v13860_v22 = vld [vmem:[#allocation6 + $0xb4c] sm:$0xf]  ;;  %7491 = vmatmul.bf16.vlgmr.msra.gmra.mxu1 %v14477_v14  ;;  %v11882_v63 = vor.u32 %v13796_v25, %v11879_v21 }
 0x421   :  { %7535 = vmatpush.bf16.msrb.mxu1 %v12202_v0  ;;  %7458 = vmatpush.bf16.msrb.mxu3 %v12678_v45  ;;  %v12135_v23 = vld [vmem:[#allocation6 + $0xb68] sm:$0xf0]  ;;  %v12550_v45 = vor.u32 %v13968_v41, %v12549_v58 }
 0x422   :  { %v13924_v24 = vld [vmem:[#allocation6 + $0xd4c] sm:$0xf]  ;;  %7504 = vmatmul.bf16.vlgmr.msra.gmra.mxu2 %v14479_v52  ;;  %v12138_v30 = vor.u32 %v13860_v22, %v12135_v23 }
 0x423   :  { %7548 = vmatpush.bf16.msrb.mxu2 %v12458_v3  ;;  %v12391_v2 = vld [vmem:[#allocation6 + $0xd68] sm:$0xf0]  ;;  %7523 = vmatpush.bf16.msrb.mxu0 %v11914_v50  ;;  %v7247_v3 = vpop.f32.mrf.mxu2  ;;  %v7273_v50 = vpop.f32.mrf.mxu0 }
 0x424   :  { %v12394_v31 = vor.u32 %v13924_v24, %v12391_v2  ;;  %v13788_v32 = vld [vmem:[#allocation6 + $0x90c] sm:$0xf]  ;;  %v12518_v24 = vor.u32 %v13960_v18, %v12517_v17  ;;  %v11149_v3 = vld [vmem:[#allocation6 + $0x390] sm:$0xf] }
 0x425   :  { %7536 = vmatpush.bf16.msrb.mxu1 %v12170_v61  ;;  %v11847_v8 = vld [vmem:[#allocation6 + $0x928] sm:$0xf0]  ;;  %7459 = vmatpush.bf16.msrb.mxu3 %v12646_v11  ;;  %v7286_v61 = vpop.f32.mrf.mxu1 }
 0x426   :  { %v13852_v47 = vld [vmem:[#allocation6 + $0xb0c] sm:$0xf]  ;;  %v11850_v39 = vor.u32 %v13788_v32, %v11847_v8  ;;  %v10861_v61 = vld [vmem:[#allocation6 + $0x150] sm:$0xf] }
 0x427   :  { %7549 = vmatpush.bf16.msrb.mxu2 %v12426_v6  ;;  %v12103_v34 = vld [vmem:[#allocation6 + $0xb28] sm:$0xf0]  ;;  %7524 = vmatpush.bf16.msrb.mxu0 %v11882_v63  ;;  %v12485_v63 = vld [vmem:[#allocation6 + $0xe08] sm:$0xf] }
 0x428   :  { %v13916_v36 = vld [vmem:[#allocation6 + $0xd0c] sm:$0xf]  ;;  %v12106_v7 = vor.u32 %v13852_v47, %v12103_v34 }
 0x429   :  { %v12359_v19 = vld [vmem:[#allocation6 + $0xd28] sm:$0xf0]  ;;  %7537 = vmatpush.bf16.msrb.mxu1 %v12138_v30  ;;  %7460 = vmatpush.bf16.msrb.mxu3 %v12614_v40 }
 0x42a   :  { %v12362_v43 = vor.u32 %v13916_v36, %v12359_v19  ;;  %v13780_v56 = vld [vmem:[#allocation6 + $0x8cc] sm:$0xf]  ;;  %v12486_v36 = vor.u32 %v13952_v28, %v12485_v63  ;;  %v10829_v28 = vld [vmem:[#allocation6 + $0x110] sm:$0xf] }
 0x42b   :  { %7550 = vmatpush.bf16.msrb.mxu2 %v12394_v31  ;;  %v11815_v55 = vld [vmem:[#allocation6 + $0x8e8] sm:$0xf0]  ;;  %7525 = vmatpush.bf16.msrb.mxu0 %v11850_v39  ;;  %v7297_v19 = vpop.f32.mrf.mxu2 }
 0x42c   :  { %v13844_v13 = vld [vmem:[#allocation6 + $0xacc] sm:$0xf]  ;;  %v11818_v60 = vor.u32 %v13780_v56, %v11815_v55  ;;  %v14564_v39 = vadd.f32 %v7297_v19, %v7285_v38  ;;  %v13625_v55 = vld [vmem:[#allocation6 + $0x3ec] sm:$0xf0] }
 0x42d   :  { %v12071_v46 = vld [vmem:[#allocation6 + $0xae8] sm:$0xf0]  ;;  %7538 = vmatpush.bf16.msrb.mxu1 %v12106_v7  ;;  %7461 = vmatpush.bf16.msrb.mxu3 %v12582_v1  ;;  %v13561_v7 = vld [vmem:[#allocation6 + $0x1ec] sm:$0xf0] }
 0x42e   :  { %v13908_v49 = vld [vmem:[#allocation6 + $0xccc] sm:$0xf]  ;;  %v12074_v62 = vor.u32 %v13844_v13, %v12071_v46  ;;  %v11437_v13 = vld [vmem:[#allocation6 + $0x5d0] sm:$0xf]  ;;  %v10926_v41 = vor.u32 %v13561_v7, %v10925_v42 }
 0x42f   :  { %v12327_v57 = vld [vmem:[#allocation6 + $0xce8] sm:$0xf0]  ;;  %7551 = vmatpush.bf16.msrb.mxu2 %v12362_v43  ;;  %7526 = vmatpush.bf16.msrb.mxu0 %v11818_v60  ;;  %v11181_v43 = vld [vmem:[#allocation6 + $0x3d0] sm:$0xf] }
 0x430   :  { %v12330_v0 = vor.u32 %v13908_v49, %v12327_v57  ;;  %v13772_v33 = vld [vmem:[#allocation6 + $0x88c] sm:$0xf]  ;;  %v13689_v1 = vld [vmem:[#allocation6 + $0x5ec] sm:$0xf0]  ;;  %v11182_v60 = vor.u32 %v13625_v55, %v11181_v43 }
 0x431   :  { %v11783_v48 = vld [vmem:[#allocation6 + $0x8a8] sm:$0xf0]  ;;  %7539 = vmatpush.bf16.msrb.mxu1 %v12074_v62  ;;  %7462 = vmatpush.bf16.msrb.mxu3 %v12550_v45  ;;  %v11438_v38 = vor.u32 %v13689_v1, %v11437_v13  ;;  %v10893_v62 = vld [vmem:[#allocation6 + $0x190] sm:$0xf] }
 0x432   :  { %v13836_v5 = vld [vmem:[#allocation6 + $0xa8c] sm:$0xf]  ;;  %v11786_v6 = vor.u32 %v13772_v33, %v11783_v48  ;;  %v13617_v48 = vld [vmem:[#allocation6 + $0x3ac] sm:$0xf0] }
 0x433   :  { %v12039_v10 = vld [vmem:[#allocation6 + $0xaa8] sm:$0xf0]  ;;  %7552 = vmatpush.bf16.msrb.mxu2 %v12330_v0  ;;  %v13553_v0 = vld [vmem:[#allocation6 + $0x1ac] sm:$0xf0]  ;;  %v7299_v17 = vpop.f32.mrf.mxu2  ;;  %v11150_v18 = vor.u32 %v13617_v48, %v11149_v3 }
 0x434   :  { %v13900_v44 = vld [vmem:[#allocation6 + $0xc8c] sm:$0xf]  ;;  %v12042_v25 = vor.u32 %v13836_v5, %v12039_v10  ;;  %7527 = vmatpush.bf16.msrb.mxu0 %v11786_v6  ;;  %v11405_v5 = vld [vmem:[#allocation6 + $0x590] sm:$0xf] }
 0x435   :  { %v12295_v16 = vld [vmem:[#allocation6 + $0xca8] sm:$0xf0]  ;;  %7463 = vmatpush.bf16.msrb.mxu3 %v12518_v24  ;;  %v13681_v45 = vld [vmem:[#allocation6 + $0x5ac] sm:$0xf0] }
 0x436   :  { %v12298_v21 = vor.u32 %v13900_v44, %v12295_v16  ;;  %v13764_v22 = vld [vmem:[#allocation6 + $0x84c] sm:$0xf]  ;;  %7540 = vmatpush.bf16.msrb.mxu1 %v12042_v25  ;;  %v10894_v16 = vor.u32 %v13553_v0, %v10893_v62  ;;  %v11406_v50 = vor.u32 %v13681_v45, %v11405_v5  ;;  %v13545_v6 = vld [vmem:[#allocation6 + $0x16c] sm:$0xf0] }
 0x437   :  { %v11751_v11 = vld [vmem:[#allocation6 + $0x868] sm:$0xf0]  ;;  %v11117_v25 = vld [vmem:[#allocation6 + $0x350] sm:$0xf] }
 0x438   :  { %v13828_v23 = vld [vmem:[#allocation6 + $0xa4c] sm:$0xf]  ;;  %v11754_v30 = vor.u32 %v13764_v22, %v11751_v11  ;;  %7553 = vmatpush.bf16.msrb.mxu2 %v12298_v21  ;;  %v13609_v22 = vld [vmem:[#allocation6 + $0x36c] sm:$0xf0] }
 0x439   :  { %v12007_v2 = vld [vmem:[#allocation6 + $0xa68] sm:$0xf0]  ;;  %7464 = vmatpush.bf16.msrb.mxu3 %v12486_v36  ;;  %v11373_v11 = vld [vmem:[#allocation6 + $0x550] sm:$0xf] }
 0x43a   :  { %v13892_v26 = vld [vmem:[#allocation6 + $0xc4c] sm:$0xf]  ;;  %v12010_v32 = vor.u32 %v13828_v23, %v12007_v2  ;;  %7528 = vmatpush.bf16.msrb.mxu0 %v11754_v30  ;;  %v13673_v23 = vld [vmem:[#allocation6 + $0x56c] sm:$0xf0] }
 0x43b   :  { %v12263_v27 = vld [vmem:[#allocation6 + $0xc68] sm:$0xf0]  ;;  %v11374_v63 = vor.u32 %v13673_v23, %v11373_v11  ;;  %v13537_v30 = vld [vmem:[#allocation6 + $0x12c] sm:$0xf0]  ;;  %v14572_v19 = vpop.f32.mrf.mxu1 }
 0x43c   :  { %v13748_v31 = vld [vmem:[#allocation6 + $0x7cc] sm:$0xf]  ;;  %v12266_v8 = vor.u32 %v13892_v26, %v12263_v27  ;;  %7541 = vmatpush.bf16.msrb.mxu1 %v12010_v32  ;;  %7465 = vmatmul.bf16.vlgmr.msrb.gmra.mxu3 %v14537_v54  ;;  %v10862_v26 = vor.u32 %v13545_v6, %v10861_v61  ;;  %v11118_v27 = vor.u32 %v13609_v22, %v11117_v25  ;;  %v13601_v32 = vld [vmem:[#allocation6 + $0x32c] sm:$0xf0] }
 0x43d   :  { %v11687_v37 = vld [vmem:[#allocation6 + $0x7e8] sm:$0xf0]  ;;  %v13529_v42 = vld [vmem:[#allocation6 + $0xec] sm:$0xf0] }
 0x43e   :  { %v13756_v47 = vld [vmem:[#allocation6 + $0x80c] sm:$0xf]  ;;  %v11690_v15 = vor.u32 %v13748_v31, %v11687_v37  ;;  %7554 = vmatpush.bf16.msrb.mxu2 %v12266_v8  ;;  %v11085_v31 = vld [vmem:[#allocation6 + $0x310] sm:$0xf] }
 0x43f   :  { %v11719_v40 = vld [vmem:[#allocation6 + $0x828] sm:$0xf0]  ;;  %v11341_v8 = vld [vmem:[#allocation6 + $0x510] sm:$0xf] }
 0x440   :  { %v13820_v34 = vld [vmem:[#allocation6 + $0xa0c] sm:$0xf]  ;;  %v11722_v56 = vor.u32 %v13756_v47, %v11719_v40  ;;  %7509 = vmatpush.bf16.msra.mxu3 %v11690_v15  ;;  %v13665_v47 = vld [vmem:[#allocation6 + $0x52c] sm:$0xf0]  ;;  %v14570_v40 = vpop.f32.mrf.mxu0 }
 0x441   :  { %v11975_v9 = vld [vmem:[#allocation6 + $0xa28] sm:$0xf0]  ;;  %v10797_v15 = vld [vmem:[#allocation6 + $0xd0] sm:$0xf] }
 0x442   :  { %v13884_v29 = vld [vmem:[#allocation6 + $0xc0c] sm:$0xf]  ;;  %v11978_v46 = vor.u32 %v13820_v34, %v11975_v9  ;;  %7529 = vmatpush.bf16.msrb.mxu0 %v11722_v56  ;;  %v10830_v9 = vor.u32 %v13537_v30, %v10829_v28  ;;  %v11053_v7 = vld [vmem:[#allocation6 + $0x2d0] sm:$0xf] }
 0x443   :  { %v12231_v4 = vld [vmem:[#allocation6 + $0xc28] sm:$0xf0]  ;;  %v13593_v56 = vld [vmem:[#allocation6 + $0x2ec] sm:$0xf0]  ;;  %v14574_v62 = vpop.f32.mrf.mxu2 }
 0x444   :  { %v13740_v49 = vld [vmem:[#allocation6 + $0x78c] sm:$0xf]  ;;  %v12234_v58 = vor.u32 %v13884_v29, %v12231_v4  ;;  %7542 = vmatpush.bf16.msrb.mxu1 %v11978_v46  ;;  %v11086_v29 = vor.u32 %v13601_v32, %v11085_v31  ;;  %v11342_v4 = vor.u32 %v13665_v47, %v11341_v8  ;;  %v11309_v55 = vld [vmem:[#allocation6 + $0x4d0] sm:$0xf] }
 0x445   :  { %v11655_v57 = vld [vmem:[#allocation6 + $0x7a8] sm:$0xf0]  ;;  %7530 = vmatmul.bf16.vlgmr.msrb.gmra.mxu0 %v14507_v51  ;;  %v13657_v13 = vld [vmem:[#allocation6 + $0x4ec] sm:$0xf0] }
 0x446   :  { %v11658_v33 = vor.u32 %v13740_v49, %v11655_v57  ;;  %v13732_v10 = vld [vmem:[#allocation6 + $0x74c] sm:$0xf]  ;;  %7555 = vmatpush.bf16.msrb.mxu2 %v12234_v58  ;;  %7574 = vmatpush.bf16.msra.mxu0 %v10926_v41  ;;  %v10798_v49 = vor.u32 %v13529_v42, %v10797_v15  ;;  %v11054_v57 = vor.u32 %v13593_v56, %v11053_v7  ;;  %v10765_v41 = vld [vmem:[#allocation6 + $0x90] sm:$0xf] }
 0x447   :  { %v11623_v44 = vld [vmem:[#allocation6 + $0x768] sm:$0xf0]  ;;  %7543 = vmatmul.bf16.vlgmr.msrb.gmra.mxu1 %v14509_v53  ;;  %v11310_v58 = vor.u32 %v13657_v13, %v11309_v55  ;;  %v13585_v3 = vld [vmem:[#allocation6 + $0x2ac] sm:$0xf0] }
 0x448   :  { %7587 = vmatpush.bf16.msra.mxu1 %v11182_v60  ;;  %7510 = vmatpush.bf16.msra.mxu3 %v11658_v33  ;;  %v11626_v21 = vor.u32 %v13732_v10, %v11623_v44  ;;  %v13724_v24 = vld [vmem:[#allocation6 + $0x70c] sm:$0xf]  ;;  %v13521_v60 = vld [vmem:[#allocation6 + $0xac] sm:$0xf0]  ;;  %v7325_v5 = vpop.f32.mrf.mxu0  ;;  %v7338_v44 = vpop.f32.mrf.mxu1 }
 0x449   :  { %7556 = vmatmul.bf16.vlgmr.msrb.gmra.mxu2 %v14515_v20  ;;  %v11591_v2 = vld [vmem:[#allocation6 + $0x728] sm:$0xf0]  ;;  %v11277_v33 = vld [vmem:[#allocation6 + $0x490] sm:$0xf] }
 0x44a   :  { %7600 = vmatpush.bf16.msra.mxu2 %v11438_v38  ;;  %7575 = vmatpush.bf16.msra.mxu0 %v10894_v16  ;;  %v11594_v37 = vor.u32 %v13724_v24, %v11591_v2  ;;  %v13716_v34 = vld [vmem:[#allocation6 + $0x6cc] sm:$0xf]  ;;  %v11021_v38 = vld [vmem:[#allocation6 + $0x290] sm:$0xf]  ;;  %v10766_v16 = vor.u32 %v13521_v60, %v10765_v41 }
 0x44b   :  { %v11559_v36 = vld [vmem:[#allocation6 + $0x6e8] sm:$0xf0]  ;;  %v13649_v48 = vld [vmem:[#allocation6 + $0x4ac] sm:$0xf0]  ;;  %v11022_v17 = vor.u32 %v13585_v3, %v11021_v38  ;;  %v7351_v32 = vpop.f32.mrf.mxu2 }
 0x44c   :  { %7588 = vmatpush.bf16.msra.mxu1 %v11150_v18  ;;  %7511 = vmatpush.bf16.msra.mxu3 %v11626_v21  ;;  %v11562_v43 = vor.u32 %v13716_v34, %v11559_v36  ;;  %v13708_v1 = vld [vmem:[#allocation6 + $0x68c] sm:$0xf]  ;;  %v11278_v18 = vor.u32 %v13649_v48, %v11277_v33  ;;  %v13513_v61 = vld [vmem:[#allocation6 + $0x6c] sm:$0xf0] }
 0x44d   :  { %v11527_v46 = vld [vmem:[#allocation6 + $0x6a8] sm:$0xf0]  ;;  %v10989_v6 = vld [vmem:[#allocation6 + $0x250] sm:$0xf] }
 0x44e   :  { %7601 = vmatpush.bf16.msra.mxu2 %v11406_v50  ;;  %7576 = vmatpush.bf16.msra.mxu0 %v10862_v26  ;;  %v11530_v0 = vor.u32 %v13708_v1, %v11527_v46  ;;  %v13700_v45 = vld [vmem:[#allocation6 + $0x64c] sm:$0xf]  ;;  %v10733_v50 = vld [vmem:[#allocation6 + $0x50] sm:$0xf] }
 0x44f   :  { %v11495_v10 = vld [vmem:[#allocation6 + $0x668] sm:$0xf0]  ;;  %v13577_v21 = vld [vmem:[#allocation6 + $0x26c] sm:$0xf0]  ;;  %v10734_v2 = vor.u32 %v13513_v61, %v10733_v50 }
 0x450   :  { %7589 = vmatpush.bf16.msra.mxu1 %v11118_v27  ;;  %7512 = vmatpush.bf16.msra.mxu3 %v11594_v37  ;;  %v11498_v25 = vor.u32 %v13700_v45, %v11495_v10  ;;  %v11245_v22 = vld [vmem:[#allocation6 + $0x450] sm:$0xf]  ;;  %v13692_v23 = vld [vmem:[#allocation6 + $0x60c] sm:$0xf] }
 0x451   :  { %v13641_v11 = vld [vmem:[#allocation6 + $0x46c] sm:$0xf0]  ;;  %v11463_v24 = vld [vmem:[#allocation6 + $0x628] sm:$0xf0] }
 0x452   :  { %7602 = vmatpush.bf16.msra.mxu2 %v11374_v63  ;;  %7577 = vmatpush.bf16.msra.mxu0 %v10830_v9  ;;  %v14004_v26 = vld [vmem:[#allocation6 + $0xfcc] sm:$0xf]  ;;  %v10990_v63 = vor.u32 %v13577_v21, %v10989_v6  ;;  %v11246_v28 = vor.u32 %v13641_v11, %v11245_v22  ;;  %v10701_v30 = vld [vmem:[#allocation6 + $0x10] sm:$0xf]  ;;  %v11466_v8 = vor.u32 %v13692_v23, %v11463_v24  ;;  %v14580_v24 = vld [vmem:[#allocation7] sm:$0xff] }
 0x453   :  { %v12711_v27 = vld [vmem:[#allocation6 + $0xfe8] sm:$0xf0]  ;;  %v13505_v31 = vld [vmem:[#allocation6 + $0x2c] sm:$0xf0] }
 0x454   :  { %7590 = vmatpush.bf16.msra.mxu1 %v11086_v29  ;;  %7513 = vmatpush.bf16.msra.mxu3 %v11562_v43  ;;  %v10957_v37 = vld [vmem:[#allocation6 + $0x210] sm:$0xf]  ;;  %v12714_v9 = vor.u32 %v14004_v26, %v12711_v27  ;;  %v10702_v42 = vor.u32 %v13505_v31, %v10701_v30  ;;  %v13996_v13 = vld [vmem:[#allocation6 + $0xf8c] sm:$0xf] }
 0x455   :  { %v13569_v47 = vld [vmem:[#allocation6 + $0x22c] sm:$0xf0]  ;;  %v12679_v1 = vld [vmem:[#allocation6 + $0xfa8] sm:$0xf0] }
 0x456   :  { %7603 = vmatpush.bf16.msra.mxu2 %v11342_v4  ;;  %7578 = vmatpush.bf16.msra.mxu0 %v10798_v49  ;;  %v11213_v34 = vld [vmem:[#allocation6 + $0x410] sm:$0xf]  ;;  %v10958_v55 = vor.u32 %v13569_v47, %v10957_v37  ;;  %v13988_v5 = vld [vmem:[#allocation6 + $0xf4c] sm:$0xf] }
 0x457   :  { %v13633_v36 = vld [vmem:[#allocation6 + $0x42c] sm:$0xf0]  ;;  %v12647_v45 = vld [vmem:[#allocation6 + $0xf68] sm:$0xf0] }
 0x458   :  { %7591 = vmatpush.bf16.msra.mxu1 %v11054_v57  ;;  %7514 = vmatpush.bf16.msra.mxu3 %v11530_v0  ;;  %v11949_v29 = vld [vmem:[#allocation6 + $0x9d0] sm:$0xf]  ;;  %v11214_v46 = vor.u32 %v13633_v36, %v11213_v34  ;;  %v12682_v0 = vor.u32 %v13996_v13, %v12679_v1  ;;  %v12650_v61 = vor.u32 %v13988_v5, %v12647_v45  ;;  %v13980_v22 = vld [vmem:[#allocation6 + $0xf0c] sm:$0xf]  ;;  %v7258_v34 = vpop.f32.mrf.mxu3 }
 0x459   :  { %v13817_v4 = vld [vmem:[#allocation6 + $0x9ec] sm:$0xf0]  ;;  %v12615_v11 = vld [vmem:[#allocation6 + $0xf28] sm:$0xf0]  ;;  %v7375_v47 = vpop.f32.mrf.mxu0 }
 0x45a   :  { %7604 = vmatpush.bf16.msra.mxu2 %v11310_v58  ;;  %7579 = vmatpush.bf16.msra.mxu0 %v10766_v16  ;;  %v12205_v15 = vld [vmem:[#allocation6 + $0xbd0] sm:$0xf]  ;;  %v11950_v49 = vor.u32 %v13817_v4, %v11949_v29  ;;  %v12618_v31 = vor.u32 %v13980_v22, %v12615_v11  ;;  %v13972_v36 = vld [vmem:[#allocation6 + $0xecc] sm:$0xf] }
 0x45b   :  { %v13881_v7 = vld [vmem:[#allocation6 + $0xbec] sm:$0xf0]  ;;  %v7388_v4 = vpop.f32.mrf.mxu1 }
 0x45c   :  { %7592 = vmatpush.bf16.msra.mxu1 %v11022_v17  ;;  %7515 = vmatpush.bf16.msra.mxu3 %v11498_v25  ;;  %v12461_v43 = vld [vmem:[#allocation6 + $0xdd0] sm:$0xf]  ;;  %v12206_v57 = vor.u32 %v13881_v7, %v12205_v15  ;;  %v14584_v15 = vadd.f32 %v7258_v34, %v14562_v35 }
 0x45d   :  { %v13945_v56 = vld [vmem:[#allocation6 + $0xdec] sm:$0xf0] }
 0x45e   :  { %7605 = vmatpush.bf16.msra.mxu2 %v11278_v18  ;;  %7580 = vmatpush.bf16.msra.mxu0 %v10734_v2  ;;  %v12462_v58 = vor.u32 %v13945_v56, %v12461_v43  ;;  %v11917_v41 = vld [vmem:[#allocation6 + $0x990] sm:$0xf]  ;;  %v4584_v2 = vperm.slane %v14580_v24, 2 }
 0x45f   :  { %v13809_v60 = vld [vmem:[#allocation6 + $0x9ac] sm:$0xf0] }
 0x460   :  { %7593 = vmatpush.bf16.msra.mxu1 %v10990_v63  ;;  %7516 = vmatpush.bf16.msra.mxu3 %v11466_v8  ;;  %v12173_v38 = vld [vmem:[#allocation6 + $0xb90] sm:$0xf]  ;;  %v11918_v10 = vor.u32 %v13809_v60, %v11917_v41  ;;  %v7376_v29 = vadd.f32 %v7375_v47, %v4584_v2  ;;  %v13964_v41 = vld [vmem:[#allocation6 + $0xe8c] sm:$0xf] }
 0x461   :  { %v13873_v3 = vld [vmem:[#allocation6 + $0xbac] sm:$0xf0]  ;;  %v12551_v60 = vld [vmem:[#allocation6 + $0xea8] sm:$0xf0] }
 0x462   :  { %7606 = vmatpush.bf16.msra.mxu2 %v11246_v28  ;;  %7581 = vmatpush.bf16.msra.mxu0 %v10702_v42  ;;  %v12429_v33 = vld [vmem:[#allocation6 + $0xd90] sm:$0xf]  ;;  %v12174_v44 = vor.u32 %v13873_v3, %v12173_v38  ;;  %v7389_v1 = vadd.f32 %v7388_v4, %v7376_v29  ;;  %v12554_v45 = vor.u32 %v13964_v41, %v12551_v60  ;;  %v11183_v60 = vld [vmem:[#allocation6 + $0x3f0] sm:$0xf0] }
 0x463   :  { %v13937_v48 = vld [vmem:[#allocation6 + $0xdac] sm:$0xf0]  ;;  %7517 = vmatmul.bf16.vlgmr.msra.gmra.mxu3 %v14481_v59  ;;  %v7401_v5 = vpop.f32.mrf.mxu2 }
 0x464   :  { %7561 = vmatpush.bf16.msrb.mxu3 %v12714_v9  ;;  %7594 = vmatpush.bf16.msra.mxu1 %v10958_v55  ;;  %v12430_v16 = vor.u32 %v13937_v48, %v12429_v33  ;;  %v11885_v17 = vld [vmem:[#allocation6 + $0x950] sm:$0xf]  ;;  %v12583_v9 = vld [vmem:[#allocation6 + $0xee8] sm:$0xf0] }
 0x465   :  { %v13801_v18 = vld [vmem:[#allocation6 + $0x96c] sm:$0xf0]  ;;  %7582 = vmatmul.bf16.vlgmr.msra.gmra.mxu0 %v14475_v12 }
 0x466   :  { %7607 = vmatpush.bf16.msra.mxu2 %v11214_v46  ;;  %7626 = vmatpush.bf16.msrb.mxu0 %v11950_v49  ;;  %v12141_v50 = vld [vmem:[#allocation6 + $0xb50] sm:$0xf]  ;;  %v11886_v23 = vor.u32 %v13801_v18, %v11885_v17  ;;  %v12586_v46 = vor.u32 %v13972_v36, %v12583_v9  ;;  %v14586_v17 = vadd.f32 %v7401_v5, %v7389_v1  ;;  %v7377_v18 = vpop.f32.mrf.mxu0 }
 0x467   :  { %v13865_v6 = vld [vmem:[#allocation6 + $0xb6c] sm:$0xf0]  ;;  %7595 = vmatmul.bf16.vlgmr.msra.gmra.mxu1 %v14477_v14  ;;  %v10895_v18 = vld [vmem:[#allocation6 + $0x1b0] sm:$0xf0] }
 0x468   :  { %7639 = vmatpush.bf16.msrb.mxu1 %v12206_v57  ;;  %7562 = vmatpush.bf16.msrb.mxu3 %v12682_v0  ;;  %v12397_v25 = vld [vmem:[#allocation6 + $0xd50] sm:$0xf]  ;;  %v12142_v26 = vor.u32 %v13865_v6, %v12141_v50  ;;  %v7260_v50 = vpop.f32.mrf.mxu3  ;;  %v12519_v6 = vld [vmem:[#allocation6 + $0xe68] sm:$0xf0] }
 0x469   :  { %v13929_v21 = vld [vmem:[#allocation6 + $0xd6c] sm:$0xf0]  ;;  %7608 = vmatmul.bf16.vlgmr.msra.gmra.mxu2 %v14479_v52 }
 0x46a   :  { %7652 = vmatpush.bf16.msrb.mxu2 %v12462_v58  ;;  %7627 = vmatpush.bf16.msrb.mxu0 %v11918_v10  ;;  %v12398_v27 = vor.u32 %v13929_v21, %v12397_v25  ;;  %v11853_v63 = vld [vmem:[#allocation6 + $0x910] sm:$0xf]  ;;  %v7390_v25 = vpop.f32.mrf.mxu1 }
 0x46b   :  { %v13793_v28 = vld [vmem:[#allocation6 + $0x92c] sm:$0xf0]  ;;  %v11407_v25 = vld [vmem:[#allocation6 + $0x5b0] sm:$0xf0] }
 0x46c   :  { %7640 = vmatpush.bf16.msrb.mxu1 %v12174_v44  ;;  %v12109_v30 = vld [vmem:[#allocation6 + $0xb10] sm:$0xf]  ;;  %7563 = vmatpush.bf16.msrb.mxu3 %v12650_v61  ;;  %v11854_v42 = vor.u32 %v13793_v28, %v11853_v63  ;;  %v13956_v61 = vld [vmem:[#allocation6 + $0xe4c] sm:$0xf] }
 0x46d   :  { %v13857_v37 = vld [vmem:[#allocation6 + $0xb2c] sm:$0xf0] }
 0x46e   :  { %7653 = vmatpush.bf16.msrb.mxu2 %v12430_v16  ;;  %v12365_v32 = vld [vmem:[#allocation6 + $0xd10] sm:$0xf]  ;;  %7628 = vmatpush.bf16.msrb.mxu0 %v11886_v23  ;;  %v12110_v7 = vor.u32 %v13857_v37, %v12109_v30  ;;  %v12487_v37 = vld [vmem:[#allocation6 + $0xe28] sm:$0xf0] }
 0x46f   :  { %v13921_v8 = vld [vmem:[#allocation6 + $0xd2c] sm:$0xf0] }
 0x470   :  { %7641 = vmatpush.bf16.msrb.mxu1 %v12142_v26  ;;  %v12366_v43 = vor.u32 %v13921_v8, %v12365_v32  ;;  %v11821_v56 = vld [vmem:[#allocation6 + $0x8d0] sm:$0xf]  ;;  %7564 = vmatpush.bf16.msrb.mxu3 %v12618_v31  ;;  %v13948_v31 = vld [vmem:[#allocation6 + $0xe0c] sm:$0xf]  ;;  %v7310_v1 = vpop.f32.mrf.mxu3 }
 0x471   :  { %v13785_v55 = vld [vmem:[#allocation6 + $0x8ec] sm:$0xf0] }
 0x472   :  { %7654 = vmatpush.bf16.msrb.mxu2 %v12398_v27  ;;  %v12077_v13 = vld [vmem:[#allocation6 + $0xad0] sm:$0xf]  ;;  %7629 = vmatpush.bf16.msrb.mxu0 %v11854_v42  ;;  %v11822_v38 = vor.u32 %v13785_v55, %v11821_v56  ;;  %v12522_v27 = vor.u32 %v13956_v61, %v12519_v6  ;;  %v7403_v42 = vpop.f32.mrf.mxu2  ;;  %v11151_v61 = vld [vmem:[#allocation6 + $0x3b0] sm:$0xf0] }
 0x473   :  { %v13849_v49 = vld [vmem:[#allocation6 + $0xaec] sm:$0xf0]  ;;  %v13677_v6 = vld [vmem:[#allocation6 + $0x594] sm:$0xf] }
 0x474   :  { %v12333_v57 = vld [vmem:[#allocation6 + $0xcd0] sm:$0xf]  ;;  %7642 = vmatpush.bf16.msrb.mxu1 %v12110_v7  ;;  %v12078_v35 = vor.u32 %v13849_v49, %v12077_v13  ;;  %7565 = vmatpush.bf16.msrb.mxu3 %v12586_v46  ;;  %v12490_v7 = vor.u32 %v13948_v31, %v12487_v37  ;;  %v13557_v46 = vld [vmem:[#allocation6 + $0x1d4] sm:$0xf] }
 0x475   :  { %v13913_v58 = vld [vmem:[#allocation6 + $0xcec] sm:$0xf0]  ;;  %v10927_v49 = vld [vmem:[#allocation6 + $0x1f0] sm:$0xf0] }
 0x476   :  { %7655 = vmatpush.bf16.msrb.mxu2 %v12366_v43  ;;  %v12334_v0 = vor.u32 %v13913_v58, %v12333_v57  ;;  %v11789_v3 = vld [vmem:[#allocation6 + $0x890] sm:$0xf]  ;;  %7630 = vmatpush.bf16.msrb.mxu0 %v11822_v38  ;;  %v13621_v57 = vld [vmem:[#allocation6 + $0x3d4] sm:$0xf]  ;;  %v7311_v58 = vadd.f32 %v7310_v1, %v14564_v39 }
 0x477   :  { %v13777_v33 = vld [vmem:[#allocation6 + $0x8ac] sm:$0xf0]  ;;  %v13685_v38 = vld [vmem:[#allocation6 + $0x5d4] sm:$0xf] }
 0x478   :  { %v12045_v48 = vld [vmem:[#allocation6 + $0xa90] sm:$0xf]  ;;  %v11790_v21 = vor.u32 %v13777_v33, %v11789_v3  ;;  %7643 = vmatpush.bf16.msrb.mxu1 %v12078_v35  ;;  %7566 = vmatpush.bf16.msrb.mxu3 %v12554_v45  ;;  %v11439_v35 = vld [vmem:[#allocation6 + $0x5f0] sm:$0xf0]  ;;  %v10930_v45 = vor.u32 %v13557_v46, %v10927_v49 }
 0x479   :  { %v13841_v10 = vld [vmem:[#allocation6 + $0xaac] sm:$0xf0]  ;;  %v13613_v39 = vld [vmem:[#allocation6 + $0x394] sm:$0xf] }
 0x47a   :  { %v12301_v44 = vld [vmem:[#allocation6 + $0xc90] sm:$0xf]  ;;  %7656 = vmatpush.bf16.msrb.mxu2 %v12334_v0  ;;  %v12046_v22 = vor.u32 %v13841_v10, %v12045_v48  ;;  %7631 = vmatpush.bf16.msrb.mxu0 %v11790_v21  ;;  %v7324_v48 = vadd.f32 %v14570_v40, %v7311_v58  ;;  %v11186_v10 = vor.u32 %v13621_v57, %v11183_v60  ;;  %v11119_v31 = vld [vmem:[#allocation6 + $0x370] sm:$0xf0] }
 0x47b   :  { %v13905_v16 = vld [vmem:[#allocation6 + $0xcac] sm:$0xf0]  ;;  %v13669_v37 = vld [vmem:[#allocation6 + $0x554] sm:$0xf] }
 0x47c   :  { %v12302_v11 = vor.u32 %v13905_v16, %v12301_v44  ;;  %v11757_v23 = vld [vmem:[#allocation6 + $0x850] sm:$0xf]  ;;  %7644 = vmatpush.bf16.msrb.mxu1 %v12046_v22  ;;  %7567 = vmatpush.bf16.msrb.mxu3 %v12522_v27  ;;  %v11442_v44 = vor.u32 %v13685_v38, %v11439_v35  ;;  %v13549_v16 = vld [vmem:[#allocation6 + $0x194] sm:$0xf]  ;;  %v7337_v21 = vadd.f32 %v14572_v19, %v7324_v48  ;;  %v7312_v27 = vpop.f32.mrf.mxu3 }
 0x47d   :  { %v13769_v2 = vld [vmem:[#allocation6 + $0x86c] sm:$0xf0]  ;;  %v14598_v46 = vpop.f32.mrf.mxu1  ;;  %v10799_v60 = vld [vmem:[#allocation6 + $0xf0] sm:$0xf0] }
 0x47e   :  { %v12013_v26 = vld [vmem:[#allocation6 + $0xa50] sm:$0xf]  ;;  %v11758_v32 = vor.u32 %v13769_v2, %v11757_v23  ;;  %7657 = vmatpush.bf16.msrb.mxu2 %v12302_v11  ;;  %v10898_v11 = vor.u32 %v13549_v16, %v10895_v18  ;;  %v7350_v23 = vadd.f32 %v14574_v62, %v7337_v21  ;;  %v11154_v2 = vor.u32 %v13613_v39, %v11151_v61  ;;  %v13589_v38 = vld [vmem:[#allocation6 + $0x2d4] sm:$0xf] }
 0x47f   :  { %v13833_v63 = vld [vmem:[#allocation6 + $0xa6c] sm:$0xf0]  ;;  %v13517_v39 = vld [vmem:[#allocation6 + $0x94] sm:$0xf] }
 0x480   :  { %v12269_v28 = vld [vmem:[#allocation6 + $0xc50] sm:$0xf]  ;;  %v12014_v34 = vor.u32 %v13833_v63, %v12013_v26  ;;  %7632 = vmatpush.bf16.msrb.mxu0 %v11758_v32  ;;  %7568 = vmatpush.bf16.msrb.mxu3 %v12490_v7  ;;  %v11410_v26 = vor.u32 %v13677_v6, %v11407_v25  ;;  %v13541_v63 = vld [vmem:[#allocation6 + $0x154] sm:$0xf] }
 0x481   :  { %v13897_v30 = vld [vmem:[#allocation6 + $0xc6c] sm:$0xf0]  ;;  %v11375_v32 = vld [vmem:[#allocation6 + $0x570] sm:$0xf0] }
 0x482   :  { %v11693_v8 = vld [vmem:[#allocation6 + $0x7d0] sm:$0xf]  ;;  %v12270_v36 = vor.u32 %v13897_v30, %v12269_v28  ;;  %7645 = vmatpush.bf16.msrb.mxu1 %v12014_v34  ;;  %v10863_v28 = vld [vmem:[#allocation6 + $0x170] sm:$0xf0] }
 0x483   :  { %v13753_v47 = vld [vmem:[#allocation6 + $0x7ec] sm:$0xf0]  ;;  %7569 = vmatmul.bf16.vlgmr.msrb.gmra.mxu3 %v14537_v54  ;;  %v13605_v30 = vld [vmem:[#allocation6 + $0x354] sm:$0xf] }
 0x484   :  { %v11725_v9 = vld [vmem:[#allocation6 + $0x810] sm:$0xf]  ;;  %v11694_v13 = vor.u32 %v13753_v47, %v11693_v8  ;;  %7658 = vmatpush.bf16.msrb.mxu2 %v12270_v36  ;;  %v10866_v47 = vor.u32 %v13541_v63, %v10863_v28  ;;  %v11122_v34 = vor.u32 %v13605_v30, %v11119_v31  ;;  %v11378_v36 = vor.u32 %v13669_v37, %v11375_v32  ;;  %v11087_v7 = vld [vmem:[#allocation6 + $0x330] sm:$0xf0]  ;;  %v7362_v48 = vpop.f32.mrf.mxu3 }
 0x485   :  { %v13761_v29 = vld [vmem:[#allocation6 + $0x82c] sm:$0xf0]  ;;  %v13581_v61 = vld [vmem:[#allocation6 + $0x294] sm:$0xf]  ;;  %v14602_v6 = vpop.f32.mrf.mxu2 }
 0x486   :  { %v11981_v4 = vld [vmem:[#allocation6 + $0xa10] sm:$0xf]  ;;  %v11726_v41 = vor.u32 %v13761_v29, %v11725_v9  ;;  %7613 = vmatpush.bf16.msra.mxu3 %v11694_v13  ;;  %v13533_v9 = vld [vmem:[#allocation6 + $0x114] sm:$0xf] }
 0x487   :  { %v13825_v43 = vld [vmem:[#allocation6 + $0xa2c] sm:$0xf0]  ;;  %v10831_v29 = vld [vmem:[#allocation6 + $0x130] sm:$0xf0] }
 0x488   :  { %v12237_v56 = vld [vmem:[#allocation6 + $0xc10] sm:$0xf]  ;;  %v11982_v0 = vor.u32 %v13825_v43, %v11981_v4  ;;  %7633 = vmatpush.bf16.msrb.mxu0 %v11726_v41  ;;  %v13597_v4 = vld [vmem:[#allocation6 + $0x314] sm:$0xf]  ;;  %v10834_v49 = vor.u32 %v13533_v9, %v10831_v29 }
 0x489   :  { %v13889_v55 = vld [vmem:[#allocation6 + $0xc2c] sm:$0xf0]  ;;  %v13661_v43 = vld [vmem:[#allocation6 + $0x514] sm:$0xf]  ;;  %v11090_v57 = vor.u32 %v13597_v4, %v11087_v7 }
 0x48a   :  { %v11661_v3 = vld [vmem:[#allocation6 + $0x790] sm:$0xf]  ;;  %v12238_v5 = vor.u32 %v13889_v55, %v12237_v56  ;;  %7646 = vmatpush.bf16.msrb.mxu1 %v11982_v0  ;;  %v11343_v56 = vld [vmem:[#allocation6 + $0x530] sm:$0xf0]  ;;  %v14596_v55 = vpop.f32.mrf.mxu0 }
 0x48b   :  { %v13745_v33 = vld [vmem:[#allocation6 + $0x7ac] sm:$0xf0]  ;;  %7634 = vmatmul.bf16.vlgmr.msrb.gmra.mxu0 %v14507_v51  ;;  %v11346_v58 = vor.u32 %v13661_v43, %v11343_v56  ;;  %v13525_v41 = vld [vmem:[#allocation6 + $0xd4] sm:$0xf] }
 0x48c   :  { %v11662_v50 = vor.u32 %v13745_v33, %v11661_v3  ;;  %v11629_v22 = vld [vmem:[#allocation6 + $0x750] sm:$0xf]  ;;  %7659 = vmatpush.bf16.msrb.mxu2 %v12238_v5  ;;  %7678 = vmatpush.bf16.msra.mxu0 %v10930_v45  ;;  %v11055_v0 = vld [vmem:[#allocation6 + $0x2f0] sm:$0xf0] }
 0x48d   :  { %v13737_v40 = vld [vmem:[#allocation6 + $0x76c] sm:$0xf0]  ;;  %7647 = vmatmul.bf16.vlgmr.msrb.gmra.mxu1 %v14509_v53  ;;  %v13653_v3 = vld [vmem:[#allocation6 + $0x4d4] sm:$0xf]  ;;  %v11058_v16 = vor.u32 %v13589_v38, %v11055_v0 }
 0x48e   :  { %7691 = vmatpush.bf16.msra.mxu1 %v11186_v10  ;;  %7614 = vmatpush.bf16.msra.mxu3 %v11662_v50  ;;  %v11630_v19 = vor.u32 %v13737_v40, %v11629_v22  ;;  %v11597_v62 = vld [vmem:[#allocation6 + $0x710] sm:$0xf]  ;;  %v11311_v33 = vld [vmem:[#allocation6 + $0x4f0] sm:$0xf0]  ;;  %v14600_v10 = vadd.f32 %v7362_v48, %v7350_v23  ;;  %v7442_v23 = vpop.f32.mrf.mxu1 }
 0x48f   :  { %7660 = vmatmul.bf16.vlgmr.msrb.gmra.mxu2 %v14515_v20  ;;  %v13729_v8 = vld [vmem:[#allocation6 + $0x72c] sm:$0xf0]  ;;  %v11314_v18 = vor.u32 %v13653_v3, %v11311_v33  ;;  %v10767_v50 = vld [vmem:[#allocation6 + $0xb0] sm:$0xf0] }
 0x490   :  { %7704 = vmatpush.bf16.msra.mxu2 %v11442_v44  ;;  %7679 = vmatpush.bf16.msra.mxu0 %v10898_v11  ;;  %v11598_v42 = vor.u32 %v13729_v8, %v11597_v62  ;;  %v11565_v13 = vld [vmem:[#allocation6 + $0x6d0] sm:$0xf]  ;;  %v10802_v44 = vor.u32 %v13525_v41, %v10799_v60  ;;  %v11023_v21 = vld [vmem:[#allocation6 + $0x2b0] sm:$0xf0]  ;;  %v10770_v27 = vor.u32 %v13517_v39, %v10767_v50 }
 0x491   :  { %v13721_v1 = vld [vmem:[#allocation6 + $0x6ec] sm:$0xf0]  ;;  %v13645_v22 = vld [vmem:[#allocation6 + $0x494] sm:$0xf]  ;;  %v11026_v63 = vor.u32 %v13581_v61, %v11023_v21 }
 0x492   :  { %7692 = vmatpush.bf16.msra.mxu1 %v11154_v2  ;;  %7615 = vmatpush.bf16.msra.mxu3 %v11630_v19  ;;  %v11566_v35 = vor.u32 %v13721_v1, %v11565_v13  ;;  %v11533_v5 = vld [vmem:[#allocation6 + $0x690] sm:$0xf]  ;;  %v11279_v40 = vld [vmem:[#allocation6 + $0x4b0] sm:$0xf0]  ;;  %v7429_v11 = vpop.f32.mrf.mxu0  ;;  %v7455_v1 = vpop.f32.mrf.mxu2 }
 0x493   :  { %v13713_v45 = vld [vmem:[#allocation6 + $0x6ac] sm:$0xf0]  ;;  %v11282_v28 = vor.u32 %v13645_v22, %v11279_v40  ;;  %v13509_v30 = vld [vmem:[#allocation6 + $0x54] sm:$0xf] }
 0x494   :  { %7705 = vmatpush.bf16.msra.mxu2 %v11410_v26  ;;  %7680 = vmatpush.bf16.msra.mxu0 %v10866_v47  ;;  %v11534_v25 = vor.u32 %v13713_v45, %v11533_v5  ;;  %v11501_v2 = vld [vmem:[#allocation6 + $0x650] sm:$0xf]  ;;  %v10735_v19 = vld [vmem:[#allocation6 + $0x70] sm:$0xf0]  ;;  %v7364_v47 = vpop.f32.mrf.mxu3 }
 0x495   :  { %v13705_v26 = vld [vmem:[#allocation6 + $0x66c] sm:$0xf0]  ;;  %v13573_v31 = vld [vmem:[#allocation6 + $0x254] sm:$0xf]  ;;  %v10738_v9 = vor.u32 %v13509_v30, %v10735_v19 }
 0x496   :  { %7693 = vmatpush.bf16.msra.mxu1 %v11122_v34  ;;  %7616 = vmatpush.bf16.msra.mxu3 %v11598_v42  ;;  %v11502_v37 = vor.u32 %v13705_v26, %v11501_v2  ;;  %v10991_v32 = vld [vmem:[#allocation6 + $0x270] sm:$0xf0]  ;;  %v11469_v34 = vld [vmem:[#allocation6 + $0x610] sm:$0xf] }
 0x497   :  { %v13637_v62 = vld [vmem:[#allocation6 + $0x454] sm:$0xf]  ;;  %v12717_v29 = vld [vmem:[#allocation6 + $0xfd0] sm:$0xf]  ;;  %v10994_v42 = vor.u32 %v13573_v31, %v10991_v32 }
 0x498   :  { %7706 = vmatpush.bf16.msra.mxu2 %v11378_v36  ;;  %7681 = vmatpush.bf16.msra.mxu0 %v10834_v49  ;;  %v11247_v8 = vld [vmem:[#allocation6 + $0x470] sm:$0xf0]  ;;  %v13697_v36 = vld [vmem:[#allocation6 + $0x62c] sm:$0xf0] }
 0x499   :  { %v14009_v4 = vld [vmem:[#allocation6 + $0xfec] sm:$0xf0]  ;;  %v11250_v7 = vor.u32 %v13637_v62, %v11247_v8  ;;  %v13501_v43 = vld [vmem:[#allocation6 + $0x14] sm:$0xf]  ;;  %v11470_v49 = vor.u32 %v13697_v36, %v11469_v34 }
 0x49a   :  { %7694 = vmatpush.bf16.msra.mxu1 %v11090_v57  ;;  %7617 = vmatpush.bf16.msra.mxu3 %v11566_v35  ;;  %v10703_v56 = vld [vmem:[#allocation6 + $0x30] sm:$0xf0]  ;;  %v12718_v60 = vor.u32 %v14009_v4, %v12717_v29  ;;  %v12653_v23 = vld [vmem:[#allocation6 + $0xf50] sm:$0xf]  ;;  %v4585_v29 = vperm.slane %v14580_v24, 3 }
 0x49b   :  { %v13565_v13 = vld [vmem:[#allocation6 + $0x214] sm:$0xf]  ;;  %v10706_v3 = vor.u32 %v13501_v43, %v10703_v56  ;;  %v12621_v34 = vld [vmem:[#allocation6 + $0xf10] sm:$0xf] }
 0x49c   :  { %7707 = vmatpush.bf16.msra.mxu2 %v11346_v58  ;;  %7682 = vmatpush.bf16.msra.mxu0 %v10802_v44  ;;  %v10959_v57 = vld [vmem:[#allocation6 + $0x230] sm:$0xf0]  ;;  %v12685_v44 = vld [vmem:[#allocation6 + $0xf90] sm:$0xf] }
 0x49d   :  { %v13629_v58 = vld [vmem:[#allocation6 + $0x414] sm:$0xf]  ;;  %v10962_v45 = vor.u32 %v13565_v13, %v10959_v57  ;;  %v13985_v36 = vld [vmem:[#allocation6 + $0xf2c] sm:$0xf0] }
 0x49e   :  { %7695 = vmatpush.bf16.msra.mxu1 %v11058_v16  ;;  %7618 = vmatpush.bf16.msra.mxu3 %v11534_v25  ;;  %v11215_v41 = vld [vmem:[#allocation6 + $0x430] sm:$0xf0]  ;;  %v14001_v16 = vld [vmem:[#allocation6 + $0xfac] sm:$0xf0]  ;;  %v12622_v13 = vor.u32 %v13985_v36, %v12621_v34 }
 0x49f   :  { %v13813_v38 = vld [vmem:[#allocation6 + $0x9d4] sm:$0xf]  ;;  %v12686_v40 = vor.u32 %v14001_v16, %v12685_v44  ;;  %v7414_v16 = vpop.f32.mrf.mxu3 }
 0x4a0   :  { %7708 = vmatpush.bf16.msra.mxu2 %v11314_v18  ;;  %7683 = vmatpush.bf16.msra.mxu0 %v10770_v27  ;;  %v11951_v35 = vld [vmem:[#allocation6 + $0x9f0] sm:$0xf0]  ;;  %v11218_v18 = vor.u32 %v13629_v58, %v11215_v41  ;;  %v13993_v27 = vld [vmem:[#allocation6 + $0xf6c] sm:$0xf0]  ;;  %v7479_v58 = vpop.f32.mrf.mxu0 }
 0x4a1   :  { %v13877_v0 = vld [vmem:[#allocation6 + $0xbd4] sm:$0xf]  ;;  %v11954_v39 = vor.u32 %v13813_v38, %v11951_v35  ;;  %v12654_v32 = vor.u32 %v13993_v27, %v12653_v23  ;;  %v12589_v41 = vld [vmem:[#allocation6 + $0xed0] sm:$0xf]  ;;  %v7480_v38 = vadd.f32 %v7479_v58, %v4585_v29  ;;  %v7492_v35 = vpop.f32.mrf.mxu1 }
 0x4a2   :  { %7696 = vmatpush.bf16.msra.mxu1 %v11026_v63  ;;  %7619 = vmatpush.bf16.msra.mxu3 %v11502_v37  ;;  %v12207_v33 = vld [vmem:[#allocation6 + $0xbf0] sm:$0xf0] }
 0x4a3   :  { %v13941_v48 = vld [vmem:[#allocation6 + $0xdd4] sm:$0xf]  ;;  %v12210_v50 = vor.u32 %v13877_v0, %v12207_v33 }
 0x4a4   :  { %7709 = vmatpush.bf16.msra.mxu2 %v11282_v28  ;;  %7684 = vmatpush.bf16.msra.mxu0 %v10738_v9  ;;  %v12463_v5 = vld [vmem:[#allocation6 + $0xdf0] sm:$0xf0] }
 0x4a5   :  { %v12466_v61 = vor.u32 %v13941_v48, %v12463_v5  ;;  %v13805_v25 = vld [vmem:[#allocation6 + $0x994] sm:$0xf] }
 0x4a6   :  { %7697 = vmatpush.bf16.msra.mxu1 %v10994_v42  ;;  %7620 = vmatpush.bf16.msra.mxu3 %v11470_v49  ;;  %v11919_v21 = vld [vmem:[#allocation6 + $0x9b0] sm:$0xf0] }
 0x4a7   :  { %v13869_v22 = vld [vmem:[#allocation6 + $0xb94] sm:$0xf]  ;;  %v11922_v63 = vor.u32 %v13805_v25, %v11919_v21  ;;  %v12557_v25 = vld [vmem:[#allocation6 + $0xe90] sm:$0xf] }
 0x4a8   :  { %7710 = vmatpush.bf16.msra.mxu2 %v11250_v7  ;;  %7685 = vmatpush.bf16.msra.mxu0 %v10706_v3  ;;  %v12175_v11 = vld [vmem:[#allocation6 + $0xbb0] sm:$0xf0]  ;;  %v13969_v21 = vld [vmem:[#allocation6 + $0xeac] sm:$0xf0] }
 0x4a9   :  { %v13933_v2 = vld [vmem:[#allocation6 + $0xd94] sm:$0xf]  ;;  %7621 = vmatmul.bf16.vlgmr.msra.gmra.mxu3 %v14481_v59  ;;  %v12178_v28 = vor.u32 %v13869_v22, %v12175_v11 }
 0x4aa   :  { %7665 = vmatpush.bf16.msrb.mxu3 %v12718_v60  ;;  %v12431_v26 = vld [vmem:[#allocation6 + $0xdb0] sm:$0xf0]  ;;  %7698 = vmatpush.bf16.msra.mxu1 %v10962_v45  ;;  %v13977_v60 = vld [vmem:[#allocation6 + $0xeec] sm:$0xf0]  ;;  %v7493_v45 = vadd.f32 %v7492_v35, %v7480_v38 }
 0x4ab   :  { %v12434_v30 = vor.u32 %v13933_v2, %v12431_v26  ;;  %v13797_v19 = vld [vmem:[#allocation6 + $0x954] sm:$0xf]  ;;  %7686 = vmatmul.bf16.vlgmr.msra.gmra.mxu0 %v14475_v12  ;;  %v12590_v44 = vor.u32 %v13977_v60, %v12589_v41 }
 0x4ac   :  { %7711 = vmatpush.bf16.msra.mxu2 %v11218_v18  ;;  %7730 = vmatpush.bf16.msrb.mxu0 %v11954_v39  ;;  %v11887_v31 = vld [vmem:[#allocation6 + $0x970] sm:$0xf0] }
 0x4ad   :  { %v13861_v37 = vld [vmem:[#allocation6 + $0xb54] sm:$0xf]  ;;  %7699 = vmatmul.bf16.vlgmr.msra.gmra.mxu1 %v14477_v14  ;;  %v11890_v9 = vor.u32 %v13797_v19, %v11887_v31 }
 0x4ae   :  { %7743 = vmatpush.bf16.msrb.mxu1 %v12210_v50  ;;  %7666 = vmatpush.bf16.msrb.mxu3 %v12686_v40  ;;  %v12143_v62 = vld [vmem:[#allocation6 + $0xb70] sm:$0xf0] }
 0x4af   :  { %v13925_v8 = vld [vmem:[#allocation6 + $0xd54] sm:$0xf]  ;;  %7712 = vmatmul.bf16.vlgmr.msra.gmra.mxu2 %v14479_v52  ;;  %v12146_v4 = vor.u32 %v13861_v37, %v12143_v62  ;;  %v7481_v37 = vpop.f32.mrf.mxu0  ;;  %v13961_v62 = vld [vmem:[#allocation6 + $0xe6c] sm:$0xf0] }
 0x4b0   :  { %7756 = vmatpush.bf16.msrb.mxu2 %v12466_v61  ;;  %v12399_v47 = vld [vmem:[#allocation6 + $0xd70] sm:$0xf0]  ;;  %7731 = vmatpush.bf16.msrb.mxu0 %v11922_v63  ;;  %v7415_v61 = vadd.f32 %v7414_v16, %v14586_v17  ;;  %v7505_v63 = vpop.f32.mrf.mxu2  ;;  %v13562_v16 = vld [vmem:[#allocation6 + $0x1f4] sm:$0xf0] }
 0x4b1   :  { %v12402_v42 = vor.u32 %v13925_v8, %v12399_v47  ;;  %v13789_v7 = vld [vmem:[#allocation6 + $0x914] sm:$0xf]  ;;  %v14611_v17 = vadd.f32 %v7505_v63, %v7493_v45  ;;  %v13554_v63 = vld [vmem:[#allocation6 + $0x1b4] sm:$0xf0] }
 0x4b2   :  { %7744 = vmatpush.bf16.msrb.mxu1 %v12178_v28  ;;  %v11855_v43 = vld [vmem:[#allocation6 + $0x930] sm:$0xf0]  ;;  %7667 = vmatpush.bf16.msrb.mxu3 %v12654_v32  ;;  %v7428_v40 = vadd.f32 %v14596_v55, %v7415_v61  ;;  %v12558_v28 = vor.u32 %v13969_v21, %v12557_v25  ;;  %v12525_v32 = vld [vmem:[#allocation6 + $0xe50] sm:$0xf]  ;;  %v7494_v55 = vpop.f32.mrf.mxu1  ;;  %v11445_v61 = vld [vmem:[#allocation6 + $0x5d8] sm:$0xf] }
 0x4b3   :  { %v13853_v56 = vld [vmem:[#allocation6 + $0xb14] sm:$0xf]  ;;  %v11858_v0 = vor.u32 %v13789_v7, %v11855_v43  ;;  %v12526_v7 = vor.u32 %v13961_v62, %v12525_v32  ;;  %v7416_v43 = vpop.f32.mrf.mxu3  ;;  %v13690_v25 = vld [vmem:[#allocation6 + $0x5f4] sm:$0xf0] }
 0x4b4   :  { %7757 = vmatpush.bf16.msrb.mxu2 %v12434_v30  ;;  %v12111_v1 = vld [vmem:[#allocation6 + $0xb30] sm:$0xf0]  ;;  %7732 = vmatpush.bf16.msrb.mxu0 %v11890_v9  ;;  %v7441_v8 = vadd.f32 %v14598_v46, %v7428_v40  ;;  %v12493_v46 = vld [vmem:[#allocation6 + $0xe10] sm:$0xf]  ;;  %v13682_v37 = vld [vmem:[#allocation6 + $0x5b4] sm:$0xf0] }
 0x4b5   :  { %v13917_v49 = vld [vmem:[#allocation6 + $0xd14] sm:$0xf]  ;;  %v12114_v24 = vor.u32 %v13853_v56, %v12111_v1  ;;  %v13674_v43 = vld [vmem:[#allocation6 + $0x574] sm:$0xf0] }
 0x4b6   :  { %v12367_v57 = vld [vmem:[#allocation6 + $0xd30] sm:$0xf0]  ;;  %7745 = vmatpush.bf16.msrb.mxu1 %v12146_v4  ;;  %7668 = vmatpush.bf16.msrb.mxu3 %v12622_v13 }
 0x4b7   :  { %v12370_v3 = vor.u32 %v13917_v49, %v12367_v57  ;;  %v13781_v33 = vld [vmem:[#allocation6 + $0x8d4] sm:$0xf]  ;;  %v13953_v49 = vld [vmem:[#allocation6 + $0xe2c] sm:$0xf0] }
 0x4b8   :  { %7758 = vmatpush.bf16.msrb.mxu2 %v12402_v42  ;;  %v11823_v48 = vld [vmem:[#allocation6 + $0x8f0] sm:$0xf0]  ;;  %7733 = vmatpush.bf16.msrb.mxu0 %v11858_v0  ;;  %v14615_v42 = vadd.f32 %v14602_v6, %v7441_v8 }
 0x4b9   :  { %v13845_v5 = vld [vmem:[#allocation6 + $0xad4] sm:$0xf]  ;;  %v11826_v22 = vor.u32 %v13781_v33, %v11823_v48 }
 0x4ba   :  { %v12079_v18 = vld [vmem:[#allocation6 + $0xaf0] sm:$0xf0]  ;;  %7746 = vmatpush.bf16.msrb.mxu1 %v12114_v24  ;;  %7669 = vmatpush.bf16.msrb.mxu3 %v12590_v44  ;;  %v7507_v24 = vpop.f32.mrf.mxu2  ;;  %v10933_v44 = vld [vmem:[#allocation6 + $0x1d8] sm:$0xf] }
 0x4bb   :  { %v13909_v39 = vld [vmem:[#allocation6 + $0xcd4] sm:$0xf]  ;;  %v12082_v11 = vor.u32 %v13845_v5, %v12079_v18  ;;  %v11189_v18 = vld [vmem:[#allocation6 + $0x3d8] sm:$0xf] }
 0x4bc   :  { %v12335_v50 = vld [vmem:[#allocation6 + $0xcf0] sm:$0xf0]  ;;  %7759 = vmatpush.bf16.msrb.mxu2 %v12370_v3  ;;  %7734 = vmatpush.bf16.msrb.mxu0 %v11826_v22  ;;  %v12494_v3 = vor.u32 %v13953_v49, %v12493_v46 }
 0x4bd   :  { %v12338_v2 = vor.u32 %v13909_v39, %v12335_v50  ;;  %v13773_v26 = vld [vmem:[#allocation6 + $0x894] sm:$0xf]  ;;  %v13626_v50 = vld [vmem:[#allocation6 + $0x3f4] sm:$0xf0] }
 0x4be   :  { %v11791_v23 = vld [vmem:[#allocation6 + $0x8b0] sm:$0xf0]  ;;  %7747 = vmatpush.bf16.msrb.mxu1 %v12082_v11  ;;  %7670 = vmatpush.bf16.msrb.mxu3 %v12558_v28  ;;  %v11157_v28 = vld [vmem:[#allocation6 + $0x398] sm:$0xf] }
 0x4bf   :  { %v13837_v27 = vld [vmem:[#allocation6 + $0xa94] sm:$0xf]  ;;  %v11794_v47 = vor.u32 %v13773_v26, %v11791_v23  ;;  %v11190_v26 = vor.u32 %v13626_v50, %v11189_v18  ;;  %v11446_v23 = vor.u32 %v13690_v25, %v11445_v61  ;;  %v11061_v18 = vld [vmem:[#allocation6 + $0x2d8] sm:$0xf]  ;;  %v7466_v50 = vpop.f32.mrf.mxu3 }
 0x4c0   :  { %v12047_v30 = vld [vmem:[#allocation6 + $0xab0] sm:$0xf0]  ;;  %7760 = vmatpush.bf16.msrb.mxu2 %v12338_v2  ;;  %v10934_v2 = vor.u32 %v13562_v16, %v10933_v44  ;;  %v10805_v44 = vld [vmem:[#allocation6 + $0xd8] sm:$0xf] }
 0x4c1   :  { %v13901_v19 = vld [vmem:[#allocation6 + $0xc94] sm:$0xf]  ;;  %v12050_v34 = vor.u32 %v13837_v27, %v12047_v30  ;;  %7735 = vmatpush.bf16.msrb.mxu0 %v11794_v47  ;;  %v10901_v27 = vld [vmem:[#allocation6 + $0x198] sm:$0xf] }
 0x4c2   :  { %v12303_v31 = vld [vmem:[#allocation6 + $0xcb0] sm:$0xf0]  ;;  %7671 = vmatpush.bf16.msrb.mxu3 %v12526_v7  ;;  %v10902_v8 = vor.u32 %v13554_v63, %v10901_v27  ;;  %v11381_v7 = vld [vmem:[#allocation6 + $0x558] sm:$0xf] }
 0x4c3   :  { %v12306_v36 = vor.u32 %v13901_v19, %v12303_v31  ;;  %v13765_v9 = vld [vmem:[#allocation6 + $0x854] sm:$0xf]  ;;  %7748 = vmatpush.bf16.msrb.mxu1 %v12050_v34  ;;  %v13618_v19 = vld [vmem:[#allocation6 + $0x3b4] sm:$0xf0]  ;;  %v11382_v49 = vor.u32 %v13674_v43, %v11381_v7 }
 0x4c4   :  { %v11759_v29 = vld [vmem:[#allocation6 + $0x870] sm:$0xf0]  ;;  %v11413_v31 = vld [vmem:[#allocation6 + $0x598] sm:$0xf]  ;;  %v11158_v55 = vor.u32 %v13618_v19, %v11157_v28 }
 0x4c5   :  { %v13829_v4 = vld [vmem:[#allocation6 + $0xa54] sm:$0xf]  ;;  %v11762_v57 = vor.u32 %v13765_v9, %v11759_v29  ;;  %7761 = vmatpush.bf16.msrb.mxu2 %v12306_v36  ;;  %v11414_v47 = vor.u32 %v13682_v37, %v11413_v31  ;;  %v10869_v34 = vld [vmem:[#allocation6 + $0x158] sm:$0xf] }
 0x4c6   :  { %v12015_v56 = vld [vmem:[#allocation6 + $0xa70] sm:$0xf0]  ;;  %7672 = vmatpush.bf16.msrb.mxu3 %v12494_v3  ;;  %v13546_v36 = vld [vmem:[#allocation6 + $0x174] sm:$0xf0] }
 0x4c7   :  { %v13893_v13 = vld [vmem:[#allocation6 + $0xc54] sm:$0xf]  ;;  %v12018_v60 = vor.u32 %v13829_v4, %v12015_v56  ;;  %7736 = vmatpush.bf16.msrb.mxu0 %v11762_v57  ;;  %v11125_v9 = vld [vmem:[#allocation6 + $0x358] sm:$0xf]  ;;  %v7468_v43 = vpop.f32.mrf.mxu3 }
 0x4c8   :  { %v12271_v1 = vld [vmem:[#allocation6 + $0xc70] sm:$0xf0]  ;;  %v13610_v4 = vld [vmem:[#allocation6 + $0x374] sm:$0xf0] }
 0x4c9   :  { %v13749_v58 = vld [vmem:[#allocation6 + $0x7d4] sm:$0xf]  ;;  %v12274_v38 = vor.u32 %v13893_v13, %v12271_v1  ;;  %7749 = vmatpush.bf16.msrb.mxu1 %v12018_v60  ;;  %7673 = vmatmul.bf16.vlgmr.msrb.gmra.mxu3 %v14537_v54  ;;  %v10870_v1 = vor.u32 %v13546_v36, %v10869_v34  ;;  %v11126_v46 = vor.u32 %v13610_v4, %v11125_v9  ;;  %v10837_v57 = vld [vmem:[#allocation6 + $0x118] sm:$0xf] }
 0x4ca   :  { %v11695_v41 = vld [vmem:[#allocation6 + $0x7f0] sm:$0xf0]  ;;  %v13530_v16 = vld [vmem:[#allocation6 + $0xf4] sm:$0xf0] }
 0x4cb   :  { %v13757_v35 = vld [vmem:[#allocation6 + $0x814] sm:$0xf]  ;;  %v11698_v45 = vor.u32 %v13749_v58, %v11695_v41  ;;  %7762 = vmatpush.bf16.msrb.mxu2 %v12274_v38  ;;  %v13538_v58 = vld [vmem:[#allocation6 + $0x134] sm:$0xf0] }
 0x4cc   :  { %v11727_v0 = vld [vmem:[#allocation6 + $0x830] sm:$0xf0]  ;;  %v11093_v41 = vld [vmem:[#allocation6 + $0x318] sm:$0xf] }
 0x4cd   :  { %v13821_v6 = vld [vmem:[#allocation6 + $0xa14] sm:$0xf]  ;;  %v11730_v39 = vor.u32 %v13757_v35, %v11727_v0  ;;  %7717 = vmatpush.bf16.msra.mxu3 %v11698_v45  ;;  %v13602_v38 = vld [vmem:[#allocation6 + $0x334] sm:$0xf0] }
 0x4ce   :  { %v11983_v33 = vld [vmem:[#allocation6 + $0xa30] sm:$0xf0]  ;;  %v11349_v35 = vld [vmem:[#allocation6 + $0x518] sm:$0xf] }
 0x4cf   :  { %v13885_v48 = vld [vmem:[#allocation6 + $0xc14] sm:$0xf]  ;;  %v11986_v21 = vor.u32 %v13821_v6, %v11983_v33  ;;  %7737 = vmatpush.bf16.msrb.mxu0 %v11730_v39  ;;  %v13666_v0 = vld [vmem:[#allocation6 + $0x534] sm:$0xf0]  ;;  %v14621_v6 = vpop.f32.mrf.mxu0  ;;  %v14623_v33 = vpop.f32.mrf.mxu1 }
 0x4d0   :  { %v12239_v5 = vld [vmem:[#allocation6 + $0xc30] sm:$0xf0]  ;;  %v11350_v45 = vor.u32 %v13666_v0, %v11349_v35  ;;  %v13594_v61 = vld [vmem:[#allocation6 + $0x2f4] sm:$0xf0] }
 0x4d1   :  { %v13741_v22 = vld [vmem:[#allocation6 + $0x794] sm:$0xf]  ;;  %v12242_v11 = vor.u32 %v13885_v48, %v12239_v5  ;;  %7750 = vmatpush.bf16.msrb.mxu1 %v11986_v21  ;;  %v10838_v48 = vor.u32 %v13538_v58, %v10837_v57  ;;  %v11094_v5 = vor.u32 %v13602_v38, %v11093_v41  ;;  %v11317_v25 = vld [vmem:[#allocation6 + $0x4d8] sm:$0xf] }
 0x4d2   :  { %v11663_v40 = vld [vmem:[#allocation6 + $0x7b0] sm:$0xf0]  ;;  %7738 = vmatmul.bf16.vlgmr.msrb.gmra.mxu0 %v14507_v51  ;;  %v13658_v21 = vld [vmem:[#allocation6 + $0x4f4] sm:$0xf0] }
 0x4d3   :  { %v11666_v30 = vor.u32 %v13741_v22, %v11663_v40  ;;  %v13733_v32 = vld [vmem:[#allocation6 + $0x754] sm:$0xf]  ;;  %7763 = vmatpush.bf16.msrb.mxu2 %v12242_v11  ;;  %7782 = vmatpush.bf16.msra.mxu0 %v10934_v2  ;;  %v14626_v22 = vadd.f32 %v7466_v50, %v14615_v42  ;;  %v10806_v2 = vor.u32 %v13530_v16, %v10805_v44  ;;  %v10773_v27 = vld [vmem:[#allocation6 + $0x98] sm:$0xf] }
 0x4d4   :  { %v11631_v62 = vld [vmem:[#allocation6 + $0x770] sm:$0xf0]  ;;  %7751 = vmatmul.bf16.vlgmr.msrb.gmra.mxu1 %v14509_v53  ;;  %v13522_v63 = vld [vmem:[#allocation6 + $0xb4] sm:$0xf0] }
 0x4d5   :  { %7795 = vmatpush.bf16.msra.mxu1 %v11190_v26  ;;  %7718 = vmatpush.bf16.msra.mxu3 %v11666_v30  ;;  %v11634_v29 = vor.u32 %v13733_v32, %v11631_v62  ;;  %v13725_v56 = vld [vmem:[#allocation6 + $0x714] sm:$0xf]  ;;  %v11062_v26 = vor.u32 %v13594_v61, %v11061_v18  ;;  %v11029_v28 = vld [vmem:[#allocation6 + $0x298] sm:$0xf]  ;;  %v14628_v30 = vpop.f32.mrf.mxu2 }
 0x4d6   :  { %7764 = vmatmul.bf16.vlgmr.msrb.gmra.mxu2 %v14515_v20  ;;  %v11599_v13 = vld [vmem:[#allocation6 + $0x730] sm:$0xf0]  ;;  %v13586_v31 = vld [vmem:[#allocation6 + $0x2b4] sm:$0xf0] }
 0x4d7   :  { %7808 = vmatpush.bf16.msra.mxu2 %v11446_v23  ;;  %7783 = vmatpush.bf16.msra.mxu0 %v10902_v8  ;;  %v11602_v60 = vor.u32 %v13725_v56, %v11599_v13  ;;  %v13717_v24 = vld [vmem:[#allocation6 + $0x6d4] sm:$0xf]  ;;  %v11318_v23 = vor.u32 %v13658_v21, %v11317_v25  ;;  %v11285_v37 = vld [vmem:[#allocation6 + $0x498] sm:$0xf]  ;;  %v7533_v42 = vpop.f32.mrf.mxu0  ;;  %v11030_v34 = vor.u32 %v13586_v31, %v11029_v28 }
 0x4d8   :  { %v11567_v3 = vld [vmem:[#allocation6 + $0x6f0] sm:$0xf0]  ;;  %v13650_v32 = vld [vmem:[#allocation6 + $0x4b4] sm:$0xf0] }
 0x4d9   :  { %7796 = vmatpush.bf16.msra.mxu1 %v11158_v55  ;;  %7719 = vmatpush.bf16.msra.mxu3 %v11634_v29  ;;  %v11570_v39 = vor.u32 %v13717_v24, %v11567_v3  ;;  %v13709_v40 = vld [vmem:[#allocation6 + $0x694] sm:$0xf]  ;;  %v7546_v55 = vpop.f32.mrf.mxu1  ;;  %v11286_v36 = vor.u32 %v13650_v32, %v11285_v37  ;;  %v10741_v9 = vld [vmem:[#allocation6 + $0x58] sm:$0xf] }
 0x4da   :  { %v11535_v11 = vld [vmem:[#allocation6 + $0x6b0] sm:$0xf0]  ;;  %v13514_v29 = vld [vmem:[#allocation6 + $0x74] sm:$0xf0] }
 0x4db   :  { %7809 = vmatpush.bf16.msra.mxu2 %v11414_v47  ;;  %7784 = vmatpush.bf16.msra.mxu0 %v10870_v1  ;;  %v11538_v19 = vor.u32 %v13709_v40, %v11535_v11  ;;  %v13701_v62 = vld [vmem:[#allocation6 + $0x654] sm:$0xf]  ;;  %v10774_v47 = vor.u32 %v13522_v63, %v10773_v27  ;;  %v10997_v4 = vld [vmem:[#allocation6 + $0x258] sm:$0xf]  ;;  %v10742_v57 = vor.u32 %v13514_v29, %v10741_v9 }
 0x4dc   :  { %v11503_v8 = vld [vmem:[#allocation6 + $0x670] sm:$0xf0]  ;;  %v13578_v56 = vld [vmem:[#allocation6 + $0x274] sm:$0xf0] }
 0x4dd   :  { %7797 = vmatpush.bf16.msra.mxu1 %v11126_v46  ;;  %7720 = vmatpush.bf16.msra.mxu3 %v11602_v60  ;;  %v11506_v7 = vor.u32 %v13701_v62, %v11503_v8  ;;  %v11253_v13 = vld [vmem:[#allocation6 + $0x458] sm:$0xf]  ;;  %v13693_v46 = vld [vmem:[#allocation6 + $0x614] sm:$0xf]  ;;  %v10998_v60 = vor.u32 %v13578_v56, %v10997_v4  ;;  %v7559_v3 = vpop.f32.mrf.mxu2 }
 0x4de   :  { %v13642_v1 = vld [vmem:[#allocation6 + $0x474] sm:$0xf0]  ;;  %v14005_v58 = vld [vmem:[#allocation6 + $0xfd4] sm:$0xf] }
 0x4df   :  { %7810 = vmatpush.bf16.msra.mxu2 %v11382_v49  ;;  %7785 = vmatpush.bf16.msra.mxu0 %v10838_v48  ;;  %v11471_v49 = vld [vmem:[#allocation6 + $0x630] sm:$0xf0]  ;;  %v11254_v38 = vor.u32 %v13642_v1, %v11253_v13  ;;  %v10709_v35 = vld [vmem:[#allocation6 + $0x18] sm:$0xf] }
 0x4e0   :  { %v12719_v41 = vld [vmem:[#allocation6 + $0xff0] sm:$0xf0]  ;;  %v13506_v0 = vld [vmem:[#allocation6 + $0x34] sm:$0xf0]  ;;  %v11474_v48 = vor.u32 %v13693_v46, %v11471_v49 }
 0x4e1   :  { %7798 = vmatpush.bf16.msra.mxu1 %v11094_v5  ;;  %7721 = vmatpush.bf16.msra.mxu3 %v11570_v39  ;;  %v10965_v24 = vld [vmem:[#allocation6 + $0x218] sm:$0xf]  ;;  %v12722_v16 = vor.u32 %v14005_v58, %v12719_v41  ;;  %v10710_v61 = vor.u32 %v13506_v0, %v10709_v35  ;;  %v13989_v55 = vld [vmem:[#allocation6 + $0xf54] sm:$0xf]  ;;  %v14634_v58 = vld [vmem:[#allocation7] sm:$0xff] }
 0x4e2   :  { %v13570_v5 = vld [vmem:[#allocation6 + $0x234] sm:$0xf0]  ;;  %v13981_v46 = vld [vmem:[#allocation6 + $0xf14] sm:$0xf]  ;;  %v4586_v41 = vperm.slane %v14634_v58, 4 }
 0x4e3   :  { %7811 = vmatpush.bf16.msra.mxu2 %v11350_v45  ;;  %7786 = vmatpush.bf16.msra.mxu0 %v10806_v2  ;;  %v11221_v45 = vld [vmem:[#allocation6 + $0x418] sm:$0xf]  ;;  %v10966_v11 = vor.u32 %v13570_v5, %v10965_v24  ;;  %v13997_v2 = vld [vmem:[#allocation6 + $0xf94] sm:$0xf] }
 0x4e4   :  { %v13634_v44 = vld [vmem:[#allocation6 + $0x434] sm:$0xf0]  ;;  %v12623_v49 = vld [vmem:[#allocation6 + $0xf30] sm:$0xf0] }
 0x4e5   :  { %7799 = vmatpush.bf16.msra.mxu1 %v11062_v26  ;;  %7722 = vmatpush.bf16.msra.mxu3 %v11538_v19  ;;  %v11957_v18 = vld [vmem:[#allocation6 + $0x9d8] sm:$0xf]  ;;  %v12687_v26 = vld [vmem:[#allocation6 + $0xfb0] sm:$0xf0]  ;;  %v12626_v3 = vor.u32 %v13981_v46, %v12623_v49 }
 0x4e6   :  { %v13818_v39 = vld [vmem:[#allocation6 + $0x9f4] sm:$0xf0]  ;;  %v12690_v32 = vor.u32 %v13997_v2, %v12687_v26 }
 0x4e7   :  { %7812 = vmatpush.bf16.msra.mxu2 %v11318_v23  ;;  %7787 = vmatpush.bf16.msra.mxu0 %v10774_v47  ;;  %v12213_v50 = vld [vmem:[#allocation6 + $0xbd8] sm:$0xf]  ;;  %v11222_v23 = vor.u32 %v13634_v44, %v11221_v45  ;;  %v11958_v27 = vor.u32 %v13818_v39, %v11957_v18  ;;  %v12655_v47 = vld [vmem:[#allocation6 + $0xf70] sm:$0xf0]  ;;  %v7583_v44 = vpop.f32.mrf.mxu0 }
 0x4e8   :  { %v13882_v25 = vld [vmem:[#allocation6 + $0xbf4] sm:$0xf0]  ;;  %v12658_v43 = vor.u32 %v13989_v55, %v12655_v47  ;;  %v12591_v18 = vld [vmem:[#allocation6 + $0xef0] sm:$0xf0]  ;;  %v7584_v39 = vadd.f32 %v7583_v44, %v4586_v41 }
 0x4e9   :  { %7800 = vmatpush.bf16.msra.mxu1 %v11030_v34  ;;  %7723 = vmatpush.bf16.msra.mxu3 %v11506_v7  ;;  %v12469_v21 = vld [vmem:[#allocation6 + $0xdd8] sm:$0xf]  ;;  %v12214_v63 = vor.u32 %v13882_v25, %v12213_v50  ;;  %v7596_v50 = vpop.f32.mrf.mxu1  ;;  %v12495_v44 = vld [vmem:[#allocation6 + $0xe30] sm:$0xf0] }
 0x4ea   :  { %v13946_v40 = vld [vmem:[#allocation6 + $0xdf4] sm:$0xf0]  ;;  %v7597_v26 = vadd.f32 %v7596_v50, %v7584_v39 }
 0x4eb   :  { %7813 = vmatpush.bf16.msra.mxu2 %v11286_v36  ;;  %7788 = vmatpush.bf16.msra.mxu0 %v10742_v57  ;;  %v12470_v28 = vor.u32 %v13946_v40, %v12469_v21  ;;  %v11925_v19 = vld [vmem:[#allocation6 + $0x998] sm:$0xf] }
 0x4ec   :  { %v13810_v31 = vld [vmem:[#allocation6 + $0x9b4] sm:$0xf0] }
 0x4ed   :  { %7801 = vmatpush.bf16.msra.mxu1 %v10998_v60  ;;  %7724 = vmatpush.bf16.msra.mxu3 %v11474_v48  ;;  %v12181_v37 = vld [vmem:[#allocation6 + $0xb98] sm:$0xf]  ;;  %v11926_v34 = vor.u32 %v13810_v31, %v11925_v19 }
 0x4ee   :  { %v13874_v42 = vld [vmem:[#allocation6 + $0xbb4] sm:$0xf0] }
 0x4ef   :  { %7814 = vmatpush.bf16.msra.mxu2 %v11254_v38  ;;  %7789 = vmatpush.bf16.msra.mxu0 %v10710_v61  ;;  %v12437_v62 = vld [vmem:[#allocation6 + $0xd98] sm:$0xf]  ;;  %v12182_v36 = vor.u32 %v13874_v42, %v12181_v37  ;;  %v13965_v37 = vld [vmem:[#allocation6 + $0xe94] sm:$0xf] }
 0x4f0   :  { %v13938_v8 = vld [vmem:[#allocation6 + $0xdb4] sm:$0xf0]  ;;  %7725 = vmatmul.bf16.vlgmr.msra.gmra.mxu3 %v14481_v59 }
 0x4f1   :  { %7769 = vmatpush.bf16.msrb.mxu3 %v12722_v16  ;;  %7802 = vmatpush.bf16.msra.mxu1 %v10966_v11  ;;  %v12438_v9 = vor.u32 %v13938_v8, %v12437_v62  ;;  %v11893_v29 = vld [vmem:[#allocation6 + $0x958] sm:$0xf]  ;;  %v13973_v16 = vld [vmem:[#allocation6 + $0xed4] sm:$0xf] }
 0x4f2   :  { %v13802_v4 = vld [vmem:[#allocation6 + $0x974] sm:$0xf0]  ;;  %7790 = vmatmul.bf16.vlgmr.msra.gmra.mxu0 %v14475_v12 }
 0x4f3   :  { %7815 = vmatpush.bf16.msra.mxu2 %v11222_v23  ;;  %7834 = vmatpush.bf16.msrb.mxu0 %v11958_v27  ;;  %v12149_v7 = vld [vmem:[#allocation6 + $0xb58] sm:$0xf]  ;;  %v11894_v57 = vor.u32 %v13802_v4, %v11893_v29  ;;  %v12594_v23 = vor.u32 %v13973_v16, %v12591_v18  ;;  %v7518_v27 = vpop.f32.mrf.mxu3 }
 0x4f4   :  { %v13866_v56 = vld [vmem:[#allocation6 + $0xb74] sm:$0xf0]  ;;  %7803 = vmatmul.bf16.vlgmr.msra.gmra.mxu1 %v14477_v14  ;;  %v7519_v31 = vadd.f32 %v7518_v27, %v14611_v17 }
 0x4f5   :  { %7847 = vmatpush.bf16.msrb.mxu1 %v12214_v63  ;;  %7770 = vmatpush.bf16.msrb.mxu3 %v12690_v32  ;;  %v12405_v13 = vld [vmem:[#allocation6 + $0xd58] sm:$0xf]  ;;  %v12150_v60 = vor.u32 %v13866_v56, %v12149_v7  ;;  %v12559_v32 = vld [vmem:[#allocation6 + $0xeb0] sm:$0xf0]  ;;  %v7585_v56 = vpop.f32.mrf.mxu0 }
 0x4f6   :  { %v13930_v1 = vld [vmem:[#allocation6 + $0xd74] sm:$0xf0]  ;;  %7816 = vmatmul.bf16.vlgmr.msra.gmra.mxu2 %v14479_v52  ;;  %v7532_v62 = vadd.f32 %v14621_v6, %v7519_v31  ;;  %v12562_v29 = vor.u32 %v13965_v37, %v12559_v32  ;;  %v7598_v6 = vpop.f32.mrf.mxu1  ;;  %v11191_v37 = vld [vmem:[#allocation6 + $0x3f8] sm:$0xf0] }
 0x4f7   :  { %7860 = vmatpush.bf16.msrb.mxu2 %v12470_v28  ;;  %7835 = vmatpush.bf16.msrb.mxu0 %v11926_v34  ;;  %v12406_v38 = vor.u32 %v13930_v1, %v12405_v13  ;;  %v11861_v35 = vld [vmem:[#allocation6 + $0x918] sm:$0xf]  ;;  %v13957_v13 = vld [vmem:[#allocation6 + $0xe54] sm:$0xf]  ;;  %v13686_v32 = vld [vmem:[#allocation6 + $0x5dc] sm:$0xf] }
 0x4f8   :  { %v13794_v0 = vld [vmem:[#allocation6 + $0x934] sm:$0xf0]  ;;  %v12527_v1 = vld [vmem:[#allocation6 + $0xe70] sm:$0xf0]  ;;  %v7545_v46 = vadd.f32 %v14623_v33, %v7532_v62  ;;  %v11159_v56 = vld [vmem:[#allocation6 + $0x3b8] sm:$0xf0] }
 0x4f9   :  { %7848 = vmatpush.bf16.msrb.mxu1 %v12182_v36  ;;  %v12117_v24 = vld [vmem:[#allocation6 + $0xb18] sm:$0xf]  ;;  %7771 = vmatpush.bf16.msrb.mxu3 %v12658_v43  ;;  %v11862_v61 = vor.u32 %v13794_v0, %v11861_v35  ;;  %v13949_v33 = vld [vmem:[#allocation6 + $0xe14] sm:$0xf] }
 0x4fa   :  { %v13858_v48 = vld [vmem:[#allocation6 + $0xb34] sm:$0xf0]  ;;  %v14643_v0 = vadd.f32 %v14628_v30, %v7545_v46 }
 0x4fb   :  { %7861 = vmatpush.bf16.msrb.mxu2 %v12438_v9  ;;  %v12373_v5 = vld [vmem:[#allocation6 + $0xd18] sm:$0xf]  ;;  %7836 = vmatpush.bf16.msrb.mxu0 %v11894_v57  ;;  %v12118_v25 = vor.u32 %v13858_v48, %v12117_v24  ;;  %v7609_v9 = vpop.f32.mrf.mxu2  ;;  %v12530_v24 = vor.u32 %v13957_v13, %v12527_v1  ;;  %v13678_v13 = vld [vmem:[#allocation6 + $0x59c] sm:$0xf] }
 0x4fc   :  { %v13922_v45 = vld [vmem:[#allocation6 + $0xd34] sm:$0xf0]  ;;  %v14639_v17 = vadd.f32 %v7609_v9, %v7597_v26  ;;  %v11415_v1 = vld [vmem:[#allocation6 + $0x5b8] sm:$0xf0] }
 0x4fd   :  { %7849 = vmatpush.bf16.msrb.mxu1 %v12150_v60  ;;  %v12374_v21 = vor.u32 %v13922_v45, %v12373_v5  ;;  %v11829_v40 = vld [vmem:[#allocation6 + $0x8d8] sm:$0xf]  ;;  %7772 = vmatpush.bf16.msrb.mxu3 %v12626_v3  ;;  %v7520_v3 = vpop.f32.mrf.mxu3 }
 0x4fe   :  { %v13786_v11 = vld [vmem:[#allocation6 + $0x8f4] sm:$0xf0]  ;;  %v11127_v3 = vld [vmem:[#allocation6 + $0x378] sm:$0xf0] }
 0x4ff   :  { %7862 = vmatpush.bf16.msrb.mxu2 %v12406_v38  ;;  %v12085_v2 = vld [vmem:[#allocation6 + $0xad8] sm:$0xf]  ;;  %7837 = vmatpush.bf16.msrb.mxu0 %v11862_v61  ;;  %v11830_v42 = vor.u32 %v13786_v11, %v11829_v40  ;;  %v12498_v11 = vor.u32 %v13949_v33, %v12495_v44 }
 0x500   :  { %v13850_v63 = vld [vmem:[#allocation6 + $0xaf4] sm:$0xf0] }
 0x501   :  { %v12341_v28 = vld [vmem:[#allocation6 + $0xcd8] sm:$0xf]  ;;  %7850 = vmatpush.bf16.msrb.mxu1 %v12118_v25  ;;  %v12086_v8 = vor.u32 %v13850_v63, %v12085_v2  ;;  %7773 = vmatpush.bf16.msrb.mxu3 %v12594_v23  ;;  %v13558_v63 = vld [vmem:[#allocation6 + $0x1dc] sm:$0xf] }
 0x502   :  { %v13914_v19 = vld [vmem:[#allocation6 + $0xcf4] sm:$0xf0] }
 0x503   :  { %7863 = vmatpush.bf16.msrb.mxu2 %v12374_v21  ;;  %v12342_v55 = vor.u32 %v13914_v19, %v12341_v28  ;;  %v11797_v47 = vld [vmem:[#allocation6 + $0x898] sm:$0xf]  ;;  %7838 = vmatpush.bf16.msrb.mxu0 %v11830_v42  ;;  %v7611_v40 = vpop.f32.mrf.mxu2  ;;  %v10935_v28 = vld [vmem:[#allocation6 + $0x1f8] sm:$0xf0] }
 0x504   :  { %v13778_v34 = vld [vmem:[#allocation6 + $0x8b4] sm:$0xf0]  ;;  %v13622_v19 = vld [vmem:[#allocation6 + $0x3dc] sm:$0xf] }
 0x505   :  { %v12053_v36 = vld [vmem:[#allocation6 + $0xa98] sm:$0xf]  ;;  %v11798_v49 = vor.u32 %v13778_v34, %v11797_v47  ;;  %7851 = vmatpush.bf16.msrb.mxu1 %v12086_v8  ;;  %7774 = vmatpush.bf16.msrb.mxu3 %v12562_v29  ;;  %v11447_v42 = vld [vmem:[#allocation6 + $0x5f8] sm:$0xf0]  ;;  %v10938_v34 = vor.u32 %v13558_v63, %v10935_v28 }
 0x506   :  { %v13842_v4 = vld [vmem:[#allocation6 + $0xab4] sm:$0xf0]  ;;  %v11450_v9 = vor.u32 %v13686_v32, %v11447_v42  ;;  %v13550_v29 = vld [vmem:[#allocation6 + $0x19c] sm:$0xf]  ;;  %v7570_v42 = vpop.f32.mrf.mxu3 }
 0x507   :  { %v12309_v7 = vld [vmem:[#allocation6 + $0xc98] sm:$0xf]  ;;  %7864 = vmatpush.bf16.msrb.mxu2 %v12342_v55  ;;  %v12054_v57 = vor.u32 %v13842_v4, %v12053_v36  ;;  %7839 = vmatpush.bf16.msrb.mxu0 %v11798_v49  ;;  %v11194_v36 = vor.u32 %v13622_v19, %v11191_v37  ;;  %v10903_v4 = vld [vmem:[#allocation6 + $0x1b8] sm:$0xf0] }
 0x508   :  { %v13906_v43 = vld [vmem:[#allocation6 + $0xcb4] sm:$0xf0]  ;;  %v10906_v49 = vor.u32 %v13550_v29, %v10903_v4  ;;  %v11351_v40 = vld [vmem:[#allocation6 + $0x538] sm:$0xf0] }
 0x509   :  { %v12310_v41 = vor.u32 %v13906_v43, %v12309_v7  ;;  %v11765_v60 = vld [vmem:[#allocation6 + $0x858] sm:$0xf]  ;;  %7852 = vmatpush.bf16.msrb.mxu1 %v12054_v57  ;;  %7775 = vmatpush.bf16.msrb.mxu3 %v12530_v24  ;;  %v13614_v7 = vld [vmem:[#allocation6 + $0x39c] sm:$0xf] }
 0x50a   :  { %v13770_v38 = vld [vmem:[#allocation6 + $0x874] sm:$0xf0]  ;;  %v11162_v57 = vor.u32 %v13614_v7, %v11159_v56  ;;  %v13526_v19 = vld [vmem:[#allocation6 + $0xdc] sm:$0xf] }
 0x50b   :  { %v12021_v35 = vld [vmem:[#allocation6 + $0xa58] sm:$0xf]  ;;  %v11766_v16 = vor.u32 %v13770_v38, %v11765_v60  ;;  %7865 = vmatpush.bf16.msrb.mxu2 %v12310_v41  ;;  %v11418_v41 = vor.u32 %v13678_v13, %v11415_v1  ;;  %v13542_v60 = vld [vmem:[#allocation6 + $0x15c] sm:$0xf] }
 0x50c   :  { %v13834_v48 = vld [vmem:[#allocation6 + $0xa74] sm:$0xf0]  ;;  %v10871_v38 = vld [vmem:[#allocation6 + $0x178] sm:$0xf0] }
 0x50d   :  { %v12277_v5 = vld [vmem:[#allocation6 + $0xc58] sm:$0xf]  ;;  %v12022_v50 = vor.u32 %v13834_v48, %v12021_v35  ;;  %7840 = vmatpush.bf16.msrb.mxu0 %v11766_v16  ;;  %7776 = vmatpush.bf16.msrb.mxu3 %v12498_v11  ;;  %v13606_v35 = vld [vmem:[#allocation6 + $0x35c] sm:$0xf]  ;;  %v10874_v44 = vor.u32 %v13542_v60, %v10871_v38  ;;  %v14649_v11 = vpop.f32.mrf.mxu0 }
 0x50e   :  { %v13898_v45 = vld [vmem:[#allocation6 + $0xc74] sm:$0xf0]  ;;  %v13670_v48 = vld [vmem:[#allocation6 + $0x55c] sm:$0xf]  ;;  %v11130_v16 = vor.u32 %v13606_v35, %v11127_v3 }
 0x50f   :  { %v11701_v18 = vld [vmem:[#allocation6 + $0x7d8] sm:$0xf]  ;;  %v12278_v61 = vor.u32 %v13898_v45, %v12277_v5  ;;  %7853 = vmatpush.bf16.msrb.mxu1 %v12022_v50  ;;  %v11383_v5 = vld [vmem:[#allocation6 + $0x578] sm:$0xf0] }
 0x510   :  { %v13754_v39 = vld [vmem:[#allocation6 + $0x7f4] sm:$0xf0]  ;;  %7777 = vmatmul.bf16.vlgmr.msrb.gmra.mxu3 %v14537_v54  ;;  %v10839_v50 = vld [vmem:[#allocation6 + $0x138] sm:$0xf0] }
 0x511   :  { %v11733_v25 = vld [vmem:[#allocation6 + $0x818] sm:$0xf]  ;;  %v11702_v27 = vor.u32 %v13754_v39, %v11701_v18  ;;  %7866 = vmatpush.bf16.msrb.mxu2 %v12278_v61  ;;  %v11386_v18 = vor.u32 %v13670_v48, %v11383_v5  ;;  %v13534_v39 = vld [vmem:[#allocation6 + $0x11c] sm:$0xf] }
 0x512   :  { %v13762_v21 = vld [vmem:[#allocation6 + $0x834] sm:$0xf0]  ;;  %v13598_v61 = vld [vmem:[#allocation6 + $0x31c] sm:$0xf]  ;;  %v14656_v13 = vpop.f32.mrf.mxu2 }
 0x513   :  { %v11989_v30 = vld [vmem:[#allocation6 + $0xa18] sm:$0xf]  ;;  %v11734_v31 = vor.u32 %v13762_v21, %v11733_v25  ;;  %7821 = vmatpush.bf16.msra.mxu3 %v11702_v27  ;;  %v11095_v21 = vld [vmem:[#allocation6 + $0x338] sm:$0xf0]  ;;  %v10842_v27 = vor.u32 %v13534_v39, %v10839_v50 }
 0x514   :  { %v13826_v2 = vld [vmem:[#allocation6 + $0xa34] sm:$0xf0]  ;;  %v11098_v63 = vor.u32 %v13598_v61, %v11095_v21  ;;  %v13590_v37 = vld [vmem:[#allocation6 + $0x2dc] sm:$0xf] }
 0x515   :  { %v12245_v26 = vld [vmem:[#allocation6 + $0xc18] sm:$0xf]  ;;  %v11990_v62 = vor.u32 %v13826_v2, %v11989_v30  ;;  %7841 = vmatpush.bf16.msrb.mxu0 %v11734_v31  ;;  %v13662_v30 = vld [vmem:[#allocation6 + $0x51c] sm:$0xf] }
 0x516   :  { %v13890_v23 = vld [vmem:[#allocation6 + $0xc34] sm:$0xf0]  ;;  %v11354_v28 = vor.u32 %v13662_v30, %v11351_v40  ;;  %v10807_v31 = vld [vmem:[#allocation6 + $0xf8] sm:$0xf0] }
 0x517   :  { %v11669_v8 = vld [vmem:[#allocation6 + $0x798] sm:$0xf]  ;;  %v12246_v47 = vor.u32 %v13890_v23, %v12245_v26  ;;  %7854 = vmatpush.bf16.msrb.mxu1 %v11990_v62  ;;  %v14651_v23 = vpop.f32.mrf.mxu1  ;;  %v11063_v62 = vld [vmem:[#allocation6 + $0x2f8] sm:$0xf0] }
 0x518   :  { %v13746_v55 = vld [vmem:[#allocation6 + $0x7b4] sm:$0xf0]  ;;  %7842 = vmatmul.bf16.vlgmr.msrb.gmra.mxu0 %v14507_v51  ;;  %v11066_v29 = vor.u32 %v13590_v37, %v11063_v62  ;;  %v13518_v7 = vld [vmem:[#allocation6 + $0x9c] sm:$0xf] }
 0x519   :  { %v11670_v43 = vor.u32 %v13746_v55, %v11669_v8  ;;  %v11637_v46 = vld [vmem:[#allocation6 + $0x758] sm:$0xf]  ;;  %7867 = vmatpush.bf16.msrb.mxu2 %v12246_v47  ;;  %7886 = vmatpush.bf16.msra.mxu0 %v10938_v34  ;;  %v13654_v8 = vld [vmem:[#allocation6 + $0x4dc] sm:$0xf]  ;;  %v14654_v47 = vadd.f32 %v7570_v42, %v14643_v0  ;;  %v7637_v0 = vpop.f32.mrf.mxu0 }
 0x51a   :  { %v13738_v6 = vld [vmem:[#allocation6 + $0x774] sm:$0xf0]  ;;  %7855 = vmatmul.bf16.vlgmr.msrb.gmra.mxu1 %v14509_v53  ;;  %v11319_v55 = vld [vmem:[#allocation6 + $0x4f8] sm:$0xf0] }
 0x51b   :  { %7899 = vmatpush.bf16.msra.mxu1 %v11194_v36  ;;  %7822 = vmatpush.bf16.msra.mxu3 %v11670_v43  ;;  %v11638_v24 = vor.u32 %v13738_v6, %v11637_v46  ;;  %v11605_v45 = vld [vmem:[#allocation6 + $0x718] sm:$0xf]  ;;  %v11322_v4 = vor.u32 %v13654_v8, %v11319_v55  ;;  %v10775_v43 = vld [vmem:[#allocation6 + $0xb8] sm:$0xf0] }
 0x51c   :  { %7868 = vmatmul.bf16.vlgmr.msrb.gmra.mxu2 %v14515_v20  ;;  %v13730_v33 = vld [vmem:[#allocation6 + $0x734] sm:$0xf0]  ;;  %v13582_v56 = vld [vmem:[#allocation6 + $0x29c] sm:$0xf]  ;;  %v10778_v38 = vor.u32 %v13518_v7, %v10775_v43 }
 0x51d   :  { %7912 = vmatpush.bf16.msra.mxu2 %v11450_v9  ;;  %7887 = vmatpush.bf16.msra.mxu0 %v10906_v49  ;;  %v11606_v25 = vor.u32 %v13730_v33, %v11605_v45  ;;  %v11573_v2 = vld [vmem:[#allocation6 + $0x6d8] sm:$0xf]  ;;  %v10810_v9 = vor.u32 %v13526_v19, %v10807_v31  ;;  %v11031_v46 = vld [vmem:[#allocation6 + $0x2b8] sm:$0xf0]  ;;  %v7572_v33 = vpop.f32.mrf.mxu3 }
 0x51e   :  { %v13722_v26 = vld [vmem:[#allocation6 + $0x6f4] sm:$0xf0]  ;;  %v13646_v6 = vld [vmem:[#allocation6 + $0x49c] sm:$0xf]  ;;  %v11034_v35 = vor.u32 %v13582_v56, %v11031_v46 }
 0x51f   :  { %7900 = vmatpush.bf16.msra.mxu1 %v11162_v57  ;;  %7823 = vmatpush.bf16.msra.mxu3 %v11638_v24  ;;  %v11574_v32 = vor.u32 %v13722_v26, %v11573_v2  ;;  %v11541_v34 = vld [vmem:[#allocation6 + $0x698] sm:$0xf]  ;;  %v11287_v49 = vld [vmem:[#allocation6 + $0x4b8] sm:$0xf0]  ;;  %v7650_v60 = vpop.f32.mrf.mxu1 }
 0x520   :  { %v13714_v36 = vld [vmem:[#allocation6 + $0x6b4] sm:$0xf0]  ;;  %v11290_v24 = vor.u32 %v13646_v6, %v11287_v49  ;;  %v13510_v3 = vld [vmem:[#allocation6 + $0x5c] sm:$0xf] }
 0x521   :  { %7913 = vmatpush.bf16.msra.mxu2 %v11418_v41  ;;  %7888 = vmatpush.bf16.msra.mxu0 %v10874_v44  ;;  %v11542_v1 = vor.u32 %v13714_v36, %v11541_v34  ;;  %v11509_v57 = vld [vmem:[#allocation6 + $0x658] sm:$0xf]  ;;  %v10743_v48 = vld [vmem:[#allocation6 + $0x78] sm:$0xf0] }
 0x522   :  { %v13706_v41 = vld [vmem:[#allocation6 + $0x674] sm:$0xf0]  ;;  %v13574_v5 = vld [vmem:[#allocation6 + $0x25c] sm:$0xf]  ;;  %v10746_v61 = vor.u32 %v13510_v3, %v10743_v48 }
 0x523   :  { %7901 = vmatpush.bf16.msra.mxu1 %v11130_v16  ;;  %7824 = vmatpush.bf16.msra.mxu3 %v11606_v25  ;;  %v11510_v45 = vor.u32 %v13706_v41, %v11509_v57  ;;  %v10999_v44 = vld [vmem:[#allocation6 + $0x278] sm:$0xf0]  ;;  %v11477_v39 = vld [vmem:[#allocation6 + $0x618] sm:$0xf] }
 0x524   :  { %v13638_v16 = vld [vmem:[#allocation6 + $0x45c] sm:$0xf]  ;;  %v13698_v50 = vld [vmem:[#allocation6 + $0x634] sm:$0xf0]  ;;  %v11002_v30 = vor.u32 %v13574_v5, %v10999_v44 }
 0x525   :  { %7914 = vmatpush.bf16.msra.mxu2 %v11386_v18  ;;  %7889 = vmatpush.bf16.msra.mxu0 %v10842_v27  ;;  %v11255_v18 = vld [vmem:[#allocation6 + $0x478] sm:$0xf0]  ;;  %v12725_v25 = vld [vmem:[#allocation6 + $0xfd8] sm:$0xf] }
 0x526   :  { %v14010_v21 = vld [vmem:[#allocation6 + $0xff4] sm:$0xf0]  ;;  %v11258_v40 = vor.u32 %v13638_v16, %v11255_v18  ;;  %v13502_v2 = vld [vmem:[#allocation6 + $0x1c] sm:$0xf] }
 0x527   :  { %7902 = vmatpush.bf16.msra.mxu1 %v11098_v63  ;;  %7825 = vmatpush.bf16.msra.mxu3 %v11574_v32  ;;  %v10711_v26 = vld [vmem:[#allocation6 + $0x38] sm:$0xf0]  ;;  %v7663_v63 = vpop.f32.mrf.mxu2  ;;  %v12726_v32 = vor.u32 %v14010_v21, %v12725_v25  ;;  %v14002_v7 = vld [vmem:[#allocation6 + $0xfb4] sm:$0xf0] }
 0x528   :  { %v13566_v27 = vld [vmem:[#allocation6 + $0x21c] sm:$0xf]  ;;  %v10714_v55 = vor.u32 %v13502_v2, %v10711_v26  ;;  %v13986_v25 = vld [vmem:[#allocation6 + $0xf34] sm:$0xf0] }
 0x529   :  { %7915 = vmatpush.bf16.msra.mxu2 %v11354_v28  ;;  %7890 = vmatpush.bf16.msra.mxu0 %v10810_v9  ;;  %v11478_v28 = vor.u32 %v13698_v50, %v11477_v39  ;;  %v10967_v19 = vld [vmem:[#allocation6 + $0x238] sm:$0xf0] }
 0x52a   :  { %v13630_v31 = vld [vmem:[#allocation6 + $0x41c] sm:$0xf] }
 0x52b   :  { %7903 = vmatpush.bf16.msra.mxu1 %v11066_v29  ;;  %7826 = vmatpush.bf16.msra.mxu3 %v11542_v1  ;;  %v11223_v37 = vld [vmem:[#allocation6 + $0x438] sm:$0xf0]  ;;  %v10970_v29 = vor.u32 %v13566_v27, %v10967_v19 }
 0x52c   :  { %v13814_v42 = vld [vmem:[#allocation6 + $0x9dc] sm:$0xf]  ;;  %v11226_v43 = vor.u32 %v13630_v31, %v11223_v37  ;;  %v7687_v31 = vpop.f32.mrf.mxu0  ;;  %v13978_v37 = vld [vmem:[#allocation6 + $0xef4] sm:$0xf0] }
 0x52d   :  { %7916 = vmatpush.bf16.msra.mxu2 %v11322_v4  ;;  %7891 = vmatpush.bf16.msra.mxu0 %v10778_v38  ;;  %v11959_v62 = vld [vmem:[#allocation6 + $0x9f8] sm:$0xf0]  ;;  %v12693_v4 = vld [vmem:[#allocation6 + $0xf98] sm:$0xf] }
 0x52e   :  { %v13878_v8 = vld [vmem:[#allocation6 + $0xbdc] sm:$0xf]  ;;  %v11962_v56 = vor.u32 %v13814_v42, %v11959_v62  ;;  %v12694_v57 = vor.u32 %v14002_v7, %v12693_v4  ;;  %v7700_v42 = vpop.f32.mrf.mxu1  ;;  %v7622_v4 = vpop.f32.mrf.mxu3 }
 0x52f   :  { %7904 = vmatpush.bf16.msra.mxu1 %v11034_v35  ;;  %7827 = vmatpush.bf16.msra.mxu3 %v11510_v45  ;;  %v12215_v34 = vld [vmem:[#allocation6 + $0xbf8] sm:$0xf0]  ;;  %v12661_v35 = vld [vmem:[#allocation6 + $0xf58] sm:$0xf] }
 0x530   :  { %v13942_v36 = vld [vmem:[#allocation6 + $0xddc] sm:$0xf]  ;;  %v12218_v1 = vor.u32 %v13878_v8, %v12215_v34 }
 0x531   :  { %7917 = vmatpush.bf16.msra.mxu2 %v11290_v24  ;;  %7892 = vmatpush.bf16.msra.mxu0 %v10746_v61  ;;  %v12471_v9 = vld [vmem:[#allocation6 + $0xdf8] sm:$0xf0]  ;;  %v13994_v24 = vld [vmem:[#allocation6 + $0xf74] sm:$0xf0] }
 0x532   :  { %v12474_v46 = vor.u32 %v13942_v36, %v12471_v9  ;;  %v13806_v6 = vld [vmem:[#allocation6 + $0x99c] sm:$0xf]  ;;  %v12662_v16 = vor.u32 %v13994_v24, %v12661_v35  ;;  %v12629_v61 = vld [vmem:[#allocation6 + $0xf18] sm:$0xf]  ;;  %v7713_v24 = vpop.f32.mrf.mxu2 }
 0x533   :  { %7905 = vmatpush.bf16.msra.mxu1 %v11002_v30  ;;  %7828 = vmatpush.bf16.msra.mxu3 %v11478_v28  ;;  %v11927_v49 = vld [vmem:[#allocation6 + $0x9b8] sm:$0xf0]  ;;  %v4587_v30 = vperm.slane %v14634_v58, 5  ;;  %v12630_v63 = vor.u32 %v13986_v25, %v12629_v61 }
 0x534   :  { %v13870_v0 = vld [vmem:[#allocation6 + $0xb9c] sm:$0xf]  ;;  %v11930_v3 = vor.u32 %v13806_v6, %v11927_v49  ;;  %v13970_v6 = vld [vmem:[#allocation6 + $0xeb4] sm:$0xf0] }
 0x535   :  { %7918 = vmatpush.bf16.msra.mxu2 %v11258_v40  ;;  %7893 = vmatpush.bf16.msra.mxu0 %v10714_v55  ;;  %v12183_v41 = vld [vmem:[#allocation6 + $0xbb8] sm:$0xf0] }
 0x536   :  { %v13934_v60 = vld [vmem:[#allocation6 + $0xd9c] sm:$0xf]  ;;  %7829 = vmatmul.bf16.vlgmr.msra.gmra.mxu3 %v14481_v59  ;;  %v12186_v48 = vor.u32 %v13870_v0, %v12183_v41 }
 0x537   :  { %7873 = vmatpush.bf16.msrb.mxu3 %v12726_v32  ;;  %v12439_v38 = vld [vmem:[#allocation6 + $0xdb8] sm:$0xf0]  ;;  %7906 = vmatpush.bf16.msra.mxu1 %v10970_v29  ;;  %v7688_v32 = vadd.f32 %v7687_v31, %v4587_v30 }
 0x538   :  { %v12442_v5 = vor.u32 %v13934_v60, %v12439_v38  ;;  %v13798_v45 = vld [vmem:[#allocation6 + $0x95c] sm:$0xf]  ;;  %7894 = vmatmul.bf16.vlgmr.msra.gmra.mxu0 %v14475_v12 }
 0x539   :  { %7919 = vmatpush.bf16.msra.mxu2 %v11226_v43  ;;  %7938 = vmatpush.bf16.msrb.mxu0 %v11962_v56  ;;  %v11895_v33 = vld [vmem:[#allocation6 + $0x978] sm:$0xf0]  ;;  %v7701_v9 = vadd.f32 %v7700_v42, %v7688_v32 }
 0x53a   :  { %v13862_v44 = vld [vmem:[#allocation6 + $0xb5c] sm:$0xf]  ;;  %7907 = vmatmul.bf16.vlgmr.msra.gmra.mxu1 %v14477_v14  ;;  %v11898_v21 = vor.u32 %v13798_v45, %v11895_v33  ;;  %v7689_v33 = vpop.f32.mrf.mxu0 }
 0x53b   :  { %7951 = vmatpush.bf16.msrb.mxu1 %v12218_v1  ;;  %7874 = vmatpush.bf16.msrb.mxu3 %v12694_v57  ;;  %v12151_v18 = vld [vmem:[#allocation6 + $0xb78] sm:$0xf0]  ;;  %v7623_v1 = vadd.f32 %v7622_v4, %v14639_v17  ;;  %v14665_v17 = vadd.f32 %v7713_v24, %v7701_v9 }
 0x53c   :  { %v13926_v39 = vld [vmem:[#allocation6 + $0xd5c] sm:$0xf]  ;;  %7920 = vmatmul.bf16.vlgmr.msra.gmra.mxu2 %v14479_v52  ;;  %v12154_v40 = vor.u32 %v13862_v44, %v12151_v18  ;;  %v12597_v52 = vld [vmem:[#allocation6 + $0xed8] sm:$0xf] }
 0x53d   :  { %7964 = vmatpush.bf16.msrb.mxu2 %v12474_v46  ;;  %v12407_v50 = vld [vmem:[#allocation6 + $0xd78] sm:$0xf0]  ;;  %7939 = vmatpush.bf16.msrb.mxu0 %v11930_v3  ;;  %v12598_v29 = vor.u32 %v13978_v37, %v12597_v52  ;;  %v12565_v46 = vld [vmem:[#allocation6 + $0xe98] sm:$0xf]  ;;  %v7636_v0 = vadd.f32 %v14649_v11, %v7623_v1  ;;  %v7702_v11 = vpop.f32.mrf.mxu1  ;;  %v14026_v1 = vld [vmem:[#allocation9 + $0x78] sm:$0xff] }
 0x53e   :  { %v12410_v2 = vor.u32 %v13926_v39, %v12407_v50  ;;  %v13790_v26 = vld [vmem:[#allocation6 + $0x91c] sm:$0xf]  ;;  %v12566_v3 = vor.u32 %v13970_v6, %v12565_v46  ;;  %v12533_v44 = vld [vmem:[#allocation6 + $0xe58] sm:$0xf]  ;;  %v14034_v46 = vld [vmem:[#allocation9 + $0xb8] sm:$0xff] }
 0x53f   :  { %7952 = vmatpush.bf16.msrb.mxu1 %v12186_v48  ;;  %v11863_v12 = vld [vmem:[#allocation6 + $0x938] sm:$0xf0]  ;;  %7875 = vmatpush.bf16.msrb.mxu3 %v12662_v16  ;;  %v13962_v16 = vld [vmem:[#allocation6 + $0xe74] sm:$0xf0]  ;;  %v7649_v18 = vadd.f32 %v14651_v23, %v7636_v0 }
 0x540   :  { %v13854_v27 = vld [vmem:[#allocation6 + $0xb1c] sm:$0xf]  ;;  %v11866_v62 = vor.u32 %v13790_v26, %v11863_v12  ;;  %v7624_v26 = vpop.f32.mrf.mxu3  ;;  %v12501_v23 = vld [vmem:[#allocation6 + $0xe18] sm:$0xf] }
 0x541   :  { %7965 = vmatpush.bf16.msrb.mxu2 %v12442_v5  ;;  %v12119_v28 = vld [vmem:[#allocation6 + $0xb38] sm:$0xf0]  ;;  %7940 = vmatpush.bf16.msrb.mxu0 %v11898_v21 }
 0x542   :  { %v13918_v19 = vld [vmem:[#allocation6 + $0xd1c] sm:$0xf]  ;;  %v12122_v58 = vor.u32 %v13854_v27, %v12119_v28  ;;  %v13954_v28 = vld [vmem:[#allocation6 + $0xe34] sm:$0xf0] }
 0x543   :  { %v12375_v14 = vld [vmem:[#allocation6 + $0xd38] sm:$0xf0]  ;;  %7953 = vmatpush.bf16.msrb.mxu1 %v12154_v40  ;;  %7876 = vmatpush.bf16.msrb.mxu3 %v12630_v63  ;;  %v14669_v40 = vadd.f32 %v14656_v13, %v7649_v18  ;;  %v7715_v13 = vpop.f32.mrf.mxu2  ;;  %v14031_v18 = vld [vmem:[#allocation9 + $0xa0] sm:$0xff] }
 0x544   :  { %v12378_v8 = vor.u32 %v13918_v19, %v12375_v14  ;;  %v13782_v55 = vld [vmem:[#allocation6 + $0x8dc] sm:$0xf] }
 0x545   :  { %7966 = vmatpush.bf16.msrb.mxu2 %v12410_v2  ;;  %v11831_v34 = vld [vmem:[#allocation6 + $0x8f8] sm:$0xf0]  ;;  %7941 = vmatpush.bf16.msrb.mxu0 %v11866_v62  ;;  %v12534_v2 = vor.u32 %v13962_v16, %v12533_v44  ;;  %v12502_v62 = vor.u32 %v13954_v28, %v12501_v23 }
 0x546   :  { %v13846_v36 = vld [vmem:[#allocation6 + $0xadc] sm:$0xf]  ;;  %v11834_v49 = vor.u32 %v13782_v55, %v11831_v34 }
 0x547   :  { %v12087_v7 = vld [vmem:[#allocation6 + $0xaf8] sm:$0xf0]  ;;  %7954 = vmatpush.bf16.msrb.mxu1 %v12122_v58  ;;  %7877 = vmatpush.bf16.msrb.mxu3 %v12598_v29 }
 0x548   :  { %v13910_v43 = vld [vmem:[#allocation6 + $0xcdc] sm:$0xf]  ;;  %v12090_v57 = vor.u32 %v13846_v36, %v12087_v7 }
 0x549   :  { %v12343_v56 = vld [vmem:[#allocation6 + $0xcf8] sm:$0xf0]  ;;  %7967 = vmatpush.bf16.msrb.mxu2 %v12378_v8  ;;  %7942 = vmatpush.bf16.msrb.mxu0 %v11834_v49 }
 0x54a   :  { %v12346_v41 = vor.u32 %v13910_v43, %v12343_v56  ;;  %v13774_v60 = vld [vmem:[#allocation6 + $0x89c] sm:$0xf]  ;;  %v14018_v56 = vld [vmem:[#allocation9 + $0x38] sm:$0xff] }
 0x54b   :  { %v11799_v38 = vld [vmem:[#allocation6 + $0x8b8] sm:$0xf0]  ;;  %7955 = vmatpush.bf16.msrb.mxu1 %v12090_v57  ;;  %7878 = vmatpush.bf16.msrb.mxu3 %v12566_v3  ;;  %v14016_v3 = vld [vmem:[#allocation9 + $0x28] sm:$0xff] }
 0x54c   :  { %v13838_v35 = vld [vmem:[#allocation6 + $0xa9c] sm:$0xf]  ;;  %v11802_v39 = vor.u32 %v13774_v60, %v11799_v38 }
 0x54d   :  { %v12055_v48 = vld [vmem:[#allocation6 + $0xab8] sm:$0xf0]  ;;  %7968 = vmatpush.bf16.msrb.mxu2 %v12346_v41 }
 0x54e   :  { %v13902_v5 = vld [vmem:[#allocation6 + $0xc9c] sm:$0xf]  ;;  %v12058_v50 = vor.u32 %v13838_v35, %v12055_v48  ;;  %7943 = vmatpush.bf16.msrb.mxu0 %v11802_v39  ;;  %v14024_v48 = vld [vmem:[#allocation9 + $0x68] sm:$0xff]  ;;  %v14679_v39 = vpop.f32.mrf.mxu3 }
 0x54f   :  { %v12311_v45 = vld [vmem:[#allocation6 + $0xcb8] sm:$0xf0]  ;;  %7879 = vmatpush.bf16.msrb.mxu3 %v12534_v2  ;;  %v14675_v33 = vpop.f32.mrf.mxu0 }
 0x550   :  { %v12314_v61 = vor.u32 %v13902_v5, %v12311_v45  ;;  %v13766_v25 = vld [vmem:[#allocation6 + $0x85c] sm:$0xf]  ;;  %7956 = vmatpush.bf16.msrb.mxu1 %v12058_v50  ;;  %v14032_v5 = vld [vmem:[#allocation9 + $0xa8] sm:$0xff] }
 0x551   :  { %v11767_v21 = vld [vmem:[#allocation6 + $0x878] sm:$0xf0] }
 0x552   :  { %v13830_v30 = vld [vmem:[#allocation6 + $0xa5c] sm:$0xf]  ;;  %v11770_v19 = vor.u32 %v13766_v25, %v11767_v21  ;;  %7969 = vmatpush.bf16.msrb.mxu2 %v12314_v61  ;;  %v14014_v25 = vld [vmem:[#allocation9 + $0x18] sm:$0xff] }
 0x553   :  { %v12023_v12 = vld [vmem:[#allocation6 + $0xa78] sm:$0xf0]  ;;  %7880 = vmatpush.bf16.msrb.mxu3 %v12502_v62  ;;  %v14022_v21 = vld [vmem:[#allocation9 + $0x58] sm:$0xff] }
 0x554   :  { %v13894_v27 = vld [vmem:[#allocation6 + $0xc5c] sm:$0xf]  ;;  %v12026_v52 = vor.u32 %v13830_v30, %v12023_v12  ;;  %7944 = vmatpush.bf16.msrb.mxu0 %v11770_v19  ;;  %v14030_v30 = vld [vmem:[#allocation9 + $0x98] sm:$0xff] }
 0x555   :  { %v12279_v63 = vld [vmem:[#allocation6 + $0xc78] sm:$0xf0] }
 0x556   :  { %v13750_v14 = vld [vmem:[#allocation6 + $0x7dc] sm:$0xf]  ;;  %v12282_v37 = vor.u32 %v13894_v27, %v12279_v63  ;;  %7957 = vmatpush.bf16.msrb.mxu1 %v12026_v52  ;;  %7881 = vmatmul.bf16.vlgmr.msrb.gmra.mxu3 %v14537_v54  ;;  %v7676_v52 = vpop.f32.mrf.mxu3 }
 0x557   :  { %v11703_v31 = vld [vmem:[#allocation6 + $0x7f8] sm:$0xf0]  ;;  %v7741_v12 = vpop.f32.mrf.mxu0  ;;  %v14054_v52 = vld [vmem:[#allocation9 + $0x158] sm:$0xff] }
 0x558   :  { %v13758_v32 = vld [vmem:[#allocation6 + $0x81c] sm:$0xf]  ;;  %v11706_v55 = vor.u32 %v13750_v14, %v11703_v31  ;;  %7970 = vmatpush.bf16.msrb.mxu2 %v12282_v37  ;;  %v14055_v12 = vld [vmem:[#allocation9 + $0x160] sm:$0xff] }
 0x559   :  { %v11735_v42 = vld [vmem:[#allocation6 + $0x838] sm:$0xf0]  ;;  %v14681_v2 = vpop.f32.mrf.mxu2 }
 0x55a   :  { %v13822_v58 = vld [vmem:[#allocation6 + $0xa1c] sm:$0xf]  ;;  %v11738_v9 = vor.u32 %v13758_v32, %v11735_v42  ;;  %7925 = vmatpush.bf16.msra.mxu3 %v11706_v55  ;;  %v14012_v42 = vld [vmem:[#allocation9 + $0x8] sm:$0xff] }
 0x55b   :  { %v11991_v8 = vld [vmem:[#allocation6 + $0xa38] sm:$0xf0] }
 0x55c   :  { %v13886_v34 = vld [vmem:[#allocation6 + $0xc1c] sm:$0xf]  ;;  %v11994_v29 = vor.u32 %v13822_v58, %v11991_v8  ;;  %7945 = vmatpush.bf16.msrb.mxu0 %v11738_v9  ;;  %v14020_v58 = vld [vmem:[#allocation9 + $0x48] sm:$0xff]  ;;  %v14011_v9 = vld [vmem:[#allocation9] sm:$0xff] }
 0x55d   :  { %v12247_v36 = vld [vmem:[#allocation6 + $0xc38] sm:$0xf0]  ;;  %v14028_v8 = vld [vmem:[#allocation9 + $0x88] sm:$0xff] }
 0x55e   :  { %v13742_v4 = vld [vmem:[#allocation6 + $0x79c] sm:$0xf]  ;;  %v12250_v43 = vor.u32 %v13886_v34, %v12247_v36  ;;  %7958 = vmatpush.bf16.msrb.mxu1 %v11994_v29 }
 0x55f   :  { %v11671_v7 = vld [vmem:[#allocation6 + $0x7b8] sm:$0xf0]  ;;  %7946 = vmatmul.bf16.vlgmr.msrb.gmra.mxu0 %v14507_v51  ;;  %v14677_v51 = vpop.f32.mrf.mxu1 }
 0x560   :  { %v11674_v6 = vor.u32 %v13742_v4, %v11671_v7  ;;  %v13734_v49 = vld [vmem:[#allocation6 + $0x75c] sm:$0xf]  ;;  %7971 = vmatpush.bf16.msrb.mxu2 %v12250_v43  ;;  %8522 = vmatpush.bf16.msra.mxu0 %v14018_v56  ;;  %v7990_v7 = vmax.f32 %v14584_v15, 0.0  ;;  %v14019_v43 = vld [vmem:[#allocation9 + $0x40] sm:$0xff]  ;;  %v7991_v56 = vmax.f32 %v14600_v10, 0.0  ;;  %v14058_v15 = vld [vmem:[#allocation9 + $0x178] sm:$0xff] }
 0x561   :  { %v11639_v0 = vld [vmem:[#allocation6 + $0x778] sm:$0xf0]  ;;  %7959 = vmatmul.bf16.vlgmr.msrb.gmra.mxu1 %v14509_v53  ;;  %v14015_v53 = vld [vmem:[#allocation9 + $0x20] sm:$0xff]  ;;  %v7767_v55 = vpop.f32.mrf.mxu2 }
 0x562   :  { %v14017_v57 = vld [vmem:[#allocation9 + $0x30] sm:$0xff]  ;;  %8535 = vmatpush.bf16.msra.mxu1 %v14026_v1  ;;  %7926 = vmatpush.bf16.msra.mxu3 %v11674_v6  ;;  %v11642_v38 = vor.u32 %v13734_v49, %v11639_v0  ;;  %v14027_v1 = vld [vmem:[#allocation9 + $0x80] sm:$0xff]  ;;  %v7992_v6 = vmax.f32 %v14626_v22, 0.0  ;;  %v14044_v55 = vld [vmem:[#allocation9 + $0x108] sm:$0xff] }
 0x563   :  { %v14025_v41 = vld [vmem:[#allocation9 + $0x70] sm:$0xff]  ;;  %7972 = vmatmul.bf16.vlgmr.msrb.gmra.mxu2 %v14515_v20  ;;  %v14023_v20 = vld [vmem:[#allocation9 + $0x60] sm:$0xff] }
 0x564   :  { %8548 = vmatpush.bf16.msra.mxu2 %v14034_v46  ;;  %v14033_v60 = vld [vmem:[#allocation9 + $0xb0] sm:$0xff]  ;;  %8523 = vmatpush.bf16.msra.mxu0 %v14017_v57  ;;  %v14050_v46 = vld [vmem:[#allocation9 + $0x138] sm:$0xff]  ;;  %v8000_v10 = vpack.c.bf16 %v7992_v6, %v7992_v6 }
 0x565   :  { %v13726_v35 = vld [vmem:[#allocation6 + $0x71c] sm:$0xf] }
 0x566   :  { %v11607_v24 = vld [vmem:[#allocation6 + $0x738] sm:$0xf0]  ;;  %8536 = vmatpush.bf16.msra.mxu1 %v14025_v41  ;;  %7927 = vmatpush.bf16.msra.mxu3 %v11642_v38  ;;  %v7998_v41 = vpack.c.bf16 %v7990_v7, %v7990_v7  ;;  %v14043_v7 = vld [vmem:[#allocation9 + $0x100] sm:$0xff] }
 0x567   :  { %v11610_v45 = vor.u32 %v13726_v35, %v11607_v24  ;;  %v13718_v44 = vld [vmem:[#allocation6 + $0x6dc] sm:$0xf]  ;;  %v7754_v23 = vpop.f32.mrf.mxu1 }
 0x568   :  { %8549 = vmatpush.bf16.msra.mxu2 %v14033_v60  ;;  %v11575_v16 = vld [vmem:[#allocation6 + $0x6f8] sm:$0xf0]  ;;  %8524 = vmatpush.bf16.msra.mxu0 %v14016_v3  ;;  %v7999_v60 = vpack.c.bf16 %v7991_v56, %v7991_v56 }
 0x569   :  { %v11578_v11 = vor.u32 %v13718_v44, %v11575_v16  ;;  %v13710_v50 = vld [vmem:[#allocation6 + $0x69c] sm:$0xf] }
 0x56a   :  { %8537 = vmatpush.bf16.msra.mxu1 %v14024_v48  ;;  %7928 = vmatpush.bf16.msra.mxu3 %v11610_v45  ;;  %v11543_v61 = vld [vmem:[#allocation6 + $0x6b8] sm:$0xf0]  ;;  %v14048_v48 = vld [vmem:[#allocation9 + $0x128] sm:$0xff] }
 0x56b   :  { %v11546_v26 = vor.u32 %v13710_v50, %v11543_v61  ;;  %v13702_v27 = vld [vmem:[#allocation6 + $0x65c] sm:$0xf]  ;;  %v14047_v50 = vld [vmem:[#allocation9 + $0x120] sm:$0xff] }
 0x56c   :  { %8550 = vmatpush.bf16.msra.mxu2 %v14032_v5  ;;  %8525 = vmatpush.bf16.msra.mxu0 %v14015_v53  ;;  %v11511_v63 = vld [vmem:[#allocation6 + $0x678] sm:$0xf0]  ;;  %v14687_v5 = vld [vmem:[#allocation7] sm:$0xff] }
 0x56d   :  { %v14013_v28 = vld [vmem:[#allocation9 + $0x10] sm:$0xff]  ;;  %v11514_v31 = vor.u32 %v13702_v27, %v11511_v63  ;;  %v14046_v27 = vld [vmem:[#allocation9 + $0x118] sm:$0xff] }
 0x56e   :  { %8538 = vmatpush.bf16.msra.mxu1 %v14023_v20  ;;  %7929 = vmatpush.bf16.msra.mxu3 %v11578_v11  ;;  %v14021_v19 = vld [vmem:[#allocation9 + $0x50] sm:$0xff]  ;;  %v14056_v20 = vld [vmem:[#allocation9 + $0x168] sm:$0xff] }
 0x56f   :  { %v14029_v14 = vld [vmem:[#allocation9 + $0x90] sm:$0xff]  ;;  %v7791_v53 = vpop.f32.mrf.mxu0 }
 0x570   :  { %8551 = vmatpush.bf16.msra.mxu2 %v14031_v18  ;;  %8526 = vmatpush.bf16.msra.mxu0 %v14014_v25  ;;  %v13694_v37 = vld [vmem:[#allocation6 + $0x61c] sm:$0xf] }
 0x571   :  { %v11479_v32 = vld [vmem:[#allocation6 + $0x638] sm:$0xf0]  ;;  %v7804_v11 = vpop.f32.mrf.mxu1 }
 0x572   :  { %8539 = vmatpush.bf16.msra.mxu1 %v14022_v21  ;;  %7930 = vmatpush.bf16.msra.mxu3 %v11546_v26  ;;  %v14006_v13 = vld [vmem:[#allocation6 + $0xfdc] sm:$0xf]  ;;  %v11482_v34 = vor.u32 %v13694_v37, %v11479_v32 }
 0x573   :  { %v12727_v62 = vld [vmem:[#allocation6 + $0xff8] sm:$0xf0]  ;;  %v7726_v21 = vpop.f32.mrf.mxu3 }
 0x574   :  { %8552 = vmatpush.bf16.msra.mxu2 %v14030_v30  ;;  %8527 = vmatpush.bf16.msra.mxu0 %v14013_v28  ;;  %v12730_v36 = vor.u32 %v14006_v13, %v12727_v62  ;;  %v13998_v29 = vld [vmem:[#allocation6 + $0xf9c] sm:$0xf] }
 0x575   :  { %v12695_v4 = vld [vmem:[#allocation6 + $0xfb8] sm:$0xf0] }
 0x576   :  { %8540 = vmatpush.bf16.msra.mxu1 %v14021_v19  ;;  %7931 = vmatpush.bf16.msra.mxu3 %v11514_v31  ;;  %v12698_v49 = vor.u32 %v13998_v29, %v12695_v4  ;;  %v13990_v0 = vld [vmem:[#allocation6 + $0xf5c] sm:$0xf]  ;;  %v14042_v29 = vld [vmem:[#allocation9 + $0xf8] sm:$0xff]  ;;  %v14052_v4 = vld [vmem:[#allocation9 + $0x148] sm:$0xff] }
 0x577   :  { %v12663_v57 = vld [vmem:[#allocation6 + $0xf78] sm:$0xf0]  ;;  %v7793_v31 = vpop.f32.mrf.mxu0 }
 0x578   :  { %8553 = vmatpush.bf16.msra.mxu2 %v14029_v14  ;;  %8528 = vmatpush.bf16.msra.mxu0 %v14012_v42  ;;  %v14049_v38 = vld [vmem:[#allocation9 + $0x130] sm:$0xff]  ;;  %v12666_v35 = vor.u32 %v13990_v0, %v12663_v57 }
 0x579   :  { %v13982_v22 = vld [vmem:[#allocation6 + $0xf1c] sm:$0xf]  ;;  %v7817_v23 = vpop.f32.mrf.mxu2  ;;  %v7806_v37 = vpop.f32.mrf.mxu1 }
 0x57a   :  { %8541 = vmatpush.bf16.msra.mxu1 %v14020_v58  ;;  %7932 = vmatpush.bf16.msra.mxu3 %v11482_v34  ;;  %v12631_v24 = vld [vmem:[#allocation6 + $0xf38] sm:$0xf0]  ;;  %v7675_v34 = vadd.f32 %v14679_v39, %v14669_v40  ;;  %v14040_v39 = vld [vmem:[#allocation9 + $0xe8] sm:$0xff] }
 0x57b   :  { %v14057_v3 = vld [vmem:[#allocation9 + $0x170] sm:$0xff]  ;;  %v12634_v45 = vor.u32 %v13982_v22, %v12631_v24  ;;  %v7728_v13 = vpop.f32.mrf.mxu3  ;;  %v14066_v22 = vld [vmem:[#allocation9 + $0x1b8] sm:$0xff] }
 0x57c   :  { %8554 = vmatpush.bf16.msra.mxu2 %v14028_v8  ;;  %8529 = vmatpush.bf16.msra.mxu0 %v14011_v9  ;;  %v13974_v44 = vld [vmem:[#allocation6 + $0xedc] sm:$0xf] }
 0x57d   :  { %7933 = vmatmul.bf16.vlgmr.msra.gmra.mxu3 %v14481_v59  ;;  %v4588_v59 = vperm.slane %v14687_v5, 6  ;;  %v12599_v16 = vld [vmem:[#allocation6 + $0xef8] sm:$0xf0] }
 0x57e   :  { %7977 = vmatpush.bf16.msrb.mxu3 %v12730_v36  ;;  %8542 = vmatpush.bf16.msra.mxu1 %v14019_v43  ;;  %v12602_v61 = vor.u32 %v13974_v44, %v12599_v16  ;;  %v13966_v30 = vld [vmem:[#allocation6 + $0xe9c] sm:$0xf]  ;;  %v7994_v43 = vmax.f32 %v7675_v34, 0.0  ;;  %v7993_v44 = vmax.f32 %v14654_v47, 0.0  ;;  %v14059_v47 = vld [vmem:[#allocation9 + $0x180] sm:$0xff] }
 0x57f   :  { %8530 = vmatmul.bf16.vlgmr.msra.gmra.mxu0 %v7998_v41  ;;  %v7792_v18 = vadd.f32 %v7791_v53, %v4588_v59  ;;  %v12567_v26 = vld [vmem:[#allocation6 + $0xeb8] sm:$0xf0]  ;;  %v14063_v53 = vld [vmem:[#allocation9 + $0x1a0] sm:$0xff] }
 0x580   :  { %8555 = vmatpush.bf16.msra.mxu2 %v14027_v1  ;;  %8574 = vmatpush.bf16.msrb.mxu0 %v14050_v46  ;;  %v12570_v63 = vor.u32 %v13966_v30, %v12567_v26  ;;  %v13958_v28 = vld [vmem:[#allocation6 + $0xe5c] sm:$0xf]  ;;  %v7727_v1 = vadd.f32 %v7726_v21, %v14665_v17  ;;  %v14051_v46 = vld [vmem:[#allocation9 + $0x140] sm:$0xff]  ;;  %v8002_v40 = vpack.c.bf16 %v7994_v43, %v7994_v43  ;;  %v14038_v17 = vld [vmem:[#allocation9 + $0xd8] sm:$0xff] }
 0x581   :  { %8543 = vmatmul.bf16.vlgmr.msra.gmra.mxu1 %v7999_v60  ;;  %v7805_v25 = vadd.f32 %v7804_v11, %v7792_v18  ;;  %v12535_v19 = vld [vmem:[#allocation6 + $0xe78] sm:$0xf0]  ;;  %v7819_v9 = vpop.f32.mrf.mxu2  ;;  %v14062_v18 = vld [vmem:[#allocation9 + $0x198] sm:$0xff]  ;;  %v14060_v30 = vld [vmem:[#allocation9 + $0x188] sm:$0xff] }
 0x582   :  { %7978 = vmatpush.bf16.msrb.mxu3 %v12698_v49  ;;  %8587 = vmatpush.bf16.msrb.mxu1 %v14058_v15  ;;  %v14045_v32 = vld [vmem:[#allocation9 + $0x110] sm:$0xff]  ;;  %v12538_v42 = vor.u32 %v13958_v28, %v12535_v19  ;;  %v7740_v6 = vadd.f32 %v14675_v33, %v7727_v1  ;;  %v14039_v49 = vld [vmem:[#allocation9 + $0xe0] sm:$0xff]  ;;  %v14072_v43 = vld [vmem:[#allocation9 + $0x1e8] sm:$0xff] }
 0x583   :  { %8556 = vmatmul.bf16.vlgmr.msra.gmra.mxu2 %v8000_v10  ;;  %v14690_v14 = vadd.f32 %v7817_v23, %v7805_v25  ;;  %v13950_v62 = vld [vmem:[#allocation6 + $0xe1c] sm:$0xf]  ;;  %v14070_v1 = vld [vmem:[#allocation9 + $0x1d8] sm:$0xff] }
 0x584   :  { %8575 = vmatpush.bf16.msrb.mxu0 %v14049_v38  ;;  %v12503_v58 = vld [vmem:[#allocation6 + $0xe38] sm:$0xf0]  ;;  %v7753_v0 = vadd.f32 %v14677_v51, %v7740_v6  ;;  %8600 = vmatpush.bf16.msrb.mxu2 %v14066_v22  ;;  %v14068_v6 = vld [vmem:[#allocation9 + $0x1c8] sm:$0xff] }
 0x585   :  { %v14053_v8 = vld [vmem:[#allocation9 + $0x150] sm:$0xff]  ;;  %v12506_v36 = vor.u32 %v13950_v62, %v12503_v58 }
 0x586   :  { %7979 = vmatpush.bf16.msrb.mxu3 %v12666_v35  ;;  %8588 = vmatpush.bf16.msrb.mxu1 %v14057_v3  ;;  %v14041_v56 = vld [vmem:[#allocation9 + $0xf0] sm:$0xff]  ;;  %v7766_v15 = vadd.f32 %v14681_v2, %v7753_v0  ;;  %v14064_v2 = vld [vmem:[#allocation9 + $0x1a8] sm:$0xff] }
 0x587   :  { %v14037_v38 = vld [vmem:[#allocation9 + $0xd0] sm:$0xff] }
 0x588   :  { %8576 = vmatpush.bf16.msrb.mxu0 %v14048_v48  ;;  %v14036_v48 = vld [vmem:[#allocation9 + $0xc8] sm:$0xff]  ;;  %v14065_v51 = vld [vmem:[#allocation9 + $0x1b0] sm:$0xff] }
 0x589   :  { %8601 = vmatpush.bf16.msrb.mxu2 %v14065_v51  ;;  %v14061_v11 = vld [vmem:[#allocation9 + $0x190] sm:$0xff] }
 0x58a   :  { %7980 = vmatpush.bf16.msrb.mxu3 %v12634_v45  ;;  %8589 = vmatpush.bf16.msrb.mxu1 %v14056_v20  ;;  %v14035_v45 = vld [vmem:[#allocation9 + $0xc0] sm:$0xff]  ;;  %v8001_v20 = vpack.c.bf16 %v7993_v44, %v7993_v44 }
 0x58c   :  { %8577 = vmatpush.bf16.msrb.mxu0 %v14047_v50  ;;  %v4589_v50 = vperm.slane %v14687_v5, 7 }
 0x58d   :  { %8602 = vmatpush.bf16.msrb.mxu2 %v14064_v2 }
 0x58e   :  { %7981 = vmatpush.bf16.msrb.mxu3 %v12602_v61  ;;  %8590 = vmatpush.bf16.msrb.mxu1 %v14055_v12 }
 0x590   :  { %8578 = vmatpush.bf16.msrb.mxu0 %v14046_v27 }
 0x591   :  { %8603 = vmatpush.bf16.msrb.mxu2 %v14063_v53 }
 0x592   :  { %7982 = vmatpush.bf16.msrb.mxu3 %v12570_v63  ;;  %8591 = vmatpush.bf16.msrb.mxu1 %v14054_v52 }
 0x593   :  { %v7778_v60 = vpop.f32.mrf.mxu3 }
 0x594   :  { %8579 = vmatpush.bf16.msrb.mxu0 %v14045_v32 }
 0x595   :  { %v7843_v57 = vpop.f32.mrf.mxu0  ;;  %8604 = vmatpush.bf16.msrb.mxu2 %v14062_v18 }
 0x596   :  { %7983 = vmatpush.bf16.msrb.mxu3 %v12538_v42  ;;  %8592 = vmatpush.bf16.msrb.mxu1 %v14053_v8  ;;  %v14074_v8 = vld [vmem:[#allocation9 + $0x1f8] sm:$0xff] }
 0x597   :  { %v7856_v41 = vpop.f32.mrf.mxu1 }
 0x598   :  { %8580 = vmatpush.bf16.msrb.mxu0 %v14044_v55 }
 0x599   :  { %8605 = vmatpush.bf16.msrb.mxu2 %v14061_v11 }
 0x59a   :  { %7984 = vmatpush.bf16.msrb.mxu3 %v12506_v36  ;;  %8593 = vmatpush.bf16.msrb.mxu1 %v14052_v4  ;;  %v14073_v4 = vld [vmem:[#allocation9 + $0x1f0] sm:$0xff] }
 0x59b   :  { %v7780_v59 = vpop.f32.mrf.mxu3 }
 0x59c   :  { %8581 = vmatpush.bf16.msrb.mxu0 %v14043_v7 }
 0x59d   :  { %7985 = vmatmul.bf16.vlgmr.msrb.gmra.mxu3 %v14537_v54  ;;  %v7779_v54 = vadd.f32 %v7778_v60, %v7766_v15  ;;  %v7845_v24 = vpop.f32.mrf.mxu0  ;;  %8606 = vmatpush.bf16.msrb.mxu2 %v14060_v30 }
 0x59e   :  { %8561 = vmatpush.bf16.msra.mxu3 %v14042_v29  ;;  %8594 = vmatpush.bf16.msrb.mxu1 %v14051_v46  ;;  %v14069_v46 = vld [vmem:[#allocation9 + $0x1d0] sm:$0xff] }
 0x59f   :  { %8582 = vmatmul.bf16.vlgmr.msrb.gmra.mxu0 %v8002_v40  ;;  %v7995_v10 = vmax.f32 %v7779_v54, 0.0  ;;  %v7869_v35 = vpop.f32.mrf.mxu2  ;;  %v7858_v3 = vpop.f32.mrf.mxu1  ;;  %v14085_v40 = vld [vmem:[#allocation10] ss:$0 sm:$0xff] }
 0x5a1   :  { %v8003_v33 = vpack.c.bf16 %v7995_v10, %v7995_v10  ;;  %8607 = vmatpush.bf16.msrb.mxu2 %v14059_v47 }
 0x5a2   :  { %8562 = vmatpush.bf16.msra.mxu3 %v14041_v56  ;;  %v14071_v56 = vld [vmem:[#allocation9 + $0x1e0] sm:$0xff] }
 0x5a3   :  { %8595 = vmatmul.bf16.vlgmr.msrb.gmra.mxu1 %v8003_v33 }
 0x5a6   :  { %8563 = vmatpush.bf16.msra.mxu3 %v14040_v39 }
 0x5a7   :  { %v7871_v16 = vpop.f32.mrf.mxu2 }
 0x5aa   :  { %8564 = vmatpush.bf16.msra.mxu3 %v14039_v49 }
 0x5ae   :  { %8565 = vmatpush.bf16.msra.mxu3 %v14038_v17  ;;  %v14067_v17 = vld [vmem:[#allocation9 + $0x1c0] sm:$0xff] }
 0x5b2   :  { %8566 = vmatpush.bf16.msra.mxu3 %v14037_v38 }
 0x5b5   :  { %v7895_v61 = vpop.f32.mrf.mxu0 }
 0x5b6   :  { %8567 = vmatpush.bf16.msra.mxu3 %v14036_v48  ;;  %v7896_v25 = vadd.f32 %v7895_v61, %v4589_v50 }
 0x5b7   :  { %v7908_v21 = vpop.f32.mrf.mxu1 }
 0x5b8   :  { %v7909_v26 = vadd.f32 %v7908_v21, %v7896_v25 }
 0x5b9   :  { %v7830_v12 = vpop.f32.mrf.mxu3 }
 0x5ba   :  { %8568 = vmatpush.bf16.msra.mxu3 %v14035_v45  ;;  %v7831_v52 = vadd.f32 %v7830_v12, %v14690_v14 }
 0x5bc   :  { %v7844_v37 = vadd.f32 %v7843_v57, %v7831_v52 }
 0x5bd   :  { %8569 = vmatmul.bf16.vlgmr.msra.gmra.mxu3 %v8001_v20  ;;  %v7897_v23 = vpop.f32.mrf.mxu0 }
 0x5be   :  { %v7857_v5 = vadd.f32 %v7856_v41, %v7844_v37  ;;  %8613 = vmatpush.bf16.msrb.mxu3 %v14074_v8 }
 0x5bf   :  { %v7921_v27 = vpop.f32.mrf.mxu2  ;;  %v7910_v28 = vpop.f32.mrf.mxu1 }
 0x5c0   :  { %v7922_v63 = vadd.f32 %v7921_v27, %v7909_v26  ;;  %v7870_v13 = vadd.f32 %v7869_v35, %v7857_v5 }
 0x5c1   :  { %v7832_v19 = vpop.f32.mrf.mxu3 }
 0x5c2   :  { %8614 = vmatpush.bf16.msrb.mxu3 %v14073_v4 }
 0x5c6   :  { %8615 = vmatpush.bf16.msrb.mxu3 %v14072_v43 }
 0x5c7   :  { %v7923_v31 = vpop.f32.mrf.mxu2 }
 0x5ca   :  { %8616 = vmatpush.bf16.msrb.mxu3 %v14071_v56 }
 0x5ce   :  { %8617 = vmatpush.bf16.msrb.mxu3 %v14070_v1 }
 0x5d2   :  { %8618 = vmatpush.bf16.msrb.mxu3 %v14069_v46 }
 0x5d6   :  { %8619 = vmatpush.bf16.msrb.mxu3 %v14068_v6 }
 0x5d9   :  { %v7882_v62 = vpop.f32.mrf.mxu3 }
 0x5da   :  { %v7883_v58 = vadd.f32 %v7882_v62, %v7870_v13  ;;  %8620 = vmatpush.bf16.msrb.mxu3 %v14067_v17 }
 0x5dc   :  { %v7947_v32 = vpop.f32.mrf.mxu0  ;;  %v7996_v55 = vmax.f32 %v7883_v58, 0.0 }
 0x5de   :  { %v7960_v42 = vpop.f32.mrf.mxu1  ;;  %v8004_v36 = vpack.c.bf16 %v7996_v55, %v7996_v55 }
 0x5e0   :  { %8608 = vmatmul.bf16.vlgmr.msrb.gmra.mxu2 %v8004_v36 }
 0x5e1   :  { %v7884_v7 = vpop.f32.mrf.mxu3 }
 0x5e4   :  { %v7949_v9 = vpop.f32.mrf.mxu0 }
 0x5e6   :  { %v7973_v34 = vpop.f32.mrf.mxu2  ;;  %v7962_v29 = vpop.f32.mrf.mxu1 }
 0x5ee   :  { %v7975_v14 = vpop.f32.mrf.mxu2 }
 0x5fc   :  { %v8531_v39 = vpop.f32.mrf.mxu0 }
 0x5fd   :  { %v8532_v49 = vadd.f32 %v14085_v40, %v8531_v39 }
 0x5fe   :  { %v8544_v0 = vpop.f32.mrf.mxu1 }
 0x5ff   :  { %v8545_v57 = vadd.f32 %v8544_v0, %v8532_v49 }
 0x600   :  { %v7934_v41 = vpop.f32.mrf.mxu3 }
 0x601   :  { %v7935_v22 = vadd.f32 %v7934_v41, %v7922_v63 }
 0x603   :  { %v7948_v33 = vadd.f32 %v7947_v32, %v7935_v22 }
 0x604   :  { %v8533_v60 = vpop.f32.mrf.mxu0 }
 0x605   :  { %v7961_v24 = vadd.f32 %v7960_v42, %v7948_v33 }
 0x606   :  { %v8557_v15 = vpop.f32.mrf.mxu2  ;;  %v8546_v38 = vpop.f32.mrf.mxu1 }
 0x607   :  { %v8558_v54 = vadd.f32 %v8557_v15, %v8545_v57  ;;  %v7974_v48 = vadd.f32 %v7973_v34, %v7961_v24 }
 0x608   :  { %v7936_v10 = vpop.f32.mrf.mxu3 }
 0x60e   :  { %v8559_v35 = vpop.f32.mrf.mxu2 }
 0x61c   :  { %v8583_v3 = vpop.f32.mrf.mxu0 }
 0x620   :  { %v7986_v51 = vpop.f32.mrf.mxu3  ;;  %v8596_v53 = vpop.f32.mrf.mxu1 }
 0x621   :  { %v7987_v59 = vadd.f32 %v7986_v51, %v7974_v48 }
 0x623   :  { %v7997_v45 = vmax.f32 %v7987_v59, 0.0 }
 0x624   :  { %v8585_v44 = vpop.f32.mrf.mxu0 }
 0x625   :  { %v8005_v2 = vpack.c.bf16 %v7997_v45, %v7997_v45 }
 0x627   :  { %8621 = vmatmul.bf16.vlgmr.msrb.gmra.mxu3 %v8005_v2 }
 0x628   :  { %v7988_v16 = vpop.f32.mrf.mxu3  ;;  %v8598_v20 = vpop.f32.mrf.mxu1 }
 0x640   :  { %v8570_v18 = vpop.f32.mrf.mxu3 }
 0x641   :  { %v8571_v11 = vadd.f32 %v8570_v18, %v8558_v54 }
 0x643   :  { %v8584_v50 = vadd.f32 %v8583_v3, %v8571_v11 }
 0x645   :  { %v8597_v61 = vadd.f32 %v8596_v53, %v8584_v50 }
 0x648   :  { %v8572_v25 = vpop.f32.mrf.mxu3 }
 0x663   :  { %v8609_v21 = vpop.f32.mrf.mxu2 }
 0x664   :  { %v8610_v26 = vadd.f32 %v8609_v21, %v8597_v61 }
 0x66b   :  { %v8611_v30 = vpop.f32.mrf.mxu2 }
 0x6aa   :  { %v8622_v12 = vpop.f32.mrf.mxu3 }
 0x6ab   :  { %v8623_v47 = vadd.f32 %v8622_v12, %v8610_v26 }
 0x6ad   :  { %8626 = vst [vmem:[%s14712_s7] sm:$0xff] %v8623_v47 }
 0x6b2   :  { %v8624_v27 = vpop.f32.mrf.mxu3 }
 0x6b3   :  { %8631 = vsyncpa [#allocation3], 1 }
 0x6b4   :  { %8632 = vsyncpa [#allocation5], 1 }
 0x6b5   :  { %8633 = vsyncpa [#allocation8], 1 }
 0x6b6   :  { %8634 = vsyncpa [#allocation11], 1 }

</bundles_post_ra>
